<compile_context>
chip_gen: v7x
topology: tpu7x:2x2x1
jax: 0.10.0
libtpu: 0.0.40
codegen_flags: <defaults>
</compile_context>

<pallas_src>
import functools

import jax
import jax.numpy as jnp
from jax.experimental import pallas as pl
from jax.experimental.pallas import tpu as pltpu

LEAKY_SLOPE = 0.01      # nn.LeakyReLU default negative_slope
BN_EPS = 1e-5           # nn.BatchNorm2d default eps
LANE = 128              # TPU lane width; channel axes are zero-padded to a multiple
                        # of this (real ResNet widths 64..512 need little/no padding;
                        # for the toy 4/8-channel config the padded FLOPs are tiny).


def _round_up(x, m):
    return (x + m - 1) // m * m


def _nbytes(shape, dtype):
    n = 1
    for d in shape:
        n *= d
    return n * jnp.dtype(dtype).itemsize


def _leaky(y):
    # For 0 < slope < 1, max(y, slope*y) == LeakyReLU(y); one VALU max, no select.
    return jnp.maximum(y, LEAKY_SLOPE * y)


def _bn_train(acc, g_row, b_row, rows):
    """Training-mode BatchNorm on the f32 conv accumulator (rows, C).

    Single pass: sum and sum-of-squares reduced off one read of acc, biased
    variance like PyTorch's forward normalization.  Zero-padded channels give
    mean = var = 0 and gamma = beta = 0, i.e. exactly 0 output (no NaNs)."""
    inv_rows = 1.0 / rows
    sq = acc * acc
    s = jnp.sum(acc, axis=0, keepdims=True)
    ss = jnp.sum(sq, axis=0, keepdims=True)
    mean = s * inv_rows
    var = jnp.maximum(ss * inv_rows - mean * mean, 0.0)
    scale = jax.lax.rsqrt(var + BN_EPS) * g_row      # (1, C); rsqrt lands on the EUP
    return (acc - mean) * scale + b_row


def _conv_accumulate(src_ref, w_ref, kh, kw, hout, wout, rows, cin):
    """ky-split im2col conv: kh MXU matmuls of K = kw*cin each, accumulated in f32.

    src_ref is a spatially (halo-)padded NHWC ref in bf16; w_ref is the
    (kh*kw*cin, cout) bf16 im2col-packed weight.  Avoids materializing the full
    (rows, kh*kw*cin) patch (the dominant in-kernel buffer at real shapes)."""
    acc = None
    for ky in range(kh):
        taps = [src_ref[:, ky:ky + hout, kx:kx + wout, :].reshape(rows, cin)
                for kx in range(kw)]
        patch = jnp.concatenate(taps, axis=-1)                     # (rows, kw*cin) bf16
        wslab = w_ref[ky * kw * cin:(ky + 1) * kw * cin, :]        # (kw*cin, cout) bf16
        d = jnp.dot(patch, wslab, preferred_element_type=jnp.float32)
        acc = d if acc is None else acc + d
    return acc


def _basic_block_kernel(x_ref, wa_ref, ga_ref, ba_ref, w2_ref, g2_ref, b2_ref,
                        out_ref, hpad_ref, *, n, hout, wout, k1, cp, has_sc_conv):
    """One fused BasicBlock: conv1 (+ fused shortcut conv) + BN + LeakyReLU,
    conv2 + BN + residual + LeakyReLU.  All activations stay in VMEM.

      x_ref   : (n, hout+k1-1, wout+k1-1, cin_p)  spatially pre-padded input, bf16
      wa_ref  : (k1*k1*cin_p, cp or 2*cp) bf16 conv1 [|| shortcut] weights
      ga/ba   : (1, cp or 2*cp) f32 BN gamma/beta for conv1 [|| shortcut]
      w2_ref  : (9*cp, cp) bf16 conv2 weights; g2/b2: (1, cp) f32
      out_ref : (n, hout, wout, cp) bf16
      hpad_ref: (n, hout+2, wout+2, cp) bf16 VMEM scratch (halo-padded h for conv2)
    """
    rows = n * hout * wout
    cin_p = x_ref.shape[-1]

    # ---- conv1 (+ shortcut conv fused on the MXU N axis) -----------------------
    acc1 = _conv_accumulate(x_ref, wa_ref, k1, k1, hout, wout, rows, cin_p)
    bn1 = _bn_train(acc1, ga_ref[...], ba_ref[...], rows)          # (rows, cp|2cp) f32
    h = _leaky(bn1[:, :cp])
    if has_sc_conv:
        sc = bn1[:, cp:]                                            # BN, no activation
    else:
        # identity shortcut = interior of the spatially padded input (bf16 -> f32)
        sc = x_ref[:, 1:1 + hout, 1:1 + wout, :].reshape(rows, cp).astype(jnp.float32)

    # ---- conv2: halo-pad h in a bf16 VMEM scratch (h never goes back to HBM) ---
    # zero only the 1-pixel halo ring; the interior is fully overwritten below
    zdt = hpad_ref.dtype
    hpad_ref[:, 0:1, :, :] = jnp.zeros((n, 1, wout + 2, cp), zdt)
    hpad_ref[:, hout + 1:hout + 2, :, :] = jnp.zeros((n, 1, wout + 2, cp), zdt)
    hpad_ref[:, 1:1 + hout, 0:1, :] = jnp.zeros((n, hout, 1, cp), zdt)
    hpad_ref[:, 1:1 + hout, wout + 1:wout + 2, :] = jnp.zeros((n, hout, 1, cp), zdt)
    hpad_ref[:, 1:1 + hout, 1:1 + wout, :] = (
        h.reshape(n, hout, wout, cp).astype(zdt))

    acc2 = _conv_accumulate(hpad_ref, w2_ref, 3, 3, hout, wout, rows, cp)
    y = _bn_train(acc2, g2_ref[...], b2_ref[...], rows) + sc
    out_ref[...] = _leaky(y).reshape(n, hout, wout, cp).astype(out_ref.dtype)


# ------------------------------ host-side glue ---------------------------------

def _pad_channels(a, cp):
    c = a.shape[-1]
    if c == cp:
        return a
    return jnp.pad(a, [(0, 0)] * (a.ndim - 1) + [(0, cp - c)])


def _space_to_depth(x):
    n, h, w, c = x.shape
    assert h % 2 == 0 and w % 2 == 0, "space-to-depth stride-2 path needs even H, W"
    x = x.reshape(n, h // 2, 2, w // 2, 2, c)
    x = jnp.transpose(x, (0, 1, 3, 2, 4, 5))
    return x.reshape(n, h // 2, w // 2, 4 * c)


def _space_to_depth_weight(w):
    """(3,3,cin,cout) stride-2 conv weight -> (2,2,4*cin,cout) stride-1 conv weight
    acting on the space-to-depth input (taps falling outside the 3x3 window are 0)."""
    cin, cout = w.shape[2], w.shape[3]
    w4 = jnp.zeros((2, 2, 4, cin, cout), w.dtype)
    for a in (0, 1):
        for b in (0, 1):
            for sb in (0, 1):
                for sd in (0, 1):
                    ky, kx = 2 * a + sb - 1, 2 * b + sd - 1
                    if 0 <= ky < 3 and 0 <= kx < 3:
                        w4 = w4.at[a, b, sb * 2 + sd].set(w[ky, kx])
    return w4.reshape(2, 2, 4 * cin, cout)


def _prep_conv(w, gamma, beta, cin_p, cout_p):
    """Pad channel axes, flatten taps -> (kh*kw*cin_p, cout_p) bf16 (MXU operand);
    gamma/beta stay f32 as (1, cout_p) rows (broadcast once in the epilogue)."""
    kh, kw, cin, cout = w.shape
    w = jnp.pad(w, ((0, 0), (0, 0), (0, cin_p - cin), (0, cout_p - cout)))
    w = w.reshape(kh * kw * cin_p, cout_p).astype(jnp.bfloat16)
    g = _pad_channels(gamma.reshape(1, -1).astype(jnp.float32), cout_p)
    b = _pad_channels(beta.reshape(1, -1).astype(jnp.float32), cout_p)
    return w, g, b


def _full_spec(a):
    nd = a.ndim
    return pl.BlockSpec(a.shape, lambda i, nd=nd: (0,) * nd)


def basic_block_forward(x, p, stride):
    """x: (N, H, W, C_padded) NHWC bf16 (true channels first, zero-filled tail).
    Returns (N, Hout, Wout, cout_padded) bf16; one fused pallas_call per block."""
    n, h, w, c_cur = x.shape
    cout = p["w1"].shape[-1]
    cout_p = _round_up(cout, LANE)

    # match the conv-weight input-channel axis to the (possibly padded) activation
    def pad_cin(wt):
        return None if wt is None else jnp.pad(
            wt, ((0, 0), (0, 0), (0, c_cur - wt.shape[2]), (0, 0)))

    w1, ws = pad_cin(p["w1"]), pad_cin(p.get("ws"))

    if stride == 1:
        k1, hout, wout = 3, h, w
        x_in = x
        pad_spec = ((0, 0), (1, 1), (1, 1), (0, 0))
        assert _round_up(c_cur, LANE) == cout_p, "identity shortcut needs cin == cout"
    else:
        # stride-2 3x3 conv == stride-1 2x2 conv on the space-to-depth input
        k1, hout, wout = 2, h // 2, w // 2
        x_in = _space_to_depth(x)
        w1 = _space_to_depth_weight(w1)
        ws = _space_to_depth_weight(ws)
        pad_spec = ((0, 0), (1, 0), (1, 0), (0, 0))   # only top/left halo needed

    cin_p = _round_up(x_in.shape[-1], LANE)
    xpad = jnp.pad(_pad_channels(x_in, cin_p), pad_spec).astype(jnp.bfloat16)

    w1m, g1, b1 = _prep_conv(w1, p["g1"], p["b1"], cin_p, cout_p)
    w2m, g2, b2 = _prep_conv(p["w2"], p["g2"], p["b2"], cout_p, cout_p)

    if stride != 1:
        # fuse conv1 + shortcut conv along the MXU output (N) dimension: one pass of
        # patch1 through the MXU, 2*cp output columns (fills the 256-wide v6e/v7x MXU)
        wsm, gs, bs = _prep_conv(ws, p["gs"], p["bs"], cin_p, cout_p)
        wa = jnp.concatenate([w1m, wsm], axis=-1)
        ga = jnp.concatenate([g1, gs], axis=-1)
        ba = jnp.concatenate([b1, bs], axis=-1)
    else:
        wa, ga, ba = w1m, g1, b1

    inputs = [xpad, wa, ga, ba, w2m, g2, b2]
    out_shape = jax.ShapeDtypeStruct((n, hout, wout, cout_p), jnp.bfloat16)
    scratch_shape = (n, hout + 2, wout + 2, cout_p)

    # vmem budget derived from the actual footprint (inputs/outputs double-buffered
    # by the pipeline + bf16 scratch + in-kernel temporaries), clamped to sane bounds
    rows = n * hout * wout
    na = 2 * cout_p if stride != 1 else cout_p
    io_bytes = (sum(_nbytes(a.shape, a.dtype) for a in inputs)
                + _nbytes(out_shape.shape, out_shape.dtype))
    tmp_bytes = rows * (k1 * cin_p * 2 + 3 * cout_p * 2   # per-ky patch slabs (bf16)
                        + 2 * na * 4                      # acc1 + bn1 (f32)
                        + 3 * cout_p * 4)                 # h, sc, acc2 (f32)
    vmem_bytes = min(max(2 * io_bytes + _nbytes(scratch_shape, jnp.bfloat16)
                         + 2 * tmp_bytes, 32 * 1024 * 1024), 100 * 1024 * 1024)

    kernel = functools.partial(
        _basic_block_kernel, n=n, hout=hout, wout=wout, k1=k1, cp=cout_p,
        has_sc_conv=(stride != 1))

    # TODO(synk): once spatially tiled for real shapes, mark the leading grid axis
    # "parallel" so v7x's two TensorCores split the work.
    return pl.pallas_call(
        kernel,
        grid=(1,),
        in_specs=[_full_spec(a) for a in inputs],
        out_specs=pl.BlockSpec(out_shape.shape, lambda i: (0, 0, 0, 0)),
        out_shape=out_shape,
        scratch_shapes=[pltpu.VMEM(scratch_shape, jnp.bfloat16)],
        compiler_params=pltpu.CompilerParams(
            dimension_semantics=("arbitrary",),
            vmem_limit_bytes=int(vmem_bytes)),
    )(*inputs)


def resnet18_block_forward(x_nchw, params, strides):
    x = jnp.transpose(x_nchw, (0, 2, 3, 1)).astype(jnp.bfloat16)   # NCHW -> NHWC bf16
    for p, s in zip(params, strides):
        x = basic_block_forward(x, p, s)
    x = x[..., :params[-1]["w2"].shape[-1]]          # strip lane padding
    return jnp.transpose(x, (0, 3, 1, 2)).astype(jnp.float32)   # NHWC -> NCHW


def init_basic_block_params(key, cin, cout, stride):
    ks = jax.random.split(key, 9)
    p = {
        "w1": 0.1 * jax.random.normal(ks[0], (3, 3, cin, cout), jnp.float32),
        "g1": 1.0 + 0.1 * jax.random.normal(ks[1], (cout,), jnp.float32),
        "b1": 0.1 * jax.random.normal(ks[2], (cout,), jnp.float32),
        "w2": 0.1 * jax.random.normal(ks[3], (3, 3, cout, cout), jnp.float32),
        "g2": 1.0 + 0.1 * jax.random.normal(ks[4], (cout,), jnp.float32),
        "b2": 0.1 * jax.random.normal(ks[5], (cout,), jnp.float32),
    }
    if stride != 1:
        p["ws"] = 0.1 * jax.random.normal(ks[6], (3, 3, cin, cout), jnp.float32)
        p["gs"] = 1.0 + 0.1 * jax.random.normal(ks[7], (cout,), jnp.float32)
        p["bs"] = 0.1 * jax.random.normal(ks[8], (cout,), jnp.float32)
    return p


if __name__ == "__main__":
    # cfg = (in_channels, out_channels, strides) as consumed by _make_layer
    cfg = (4, 8, (2, 1))
    cin, cout, strides = cfg

    key = jax.random.PRNGKey(0)
    kx, *pkeys = jax.random.split(key, 1 + len(strides))

    params = []
    cur = cin
    for pk, s in zip(pkeys, strides):
        params.append(init_basic_block_params(pk, cur, cout, s))
        cur = cout

    x = jax.random.normal(kx, (2, cin, 16, 16), jnp.float32)   # NCHW input

    fwd = jax.jit(functools.partial(resnet18_block_forward, strides=strides))
    out = fwd(x, params)
    jax.block_until_ready(out)
    assert out.shape == (2, cout, 8, 8), out.shape
    assert bool(jnp.all(jnp.isfinite(out)))
    print("KERNEL_OK")
</pallas_src>

<mosaic_0001>
module attributes {stable_mosaic.version = 11 : i64} {
  func.func @_basic_block_kernel(%arg0: i32, %arg1: memref<2x10x10x128xbf16, #tpu.memory_space<vmem>>, %arg2: memref<1152x128xbf16, #tpu.memory_space<vmem>>, %arg3: memref<1x128xf32, #tpu.memory_space<vmem>>, %arg4: memref<1x128xf32, #tpu.memory_space<vmem>>, %arg5: memref<1152x128xbf16, #tpu.memory_space<vmem>>, %arg6: memref<1x128xf32, #tpu.memory_space<vmem>>, %arg7: memref<1x128xf32, #tpu.memory_space<vmem>>, %arg8: memref<2x8x8x128xbf16, #tpu.memory_space<vmem>>, %arg9: memref<2x10x10x128xbf16, #tpu.memory_space<vmem>>) attributes {dimension_semantics = [#tpu.dimension_semantics<arbitrary>], iteration_bounds = array<i64: 1>, scalar_prefetch = 0 : i64, scratch_operands = 1 : i64, tpu.core_type = #tpu.core_type<tc>, window_params = [{pipeline_mode = #tpu.pipeline_mode<synchronous>, transform_indices = @transform_0, window_bounds = array<i64: 2, 10, 10, 128>}, {pipeline_mode = #tpu.pipeline_mode<synchronous>, transform_indices = @transform_1, window_bounds = array<i64: 1152, 128>}, {pipeline_mode = #tpu.pipeline_mode<synchronous>, transform_indices = @transform_2, window_bounds = array<i64: 1, 128>}, {pipeline_mode = #tpu.pipeline_mode<synchronous>, transform_indices = @transform_3, window_bounds = array<i64: 1, 128>}, {pipeline_mode = #tpu.pipeline_mode<synchronous>, transform_indices = @transform_4, window_bounds = array<i64: 1152, 128>}, {pipeline_mode = #tpu.pipeline_mode<synchronous>, transform_indices = @transform_5, window_bounds = array<i64: 1, 128>}, {pipeline_mode = #tpu.pipeline_mode<synchronous>, transform_indices = @transform_6, window_bounds = array<i64: 1, 128>}, {pipeline_mode = #tpu.pipeline_mode<synchronous>, transform_indices = @transform_7, window_bounds = array<i64: 2, 8, 8, 128>}]} {
    %c0 = arith.constant 0 : index
    %c0_0 = arith.constant 0 : index
    %c0_1 = arith.constant 0 : index
    %c0_2 = arith.constant 0 : index
    %0 = vector.load %arg1[%c0, %c0_0, %c0_1, %c0_2] : memref<2x10x10x128xbf16, #tpu.memory_space<vmem>>, vector<2x8x8x128xbf16>
    %1 = vector.shape_cast %0 : vector<2x8x8x128xbf16> to vector<128x128xbf16>
    %c0_3 = arith.constant 0 : index
    %c0_4 = arith.constant 0 : index
    %c1 = arith.constant 1 : index
    %c0_5 = arith.constant 0 : index
    %2 = vector.load %arg1[%c0_3, %c0_4, %c1, %c0_5] : memref<2x10x10x128xbf16, #tpu.memory_space<vmem>>, vector<2x8x8x128xbf16>
    %3 = vector.shape_cast %2 : vector<2x8x8x128xbf16> to vector<128x128xbf16>
    %c0_6 = arith.constant 0 : index
    %c0_7 = arith.constant 0 : index
    %c2 = arith.constant 2 : index
    %c0_8 = arith.constant 0 : index
    %4 = vector.load %arg1[%c0_6, %c0_7, %c2, %c0_8] : memref<2x10x10x128xbf16, #tpu.memory_space<vmem>>, vector<2x8x8x128xbf16>
    %5 = vector.shape_cast %4 : vector<2x8x8x128xbf16> to vector<128x128xbf16>
    %6 = tpu.concatenate %1, %3, %5 in 1 : vector<128x128xbf16>, vector<128x128xbf16>, vector<128x128xbf16> -> vector<128x384xbf16>
    %c0_9 = arith.constant 0 : index
    %c0_10 = arith.constant 0 : index
    %7 = vector.load %arg2[%c0_9, %c0_10] : memref<1152x128xbf16, #tpu.memory_space<vmem>>, vector<384x128xbf16>
    %cst = arith.constant dense<0.000000e+00> : vector<128x128xf32>
    %8 = tpu.matmul %6, %7, %cst {dimension_numbers = #tpu.dot_dimension_numbers<[1], [0], [0], [1], [0, 0, 1, 1], [], []>} : vector<128x384xbf16>, vector<384x128xbf16>, vector<128x128xf32> -> vector<128x128xf32>
    %c0_11 = arith.constant 0 : index
    %c1_12 = arith.constant 1 : index
    %c0_13 = arith.constant 0 : index
    %c0_14 = arith.constant 0 : index
    %9 = vector.load %arg1[%c0_11, %c1_12, %c0_13, %c0_14] : memref<2x10x10x128xbf16, #tpu.memory_space<vmem>>, vector<2x8x8x128xbf16>
    %10 = vector.shape_cast %9 : vector<2x8x8x128xbf16> to vector<128x128xbf16>
    %c0_15 = arith.constant 0 : index
    %c1_16 = arith.constant 1 : index
    %c1_17 = arith.constant 1 : index
    %c0_18 = arith.constant 0 : index
    %11 = vector.load %arg1[%c0_15, %c1_16, %c1_17, %c0_18] : memref<2x10x10x128xbf16, #tpu.memory_space<vmem>>, vector<2x8x8x128xbf16>
    %12 = vector.shape_cast %11 : vector<2x8x8x128xbf16> to vector<128x128xbf16>
    %c0_19 = arith.constant 0 : index
    %c1_20 = arith.constant 1 : index
    %c2_21 = arith.constant 2 : index
    %c0_22 = arith.constant 0 : index
    %13 = vector.load %arg1[%c0_19, %c1_20, %c2_21, %c0_22] : memref<2x10x10x128xbf16, #tpu.memory_space<vmem>>, vector<2x8x8x128xbf16>
    %14 = vector.shape_cast %13 : vector<2x8x8x128xbf16> to vector<128x128xbf16>
    %15 = tpu.concatenate %10, %12, %14 in 1 : vector<128x128xbf16>, vector<128x128xbf16>, vector<128x128xbf16> -> vector<128x384xbf16>
    %c384 = arith.constant 384 : index
    %c0_23 = arith.constant 0 : index
    %16 = vector.load %arg2[%c384, %c0_23] : memref<1152x128xbf16, #tpu.memory_space<vmem>>, vector<384x128xbf16>
    %cst_24 = arith.constant dense<0.000000e+00> : vector<128x128xf32>
    %17 = tpu.matmul %15, %16, %cst_24 {dimension_numbers = #tpu.dot_dimension_numbers<[1], [0], [0], [1], [0, 0, 1, 1], [], []>} : vector<128x384xbf16>, vector<384x128xbf16>, vector<128x128xf32> -> vector<128x128xf32>
    %18 = arith.addf %8, %17 : vector<128x128xf32>
    %c0_25 = arith.constant 0 : index
    %c2_26 = arith.constant 2 : index
    %c0_27 = arith.constant 0 : index
    %c0_28 = arith.constant 0 : index
    %19 = vector.load %arg1[%c0_25, %c2_26, %c0_27, %c0_28] : memref<2x10x10x128xbf16, #tpu.memory_space<vmem>>, vector<2x8x8x128xbf16>
    %20 = vector.shape_cast %19 : vector<2x8x8x128xbf16> to vector<128x128xbf16>
    %c0_29 = arith.constant 0 : index
    %c2_30 = arith.constant 2 : index
    %c1_31 = arith.constant 1 : index
    %c0_32 = arith.constant 0 : index
    %21 = vector.load %arg1[%c0_29, %c2_30, %c1_31, %c0_32] : memref<2x10x10x128xbf16, #tpu.memory_space<vmem>>, vector<2x8x8x128xbf16>
    %22 = vector.shape_cast %21 : vector<2x8x8x128xbf16> to vector<128x128xbf16>
    %c0_33 = arith.constant 0 : index
    %c2_34 = arith.constant 2 : index
    %c2_35 = arith.constant 2 : index
    %c0_36 = arith.constant 0 : index
    %23 = vector.load %arg1[%c0_33, %c2_34, %c2_35, %c0_36] : memref<2x10x10x128xbf16, #tpu.memory_space<vmem>>, vector<2x8x8x128xbf16>
    %24 = vector.shape_cast %23 : vector<2x8x8x128xbf16> to vector<128x128xbf16>
    %25 = tpu.concatenate %20, %22, %24 in 1 : vector<128x128xbf16>, vector<128x128xbf16>, vector<128x128xbf16> -> vector<128x384xbf16>
    %c768 = arith.constant 768 : index
    %c0_37 = arith.constant 0 : index
    %26 = vector.load %arg2[%c768, %c0_37] : memref<1152x128xbf16, #tpu.memory_space<vmem>>, vector<384x128xbf16>
    %cst_38 = arith.constant dense<0.000000e+00> : vector<128x128xf32>
    %27 = tpu.matmul %25, %26, %cst_38 {dimension_numbers = #tpu.dot_dimension_numbers<[1], [0], [0], [1], [0, 0, 1, 1], [], []>} : vector<128x384xbf16>, vector<384x128xbf16>, vector<128x128xf32> -> vector<128x128xf32>
    %28 = arith.addf %18, %27 : vector<128x128xf32>
    %c0_39 = arith.constant 0 : index
    %c0_40 = arith.constant 0 : index
    %29 = vector.load %arg3[%c0_39, %c0_40] : memref<1x128xf32, #tpu.memory_space<vmem>>, vector<1x128xf32>
    %c0_41 = arith.constant 0 : index
    %c0_42 = arith.constant 0 : index
    %30 = vector.load %arg4[%c0_41, %c0_42] : memref<1x128xf32, #tpu.memory_space<vmem>>, vector<1x128xf32>
    %31 = arith.mulf %28, %28 : vector<128x128xf32>
    %cst_43 = arith.constant dense<0.000000e+00> : vector<128xf32>
    %32 = vector.multi_reduction <add>, %28, %cst_43 [0] : vector<128x128xf32> to vector<128xf32>
    %33 = vector.shape_cast %32 : vector<128xf32> to vector<1x128xf32>
    %cst_44 = arith.constant dense<0.000000e+00> : vector<128xf32>
    %34 = vector.multi_reduction <add>, %31, %cst_44 [0] : vector<128x128xf32> to vector<128xf32>
    %35 = vector.shape_cast %34 : vector<128xf32> to vector<1x128xf32>
    %cst_45 = arith.constant 7.812500e-03 : f32
    %36 = vector.broadcast %cst_45 : f32 to vector<1x128xf32>
    %37 = arith.mulf %33, %36 : vector<1x128xf32>
    %cst_46 = arith.constant 7.812500e-03 : f32
    %38 = vector.broadcast %cst_46 : f32 to vector<1x128xf32>
    %39 = arith.mulf %35, %38 : vector<1x128xf32>
    %40 = arith.mulf %37, %37 : vector<1x128xf32>
    %41 = arith.subf %39, %40 : vector<1x128xf32>
    %cst_47 = arith.constant 0.000000e+00 : f32
    %42 = vector.broadcast %cst_47 : f32 to vector<1x128xf32>
    %43 = arith.maximumf %41, %42 : vector<1x128xf32>
    %cst_48 = arith.constant 9.99999974E-6 : f32
    %44 = vector.broadcast %cst_48 : f32 to vector<1x128xf32>
    %45 = arith.addf %43, %44 : vector<1x128xf32>
    %46 = math.rsqrt %45 : vector<1x128xf32>
    %47 = arith.mulf %46, %29 : vector<1x128xf32>
    %48 = vector.broadcast %37 : vector<1x128xf32> to vector<128x128xf32>
    %49 = arith.subf %28, %48 : vector<128x128xf32>
    %50 = vector.broadcast %47 : vector<1x128xf32> to vector<128x128xf32>
    %51 = arith.mulf %49, %50 : vector<128x128xf32>
    %52 = vector.broadcast %30 : vector<1x128xf32> to vector<128x128xf32>
    %53 = arith.addf %51, %52 : vector<128x128xf32>
    %cst_49 = arith.constant 0.00999999977 : f32
    %54 = vector.broadcast %cst_49 : f32 to vector<128x128xf32>
    %55 = arith.mulf %54, %53 : vector<128x128xf32>
    %56 = arith.maximumf %53, %55 : vector<128x128xf32>
    %c0_50 = arith.constant 0 : index
    %c1_51 = arith.constant 1 : index
    %c1_52 = arith.constant 1 : index
    %c0_53 = arith.constant 0 : index
    %57 = vector.load %arg1[%c0_50, %c1_51, %c1_52, %c0_53] : memref<2x10x10x128xbf16, #tpu.memory_space<vmem>>, vector<2x8x8x128xbf16>
    %58 = vector.shape_cast %57 : vector<2x8x8x128xbf16> to vector<128x128xbf16>
    %59 = arith.extf %58 : vector<128x128xbf16> to vector<128x128xf32>
    %cst_54 = arith.constant 0.000000e+00 : bf16
    %60 = vector.broadcast %cst_54 : bf16 to vector<2x1x10x128xbf16>
    %c0_55 = arith.constant 0 : index
    %c0_56 = arith.constant 0 : index
    %c0_57 = arith.constant 0 : index
    %c0_58 = arith.constant 0 : index
    %61 = vector.load %arg9[%c0_55, %c0_56, %c0_57, %c0_58] : memref<2x10x10x128xbf16, #tpu.memory_space<vmem>>, vector<2x1x10x128xbf16>
    tpu.vector_store %arg9[%c0_55, %c0_56, %c0_57, %c0_58], %60 {strides = array<i32>} : memref<2x10x10x128xbf16, #tpu.memory_space<vmem>>, vector<2x1x10x128xbf16>,
    %cst_59 = arith.constant 0.000000e+00 : bf16
    %62 = vector.broadcast %cst_59 : bf16 to vector<2x1x10x128xbf16>
    %c0_60 = arith.constant 0 : index
    %c9 = arith.constant 9 : index
    %c0_61 = arith.constant 0 : index
    %c0_62 = arith.constant 0 : index
    %63 = vector.load %arg9[%c0_60, %c9, %c0_61, %c0_62] : memref<2x10x10x128xbf16, #tpu.memory_space<vmem>>, vector<2x1x10x128xbf16>
    tpu.vector_store %arg9[%c0_60, %c9, %c0_61, %c0_62], %62 {strides = array<i32>} : memref<2x10x10x128xbf16, #tpu.memory_space<vmem>>, vector<2x1x10x128xbf16>,
    %cst_63 = arith.constant 0.000000e+00 : bf16
    %64 = vector.broadcast %cst_63 : bf16 to vector<2x8x1x128xbf16>
    %c0_64 = arith.constant 0 : index
    %c1_65 = arith.constant 1 : index
    %c0_66 = arith.constant 0 : index
    %c0_67 = arith.constant 0 : index
    %65 = vector.load %arg9[%c0_64, %c1_65, %c0_66, %c0_67] : memref<2x10x10x128xbf16, #tpu.memory_space<vmem>>, vector<2x8x1x128xbf16>
    tpu.vector_store %arg9[%c0_64, %c1_65, %c0_66, %c0_67], %64 {strides = array<i32>} : memref<2x10x10x128xbf16, #tpu.memory_space<vmem>>, vector<2x8x1x128xbf16>,
    %cst_68 = arith.constant 0.000000e+00 : bf16
    %66 = vector.broadcast %cst_68 : bf16 to vector<2x8x1x128xbf16>
    %c0_69 = arith.constant 0 : index
    %c1_70 = arith.constant 1 : index
    %c9_71 = arith.constant 9 : index
    %c0_72 = arith.constant 0 : index
    %67 = vector.load %arg9[%c0_69, %c1_70, %c9_71, %c0_72] : memref<2x10x10x128xbf16, #tpu.memory_space<vmem>>, vector<2x8x1x128xbf16>
    tpu.vector_store %arg9[%c0_69, %c1_70, %c9_71, %c0_72], %66 {strides = array<i32>} : memref<2x10x10x128xbf16, #tpu.memory_space<vmem>>, vector<2x8x1x128xbf16>,
    %68 = vector.shape_cast %56 : vector<128x128xf32> to vector<2x8x8x128xf32>
    %69 = arith.truncf %68 : vector<2x8x8x128xf32> to vector<2x8x8x128xbf16>
    %c0_73 = arith.constant 0 : index
    %c1_74 = arith.constant 1 : index
    %c1_75 = arith.constant 1 : index
    %c0_76 = arith.constant 0 : index
    %70 = vector.load %arg9[%c0_73, %c1_74, %c1_75, %c0_76] : memref<2x10x10x128xbf16, #tpu.memory_space<vmem>>, vector<2x8x8x128xbf16>
    tpu.vector_store %arg9[%c0_73, %c1_74, %c1_75, %c0_76], %69 {strides = array<i32>} : memref<2x10x10x128xbf16, #tpu.memory_space<vmem>>, vector<2x8x8x128xbf16>,
    %c0_77 = arith.constant 0 : index
    %c0_78 = arith.constant 0 : index
    %c0_79 = arith.constant 0 : index
    %c0_80 = arith.constant 0 : index
    %71 = vector.load %arg9[%c0_77, %c0_78, %c0_79, %c0_80] : memref<2x10x10x128xbf16, #tpu.memory_space<vmem>>, vector<2x8x8x128xbf16>
    %72 = vector.shape_cast %71 : vector<2x8x8x128xbf16> to vector<128x128xbf16>
    %c0_81 = arith.constant 0 : index
    %c0_82 = arith.constant 0 : index
    %c1_83 = arith.constant 1 : index
    %c0_84 = arith.constant 0 : index
    %73 = vector.load %arg9[%c0_81, %c0_82, %c1_83, %c0_84] : memref<2x10x10x128xbf16, #tpu.memory_space<vmem>>, vector<2x8x8x128xbf16>
    %74 = vector.shape_cast %73 : vector<2x8x8x128xbf16> to vector<128x128xbf16>
    %c0_85 = arith.constant 0 : index
    %c0_86 = arith.constant 0 : index
    %c2_87 = arith.constant 2 : index
    %c0_88 = arith.constant 0 : index
    %75 = vector.load %arg9[%c0_85, %c0_86, %c2_87, %c0_88] : memref<2x10x10x128xbf16, #tpu.memory_space<vmem>>, vector<2x8x8x128xbf16>
    %76 = vector.shape_cast %75 : vector<2x8x8x128xbf16> to vector<128x128xbf16>
    %77 = tpu.concatenate %72, %74, %76 in 1 : vector<128x128xbf16>, vector<128x128xbf16>, vector<128x128xbf16> -> vector<128x384xbf16>
    %c0_89 = arith.constant 0 : index
    %c0_90 = arith.constant 0 : index
    %78 = vector.load %arg5[%c0_89, %c0_90] : memref<1152x128xbf16, #tpu.memory_space<vmem>>, vector<384x128xbf16>
    %cst_91 = arith.constant dense<0.000000e+00> : vector<128x128xf32>
    %79 = tpu.matmul %77, %78, %cst_91 {dimension_numbers = #tpu.dot_dimension_numbers<[1], [0], [0], [1], [0, 0, 1, 1], [], []>} : vector<128x384xbf16>, vector<384x128xbf16>, vector<128x128xf32> -> vector<128x128xf32>
    %c0_92 = arith.constant 0 : index
    %c1_93 = arith.constant 1 : index
    %c0_94 = arith.constant 0 : index
    %c0_95 = arith.constant 0 : index
    %80 = vector.load %arg9[%c0_92, %c1_93, %c0_94, %c0_95] : memref<2x10x10x128xbf16, #tpu.memory_space<vmem>>, vector<2x8x8x128xbf16>
    %81 = vector.shape_cast %80 : vector<2x8x8x128xbf16> to vector<128x128xbf16>
    %c0_96 = arith.constant 0 : index
    %c1_97 = arith.constant 1 : index
    %c1_98 = arith.constant 1 : index
    %c0_99 = arith.constant 0 : index
    %82 = vector.load %arg9[%c0_96, %c1_97, %c1_98, %c0_99] : memref<2x10x10x128xbf16, #tpu.memory_space<vmem>>, vector<2x8x8x128xbf16>
    %83 = vector.shape_cast %82 : vector<2x8x8x128xbf16> to vector<128x128xbf16>
    %c0_100 = arith.constant 0 : index
    %c1_101 = arith.constant 1 : index
    %c2_102 = arith.constant 2 : index
    %c0_103 = arith.constant 0 : index
    %84 = vector.load %arg9[%c0_100, %c1_101, %c2_102, %c0_103] : memref<2x10x10x128xbf16, #tpu.memory_space<vmem>>, vector<2x8x8x128xbf16>
    %85 = vector.shape_cast %84 : vector<2x8x8x128xbf16> to vector<128x128xbf16>
    %86 = tpu.concatenate %81, %83, %85 in 1 : vector<128x128xbf16>, vector<128x128xbf16>, vector<128x128xbf16> -> vector<128x384xbf16>
    %c384_104 = arith.constant 384 : index
    %c0_105 = arith.constant 0 : index
    %87 = vector.load %arg5[%c384_104, %c0_105] : memref<1152x128xbf16, #tpu.memory_space<vmem>>, vector<384x128xbf16>
    %cst_106 = arith.constant dense<0.000000e+00> : vector<128x128xf32>
    %88 = tpu.matmul %86, %87, %cst_106 {dimension_numbers = #tpu.dot_dimension_numbers<[1], [0], [0], [1], [0, 0, 1, 1], [], []>} : vector<128x384xbf16>, vector<384x128xbf16>, vector<128x128xf32> -> vector<128x128xf32>
    %89 = arith.addf %79, %88 : vector<128x128xf32>
    %c0_107 = arith.constant 0 : index
    %c2_108 = arith.constant 2 : index
    %c0_109 = arith.constant 0 : index
    %c0_110 = arith.constant 0 : index
    %90 = vector.load %arg9[%c0_107, %c2_108, %c0_109, %c0_110] : memref<2x10x10x128xbf16, #tpu.memory_space<vmem>>, vector<2x8x8x128xbf16>
    %91 = vector.shape_cast %90 : vector<2x8x8x128xbf16> to vector<128x128xbf16>
    %c0_111 = arith.constant 0 : index
    %c2_112 = arith.constant 2 : index
    %c1_113 = arith.constant 1 : index
    %c0_114 = arith.constant 0 : index
    %92 = vector.load %arg9[%c0_111, %c2_112, %c1_113, %c0_114] : memref<2x10x10x128xbf16, #tpu.memory_space<vmem>>, vector<2x8x8x128xbf16>
    %93 = vector.shape_cast %92 : vector<2x8x8x128xbf16> to vector<128x128xbf16>
    %c0_115 = arith.constant 0 : index
    %c2_116 = arith.constant 2 : index
    %c2_117 = arith.constant 2 : index
    %c0_118 = arith.constant 0 : index
    %94 = vector.load %arg9[%c0_115, %c2_116, %c2_117, %c0_118] : memref<2x10x10x128xbf16, #tpu.memory_space<vmem>>, vector<2x8x8x128xbf16>
    %95 = vector.shape_cast %94 : vector<2x8x8x128xbf16> to vector<128x128xbf16>
    %96 = tpu.concatenate %91, %93, %95 in 1 : vector<128x128xbf16>, vector<128x128xbf16>, vector<128x128xbf16> -> vector<128x384xbf16>
    %c768_119 = arith.constant 768 : index
    %c0_120 = arith.constant 0 : index
    %97 = vector.load %arg5[%c768_119, %c0_120] : memref<1152x128xbf16, #tpu.memory_space<vmem>>, vector<384x128xbf16>
    %cst_121 = arith.constant dense<0.000000e+00> : vector<128x128xf32>
    %98 = tpu.matmul %96, %97, %cst_121 {dimension_numbers = #tpu.dot_dimension_numbers<[1], [0], [0], [1], [0, 0, 1, 1], [], []>} : vector<128x384xbf16>, vector<384x128xbf16>, vector<128x128xf32> -> vector<128x128xf32>
    %99 = arith.addf %89, %98 : vector<128x128xf32>
    %c0_122 = arith.constant 0 : index
    %c0_123 = arith.constant 0 : index
    %100 = vector.load %arg6[%c0_122, %c0_123] : memref<1x128xf32, #tpu.memory_space<vmem>>, vector<1x128xf32>
    %c0_124 = arith.constant 0 : index
    %c0_125 = arith.constant 0 : index
    %101 = vector.load %arg7[%c0_124, %c0_125] : memref<1x128xf32, #tpu.memory_space<vmem>>, vector<1x128xf32>
    %102 = arith.mulf %99, %99 : vector<128x128xf32>
    %cst_126 = arith.constant dense<0.000000e+00> : vector<128xf32>
    %103 = vector.multi_reduction <add>, %99, %cst_126 [0] : vector<128x128xf32> to vector<128xf32>
    %104 = vector.shape_cast %103 : vector<128xf32> to vector<1x128xf32>
    %cst_127 = arith.constant dense<0.000000e+00> : vector<128xf32>
    %105 = vector.multi_reduction <add>, %102, %cst_127 [0] : vector<128x128xf32> to vector<128xf32>
    %106 = vector.shape_cast %105 : vector<128xf32> to vector<1x128xf32>
    %cst_128 = arith.constant 7.812500e-03 : f32
    %107 = vector.broadcast %cst_128 : f32 to vector<1x128xf32>
    %108 = arith.mulf %104, %107 : vector<1x128xf32>
    %cst_129 = arith.constant 7.812500e-03 : f32
    %109 = vector.broadcast %cst_129 : f32 to vector<1x128xf32>
    %110 = arith.mulf %106, %109 : vector<1x128xf32>
    %111 = arith.mulf %108, %108 : vector<1x128xf32>
    %112 = arith.subf %110, %111 : vector<1x128xf32>
    %cst_130 = arith.constant 0.000000e+00 : f32
    %113 = vector.broadcast %cst_130 : f32 to vector<1x128xf32>
    %114 = arith.maximumf %112, %113 : vector<1x128xf32>
    %cst_131 = arith.constant 9.99999974E-6 : f32
    %115 = vector.broadcast %cst_131 : f32 to vector<1x128xf32>
    %116 = arith.addf %114, %115 : vector<1x128xf32>
    %117 = math.rsqrt %116 : vector<1x128xf32>
    %118 = arith.mulf %117, %100 : vector<1x128xf32>
    %119 = vector.broadcast %108 : vector<1x128xf32> to vector<128x128xf32>
    %120 = arith.subf %99, %119 : vector<128x128xf32>
    %121 = vector.broadcast %118 : vector<1x128xf32> to vector<128x128xf32>
    %122 = arith.mulf %120, %121 : vector<128x128xf32>
    %123 = vector.broadcast %101 : vector<1x128xf32> to vector<128x128xf32>
    %124 = arith.addf %122, %123 : vector<128x128xf32>
    %125 = arith.addf %124, %59 : vector<128x128xf32>
    %cst_132 = arith.constant 0.00999999977 : f32
    %126 = vector.broadcast %cst_132 : f32 to vector<128x128xf32>
    %127 = arith.mulf %126, %125 : vector<128x128xf32>
    %128 = arith.maximumf %125, %127 : vector<128x128xf32>
    %129 = vector.shape_cast %128 : vector<128x128xf32> to vector<2x8x8x128xf32>
    %130 = arith.truncf %129 : vector<2x8x8x128xf32> to vector<2x8x8x128xbf16>
    %c0_133 = arith.constant 0 : index
    %c0_134 = arith.constant 0 : index
    %c0_135 = arith.constant 0 : index
    %c0_136 = arith.constant 0 : index
    %131 = vector.load %arg8[%c0_133, %c0_134, %c0_135, %c0_136] : memref<2x8x8x128xbf16, #tpu.memory_space<vmem>>, vector<2x8x8x128xbf16>
    tpu.vector_store %arg8[%c0_133, %c0_134, %c0_135, %c0_136], %130 {strides = array<i32>} : memref<2x8x8x128xbf16, #tpu.memory_space<vmem>>, vector<2x8x8x128xbf16>,
    return
  }
  func.func @transform_0(%arg0: i32) -> (i32, i32, i32, i32) {
    %c0_i32 = arith.constant 0 : i32
    %c0_i32_0 = arith.constant 0 : i32
    %c0_i32_1 = arith.constant 0 : i32
    %c0_i32_2 = arith.constant 0 : i32
    %c0_i32_3 = arith.constant 0 : i32
    return %c0_i32, %c0_i32_0, %c0_i32_1, %c0_i32_2 : i32, i32, i32, i32
  }
  func.func @transform_1(%arg0: i32) -> (i32, i32) {
    %c0_i32 = arith.constant 0 : i32
    %c0_i32_0 = arith.constant 0 : i32
    %c0_i32_1 = arith.constant 0 : i32
    return %c0_i32, %c0_i32_0 : i32, i32
  }
  func.func @transform_2(%arg0: i32) -> (i32, i32) {
    %c0_i32 = arith.constant 0 : i32
    %c0_i32_0 = arith.constant 0 : i32
    %c0_i32_1 = arith.constant 0 : i32
    return %c0_i32, %c0_i32_0 : i32, i32
  }
  func.func @transform_3(%arg0: i32) -> (i32, i32) {
    %c0_i32 = arith.constant 0 : i32
    %c0_i32_0 = arith.constant 0 : i32
    %c0_i32_1 = arith.constant 0 : i32
    return %c0_i32, %c0_i32_0 : i32, i32
  }
  func.func @transform_4(%arg0: i32) -> (i32, i32) {
    %c0_i32 = arith.constant 0 : i32
    %c0_i32_0 = arith.constant 0 : i32
    %c0_i32_1 = arith.constant 0 : i32
    return %c0_i32, %c0_i32_0 : i32, i32
  }
  func.func @transform_5(%arg0: i32) -> (i32, i32) {
    %c0_i32 = arith.constant 0 : i32
    %c0_i32_0 = arith.constant 0 : i32
    %c0_i32_1 = arith.constant 0 : i32
    return %c0_i32, %c0_i32_0 : i32, i32
  }
  func.func @transform_6(%arg0: i32) -> (i32, i32) {
    %c0_i32 = arith.constant 0 : i32
    %c0_i32_0 = arith.constant 0 : i32
    %c0_i32_1 = arith.constant 0 : i32
    return %c0_i32, %c0_i32_0 : i32, i32
  }
  func.func @transform_7(%arg0: i32) -> (i32, i32, i32, i32) {
    %c0_i32 = arith.constant 0 : i32
    %c0_i32_0 = arith.constant 0 : i32
    %c0_i32_1 = arith.constant 0 : i32
    %c0_i32_2 = arith.constant 0 : i32
    %c0_i32_3 = arith.constant 0 : i32
    return %c0_i32, %c0_i32_0, %c0_i32_1, %c0_i32_2 : i32, i32, i32, i32
  }
}

module attributes {stable_mosaic.version = 11 : i64} {
  func.func @_basic_block_kernel(%arg0: i32, %arg1: memref<2x9x9x128xbf16, #tpu.memory_space<vmem>>, %arg2: memref<512x256xbf16, #tpu.memory_space<vmem>>, %arg3: memref<1x256xf32, #tpu.memory_space<vmem>>, %arg4: memref<1x256xf32, #tpu.memory_space<vmem>>, %arg5: memref<1152x128xbf16, #tpu.memory_space<vmem>>, %arg6: memref<1x128xf32, #tpu.memory_space<vmem>>, %arg7: memref<1x128xf32, #tpu.memory_space<vmem>>, %arg8: memref<2x8x8x128xbf16, #tpu.memory_space<vmem>>, %arg9: memref<2x10x10x128xbf16, #tpu.memory_space<vmem>>) attributes {dimension_semantics = [#tpu.dimension_semantics<arbitrary>], iteration_bounds = array<i64: 1>, scalar_prefetch = 0 : i64, scratch_operands = 1 : i64, tpu.core_type = #tpu.core_type<tc>, window_params = [{pipeline_mode = #tpu.pipeline_mode<synchronous>, transform_indices = @transform_0, window_bounds = array<i64: 2, 9, 9, 128>}, {pipeline_mode = #tpu.pipeline_mode<synchronous>, transform_indices = @transform_1, window_bounds = array<i64: 512, 256>}, {pipeline_mode = #tpu.pipeline_mode<synchronous>, transform_indices = @transform_2, window_bounds = array<i64: 1, 256>}, {pipeline_mode = #tpu.pipeline_mode<synchronous>, transform_indices = @transform_3, window_bounds = array<i64: 1, 256>}, {pipeline_mode = #tpu.pipeline_mode<synchronous>, transform_indices = @transform_4, window_bounds = array<i64: 1152, 128>}, {pipeline_mode = #tpu.pipeline_mode<synchronous>, transform_indices = @transform_5, window_bounds = array<i64: 1, 128>}, {pipeline_mode = #tpu.pipeline_mode<synchronous>, transform_indices = @transform_6, window_bounds = array<i64: 1, 128>}, {pipeline_mode = #tpu.pipeline_mode<synchronous>, transform_indices = @transform_7, window_bounds = array<i64: 2, 8, 8, 128>}]} {
    %c0 = arith.constant 0 : index
    %c0_0 = arith.constant 0 : index
    %c0_1 = arith.constant 0 : index
    %c0_2 = arith.constant 0 : index
    %0 = vector.load %arg1[%c0, %c0_0, %c0_1, %c0_2] : memref<2x9x9x128xbf16, #tpu.memory_space<vmem>>, vector<2x8x8x128xbf16>
    %1 = vector.shape_cast %0 : vector<2x8x8x128xbf16> to vector<128x128xbf16>
    %c0_3 = arith.constant 0 : index
    %c0_4 = arith.constant 0 : index
    %c1 = arith.constant 1 : index
    %c0_5 = arith.constant 0 : index
    %2 = vector.load %arg1[%c0_3, %c0_4, %c1, %c0_5] : memref<2x9x9x128xbf16, #tpu.memory_space<vmem>>, vector<2x8x8x128xbf16>
    %3 = vector.shape_cast %2 : vector<2x8x8x128xbf16> to vector<128x128xbf16>
    %4 = tpu.concatenate %1, %3 in 1 : vector<128x128xbf16>, vector<128x128xbf16> -> vector<128x256xbf16>
    %c0_6 = arith.constant 0 : index
    %c0_7 = arith.constant 0 : index
    %5 = vector.load %arg2[%c0_6, %c0_7] : memref<512x256xbf16, #tpu.memory_space<vmem>>, vector<256x256xbf16>
    %cst = arith.constant dense<0.000000e+00> : vector<128x256xf32>
    %6 = tpu.matmul %4, %5, %cst {dimension_numbers = #tpu.dot_dimension_numbers<[1], [0], [0], [1], [0, 0, 1, 1], [], []>} : vector<128x256xbf16>, vector<256x256xbf16>, vector<128x256xf32> -> vector<128x256xf32>
    %c0_8 = arith.constant 0 : index
    %c1_9 = arith.constant 1 : index
    %c0_10 = arith.constant 0 : index
    %c0_11 = arith.constant 0 : index
    %7 = vector.load %arg1[%c0_8, %c1_9, %c0_10, %c0_11] : memref<2x9x9x128xbf16, #tpu.memory_space<vmem>>, vector<2x8x8x128xbf16>
    %8 = vector.shape_cast %7 : vector<2x8x8x128xbf16> to vector<128x128xbf16>
    %c0_12 = arith.constant 0 : index
    %c1_13 = arith.constant 1 : index
    %c1_14 = arith.constant 1 : index
    %c0_15 = arith.constant 0 : index
    %9 = vector.load %arg1[%c0_12, %c1_13, %c1_14, %c0_15] : memref<2x9x9x128xbf16, #tpu.memory_space<vmem>>, vector<2x8x8x128xbf16>
    %10 = vector.shape_cast %9 : vector<2x8x8x128xbf16> to vector<128x128xbf16>
    %11 = tpu.concatenate %8, %10 in 1 : vector<128x128xbf16>, vector<128x128xbf16> -> vector<128x256xbf16>
    %c256 = arith.constant 256 : index
    %c0_16 = arith.constant 0 : index
    %12 = vector.load %arg2[%c256, %c0_16] : memref<512x256xbf16, #tpu.memory_space<vmem>>, vector<256x256xbf16>
    %cst_17 = arith.constant dense<0.000000e+00> : vector<128x256xf32>
    %13 = tpu.matmul %11, %12, %cst_17 {dimension_numbers = #tpu.dot_dimension_numbers<[1], [0], [0], [1], [0, 0, 1, 1], [], []>} : vector<128x256xbf16>, vector<256x256xbf16>, vector<128x256xf32> -> vector<128x256xf32>
    %14 = arith.addf %6, %13 : vector<128x256xf32>
    %c0_18 = arith.constant 0 : index
    %c0_19 = arith.constant 0 : index
    %15 = vector.load %arg3[%c0_18, %c0_19] : memref<1x256xf32, #tpu.memory_space<vmem>>, vector<1x256xf32>
    %c0_20 = arith.constant 0 : index
    %c0_21 = arith.constant 0 : index
    %16 = vector.load %arg4[%c0_20, %c0_21] : memref<1x256xf32, #tpu.memory_space<vmem>>, vector<1x256xf32>
    %17 = arith.mulf %14, %14 : vector<128x256xf32>
    %cst_22 = arith.constant dense<0.000000e+00> : vector<256xf32>
    %18 = vector.multi_reduction <add>, %14, %cst_22 [0] : vector<128x256xf32> to vector<256xf32>
    %19 = vector.shape_cast %18 : vector<256xf32> to vector<1x256xf32>
    %cst_23 = arith.constant dense<0.000000e+00> : vector<256xf32>
    %20 = vector.multi_reduction <add>, %17, %cst_23 [0] : vector<128x256xf32> to vector<256xf32>
    %21 = vector.shape_cast %20 : vector<256xf32> to vector<1x256xf32>
    %cst_24 = arith.constant 7.812500e-03 : f32
    %22 = vector.broadcast %cst_24 : f32 to vector<1x256xf32>
    %23 = arith.mulf %19, %22 : vector<1x256xf32>
    %cst_25 = arith.constant 7.812500e-03 : f32
    %24 = vector.broadcast %cst_25 : f32 to vector<1x256xf32>
    %25 = arith.mulf %21, %24 : vector<1x256xf32>
    %26 = arith.mulf %23, %23 : vector<1x256xf32>
    %27 = arith.subf %25, %26 : vector<1x256xf32>
    %cst_26 = arith.constant 0.000000e+00 : f32
    %28 = vector.broadcast %cst_26 : f32 to vector<1x256xf32>
    %29 = arith.maximumf %27, %28 : vector<1x256xf32>
    %cst_27 = arith.constant 9.99999974E-6 : f32
    %30 = vector.broadcast %cst_27 : f32 to vector<1x256xf32>
    %31 = arith.addf %29, %30 : vector<1x256xf32>
    %32 = math.rsqrt %31 : vector<1x256xf32>
    %33 = arith.mulf %32, %15 : vector<1x256xf32>
    %34 = vector.broadcast %23 : vector<1x256xf32> to vector<128x256xf32>
    %35 = arith.subf %14, %34 : vector<128x256xf32>
    %36 = vector.broadcast %33 : vector<1x256xf32> to vector<128x256xf32>
    %37 = arith.mulf %35, %36 : vector<128x256xf32>
    %38 = vector.broadcast %16 : vector<1x256xf32> to vector<128x256xf32>
    %39 = arith.addf %37, %38 : vector<128x256xf32>
    %40 = vector.extract_strided_slice %39 {offsets = [0, 0], sizes = [128, 128], strides = [1, 1]} : vector<128x256xf32> to vector<128x128xf32>
    %cst_28 = arith.constant 0.00999999977 : f32
    %41 = vector.broadcast %cst_28 : f32 to vector<128x128xf32>
    %42 = arith.mulf %41, %40 : vector<128x128xf32>
    %43 = arith.maximumf %40, %42 : vector<128x128xf32>
    %44 = vector.extract_strided_slice %39 {offsets = [0, 128], sizes = [128, 128], strides = [1, 1]} : vector<128x256xf32> to vector<128x128xf32>
    %cst_29 = arith.constant 0.000000e+00 : bf16
    %45 = vector.broadcast %cst_29 : bf16 to vector<2x1x10x128xbf16>
    %c0_30 = arith.constant 0 : index
    %c0_31 = arith.constant 0 : index
    %c0_32 = arith.constant 0 : index
    %c0_33 = arith.constant 0 : index
    %46 = vector.load %arg9[%c0_30, %c0_31, %c0_32, %c0_33] : memref<2x10x10x128xbf16, #tpu.memory_space<vmem>>, vector<2x1x10x128xbf16>
    tpu.vector_store %arg9[%c0_30, %c0_31, %c0_32, %c0_33], %45 {strides = array<i32>} : memref<2x10x10x128xbf16, #tpu.memory_space<vmem>>, vector<2x1x10x128xbf16>,
    %cst_34 = arith.constant 0.000000e+00 : bf16
    %47 = vector.broadcast %cst_34 : bf16 to vector<2x1x10x128xbf16>
    %c0_35 = arith.constant 0 : index
    %c9 = arith.constant 9 : index
    %c0_36 = arith.constant 0 : index
    %c0_37 = arith.constant 0 : index
    %48 = vector.load %arg9[%c0_35, %c9, %c0_36, %c0_37] : memref<2x10x10x128xbf16, #tpu.memory_space<vmem>>, vector<2x1x10x128xbf16>
    tpu.vector_store %arg9[%c0_35, %c9, %c0_36, %c0_37], %47 {strides = array<i32>} : memref<2x10x10x128xbf16, #tpu.memory_space<vmem>>, vector<2x1x10x128xbf16>,
    %cst_38 = arith.constant 0.000000e+00 : bf16
    %49 = vector.broadcast %cst_38 : bf16 to vector<2x8x1x128xbf16>
    %c0_39 = arith.constant 0 : index
    %c1_40 = arith.constant 1 : index
    %c0_41 = arith.constant 0 : index
    %c0_42 = arith.constant 0 : index
    %50 = vector.load %arg9[%c0_39, %c1_40, %c0_41, %c0_42] : memref<2x10x10x128xbf16, #tpu.memory_space<vmem>>, vector<2x8x1x128xbf16>
    tpu.vector_store %arg9[%c0_39, %c1_40, %c0_41, %c0_42], %49 {strides = array<i32>} : memref<2x10x10x128xbf16, #tpu.memory_space<vmem>>, vector<2x8x1x128xbf16>,
    %cst_43 = arith.constant 0.000000e+00 : bf16
    %51 = vector.broadcast %cst_43 : bf16 to vector<2x8x1x128xbf16>
    %c0_44 = arith.constant 0 : index
    %c1_45 = arith.constant 1 : index
    %c9_46 = arith.constant 9 : index
    %c0_47 = arith.constant 0 : index
    %52 = vector.load %arg9[%c0_44, %c1_45, %c9_46, %c0_47] : memref<2x10x10x128xbf16, #tpu.memory_space<vmem>>, vector<2x8x1x128xbf16>
    tpu.vector_store %arg9[%c0_44, %c1_45, %c9_46, %c0_47], %51 {strides = array<i32>} : memref<2x10x10x128xbf16, #tpu.memory_space<vmem>>, vector<2x8x1x128xbf16>,
    %53 = vector.shape_cast %43 : vector<128x128xf32> to vector<2x8x8x128xf32>
    %54 = arith.truncf %53 : vector<2x8x8x128xf32> to vector<2x8x8x128xbf16>
    %c0_48 = arith.constant 0 : index
    %c1_49 = arith.constant 1 : index
    %c1_50 = arith.constant 1 : index
    %c0_51 = arith.constant 0 : index
    %55 = vector.load %arg9[%c0_48, %c1_49, %c1_50, %c0_51] : memref<2x10x10x128xbf16, #tpu.memory_space<vmem>>, vector<2x8x8x128xbf16>
    tpu.vector_store %arg9[%c0_48, %c1_49, %c1_50, %c0_51], %54 {strides = array<i32>} : memref<2x10x10x128xbf16, #tpu.memory_space<vmem>>, vector<2x8x8x128xbf16>,
    %c0_52 = arith.constant 0 : index
    %c0_53 = arith.constant 0 : index
    %c0_54 = arith.constant 0 : index
    %c0_55 = arith.constant 0 : index
    %56 = vector.load %arg9[%c0_52, %c0_53, %c0_54, %c0_55] : memref<2x10x10x128xbf16, #tpu.memory_space<vmem>>, vector<2x8x8x128xbf16>
    %57 = vector.shape_cast %56 : vector<2x8x8x128xbf16> to vector<128x128xbf16>
    %c0_56 = arith.constant 0 : index
    %c0_57 = arith.constant 0 : index
    %c1_58 = arith.constant 1 : index
    %c0_59 = arith.constant 0 : index
    %58 = vector.load %arg9[%c0_56, %c0_57, %c1_58, %c0_59] : memref<2x10x10x128xbf16, #tpu.memory_space<vmem>>, vector<2x8x8x128xbf16>
    %59 = vector.shape_cast %58 : vector<2x8x8x128xbf16> to vector<128x128xbf16>
    %c0_60 = arith.constant 0 : index
    %c0_61 = arith.constant 0 : index
    %c2 = arith.constant 2 : index
    %c0_62 = arith.constant 0 : index
    %60 = vector.load %arg9[%c0_60, %c0_61, %c2, %c0_62] : memref<2x10x10x128xbf16, #tpu.memory_space<vmem>>, vector<2x8x8x128xbf16>
    %61 = vector.shape_cast %60 : vector<2x8x8x128xbf16> to vector<128x128xbf16>
    %62 = tpu.concatenate %57, %59, %61 in 1 : vector<128x128xbf16>, vector<128x128xbf16>, vector<128x128xbf16> -> vector<128x384xbf16>
    %c0_63 = arith.constant 0 : index
    %c0_64 = arith.constant 0 : index
    %63 = vector.load %arg5[%c0_63, %c0_64] : memref<1152x128xbf16, #tpu.memory_space<vmem>>, vector<384x128xbf16>
    %cst_65 = arith.constant dense<0.000000e+00> : vector<128x128xf32>
    %64 = tpu.matmul %62, %63, %cst_65 {dimension_numbers = #tpu.dot_dimension_numbers<[1], [0], [0], [1], [0, 0, 1, 1], [], []>} : vector<128x384xbf16>, vector<384x128xbf16>, vector<128x128xf32> -> vector<128x128xf32>
    %c0_66 = arith.constant 0 : index
    %c1_67 = arith.constant 1 : index
    %c0_68 = arith.constant 0 : index
    %c0_69 = arith.constant 0 : index
    %65 = vector.load %arg9[%c0_66, %c1_67, %c0_68, %c0_69] : memref<2x10x10x128xbf16, #tpu.memory_space<vmem>>, vector<2x8x8x128xbf16>
    %66 = vector.shape_cast %65 : vector<2x8x8x128xbf16> to vector<128x128xbf16>
    %c0_70 = arith.constant 0 : index
    %c1_71 = arith.constant 1 : index
    %c1_72 = arith.constant 1 : index
    %c0_73 = arith.constant 0 : index
    %67 = vector.load %arg9[%c0_70, %c1_71, %c1_72, %c0_73] : memref<2x10x10x128xbf16, #tpu.memory_space<vmem>>, vector<2x8x8x128xbf16>
    %68 = vector.shape_cast %67 : vector<2x8x8x128xbf16> to vector<128x128xbf16>
    %c0_74 = arith.constant 0 : index
    %c1_75 = arith.constant 1 : index
    %c2_76 = arith.constant 2 : index
    %c0_77 = arith.constant 0 : index
    %69 = vector.load %arg9[%c0_74, %c1_75, %c2_76, %c0_77] : memref<2x10x10x128xbf16, #tpu.memory_space<vmem>>, vector<2x8x8x128xbf16>
    %70 = vector.shape_cast %69 : vector<2x8x8x128xbf16> to vector<128x128xbf16>
    %71 = tpu.concatenate %66, %68, %70 in 1 : vector<128x128xbf16>, vector<128x128xbf16>, vector<128x128xbf16> -> vector<128x384xbf16>
    %c384 = arith.constant 384 : index
    %c0_78 = arith.constant 0 : index
    %72 = vector.load %arg5[%c384, %c0_78] : memref<1152x128xbf16, #tpu.memory_space<vmem>>, vector<384x128xbf16>
    %cst_79 = arith.constant dense<0.000000e+00> : vector<128x128xf32>
    %73 = tpu.matmul %71, %72, %cst_79 {dimension_numbers = #tpu.dot_dimension_numbers<[1], [0], [0], [1], [0, 0, 1, 1], [], []>} : vector<128x384xbf16>, vector<384x128xbf16>, vector<128x128xf32> -> vector<128x128xf32>
    %74 = arith.addf %64, %73 : vector<128x128xf32>
    %c0_80 = arith.constant 0 : index
    %c2_81 = arith.constant 2 : index
    %c0_82 = arith.constant 0 : index
    %c0_83 = arith.constant 0 : index
    %75 = vector.load %arg9[%c0_80, %c2_81, %c0_82, %c0_83] : memref<2x10x10x128xbf16, #tpu.memory_space<vmem>>, vector<2x8x8x128xbf16>
    %76 = vector.shape_cast %75 : vector<2x8x8x128xbf16> to vector<128x128xbf16>
    %c0_84 = arith.constant 0 : index
    %c2_85 = arith.constant 2 : index
    %c1_86 = arith.constant 1 : index
    %c0_87 = arith.constant 0 : index
    %77 = vector.load %arg9[%c0_84, %c2_85, %c1_86, %c0_87] : memref<2x10x10x128xbf16, #tpu.memory_space<vmem>>, vector<2x8x8x128xbf16>
    %78 = vector.shape_cast %77 : vector<2x8x8x128xbf16> to vector<128x128xbf16>
    %c0_88 = arith.constant 0 : index
    %c2_89 = arith.constant 2 : index
    %c2_90 = arith.constant 2 : index
    %c0_91 = arith.constant 0 : index
    %79 = vector.load %arg9[%c0_88, %c2_89, %c2_90, %c0_91] : memref<2x10x10x128xbf16, #tpu.memory_space<vmem>>, vector<2x8x8x128xbf16>
    %80 = vector.shape_cast %79 : vector<2x8x8x128xbf16> to vector<128x128xbf16>
    %81 = tpu.concatenate %76, %78, %80 in 1 : vector<128x128xbf16>, vector<128x128xbf16>, vector<128x128xbf16> -> vector<128x384xbf16>
    %c768 = arith.constant 768 : index
    %c0_92 = arith.constant 0 : index
    %82 = vector.load %arg5[%c768, %c0_92] : memref<1152x128xbf16, #tpu.memory_space<vmem>>, vector<384x128xbf16>
    %cst_93 = arith.constant dense<0.000000e+00> : vector<128x128xf32>
    %83 = tpu.matmul %81, %82, %cst_93 {dimension_numbers = #tpu.dot_dimension_numbers<[1], [0], [0], [1], [0, 0, 1, 1], [], []>} : vector<128x384xbf16>, vector<384x128xbf16>, vector<128x128xf32> -> vector<128x128xf32>
    %84 = arith.addf %74, %83 : vector<128x128xf32>
    %c0_94 = arith.constant 0 : index
    %c0_95 = arith.constant 0 : index
    %85 = vector.load %arg6[%c0_94, %c0_95] : memref<1x128xf32, #tpu.memory_space<vmem>>, vector<1x128xf32>
    %c0_96 = arith.constant 0 : index
    %c0_97 = arith.constant 0 : index
    %86 = vector.load %arg7[%c0_96, %c0_97] : memref<1x128xf32, #tpu.memory_space<vmem>>, vector<1x128xf32>
    %87 = arith.mulf %84, %84 : vector<128x128xf32>
    %cst_98 = arith.constant dense<0.000000e+00> : vector<128xf32>
    %88 = vector.multi_reduction <add>, %84, %cst_98 [0] : vector<128x128xf32> to vector<128xf32>
    %89 = vector.shape_cast %88 : vector<128xf32> to vector<1x128xf32>
    %cst_99 = arith.constant dense<0.000000e+00> : vector<128xf32>
    %90 = vector.multi_reduction <add>, %87, %cst_99 [0] : vector<128x128xf32> to vector<128xf32>
    %91 = vector.shape_cast %90 : vector<128xf32> to vector<1x128xf32>
    %cst_100 = arith.constant 7.812500e-03 : f32
    %92 = vector.broadcast %cst_100 : f32 to vector<1x128xf32>
    %93 = arith.mulf %89, %92 : vector<1x128xf32>
    %cst_101 = arith.constant 7.812500e-03 : f32
    %94 = vector.broadcast %cst_101 : f32 to vector<1x128xf32>
    %95 = arith.mulf %91, %94 : vector<1x128xf32>
    %96 = arith.mulf %93, %93 : vector<1x128xf32>
    %97 = arith.subf %95, %96 : vector<1x128xf32>
    %cst_102 = arith.constant 0.000000e+00 : f32
    %98 = vector.broadcast %cst_102 : f32 to vector<1x128xf32>
    %99 = arith.maximumf %97, %98 : vector<1x128xf32>
    %cst_103 = arith.constant 9.99999974E-6 : f32
    %100 = vector.broadcast %cst_103 : f32 to vector<1x128xf32>
    %101 = arith.addf %99, %100 : vector<1x128xf32>
    %102 = math.rsqrt %101 : vector<1x128xf32>
    %103 = arith.mulf %102, %85 : vector<1x128xf32>
    %104 = vector.broadcast %93 : vector<1x128xf32> to vector<128x128xf32>
    %105 = arith.subf %84, %104 : vector<128x128xf32>
    %106 = vector.broadcast %103 : vector<1x128xf32> to vector<128x128xf32>
    %107 = arith.mulf %105, %106 : vector<128x128xf32>
    %108 = vector.broadcast %86 : vector<1x128xf32> to vector<128x128xf32>
    %109 = arith.addf %107, %108 : vector<128x128xf32>
    %110 = arith.addf %109, %44 : vector<128x128xf32>
    %cst_104 = arith.constant 0.00999999977 : f32
    %111 = vector.broadcast %cst_104 : f32 to vector<128x128xf32>
    %112 = arith.mulf %111, %110 : vector<128x128xf32>
    %113 = arith.maximumf %110, %112 : vector<128x128xf32>
    %114 = vector.shape_cast %113 : vector<128x128xf32> to vector<2x8x8x128xf32>
    %115 = arith.truncf %114 : vector<2x8x8x128xf32> to vector<2x8x8x128xbf16>
    %c0_105 = arith.constant 0 : index
    %c0_106 = arith.constant 0 : index
    %c0_107 = arith.constant 0 : index
    %c0_108 = arith.constant 0 : index
    %116 = vector.load %arg8[%c0_105, %c0_106, %c0_107, %c0_108] : memref<2x8x8x128xbf16, #tpu.memory_space<vmem>>, vector<2x8x8x128xbf16>
    tpu.vector_store %arg8[%c0_105, %c0_106, %c0_107, %c0_108], %115 {strides = array<i32>} : memref<2x8x8x128xbf16, #tpu.memory_space<vmem>>, vector<2x8x8x128xbf16>,
    return
  }
  func.func @transform_0(%arg0: i32) -> (i32, i32, i32, i32) {
    %c0_i32 = arith.constant 0 : i32
    %c0_i32_0 = arith.constant 0 : i32
    %c0_i32_1 = arith.constant 0 : i32
    %c0_i32_2 = arith.constant 0 : i32
    %c0_i32_3 = arith.constant 0 : i32
    return %c0_i32, %c0_i32_0, %c0_i32_1, %c0_i32_2 : i32, i32, i32, i32
  }
  func.func @transform_1(%arg0: i32) -> (i32, i32) {
    %c0_i32 = arith.constant 0 : i32
    %c0_i32_0 = arith.constant 0 : i32
    %c0_i32_1 = arith.constant 0 : i32
    return %c0_i32, %c0_i32_0 : i32, i32
  }
  func.func @transform_2(%arg0: i32) -> (i32, i32) {
    %c0_i32 = arith.constant 0 : i32
    %c0_i32_0 = arith.constant 0 : i32
    %c0_i32_1 = arith.constant 0 : i32
    return %c0_i32, %c0_i32_0 : i32, i32
  }
  func.func @transform_3(%arg0: i32) -> (i32, i32) {
    %c0_i32 = arith.constant 0 : i32
    %c0_i32_0 = arith.constant 0 : i32
    %c0_i32_1 = arith.constant 0 : i32
    return %c0_i32, %c0_i32_0 : i32, i32
  }
  func.func @transform_4(%arg0: i32) -> (i32, i32) {
    %c0_i32 = arith.constant 0 : i32
    %c0_i32_0 = arith.constant 0 : i32
    %c0_i32_1 = arith.constant 0 : i32
    return %c0_i32, %c0_i32_0 : i32, i32
  }
  func.func @transform_5(%arg0: i32) -> (i32, i32) {
    %c0_i32 = arith.constant 0 : i32
    %c0_i32_0 = arith.constant 0 : i32
    %c0_i32_1 = arith.constant 0 : i32
    return %c0_i32, %c0_i32_0 : i32, i32
  }
  func.func @transform_6(%arg0: i32) -> (i32, i32) {
    %c0_i32 = arith.constant 0 : i32
    %c0_i32_0 = arith.constant 0 : i32
    %c0_i32_1 = arith.constant 0 : i32
    return %c0_i32, %c0_i32_0 : i32, i32
  }
  func.func @transform_7(%arg0: i32) -> (i32, i32, i32, i32) {
    %c0_i32 = arith.constant 0 : i32
    %c0_i32_0 = arith.constant 0 : i32
    %c0_i32_1 = arith.constant 0 : i32
    %c0_i32_2 = arith.constant 0 : i32
    %c0_i32_3 = arith.constant 0 : i32
    return %c0_i32, %c0_i32_0, %c0_i32_1, %c0_i32_2 : i32, i32, i32, i32
  }
}

</mosaic_0001>

<bundles_post_ra>
// kernel: resnet18_block_forward.2
= control target key start
LH: loop header
LB: loop body
LE: loop exit
PB: predicated region body
PF: predicated region fallthrough
CT: control target
= control target key end

     0   :  { %vm59_vm0 = vsmask.f32 3328  ;;  %vm60_vm1 = vsmask.f32 7440  ;;  %vm1615_vm3 = vcmask 1040384   ;;  %vm1940_vm8 = vcmask 1043456   ;;  %s8355_s1 = inlined_call_operand.vmem [shape: bf16[512,256], index: 1, kind: input, shape index: {}]   ;;  %s8356_s0 = inlined_call_operand.vmem [shape: bf16[2,9,9,128], index: 0, kind: input, shape index: {}]   ;;  %s8357_s2 = inlined_call_operand.vmem [shape: f32[1,256], index: 2, kind: input, shape index: {}]   ;;  %s8358_s3 = inlined_call_operand.vmem [shape: f32[1,256], index: 3, kind: input, shape index: {}]   ;;  %s8359_s4 = inlined_call_operand.vmem [shape: bf16[1152,128], index: 4, kind: input, shape index: {}]   ;;  %s8360_s5 = inlined_call_operand.vmem [shape: f32[1,128], index: 5, kind: input, shape index: {}]   ;;  %s8361_s6 = inlined_call_operand.vmem [shape: f32[1,128], index: 6, kind: input, shape index: {}]   ;;  %s8362_s7 = inlined_call_operand.vmem [shape: bf16[2,8,8,128], index: 7, kind: output, shape index: {}]  }
   0x1   :  { %v5715_v0 = vld [vmem:[%s8355_s1 + $0x104] ss:$8 sps:$4 sm:$0xff]   ;;  %v5717_v1 = vld [vmem:[%s8355_s1 + $0x100] ss:$8 sps:$4 sm:$0xff]   ;;  %v5718_v2 = vld [vmem:[%s8355_s1 + $0x114] ss:$8 sps:$4 sm:$0xff]  }
   0x2   :  { %927 = vmatprep.subr.bf16.mxu0 %v5715_v0  ;;  %v5720_v3 = vld [vmem:[%s8355_s1 + $0x110] ss:$8 sps:$4 sm:$0xff]   ;;  %v5721_v4 = vld [vmem:[%s8355_s1 + $0x124] ss:$8 sps:$4 sm:$0xff]   ;;  %v5723_v5 = vld [vmem:[%s8355_s1 + $0x120] ss:$8 sps:$4 sm:$0xff]  }
   0x3   :  { %928 = vmatpush1.bf16.msra.mxu0 %v5717_v1  ;;  %v5724_v6 = vld [vmem:[%s8355_s1 + $0x134] ss:$8 sps:$4 sm:$0xff]   ;;  %v5726_v7 = vld [vmem:[%s8355_s1 + $0x130] ss:$8 sps:$4 sm:$0xff]   ;;  %v5727_v8 = vld [vmem:[%s8355_s1 + $0x144] ss:$8 sps:$4 sm:$0xff]  }
   0x4   :  { %929 = vmatprep.subr.bf16.mxu0 %v5718_v2  ;;  %v5729_v9 = vld [vmem:[%s8355_s1 + $0x140] ss:$8 sps:$4 sm:$0xff]   ;;  %v5730_v10 = vld [vmem:[%s8355_s1 + $0x154] ss:$8 sps:$4 sm:$0xff]   ;;  %v5732_v11 = vld [vmem:[%s8355_s1 + $0x150] ss:$8 sps:$4 sm:$0xff]  }
   0x5   :  { %v5733_v12 = vld [vmem:[%s8355_s1 + $0x164] ss:$8 sps:$4 sm:$0xff]   ;;  %v5735_v13 = vld [vmem:[%s8355_s1 + $0x160] ss:$8 sps:$4 sm:$0xff]   ;;  %v6038_v15 = vld [vmem:[%s8356_s0 + $0x10] sm:$0xf] }
   0x6   :  { %v6033_v14 = vld [vmem:[%s8356_s0 + $0x8] sm:$0xf]  ;;  %v4898_v16 = vld [vmem:[%s8356_s0 + $0xc] sm:$0x1]  ;;  %v4899_v17 = vld [vmem:[%s8356_s0 + $0x14] sm:$0x1] }
   0x7   :  { %930 = vmatpush1.bf16.msra.mxu0 %v5720_v3  ;;  %v432_v18 = vshrl.u32 %v6033_v14, 16  ;;  %v435_v19 = vshll.u32 %v6033_v14, 16  ;;  %v441_v20 = vshll.u32 %v4898_v16, 16  ;;  %v446_v21 = vshrl.u32 %v6038_v15, 16  ;;  %v5736_v22 = vld [vmem:[%s8355_s1 + $0x174] ss:$8 sps:$4 sm:$0xff]   ;;  %vm6060_vm2 = vmor %vm59_vm0, %vm60_vm1 }
   0x8   :  { %931 = vmatprep.subr.bf16.mxu0 %v5721_v4  ;;  %v449_v23 = vshll.u32 %v6038_v15, 16  ;;  %v455_v24 = vshll.u32 %v4899_v17, 16  ;;  %v5738_v29 = vld [vmem:[%s8355_s1 + $0x170] ss:$8 sps:$4 sm:$0xff]   ;;  %v5739_v32 = vld [vmem:[%s8355_s1 + $0x184] ss:$8 sps:$4 sm:$0xff]  }
   0x9   :  { %v434_v25 = vrot.slane %v432_v18, 4  ;;  %v437_v26 = vrot.slane %v435_v19, 5  ;;  %v448_v27 = vrot.slane %v446_v21, 4  ;;  %v443_v31 = vrot.slane %v441_v20, 5  ;;  %v5741_v38 = vld [vmem:[%s8355_s1 + $0x180] ss:$8 sps:$4 sm:$0xff]  }
   0xa   :  { %v451_v28 = vrot.slane %v449_v23, 5  ;;  %v457_v35 = vrot.slane %v455_v24, 5  ;;  %v5742_v40 = vld [vmem:[%s8355_s1 + $0x194] ss:$8 sps:$4 sm:$0xff]   ;;  %v5744_v43 = vld [vmem:[%s8355_s1 + $0x190] ss:$8 sps:$4 sm:$0xff]  }
   0xb   :  { %932 = vmatpush1.bf16.msra.mxu0 %v5723_v5  ;;  %v438_v30 = vor.u32 %v437_v26, %v434_v25  ;;  %v5745_v44 = vld [vmem:[%s8355_s1 + $0x1a4] ss:$8 sps:$4 sm:$0xff]   ;;  %v6083_v45 = vld [vmem:[%s8356_s0 + $0x18] sm:$0xf]  ;;  %v6088_v46 = vld [vmem:[%s8356_s0 + $0x20] sm:$0xf] }
   0xc   :  { %933 = vmatprep.subr.bf16.mxu0 %v5724_v6  ;;  %v452_v34 = vor.u32 %v451_v28, %v448_v27  ;;  %v5747_v47 = vld [vmem:[%s8355_s1 + $0x1a0] ss:$8 sps:$4 sm:$0xff]   ;;  %v5748_v48 = vld [vmem:[%s8355_s1 + $0x1b4] ss:$8 sps:$4 sm:$0xff]   ;;  %v460_v49 = vshrl.u32 %v6083_v45, 16  ;;  %v463_v50 = vshll.u32 %v6083_v45, 16 }
   0xd   :  { %v439_v36 = vrot.slane %v438_v30, 4  ;;  %v474_v51 = vshrl.u32 %v6088_v46, 16  ;;  %v477_v52 = vshll.u32 %v6088_v46, 16  ;;  %v5750_v53 = vld [vmem:[%s8355_s1 + $0x1b0] ss:$8 sps:$4 sm:$0xff]   ;;  %vm2342_vm10 = vcmask 1042432  }
   0xe   :  { %v453_v37 = vrot.slane %v452_v34, 4  ;;  %v5751_v54 = vld [vmem:[%s8355_s1 + $0x1c4] ss:$8 sps:$4 sm:$0xff]   ;;  %v5753_v55 = vld [vmem:[%s8355_s1 + $0x1c0] ss:$8 sps:$4 sm:$0xff]   ;;  %v462_v57 = vrot.slane %v460_v49, 4 }
   0xf   :  { %934 = vmatpush1.bf16.msra.mxu0 %v5726_v7  ;;  %v444_v39 = vsel %vm6060_vm2, %v439_v36, %v443_v31  ;;  %v4900_v56 = vld [vmem:[%s8356_s0 + $0x1c] sm:$0x1]  ;;  %v465_v58 = vrot.slane %v463_v50, 5  ;;  %v476_v59 = vrot.slane %v474_v51, 4  ;;  %v479_v60 = vrot.slane %v477_v52, 5 }
  0x10   :  { %935 = vmatprep.subr.bf16.mxu0 %v5727_v8  ;;  %v458_v41 = vsel %vm6060_vm2, %v453_v37, %v457_v35  ;;  %v4901_v61 = vld [vmem:[%s8356_s0 + $0x24] sm:$0x1]  ;;  %v6118_v62 = vld [vmem:[%s8356_s0 + $0x28] sm:$0xf]  ;;  %v6123_v63 = vld [vmem:[%s8356_s0 + $0x30] sm:$0xf] }
  0x11   :  { %v4922_v42 = vcombine.low %v444_v39, %v458_v41  ;;  %v5754_v0 = vld [vmem:[%s8355_s1 + $0x1d4] ss:$8 sps:$4 sm:$0xff]   ;;  %v469_v1 = vshll.u32 %v4900_v56, 16  ;;  %v466_v2 = vor.u32 %v465_v58, %v462_v57  ;;  %v480_v3 = vor.u32 %v479_v60, %v476_v59  ;;  %v5759_v23 = vld [vmem:[%s8355_s1 + $0x1e0] ss:$8 sps:$4 sm:$0xff]  }
  0x12   :  { %v483_v4 = vshll.u32 %v4901_v61, 16  ;;  %v488_v5 = vshrl.u32 %v6118_v62, 16  ;;  %v491_v6 = vshll.u32 %v6118_v62, 16  ;;  %v502_v7 = vshrl.u32 %v6123_v63, 16  ;;  %v4903_v18 = vld [vmem:[%s8356_s0 + $0x34] sm:$0x1] }
  0x13   :  { %936 = vmatpush1.bf16.msra.mxu0 %v5729_v9  ;;  %959 = vmatprep.mubr.bf16.mxu0 %v4922_v42  ;;  %v505_v8 = vshll.u32 %v6123_v63, 16  ;;  %v5756_v9 = vld [vmem:[%s8355_s1 + $0x1d0] ss:$8 sps:$4 sm:$0xff]   ;;  %v481_v16 = vrot.slane %v480_v3, 4  ;;  %v5760_v24 = vld [vmem:[%s8355_s1 + $0x1f4] ss:$8 sps:$4 sm:$0xff]  }
  0x14   :  { %937 = vmatprep.subr.bf16.mxu0 %v5730_v10  ;;  %v5757_v10 = vld [vmem:[%s8355_s1 + $0x1e4] ss:$8 sps:$4 sm:$0xff]   ;;  %v485_v17 = vrot.slane %v483_v4, 5  ;;  %v490_v19 = vrot.slane %v488_v5, 4  ;;  %v493_v20 = vrot.slane %v491_v6, 5  ;;  %v504_v21 = vrot.slane %v502_v7, 4 }
  0x15   :  { %v6153_v25 = vld [vmem:[%s8356_s0 + $0x38] sm:$0xf]  ;;  %v6158_v26 = vld [vmem:[%s8356_s0 + $0x40] sm:$0xf]  ;;  %v511_v28 = vshll.u32 %v4903_v18, 16  ;;  %v4915_v7 = vcombine.low %v6083_v45, %v6088_v46  ;;  %vm2343_vm11 = vcmask 1046532  }
  0x16   :  { %v486_v31 = vsel %vm6060_vm2, %v481_v16, %v485_v17  ;;  %v516_v35 = vshrl.u32 %v6153_v25, 16  ;;  %v519_v36 = vshll.u32 %v6153_v25, 16  ;;  %v530_v37 = vshrl.u32 %v6158_v26, 16  ;;  %v5766_v39 = vld [vmem:[%s8355_s1 + $0x4] ss:$8 sps:$4 sm:$0xff]   ;;  %vm7526_vm12 = vmor %vm2342_vm10, %vm2343_vm11 }
  0x17   :  { %938 = vmatpush1.bf16.msra.mxu0 %v5732_v11  ;;  %v471_v11 = vrot.slane %v469_v1, 5  ;;  %v5764_v41 = vld [vmem:[%s8355_s1] ss:$8 sps:$4 sm:$0xff]   ;;  %v4904_v49 = vld [vmem:[%s8356_s0 + $0x3c] sm:$0x1] }
  0x18   :  { %939 = vmatprep.subr.bf16.mxu0 %v5733_v12  ;;  %v4902_v12 = vld [vmem:[%s8356_s0 + $0x2c] sm:$0x1]  ;;  %v518_v50 = vrot.slane %v516_v35, 4  ;;  %v521_v51 = vrot.slane %v519_v36, 5  ;;  %v532_v52 = vrot.slane %v530_v37, 4  ;;  %v525_v57 = vshll.u32 %v4904_v49, 16 }
  0x19   :  { %v497_v27 = vshll.u32 %v4902_v12, 16  ;;  %v5767_v58 = vld [vmem:[%s8355_s1 + $0x10] ss:$8 sps:$4 sm:$0xff]   ;;  %v5773_v1 = vld [vmem:[%s8355_s1 + $0x24] ss:$8 sps:$4 sm:$0xff]  }
  0x1a   :  { %v522_v60 = vor.u32 %v521_v51, %v518_v50  ;;  %v5771_v6 = vld [vmem:[%s8355_s1 + $0x20] ss:$8 sps:$4 sm:$0xff]   ;;  %v4906_v46 = vld [vmem:[%s8356_s0 + $0x54] sm:$0x1]  ;;  %v4907_v17 = vld [vmem:[%s8356_s0 + $0x5c] sm:$0x1] }
  0x1b   :  { %940 = vmatpush1.bf16.msra.mxu0 %v5735_v13  ;;  %v467_v13 = vrot.slane %v466_v2, 4  ;;  %v499_v42 = vrot.slane %v497_v27, 5  ;;  %vm1616_vm4 = vsmask.f32 256  ;;  %vm1666_vm5 = vsmask.f32 7938 }
  0x1c   :  { %941 = vmatprep.subr.bf16.mxu0 %v5736_v22  ;;  %v507_v22 = vrot.slane %v505_v8, 5  ;;  %v5776_v8 = vld [vmem:[%s8355_s1 + $0x34] ss:$8 sps:$4 sm:$0xff]   ;;  %vm6616_vm6 = vmand %vm1615_vm3, %vm1616_vm4 }
  0x1d   :  { %v472_v30 = vsel %vm6060_vm2, %v467_v13, %v471_v11  ;;  %v6228_v11 = vld [vmem:[%s8356_s0 + $0x68] sm:$0xf]  ;;  %v523_v13 = vrot.slane %v522_v60, 4  ;;  %vm6623_vm7 = vmand %vm1615_vm3, %vm1666_vm5 }
  0x1e   :  { %v508_v34 = vor.u32 %v507_v22, %v504_v21  ;;  %v589_v27 = vshll.u32 %v6228_v11, 16  ;;  %vm7043_vm9 = vmand %vm1940_vm8, %vm1666_vm5 }
  0x1f   :  { %942 = vmatpush1.bf16.msra.mxu0 %v5738_v29  ;;  %v5762_v29 = vld [vmem:[%s8355_s1 + $0x1f0] ss:$8 sps:$4 sm:$0xff]  }
  0x20   :  { %943 = vmatprep.subr.bf16.mxu0 %v5739_v32  ;;  %v494_v32 = vor.u32 %v493_v20, %v490_v19 }
  0x23   :  { %944 = vmatpush1.bf16.msra.mxu0 %v5741_v38  ;;  %v533_v38 = vshll.u32 %v6158_v26, 16 }
  0x24   :  { %945 = vmatprep.subr.bf16.mxu0 %v5742_v40  ;;  %v4914_v40 = vcombine.low %v6033_v14, %v6038_v15  ;;  %v5769_v14 = vld [vmem:[%s8355_s1 + $0x14] ss:$8 sps:$4 sm:$0xff]   ;;  %v4905_v15 = vld [vmem:[%s8356_s0 + $0x44] sm:$0x1] }
  0x27   :  { %946 = vmatpush1.bf16.msra.mxu0 %v5744_v43  ;;  %v4923_v43 = vcombine.low %v472_v30, %v486_v31  ;;  %v567_v30 = vshll.u32 %v4907_v17, 16  ;;  %v5780_v31 = vld [vmem:[%s8355_s1 + $0x44] ss:$8 sps:$4 sm:$0xff]   ;;  %v6305_v17 = vld [vmem:[%s8356_s0 + $0x80] sm:$0xf] }
  0x28   :  { %947 = vmatprep.subr.bf16.mxu0 %v5745_v44  ;;  %v495_v44 = vrot.slane %v494_v32, 4 }
  0x2a   :  { %v500_v56 = vsel %vm6060_vm2, %v495_v44, %v499_v42  ;;  %v4908_v42 = vld [vmem:[%s8356_s0 + $0x64] sm:$0x1]  ;;  %v5778_v44 = vld [vmem:[%s8355_s1 + $0x40] ss:$8 sps:$4 sm:$0xff]  }
  0x2b   :  { %948 = vmatpush1.bf16.msra.mxu0 %v5747_v47  ;;  %v509_v47 = vrot.slane %v508_v34, 4 }
  0x2c   :  { %949 = vmatprep.subr.bf16.mxu0 %v5748_v48  ;;  %v513_v48 = vrot.slane %v511_v28, 5  ;;  %v5774_v28 = vld [vmem:[%s8355_s1 + $0x30] ss:$8 sps:$4 sm:$0xff]  }
  0x2e   :  { %v514_v59 = vsel %vm6060_vm2, %v509_v47, %v513_v48  ;;  %v6264_v48 = vld [vmem:[%s8356_s0 + $0x70] sm:$0xf] }
  0x2f   :  { %950 = vmatpush1.bf16.msra.mxu0 %v5750_v53  ;;  %v535_v53 = vrot.slane %v533_v38, 5  ;;  %v4924_v12 = vcombine.low %v500_v56, %v514_v59 }
  0x30   :  { %951 = vmatprep.subr.bf16.mxu0 %v5751_v54  ;;  %v6191_v54 = vld [vmem:[%s8356_s0 + $0x50] sm:$0xf] }
  0x31   :  { %v536_v61 = vor.u32 %v535_v53, %v532_v52  ;;  %v544_v2 = vshrl.u32 %v6191_v54, 16  ;;  %v547_v3 = vshll.u32 %v6191_v54, 16  ;;  %v569_v52 = vrot.slane %v567_v30, 5 }
  0x33   :  { %952 = vmatpush1.bf16.msra.mxu0 %v5753_v55  ;;  %v6196_v55 = vld [vmem:[%s8356_s0 + $0x58] sm:$0xf]  ;;  %v537_v16 = vrot.slane %v536_v61, 4  ;;  %v546_v18 = vrot.slane %v544_v2, 4  ;;  %v549_v19 = vrot.slane %v547_v3, 5 }
  0x34   :  { %953 = vmatprep.subr.bf16.mxu0 %v5754_v0  ;;  %v539_v0 = vshll.u32 %v4905_v15, 16  ;;  %v558_v4 = vshrl.u32 %v6196_v55, 16  ;;  %v561_v5 = vshll.u32 %v6196_v55, 16  ;;  %v5781_v61 = vld [vmem:[%s8355_s1 + $0x50] ss:$8 sps:$4 sm:$0xff]  }
  0x35   :  { %v550_v35 = vor.u32 %v549_v19, %v546_v18  ;;  %v6310_v18 = vld [vmem:[%s8356_s0 + $0x88] sm:$0xf] }
  0x36   :  { %v541_v45 = vrot.slane %v539_v0, 5  ;;  %v560_v20 = vrot.slane %v558_v4, 4  ;;  %v563_v21 = vrot.slane %v561_v5, 5  ;;  %v4917_v0 = vcombine.low %v6153_v25, %v6158_v26  ;;  %v4911_v25 = vld [vmem:[%s8356_s0 + $0x7c] sm:$0x1] }
  0x37   :  { %954 = vmatpush1.bf16.msra.mxu0 %v5756_v9  ;;  %v527_v9 = vrot.slane %v525_v57, 5  ;;  %v551_v49 = vrot.slane %v550_v35, 4  ;;  %v600_v57 = vshrl.u32 %v6264_v48, 16  ;;  %v642_v30 = vshrl.u32 %v6310_v18, 16  ;;  %v5792_v35 = vld [vmem:[%s8355_s1 + $0x80] ss:$8 sps:$4 sm:$0xff]  }
  0x38   :  { %955 = vmatprep.subr.bf16.mxu0 %v5757_v10  ;;  %v6223_v10 = vld [vmem:[%s8356_s0 + $0x60] sm:$0xf]  ;;  %v542_v34 = vsel %vm6060_vm2, %v537_v16, %v541_v45  ;;  %v564_v36 = vor.u32 %v563_v21, %v560_v20  ;;  %v623_v20 = vshll.u32 %v4911_v25, 16 }
  0x39   :  { %v572_v22 = vshrl.u32 %v6223_v10, 16  ;;  %v528_v32 = vsel %vm6060_vm2, %v523_v13, %v527_v9  ;;  %v602_v26 = vrot.slane %v600_v57, 4  ;;  %v5785_v16 = vld [vmem:[%s8355_s1 + $0x60] ss:$8 sps:$4 sm:$0xff]  }
  0x3a   :  { %v4925_v47 = vcombine.low %v528_v32, %v542_v34  ;;  %v565_v51 = vrot.slane %v564_v36, 4  ;;  %v5794_v32 = vld [vmem:[%s8355_s1 + $0x84] ss:$8 sps:$4 sm:$0xff]   ;;  %v4918_v34 = vcombine.low %v6191_v54, %v6196_v55  ;;  %v644_v55 = vrot.slane %v642_v30, 4  ;;  %v5806_v30 = vld [vmem:[%s8355_s1 + $0xc0] ss:$8 sps:$4 sm:$0xff]  }
  0x3b   :  { %956 = vmatpush1.bf16.msra.mxu0 %v5759_v23  ;;  %v575_v23 = vshll.u32 %v6223_v10, 16  ;;  %v574_v37 = vrot.slane %v572_v22, 4 }
  0x3c   :  { %957 = vmatprep.subr.bf16.mxu0 %v5760_v24  ;;  %v586_v24 = vshrl.u32 %v6228_v11, 16  ;;  %v570_v3 = vsel %vm6060_vm2, %v565_v51, %v569_v52 }
  0x3d   :  { %v577_v38 = vrot.slane %v575_v23, 5 }
  0x3f   :  { %958 = vmatpush1.bf16.msra.mxu0 %v5762_v29  ;;  %v553_v29 = vshll.u32 %v4906_v46, 16  ;;  %v578_v53 = vor.u32 %v577_v38, %v574_v37  ;;  %v5790_v46 = vld [vmem:[%s8355_s1 + $0x74] ss:$8 sps:$4 sm:$0xff]  }
  0x40   :  { %1200 = vmatprep.subr.bf16.mxu0 %v5766_v39  ;;  %v588_v39 = vrot.slane %v586_v24, 4 }
  0x41   :  { %v555_v50 = vrot.slane %v553_v29, 5  ;;  %v579_v4 = vrot.slane %v578_v53, 4  ;;  %v631_v29 = vshll.u32 %v6305_v17, 16 }
  0x42   :  { %960 = vmatmul.mubr.bf16.vlgmr.msra.gmra.mrb[0].mxu0 %v4914_v40  ;;  %v591_v40 = vrot.slane %v589_v27, 5  ;;  %v5788_v27 = vld [vmem:[%s8355_s1 + $0x70] ss:$8 sps:$4 sm:$0xff]  }
  0x43   :  { %1201 = vmatpush1.bf16.msra.mxu0 %v5764_v41  ;;  %969 = vmatprep.mubr.bf16.mxu0 %v4923_v43  ;;  %v4916_v41 = vcombine.low %v6118_v62, %v6123_v63  ;;  %v4909_v43 = vld [vmem:[%s8356_s0 + $0x6c] sm:$0x1]  ;;  %v6269_v62 = vld [vmem:[%s8356_s0 + $0x78] sm:$0xf]  ;;  %v5783_v63 = vld [vmem:[%s8355_s1 + $0x54] ss:$8 sps:$4 sm:$0xff]   ;;  %v556_v2 = vsel %vm6060_vm2, %v551_v49, %v555_v50 }
  0x44   :  { %1202 = vmatprep.subr.bf16.mxu0 %v5769_v14  ;;  %v581_v14 = vshll.u32 %v4908_v42, 16  ;;  %v592_v15 = vor.u32 %v591_v40, %v588_v39  ;;  %v595_v56 = vshll.u32 %v4909_v43, 16  ;;  %v614_v59 = vshrl.u32 %v6269_v62, 16  ;;  %v4913_v42 = vld [vmem:[%s8356_s0 + $0x8c] sm:$0x1] }
  0x45   :  { %v617_v60 = vshll.u32 %v6269_v62, 16  ;;  %v4926_v45 = vcombine.low %v556_v2, %v570_v3  ;;  %v625_v40 = vrot.slane %v623_v20, 5  ;;  %v633_v54 = vrot.slane %v631_v29, 5  ;;  %v6348_v49 = vld [vmem:[%s8356_s0 + $0x8] sm:$0xf] }
  0x46   :  { %v583_v5 = vrot.slane %v581_v14, 5  ;;  %v651_v53 = vshll.u32 %v4913_v42, 16  ;;  %v5795_v14 = vld [vmem:[%s8355_s1 + $0x90] ss:$8 sps:$4 sm:$0xff]  }
  0x47   :  { %1203 = vmatpush1.bf16.msra.mxu0 %v5767_v58  ;;  %v603_v58 = vshll.u32 %v6264_v48, 16  ;;  %v619_v13 = vrot.slane %v617_v60, 5  ;;  %v77_v60 = vshrl.u32 %v6348_v49, 16 }
  0x48   :  { %1204 = vmatprep.subr.bf16.mxu0 %v5773_v1  ;;  %v5787_v1 = vld [vmem:[%s8355_s1 + $0x64] ss:$8 sps:$4 sm:$0xff]   ;;  %v584_v21 = vsel %vm6060_vm2, %v579_v4, %v583_v5  ;;  %v653_v4 = vrot.slane %v651_v53, 5 }
  0x49   :  { %v605_v9 = vrot.slane %v603_v58, 5  ;;  %v43_v5 = vld [vmem:[%s8356_s0 + $0x4] sm:$0x1] }
  0x4a   :  { %970 = vmatmul.mubr.bf16.gmra.mrb[4].mxu0 %v4915_v7  ;;  %v597_v7 = vrot.slane %v595_v56, 5 }
  0x4b   :  { %1205 = vmatpush1.bf16.msra.mxu0 %v5771_v6  ;;  %979 = vmatprep.mubr.bf16.mxu0 %v4924_v12  ;;  %v593_v6 = vrot.slane %v592_v15, 4  ;;  %v616_v12 = vrot.slane %v614_v59, 4  ;;  %v606_v23 = vor.u32 %v605_v9, %v602_v26  ;;  %v5801_v59 = vld [vmem:[%s8355_s1 + $0xa4] ss:$8 sps:$4 sm:$0xff]   ;;  %v79_v26 = vrot.slane %v77_v60, 4 }
  0x4c   :  { %1206 = vmatprep.subr.bf16.mxu0 %v5776_v8  ;;  %v4910_v8 = vld [vmem:[%s8356_s0 + $0x74] sm:$0x1]  ;;  %v5813_v60 = vld [vmem:[%s8355_s1 + $0xe0] ss:$8 sps:$4 sm:$0xff]  }
  0x4d   :  { %v609_v19 = vshll.u32 %v4910_v8, 16  ;;  %v598_v22 = vsel %vm6060_vm2, %v593_v6, %v597_v7  ;;  %v620_v24 = vor.u32 %v619_v13, %v616_v12  ;;  %v607_v38 = vrot.slane %v606_v23, 4  ;;  %v44_v8 = vld [vmem:[%s8356_s0 + $0xc] sm:$0x1]  ;;  %v6381_v12 = vld [vmem:[%s8356_s0 + $0x10] sm:$0xf] }
  0x4e   :  { %v4927_v37 = vcombine.low %v584_v21, %v598_v22  ;;  %v6386_v13 = vld [vmem:[%s8356_s0 + $0x18] sm:$0xf]  ;;  %v91_v22 = vshrl.u32 %v6381_v12, 16  ;;  %v5808_v23 = vld [vmem:[%s8355_s1 + $0xc4] ss:$8 sps:$4 sm:$0xff]  }
  0x4f   :  { %1207 = vmatpush1.bf16.msra.mxu0 %v5774_v28  ;;  %v628_v28 = vshrl.u32 %v6305_v17, 16  ;;  %v611_v36 = vrot.slane %v609_v19, 5  ;;  %v621_v39 = vrot.slane %v620_v24, 4  ;;  %v108_v29 = vshll.u32 %v6386_v13, 16 }
  0x50   :  { %1208 = vmatprep.subr.bf16.mxu0 %v5780_v31  ;;  %v645_v31 = vshll.u32 %v6310_v18, 16 }
  0x51   :  { %v630_v43 = vrot.slane %v628_v28, 4  ;;  %v612_v50 = vsel %vm6060_vm2, %v607_v38, %v611_v36  ;;  %v626_v51 = vsel %vm6060_vm2, %v621_v39, %v625_v40  ;;  %v105_v28 = vshrl.u32 %v6386_v13, 16  ;;  %v45_v36 = vld [vmem:[%s8356_s0 + $0x14] sm:$0x1]  ;;  %v46_v39 = vld [vmem:[%s8356_s0 + $0x1c] sm:$0x1] }
  0x52   :  { %980 = vmatmul.mubr.bf16.gmra.mrb[8].mxu0 %v4916_v41  ;;  %v4912_v41 = vld [vmem:[%s8356_s0 + $0x84] sm:$0x1]  ;;  %v4928_v2 = vcombine.low %v612_v50, %v626_v51  ;;  %v93_v40 = vrot.slane %v91_v22, 4  ;;  %v100_v50 = vshll.u32 %v45_v36, 16  ;;  %v114_v51 = vshll.u32 %v46_v39, 16 }
  0x53   :  { %1209 = vmatpush1.bf16.msra.mxu0 %v5778_v44  ;;  %989 = vmatprep.mubr.bf16.mxu0 %v4925_v47  ;;  %v647_v44 = vrot.slane %v645_v31, 5  ;;  %v5797_v47 = vld [vmem:[%s8355_s1 + $0x94] ss:$8 sps:$4 sm:$0xff]   ;;  %v637_v52 = vshll.u32 %v4912_v41, 16  ;;  %v634_v15 = vor.u32 %v633_v54, %v630_v43  ;;  %v4920_v31 = vcombine.low %v6264_v48, %v6269_v62  ;;  %v6419_v48 = vld [vmem:[%s8356_s0 + $0x20] sm:$0xf] }
  0x54   :  { %1210 = vmatprep.subr.bf16.mxu0 %v5783_v63  ;;  %v6343_v63 = vld [vmem:[%s8356_s0] sm:$0xf]  ;;  %v107_v42 = vrot.slane %v105_v28, 4  ;;  %v110_v43 = vrot.slane %v108_v29, 5  ;;  %v6424_v54 = vld [vmem:[%s8356_s0 + $0x28] sm:$0xf] }
  0x55   :  { %v648_v56 = vor.u32 %v647_v44, %v644_v55  ;;  %v63_v57 = vshrl.u32 %v6343_v63, 16  ;;  %v66_v58 = vshll.u32 %v6343_v63, 16  ;;  %v639_v3 = vrot.slane %v637_v52, 5  ;;  %v50_v36 = vld [vmem:[%s8356_s0 + $0x3c] sm:$0x1] }
  0x56   :  { %v635_v6 = vrot.slane %v634_v15, 4  ;;  %v119_v55 = vshrl.u32 %v6419_v48, 16  ;;  %v122_v44 = vshll.u32 %v6419_v48, 16  ;;  %v133_v52 = vshrl.u32 %v6424_v54, 16 }
  0x57   :  { %1211 = vmatpush1.bf16.msra.mxu0 %v5781_v61  ;;  %v80_v61 = vshll.u32 %v6348_v49, 16  ;;  %v649_v7 = vrot.slane %v648_v56, 4  ;;  %v65_v25 = vrot.slane %v63_v57, 4  ;;  %v136_v53 = vshll.u32 %v6424_v54, 16 }
  0x58   :  { %1212 = vmatprep.subr.bf16.mxu0 %v5787_v1  ;;  %v5799_v1 = vld [vmem:[%s8355_s1 + $0xa0] ss:$8 sps:$4 sm:$0xff]   ;;  %v640_v19 = vsel %vm6060_vm2, %v635_v6, %v639_v3  ;;  %v47_v3 = vld [vmem:[%s8356_s0 + $0x24] sm:$0x1]  ;;  %v102_v6 = vrot.slane %v100_v50, 5 }
  0x59   :  { %v82_v9 = vrot.slane %v80_v61, 5  ;;  %v654_v20 = vsel %vm6060_vm2, %v649_v7, %v653_v4  ;;  %v5818_v61 = vld [vmem:[%s8355_s1 + $0xf4] ss:$8 sps:$4 sm:$0xff]   ;;  %v138_v4 = vrot.slane %v136_v53, 5  ;;  %v51_v53 = vld [vmem:[%s8356_s0 + $0x4c] sm:$0x1] }
  0x5a   :  { %990 = vmatmul.mubr.bf16.gmra.mrb[12].mxu0 %v4917_v0  ;;  %v4919_v0 = vcombine.low %v6223_v10, %v6228_v11  ;;  %v68_v10 = vrot.slane %v66_v58, 5  ;;  %v5804_v11 = vld [vmem:[%s8355_s1 + $0xb4] ss:$8 sps:$4 sm:$0xff]   ;;  %v111_v58 = vor.u32 %v110_v43, %v107_v42  ;;  %v170_v42 = vshll.u32 %v50_v36, 16 }
  0x5b   :  { %1213 = vmatpush1.bf16.msra.mxu0 %v5785_v16  ;;  %999 = vmatprep.mubr.bf16.mxu0 %v4926_v45  ;;  %v72_v16 = vshll.u32 %v43_v5, 16  ;;  %v86_v45 = vshll.u32 %v44_v8, 16  ;;  %v83_v24 = vor.u32 %v82_v9, %v79_v26  ;;  %v116_v8 = vrot.slane %v114_v51, 5 }
  0x5c   :  { %1214 = vmatprep.subr.bf16.mxu0 %v5790_v46  ;;  %v5802_v46 = vld [vmem:[%s8355_s1 + $0xb0] ss:$8 sps:$4 sm:$0xff]   ;;  %v69_v21 = vor.u32 %v68_v10, %v65_v25  ;;  %v112_v7 = vrot.slane %v111_v58, 4  ;;  %v128_v26 = vshll.u32 %v47_v3, 16  ;;  %v4867_v51 = vcombine.low %v6381_v12, %v6386_v13  ;;  %v52_v13 = vld [vmem:[%s8356_s0 + $0x54] sm:$0x1] }
  0x5d   :  { %v84_v62 = vrot.slane %v83_v24, 4  ;;  %v6457_v25 = vld [vmem:[%s8356_s0 + $0x30] sm:$0xf]  ;;  %v6462_v10 = vld [vmem:[%s8356_s0 + $0x38] sm:$0xf]  ;;  %v4866_v24 = vcombine.low %v6343_v63, %v6348_v49 }
  0x5e   :  { %v70_v38 = vrot.slane %v69_v21, 4  ;;  %v117_v21 = vsel %vm6060_vm2, %v112_v7, %v116_v8  ;;  %v161_v22 = vshrl.u32 %v6462_v10, 16  ;;  %v130_v28 = vrot.slane %v128_v26, 5  ;;  %v6486_v63 = vld [vmem:[%s8356_s0 + $0x48] sm:$0xf] }
  0x5f   :  { %1215 = vmatpush1.bf16.msra.mxu0 %v5788_v27  ;;  %v94_v27 = vshll.u32 %v6381_v12, 16  ;;  %v6491_v49 = vld [vmem:[%s8356_s0 + $0x50] sm:$0xf]  ;;  %v175_v43 = vshrl.u32 %v6486_v63, 16  ;;  %v6509_v58 = vld [vmem:[%s8356_s0 + $0x58] sm:$0xf] }
  0x60   :  { %1216 = vmatprep.subr.bf16.mxu0 %v5794_v32  ;;  %v5811_v32 = vld [vmem:[%s8355_s1 + $0xd4] ss:$8 sps:$4 sm:$0xff]   ;;  %v192_v50 = vshll.u32 %v6491_v49, 16  ;;  %v6514_v12 = vld [vmem:[%s8356_s0 + $0x60] sm:$0xf]  ;;  %v198_v8 = vshll.u32 %v52_v13, 16  ;;  %v4870_v13 = vcombine.low %v6486_v63, %v6491_v49 }
  0x61   :  { %v96_v41 = vrot.slane %v94_v27, 5 }
  0x62   :  { %1000 = vmatmul.mubr.bf16.gmra.mrb[16].mxu0 %v4918_v34  ;;  %v74_v34 = vrot.slane %v72_v16, 5  ;;  %v5816_v16 = vld [vmem:[%s8355_s1 + $0xf0] ss:$8 sps:$4 sm:$0xff]  }
  0x63   :  { %1217 = vmatpush1.bf16.msra.mxu0 %v5792_v35  ;;  %1009 = vmatprep.mubr.bf16.mxu0 %v4927_v37  ;;  %v88_v35 = vrot.slane %v86_v45, 5  ;;  %v4929_v37 = vcombine.low %v640_v19, %v654_v20  ;;  %v97_v57 = vor.u32 %v96_v41, %v93_v40  ;;  %v150_v19 = vshll.u32 %v6457_v25, 16 }
  0x64   :  { %1218 = vmatprep.subr.bf16.mxu0 %v5797_v47  ;;  %v5809_v47 = vld [vmem:[%s8355_s1 + $0xd0] ss:$8 sps:$4 sm:$0xff]   ;;  %v75_v15 = vsel %vm6060_vm2, %v70_v38, %v74_v34 }
  0x65   :  { %v89_v56 = vsel %vm6060_vm2, %v84_v62, %v88_v35  ;;  %v98_v5 = vrot.slane %v97_v57, 4  ;;  %v152_v35 = vrot.slane %v150_v19, 5  ;;  %v177_v57 = vrot.slane %v175_v43, 4  ;;  %v55_v43 = vld [vmem:[%s8356_s0 + $0x6c] sm:$0x1] }
  0x67   :  { %1219 = vmatpush1.bf16.msra.mxu0 %v5795_v14  ;;  %v5815_v14 = vld [vmem:[%s8355_s1 + $0xe4] ss:$8 sps:$4 sm:$0xff]   ;;  %v103_v20 = vsel %vm6060_vm2, %v98_v5, %v102_v6 }
  0x68   :  { %1220 = vmatprep.subr.bf16.mxu0 %v5801_v59  ;;  %v4921_v59 = vcombine.low %v6305_v17, %v6310_v18  ;;  %v48_v17 = vld [vmem:[%s8356_s0 + $0x2c] sm:$0x1]  ;;  %v135_v18 = vrot.slane %v133_v52, 4 }
  0x69   :  { %v142_v9 = vshll.u32 %v48_v17, 16  ;;  %v184_v17 = vshll.u32 %v51_v53, 16  ;;  %v240_v53 = vshll.u32 %v55_v43, 16  ;;  %v5830_v43 = vld [vmem:[%s8359_s4 + $0x180] sm:$0xff]  }
  0x6a   :  { %1010 = vmatmul.mubr.bf16.gmra.mrb[20].mxu0 %v4919_v0  ;;  %v121_v0 = vrot.slane %v119_v55, 4  ;;  %v139_v45 = vor.u32 %v138_v4, %v135_v18  ;;  %v217_v18 = vshrl.u32 %v6514_v12, 16  ;;  %v220_v4 = vshll.u32 %v6514_v12, 16 }
  0x6b   :  { %1221 = vmatpush1.bf16.msra.mxu0 %v5799_v1  ;;  %1019 = vmatprep.mubr.bf16.mxu0 %v4928_v2  ;;  %v124_v1 = vrot.slane %v122_v44, 5  ;;  %v4874_v2 = vcombine.low %v75_v15, %v89_v56  ;;  %v144_v29 = vrot.slane %v142_v9, 5  ;;  %v178_v44 = vshll.u32 %v6486_v63, 16 }
  0x6c   :  { %1222 = vmatprep.subr.bf16.mxu0 %v5804_v11  ;;  %v172_v56 = vrot.slane %v170_v42, 5  ;;  %v219_v19 = vrot.slane %v217_v18, 4 }
  0x6d   :  { %v125_v11 = vor.u32 %v124_v1, %v121_v0  ;;  %v194_v0 = vrot.slane %v192_v50, 5  ;;  %v203_v1 = vshrl.u32 %v6509_v58, 16 }
  0x6f   :  { %1223 = vmatpush1.bf16.msra.mxu0 %v5802_v46  ;;  %v147_v46 = vshrl.u32 %v6457_v25, 16  ;;  %v126_v27 = vrot.slane %v125_v11, 4  ;;  %v4868_v11 = vcombine.low %v6419_v48, %v6424_v54  ;;  %v205_v26 = vrot.slane %v203_v1, 4  ;;  %v6538_v48 = vld [vmem:[%s8356_s0 + $0x68] sm:$0xf] }
  0x70   :  { %1224 = vmatprep.subr.bf16.mxu0 %v5808_v23  ;;  %v164_v23 = vshll.u32 %v6462_v10, 16  ;;  %v6543_v54 = vld [vmem:[%s8356_s0 + $0x70] sm:$0xf]  ;;  %v242_v1 = vrot.slane %v240_v53, 5  ;;  %v5839_v53 = vld [vmem:[%s8359_s4 + $0x118] sm:$0xff]  }
  0x71   :  { %v149_v34 = vrot.slane %v147_v46, 4  ;;  %v131_v39 = vsel %vm6060_vm2, %v126_v27, %v130_v28  ;;  %v54_v46 = vld [vmem:[%s8356_s0 + $0x64] sm:$0x1]  ;;  %v245_v36 = vshrl.u32 %v6543_v54, 16 }
  0x72   :  { %1020 = vmatmul.mubr.bf16.gmra.mrb[24].mxu0 %v4920_v31  ;;  %v140_v31 = vrot.slane %v139_v45, 4  ;;  %v166_v38 = vrot.slane %v164_v23, 5  ;;  %v53_v45 = vld [vmem:[%s8356_s0 + $0x5c] sm:$0x1] }
  0x73   :  { %1225 = vmatpush1.bf16.msra.mxu0 %v5806_v30  ;;  %1029 = vmatprep.mubr.bf16.mxu0 %v4929_v37  ;;  %v4875_v30 = vcombine.low %v103_v20, %v117_v21  ;;  %v163_v37 = vrot.slane %v161_v22, 4  ;;  %v153_v41 = vor.u32 %v152_v35, %v149_v34  ;;  %v222_v20 = vrot.slane %v220_v4, 5 }
  0x74   :  { %1226 = vmatprep.subr.bf16.mxu0 %v5811_v32  ;;  %v49_v32 = vld [vmem:[%s8356_s0 + $0x34] sm:$0x1]  ;;  %v145_v62 = vsel %vm6060_vm2, %v140_v31, %v144_v29  ;;  %v186_v22 = vrot.slane %v184_v17, 5  ;;  %v212_v28 = vshll.u32 %v53_v45, 16  ;;  %v226_v29 = vshll.u32 %v54_v46, 16 }
  0x75   :  { %v156_v40 = vshll.u32 %v49_v32, 16  ;;  %v167_v55 = vor.u32 %v166_v38, %v163_v37  ;;  %v154_v15 = vrot.slane %v153_v41, 4  ;;  %v231_v31 = vshrl.u32 %v6538_v48, 16 }
  0x76   :  { %v234_v32 = vshll.u32 %v6538_v48, 16  ;;  %v248_v37 = vshll.u32 %v6543_v54, 16  ;;  %v4869_v38 = vcombine.low %v6457_v25, %v6462_v10  ;;  %v247_v50 = vrot.slane %v245_v36, 4  ;;  %v41_v25 = vld [vmem:[%s8356_s0 + $0x78] sm:$0xf]  ;;  %v5828_v36 = vld [vmem:[%s8359_s4 + $0x1c0] sm:$0xff]  }
  0x77   :  { %1227 = vmatpush1.bf16.msra.mxu0 %v5809_v47  ;;  %v189_v47 = vshrl.u32 %v6491_v49, 16  ;;  %v158_v52 = vrot.slane %v156_v40, 5  ;;  %v214_v40 = vrot.slane %v212_v28, 5  ;;  %v42_v10 = vld [vmem:[%s8356_s0 + $0x80] sm:$0xf]  ;;  %v4871_v46 = vcombine.low %v6509_v58, %v6514_v12 }
  0x78   :  { %1228 = vmatprep.subr.bf16.mxu0 %v5815_v14  ;;  %v4876_v14 = vcombine.low %v131_v39, %v145_v62  ;;  %v228_v62 = vrot.slane %v226_v29, 5  ;;  %v4872_v28 = vcombine.low %v6538_v48, %v6543_v54  ;;  %v1446_v12 = vlaneseq  ;;  %v1314_v48 = vld [vmem:[%s8358_s3] sm:$0x3] }
  0x79   :  { %v159_v3 = vsel %vm6060_vm2, %v154_v15, %v158_v52 }
  0x7a   :  { %1030 = vmatmul.mubr.bf16.gmra.mrb[28].mxu0 %v4921_v59  ;;  %v168_v59 = vrot.slane %v167_v55, 4  ;;  %v233_v55 = vrot.slane %v231_v31, 4  ;;  %v6596_v31 = vld [vmem:[%s8357_s2] sm:$0x3] }
  0x7b   :  { %1229 = vmatpush1.bf16.msra.mxu0 %v5813_v60  ;;  %1232 = vmatprep.mubr.bf16.mxu0 %v4874_v2  ;;  %v180_v60 = vrot.slane %v178_v44, 5  ;;  %v206_v2 = vshll.u32 %v6509_v58, 16  ;;  %v236_v44 = vrot.slane %v234_v32, 5  ;;  %v4873_v58 = vcombine.low %v41_v25, %v42_v10 }
  0x7c   :  { %1230 = vmatprep.subr.bf16.mxu0 %v5818_v61  ;;  %v191_v61 = vrot.slane %v189_v47, 4  ;;  %v173_v5 = vsel %vm6060_vm2, %v168_v59, %v172_v56  ;;  %v56_v47 = vld [vmem:[%s8356_s0 + $0x74] sm:$0x1] }
  0x7d   :  { %v181_v6 = vor.u32 %v180_v60, %v177_v57  ;;  %v208_v9 = vrot.slane %v206_v2, 5  ;;  %v237_v15 = vor.u32 %v236_v44, %v233_v55  ;;  %v254_v56 = vshll.u32 %v56_v47, 16  ;;  %v5831_v55 = vld [vmem:[%s8359_s4 + $0x108] sm:$0xff]  }
  0x7e   :  { %v195_v7 = vor.u32 %v194_v0, %v191_v61  ;;  %v259_v57 = vshrl.u32 %v41_v25, 16  ;;  %v262_v60 = vshll.u32 %v41_v25, 16  ;;  %v273_v61 = vshrl.u32 %v42_v10, 16  ;;  %v5832_v44 = vld [vmem:[%s8359_s4 + $0x1c8] sm:$0xff]   ;;  %v5836_v25 = vld [vmem:[%s8359_s4 + $0x1d0] sm:$0xff]  }
  0x7f   :  { %1231 = vmatpush1.bf16.msra.mxu0 %v5816_v16  ;;  %v4877_v16 = vcombine.low %v159_v3, %v173_v5  ;;  %v182_v21 = vrot.slane %v181_v6, 4  ;;  %v209_v27 = vor.u32 %v208_v9, %v205_v26  ;;  %v276_v0 = vshll.u32 %v42_v10, 16  ;;  %v57_v5 = vld [vmem:[%s8356_s0 + $0x7c] sm:$0x1]  ;;  %v5833_v47 = vld [vmem:[%s8359_s4 + $0xc8] sm:$0xff]   ;;  %v5837_v10 = vld [vmem:[%s8359_s4 + $0xd0] sm:$0xff]  }
  0x80   :  { %v196_v23 = vrot.slane %v195_v7, 4  ;;  %v238_v3 = vrot.slane %v237_v15, 4  ;;  %v256_v17 = vrot.slane %v254_v56, 5  ;;  %v261_v18 = vrot.slane %v259_v57, 4  ;;  %5426 = vmatprep.subr.bf16.mxu0 %v5828_v36  ;;  %v5841_v15 = vld [vmem:[%s8359_s4 + $0xd8] sm:$0xff]   ;;  %v5843_v57 = vld [vmem:[%s8359_s4 + $0x120] sm:$0xff]  }
  0x81   :  { %v187_v34 = vsel %vm6060_vm2, %v182_v21, %v186_v22  ;;  %v210_v39 = vrot.slane %v209_v27, 4  ;;  %v264_v6 = vrot.slane %v262_v60, 5  ;;  %v275_v7 = vrot.slane %v273_v61, 4  ;;  %v5842_v56 = vld [vmem:[%s8359_s4 + $0x198] sm:$0xff]   ;;  %v5845_v60 = vld [vmem:[%s8359_s4 + $0xe0] sm:$0xff]  }
  0x82   :  { %1233 = vmatmul.mubr.bf16.vlgmr.msra.gmra.mrb[0].mxu0 %v4866_v24  ;;  %v200_v24 = vrot.slane %v198_v8, 5  ;;  %v278_v8 = vrot.slane %v276_v0, 5  ;;  %v243_v63 = vsel %vm6060_vm2, %v238_v3, %v242_v1  ;;  %v268_v49 = vshll.u32 %v57_v5, 16  ;;  %v5846_v61 = vld [vmem:[%s8359_s4 + $0x1a0] sm:$0xff]   ;;  %v5847_v0 = vld [vmem:[%s8359_s4 + $0x128] sm:$0xff]  }
  0x83   :  { %1242 = vmatprep.mubr.bf16.mxu0 %v4875_v30  ;;  %v223_v30 = vor.u32 %v222_v20, %v219_v19  ;;  %v215_v52 = vsel %vm6060_vm2, %v210_v39, %v214_v40  ;;  %v265_v9 = vor.u32 %v264_v6, %v261_v18  ;;  %v1663_v39 = vld [vmem:[#allocation2 + $0x90] sm:$0x1]  ;;  %v1713_v40 = vld [vmem:[#allocation2 + $0x94] sm:$0x1]  ;;  %5427 = vmatpush3.bf16.msra.mxu0 %v5830_v43  ;;  %v5849_v1 = vld [vmem:[%s8359_s4 + $0xe8] sm:$0xff]  }
  0x84   :  { %v201_v35 = vsel %vm6060_vm2, %v196_v23, %v200_v24  ;;  %v270_v21 = vrot.slane %v268_v49, 5  ;;  %5428 = vmatprep.subr.bf16.mxu0 %v5832_v44  ;;  %v5853_v6 = vld [vmem:[%s8359_s4 + $0xf0] sm:$0xff]  }
  0x85   :  { %v4878_v41 = vcombine.low %v187_v34, %v201_v35  ;;  %v224_v42 = vrot.slane %v223_v30, 4  ;;  %v266_v20 = vrot.slane %v265_v9, 4  ;;  %v6591_v30 = vshrl.u32 %v1446_v12, 7  ;;  %v5827_v35 = vld [vmem:[%s8359_s4 + $0x100] sm:$0xff]   ;;  %v5854_v49 = vld [vmem:[%s8359_s4 + $0x1b0] sm:$0xff]  }
  0x86   :  { %5266 = vmatprep.subr.bf16.mxu1 %v5827_v35 }
  0x87   :  { %v271_v24 = vsel %vm6060_vm2, %v266_v20, %v270_v21  ;;  %v1452_v32 = vsub.s32 1, %v6591_v30  ;;  %v5857_v21 = vld [vmem:[%s8359_s4 + $0xf8] sm:$0xff]  }
  0x89   :  { %v6600_v34 = vrot.slane %v6596_v31, %v1452_v32  ;;  %v6605_v54 = vrot.slane %v1314_v48, %v1452_v32  ;;  %v1668_v48 = vld [vmem:[#allocation2 + $0xc] sm:$0x1] }
  0x8a   :  { %1243 = vmatmul.mubr.bf16.gmra.mrb[4].mxu0 %v4867_v51  ;;  %v250_v51 = vrot.slane %v248_v37, 5  ;;  %v5829_v37 = vld [vmem:[%s8359_s4 + $0xc0] sm:$0xff]  }
  0x8b   :  { %1252 = vmatprep.mubr.bf16.mxu0 %v4876_v14  ;;  %v229_v14 = vsel %vm6060_vm2, %v224_v42, %v228_v62  ;;  %8379 = vst [vmem:[#allocation3_spill] sm:$0xff] %v6605_v54  ;;  %v1664_v62 = vsel %vm6616_vm6, 0, %v1663_v39  ;;  %5267 = vmatpush3.bf16.msra.mxu1 %v5829_v37  ;;  %v1714_v42 = vsel %vm6623_vm7, 0, %v1713_v40  ;;  %v1669_v39 = vsel %vm6623_vm7, 0, %v1668_v48  ;;  %v1671_v40 = vld [vmem:[#allocation2 + $0x14] sm:$0x1] }
  0x8c   :  { %v251_v59 = vor.u32 %v250_v51, %v247_v50  ;;  %v4879_v2 = vcombine.low %v215_v52, %v229_v14  ;;  %1665 = vst [vmem:[#allocation2 + $0x90] sm:$0x1] %v1664_v62  ;;  %1715 = vst [vmem:[#allocation2 + $0x94] sm:$0x1] %v1714_v42  ;;  %5268 = vmatprep.subr.bf16.mxu1 %v5831_v55  ;;  %v5834_v50 = vld [vmem:[%s8359_s4 + $0x188] sm:$0xff]   ;;  %v5835_v51 = vld [vmem:[%s8359_s4 + $0x110] sm:$0xff]  }
  0x8d   :  { %5429 = vmatpush3.bf16.msra.mxu0 %v5834_v50  ;;  %v5838_v52 = vld [vmem:[%s8359_s4 + $0x190] sm:$0xff]   ;;  %v5840_v14 = vld [vmem:[%s8359_s4 + $0x1d8] sm:$0xff]   ;;  %1670 = vst [vmem:[#allocation2 + $0xc] sm:$0x1] %v1669_v39  ;;  %v1639_v48 = vld [vmem:[#allocation2 + $0x40] sm:$0x1] }
  0x8e   :  { %v252_v4 = vrot.slane %v251_v59, 4  ;;  %5430 = vmatprep.subr.bf16.mxu0 %v5836_v25  ;;  %v5844_v59 = vld [vmem:[%s8359_s4 + $0x1e0] sm:$0xff]   ;;  %v1624_v62 = vld [vmem:[#allocation2 + $0x18] sm:$0x1]  ;;  %v1674_v50 = vld [vmem:[#allocation2 + $0x1c] sm:$0x1] }
  0x8f   :  { %5269 = vmatpush3.bf16.msra.mxu1 %v5833_v47  ;;  %v1672_v47 = vsel %vm6623_vm7, 0, %v1671_v40  ;;  %v1689_v40 = vld [vmem:[#allocation2 + $0x44] sm:$0x1] }
  0x90   :  { %v257_v26 = vsel %vm6060_vm2, %v252_v4, %v256_v17  ;;  %5270 = vmatprep.subr.bf16.mxu1 %v5835_v51  ;;  %v5851_v17 = vld [vmem:[%s8359_s4 + $0x130] sm:$0xff]   ;;  %1673 = vst [vmem:[#allocation2 + $0x14] sm:$0x1] %v1672_v47 }
  0x91   :  { %v4880_v19 = vcombine.low %v243_v63, %v257_v26  ;;  %5431 = vmatpush3.bf16.msra.mxu0 %v5838_v52  ;;  %v5852_v4 = vld [vmem:[%s8359_s4 + $0x1f0] sm:$0xff]   ;;  %v1625_v52 = vsel %vm6616_vm6, 0, %v1624_v62 }
  0x92   :  { %1253 = vmatmul.mubr.bf16.gmra.mrb[8].mxu0 %v4868_v11  ;;  %v58_v11 = vld [vmem:[%s8356_s0 + $0x84] sm:$0x1]  ;;  %5432 = vmatprep.subr.bf16.mxu0 %v5840_v14  ;;  %v1627_v14 = vld [vmem:[#allocation2 + $0x20] sm:$0x1]  ;;  %1626 = vst [vmem:[#allocation2 + $0x18] sm:$0x1] %v1625_v52 }
  0x93   :  { %1262 = vmatprep.mubr.bf16.mxu0 %v4877_v16  ;;  %v279_v16 = vor.u32 %v278_v8, %v275_v7  ;;  %v282_v45 = vshll.u32 %v58_v11, 16  ;;  %5271 = vmatpush3.bf16.msra.mxu1 %v5837_v10 }
  0x94   :  { %5272 = vmatprep.subr.bf16.mxu1 %v5839_v53  ;;  %v5860_v53 = vld [vmem:[%s8359_s4 + $0x140] sm:$0xff]  }
  0x95   :  { %v280_v22 = vrot.slane %v279_v16, 4  ;;  %v284_v23 = vrot.slane %v282_v45, 5  ;;  %5433 = vmatpush3.bf16.msra.mxu0 %v5842_v56  ;;  %v5855_v45 = vld [vmem:[%s8359_s4 + $0x138] sm:$0xff]   ;;  %v1675_v56 = vsel %vm6623_vm7, 0, %v1674_v50 }
  0x96   :  { %5434 = vmatprep.subr.bf16.mxu0 %v5844_v59  ;;  %v1677_v59 = vld [vmem:[#allocation2 + $0x24] sm:$0x1]  ;;  %1676 = vst [vmem:[#allocation2 + $0x1c] sm:$0x1] %v1675_v56  ;;  %v1642_v50 = vld [vmem:[#allocation2 + $0x58] sm:$0x1] }
  0x97   :  { %v285_v27 = vsel %vm6060_vm2, %v280_v22, %v284_v23  ;;  %5273 = vmatpush3.bf16.msra.mxu1 %v5841_v15  ;;  %v5858_v22 = vld [vmem:[%s8359_s4 + $0x1b8] sm:$0xff]   ;;  %v1643_v52 = vsel %vm6616_vm6, 0, %v1642_v50 }
  0x98   :  { %v4881_v29 = vcombine.low %v271_v24, %v285_v27  ;;  %5274 = vmatprep.subr.bf16.mxu1 %v5843_v57  ;;  %v1618_v24 = vld [vmem:[#allocation2 + $0x8] sm:$0x1]  ;;  %v1621_v27 = vld [vmem:[#allocation2 + $0x10] sm:$0x1]  ;;  %v1628_v57 = vsel %vm6616_vm6, 0, %v1627_v14 }
  0x99   :  { %5435 = vmatpush3.bf16.msra.mxu0 %v5846_v61  ;;  %v1619_v12 = vsel %vm6616_vm6, 0, %v1618_v24  ;;  %v1622_v32 = vsel %vm6616_vm6, 0, %v1621_v27  ;;  %1629 = vst [vmem:[#allocation2 + $0x20] sm:$0x1] %v1628_v57  ;;  %v5947_v57 = vmov 0  }
  0x9a   :  { %1263 = vmatmul.mubr.bf16.gmra.mrb[12].mxu0 %v4869_v38  ;;  %1620 = vst [vmem:[#allocation2 + $0x8] sm:$0x1] %v1619_v12  ;;  %1623 = vst [vmem:[#allocation2 + $0x10] sm:$0x1] %v1622_v32 }
  0x9b   :  { %1272 = vmatprep.mubr.bf16.mxu0 %v4878_v41  ;;  %5275 = vmatpush3.bf16.msra.mxu1 %v5845_v60  ;;  %v1630_v60 = vld [vmem:[#allocation2 + $0x28] sm:$0x1]  ;;  %1610 = vst [vmem:[#allocation2 + $0x48] sm:$0xf] %v5947_v57  ;;  %1611 = vst [vmem:[#allocation2 + $0x4c] sm:$0x1] %v5947_v57 }
  0x9c   :  { %5276 = vmatprep.subr.bf16.mxu1 %v5847_v0  ;;  %v1678_v0 = vsel %vm6623_vm7, 0, %v1677_v59  ;;  %1605 = vst [vmem:[#allocation2] sm:$0xf] %v5947_v57  ;;  %1606 = vst [vmem:[#allocation2 + $0x4] sm:$0x1] %v5947_v57 }
  0x9d   :  { %1679 = vst [vmem:[#allocation2 + $0x24] sm:$0x1] %v1678_v0  ;;  %1607 = vst [vmem:[#allocation2 + $0x50] sm:$0xf] %v5947_v57  ;;  %v1645_v59 = vld [vmem:[#allocation2 + $0x60] sm:$0x1] }
  0x9e   :  { %1608 = vst [vmem:[#allocation2 + $0x54] sm:$0x1] %v5947_v57  ;;  %1612 = vst [vmem:[#allocation2 + $0x98] sm:$0xf] %v5947_v57 }
  0x9f   :  { %5277 = vmatpush3.bf16.msra.mxu1 %v5849_v1  ;;  %v1680_v1 = vld [vmem:[#allocation2 + $0x2c] sm:$0x1]  ;;  %1613 = vst [vmem:[#allocation2 + $0x9c] sm:$0x1] %v5947_v57  ;;  %1644 = vst [vmem:[#allocation2 + $0x58] sm:$0x1] %v1643_v52 }
  0xa0   :  { %5278 = vmatprep.subr.bf16.mxu1 %v5851_v17  ;;  %v1633_v17 = vld [vmem:[#allocation2 + $0x30] sm:$0x1] }
  0xa2   :  { %1273 = vmatmul.mubr.bf16.gmra.mrb[16].mxu0 %v4870_v13  ;;  %v5848_v13 = vld [vmem:[%s8359_s4 + $0x1e8] sm:$0xff]  }
  0xa3   :  { %1282 = vmatprep.mubr.bf16.mxu0 %v4879_v2  ;;  %5436 = vmatprep.subr.bf16.mxu0 %v5848_v13  ;;  %v5850_v2 = vld [vmem:[%s8359_s4 + $0x1a8] sm:$0xff]   ;;  %v1631_v13 = vsel %vm6616_vm6, 0, %v1630_v60 }
  0xa4   :  { %5437 = vmatpush3.bf16.msra.mxu0 %v5850_v2  ;;  %5279 = vmatpush3.bf16.msra.mxu1 %v5853_v6  ;;  %1632 = vst [vmem:[#allocation2 + $0x28] sm:$0x1] %v1631_v13  ;;  %v1681_v2 = vsel %vm6623_vm7, 0, %v1680_v1  ;;  %v1634_v6 = vsel %vm6616_vm6, 0, %v1633_v17  ;;  %v1646_v13 = vsel %vm6616_vm6, 0, %v1645_v59 }
  0xa5   :  { %5438 = vmatprep.subr.bf16.mxu0 %v5852_v4  ;;  %5280 = vmatprep.subr.bf16.mxu1 %v5855_v45  ;;  %1682 = vst [vmem:[#allocation2 + $0x2c] sm:$0x1] %v1681_v2  ;;  %1635 = vst [vmem:[#allocation2 + $0x30] sm:$0x1] %v1634_v6  ;;  %v1692_v1 = vld [vmem:[#allocation2 + $0x5c] sm:$0x1] }
  0xa6   :  { %v1695_v2 = vld [vmem:[#allocation2 + $0x64] sm:$0x1]  ;;  %1647 = vst [vmem:[#allocation2 + $0x60] sm:$0x1] %v1646_v13  ;;  %v1693_v6 = vsel %vm6623_vm7, 0, %v1692_v1 }
  0xa7   :  { %1694 = vst [vmem:[#allocation2 + $0x5c] sm:$0x1] %v1693_v6 }
  0xa8   :  { %5439 = vmatpush3.bf16.msra.mxu0 %v5854_v49  ;;  %5281 = vmatpush3.bf16.msra.mxu1 %v5857_v21 }
  0xa9   :  { %5506 = vmatprep.subr.bf16.mxu1 %v5860_v53 }
  0xaa   :  { %1283 = vmatmul.mubr.bf16.gmra.mrb[20].mxu0 %v4871_v46 }
  0xab   :  { %1292 = vmatprep.mubr.bf16.mxu0 %v4880_v19  ;;  %v5856_v19 = vld [vmem:[%s8359_s4 + $0x1f8] sm:$0xff]  }
  0xac   :  { %5440 = vmatprep.subr.bf16.mxu0 %v5856_v19 }
  0xad   :  { %5441 = vmatpush3.bf16.msra.mxu0 %v5858_v22 }
  0xb2   :  { %1293 = vmatmul.mubr.bf16.gmra.mrb[24].mxu0 %v4872_v28 }
  0xb3   :  { %1302 = vmatprep.mubr.bf16.mxu0 %v4881_v29 }
  0xba   :  { %1303 = vmatmul.mubr.bf16.gmra.mrb[28].mxu0 %v4873_v58 }
 0x155   :  { %v6692_v3 = vpop.f32.mrb[0].mxu0 }
 0x156   :  { %v6697_v18 = vpop.f32.mrb[1].mxu0  ;;  %v1315_v7 = vmul.f32 %v6692_v3, %v6692_v3 }
 0x157   :  { %v6702_v5 = vpop.f32.mrb[2].mxu0  ;;  %v1316_v26 = vmul.f32 %v6697_v18, %v6697_v18 }
 0x158   :  { %v1317_v8 = vmul.f32 %v6702_v5, %v6702_v5  ;;  %v1347_v11 = vadd.f32 %v6702_v5, %v6692_v3  ;;  %v6713_v63 = vpop.f32.mrb[3].mxu0 }
 0x159   :  { %v1318_v9 = vmul.f32 %v6713_v63, %v6713_v63  ;;  %v1368_v16 = vadd.f32 %v6713_v63, %v6697_v18 }
 0x15a   :  { %v1389_v46 = vadd.f32 %v1317_v8, %v1315_v7  ;;  %v1683_v7 = vld [vmem:[#allocation2 + $0x34] sm:$0x1]  ;;  %v1636_v8 = vld [vmem:[#allocation2 + $0x38] sm:$0x1] }
 0x15b   :  { %v1410_v20 = vadd.f32 %v1318_v9, %v1316_v26  ;;  %v1684_v9 = vsel %vm6623_vm7, 0, %v1683_v7  ;;  %v1637_v19 = vsel %vm6616_vm6, 0, %v1636_v8  ;;  %v1696_v7 = vsel %vm6623_vm7, 0, %v1695_v2 }
 0x15c   :  { %1685 = vst [vmem:[#allocation2 + $0x34] sm:$0x1] %v1684_v9  ;;  %1638 = vst [vmem:[#allocation2 + $0x38] sm:$0x1] %v1637_v19 }
 0x15d   :  { %v6736_v23 = vpop.f32.mrb[4].mxu0  ;;  %1697 = vst [vmem:[#allocation2 + $0x64] sm:$0x1] %v1696_v7 }
 0x15e   :  { %v1319_v28 = vmul.f32 %v6736_v23, %v6736_v23  ;;  %v1348_v29 = vadd.f32 %v1347_v11, %v6736_v23  ;;  %v6741_v58 = vpop.f32.mrb[5].mxu0 }
 0x15f   :  { %v1320_v35 = vmul.f32 %v6741_v58, %v6741_v58  ;;  %v1369_v36 = vadd.f32 %v1368_v16, %v6741_v58  ;;  %v6750_v37 = vpop.f32.mrb[6].mxu0 }
 0x160   :  { %v1390_v42 = vadd.f32 %v1389_v46, %v1319_v28  ;;  %v1321_v43 = vmul.f32 %v6750_v37, %v6750_v37  ;;  %v1349_v55 = vadd.f32 %v1348_v29, %v6750_v37  ;;  %v6757_v44 = vpop.f32.mrb[7].mxu0 }
 0x161   :  { %v1411_v51 = vadd.f32 %v1410_v20, %v1320_v35  ;;  %v1322_v25 = vmul.f32 %v6757_v44, %v6757_v44  ;;  %v1370_v10 = vadd.f32 %v1369_v36, %v6757_v44  ;;  %v1686_v20 = vld [vmem:[#allocation2 + $0x3c] sm:$0x1]  ;;  %v1640_v36 = vsel %vm6616_vm6, 0, %v1639_v48 }
 0x162   :  { %v1391_v15 = vadd.f32 %v1390_v42, %v1321_v43  ;;  %v1687_v28 = vsel %vm6623_vm7, 0, %v1686_v20  ;;  %1641 = vst [vmem:[#allocation2 + $0x40] sm:$0x1] %v1640_v36  ;;  %v1690_v42 = vsel %vm6623_vm7, 0, %v1689_v40  ;;  %v1698_v36 = vld [vmem:[#allocation2 + $0x6c] sm:$0x1] }
 0x163   :  { %v1412_v61 = vadd.f32 %v1411_v51, %v1322_v25  ;;  %1688 = vst [vmem:[#allocation2 + $0x3c] sm:$0x1] %v1687_v28  ;;  %1691 = vst [vmem:[#allocation2 + $0x44] sm:$0x1] %v1690_v42  ;;  %v1699_v42 = vsel %vm6623_vm7, 0, %v1698_v36 }
 0x164   :  { %1700 = vst [vmem:[#allocation2 + $0x6c] sm:$0x1] %v1699_v42 }
 0x165   :  { %v6779_v4 = vpop.f32.mrb[8].mxu0 }
 0x166   :  { %v1323_v11 = vmul.f32 %v6779_v4, %v6779_v4  ;;  %v1350_v49 = vadd.f32 %v1349_v55, %v6779_v4  ;;  %v6786_v26 = vpop.f32.mrb[9].mxu0 }
 0x167   :  { %v1324_v16 = vmul.f32 %v6786_v26, %v6786_v26  ;;  %v1371_v45 = vadd.f32 %v1370_v10, %v6786_v26  ;;  %v6793_v46 = vpop.f32.mrb[10].mxu0 }
 0x168   :  { %v1392_v21 = vadd.f32 %v1391_v15, %v1323_v11  ;;  %v1325_v22 = vmul.f32 %v6793_v46, %v6793_v46  ;;  %v1351_v24 = vadd.f32 %v1350_v49, %v6793_v46  ;;  %v6800_v27 = vpop.f32.mrb[11].mxu0 }
 0x169   :  { %v1413_v29 = vadd.f32 %v1412_v61, %v1324_v16  ;;  %v1326_v12 = vmul.f32 %v6800_v27, %v6800_v27  ;;  %v1372_v32 = vadd.f32 %v1371_v45, %v6800_v27 }
 0x16a   :  { %v1393_v35 = vadd.f32 %v1392_v21, %v1325_v22 }
 0x16b   :  { %v1414_v39 = vadd.f32 %v1413_v29, %v1326_v12 }
 0x16d   :  { %v6809_v62 = vpop.f32.mrb[12].mxu0 }
 0x16e   :  { %v1327_v43 = vmul.f32 %v6809_v62, %v6809_v62  ;;  %v1352_v55 = vadd.f32 %v1351_v24, %v6809_v62  ;;  %v6816_v47 = vpop.f32.mrb[13].mxu0 }
 0x16f   :  { %v1328_v51 = vmul.f32 %v6816_v47, %v6816_v47  ;;  %v1373_v25 = vadd.f32 %v1372_v32, %v6816_v47  ;;  %v6821_v10 = vpop.f32.mrb[14].mxu0 }
 0x170   :  { %v1394_v53 = vadd.f32 %v1393_v35, %v1327_v43  ;;  %v1329_v14 = vmul.f32 %v6821_v10, %v6821_v10  ;;  %v1353_v15 = vadd.f32 %v1352_v55, %v6821_v10  ;;  %v6828_v56 = vpop.f32.mrb[15].mxu0  ;;  %v1648_v35 = vld [vmem:[#allocation2 + $0x68] sm:$0x1] }
 0x171   :  { %v1415_v60 = vadd.f32 %v1414_v39, %v1328_v51  ;;  %v1330_v61 = vmul.f32 %v6828_v56, %v6828_v56  ;;  %v1374_v0 = vadd.f32 %v1373_v25, %v6828_v56  ;;  %v1649_v40 = vsel %vm6616_vm6, 0, %v1648_v35 }
 0x172   :  { %v1395_v17 = vadd.f32 %v1394_v53, %v1329_v14  ;;  %1650 = vst [vmem:[#allocation2 + $0x68] sm:$0x1] %v1649_v40 }
 0x173   :  { %v1416_v8 = vadd.f32 %v1415_v60, %v1330_v61 }
 0x175   :  { %v6839_v11 = vpop.f32.mrb[16].mxu0 }
 0x176   :  { %v1331_v49 = vmul.f32 %v6839_v11, %v6839_v11  ;;  %v1354_v9 = vadd.f32 %v1353_v15, %v6839_v11  ;;  %v6844_v16 = vpop.f32.mrb[17].mxu0 }
 0x177   :  { %v1332_v45 = vmul.f32 %v6844_v16, %v6844_v16  ;;  %v1375_v19 = vadd.f32 %v1374_v0, %v6844_v16  ;;  %v6849_v20 = vpop.f32.mrb[18].mxu0 }
 0x178   :  { %v1396_v21 = vadd.f32 %v1395_v17, %v1331_v49  ;;  %v1333_v22 = vmul.f32 %v6849_v20, %v6849_v20  ;;  %v1355_v24 = vadd.f32 %v1354_v9, %v6849_v20  ;;  %v6854_v28 = vpop.f32.mrb[19].mxu0  ;;  %v1651_v17 = vld [vmem:[#allocation2 + $0x70] sm:$0x1]  ;;  %v1701_v9 = vld [vmem:[#allocation2 + $0x74] sm:$0x1] }
 0x179   :  { %8384 = vst [vmem:[#allocation4_spill] sm:$0xff] %v6854_v28  ;;  %v1417_v29 = vadd.f32 %v1416_v8, %v1332_v45  ;;  %v1334_v12 = vmul.f32 %v6854_v28, %v6854_v28  ;;  %v1376_v32 = vadd.f32 %v1375_v19, %v6854_v28  ;;  %v1652_v49 = vsel %vm6616_vm6, 0, %v1651_v17  ;;  %v1654_v45 = vld [vmem:[#allocation2 + $0x78] sm:$0x1] }
 0x17a   :  { %v1397_v48 = vadd.f32 %v1396_v21, %v1333_v22  ;;  %1653 = vst [vmem:[#allocation2 + $0x70] sm:$0x1] %v1652_v49 }
 0x17b   :  { %v1418_v39 = vadd.f32 %v1417_v29, %v1334_v12  ;;  %v1655_v29 = vsel %vm6616_vm6, 0, %v1654_v45  ;;  %v1704_v12 = vld [vmem:[#allocation2 + $0x7c] sm:$0x1] }
 0x17c   :  { %1656 = vst [vmem:[#allocation2 + $0x78] sm:$0x1] %v1655_v29 }
 0x17d   :  { %v6863_v43 = vpop.f32.mrb[20].mxu0 }
 0x17e   :  { %v1335_v55 = vmul.f32 %v6863_v43, %v6863_v43  ;;  %v1356_v50 = vadd.f32 %v1355_v24, %v6863_v43  ;;  %v6868_v51 = vpop.f32.mrb[21].mxu0  ;;  %v1702_v24 = vsel %vm6623_vm7, 0, %v1701_v9  ;;  %v1707_v9 = vld [vmem:[#allocation2 + $0x84] sm:$0x1] }
 0x17f   :  { %8385 = vst [vmem:[#allocation5_spill] sm:$0xff] %v6868_v51  ;;  %v1336_v25 = vmul.f32 %v6868_v51, %v6868_v51  ;;  %v1377_v52 = vadd.f32 %v1376_v32, %v6868_v51  ;;  %v6873_v53 = vpop.f32.mrb[22].mxu0  ;;  %1703 = vst [vmem:[#allocation2 + $0x74] sm:$0x1] %v1702_v24  ;;  %v1708_v24 = vsel %vm6623_vm7, 0, %v1707_v9 }
 0x180   :  { %v1398_v14 = vadd.f32 %v1397_v48, %v1335_v55  ;;  %v1337_v15 = vmul.f32 %v6873_v53, %v6873_v53  ;;  %v1357_v57 = vadd.f32 %v1356_v50, %v6873_v53  ;;  %v6878_v59 = vpop.f32.mrb[23].mxu0  ;;  %1709 = vst [vmem:[#allocation2 + $0x84] sm:$0x1] %v1708_v24 }
 0x181   :  { %8386 = vst [vmem:[#allocation6_spill] sm:$0xff] %v6878_v59  ;;  %v1419_v60 = vadd.f32 %v1418_v39, %v1336_v25  ;;  %v1338_v61 = vmul.f32 %v6878_v59, %v6878_v59  ;;  %v1378_v0 = vadd.f32 %v1377_v52, %v6878_v59  ;;  %v1705_v39 = vsel %vm6623_vm7, 0, %v1704_v12 }
 0x182   :  { %v1399_v13 = vadd.f32 %v1398_v14, %v1337_v15  ;;  %1706 = vst [vmem:[#allocation2 + $0x7c] sm:$0x1] %v1705_v39 }
 0x183   :  { %v1420_v1 = vadd.f32 %v1419_v60, %v1338_v61 }
 0x185   :  { %v6883_v2 = vpop.f32.mrb[24].mxu0 }
 0x186   :  { %v1339_v6 = vmul.f32 %v6883_v2, %v6883_v2  ;;  %v1358_v7 = vadd.f32 %v1357_v57, %v6883_v2  ;;  %v6888_v8 = vpop.f32.mrb[25].mxu0 }
 0x187   :  { %8387 = vst [vmem:[#allocation7_spill] sm:$0xff] %v6888_v8  ;;  %v1340_v19 = vmul.f32 %v6888_v8, %v6888_v8  ;;  %v1379_v21 = vadd.f32 %v1378_v0, %v6888_v8  ;;  %v6895_v22 = vpop.f32.mrb[26].mxu0 }
 0x188   :  { %v1400_v32 = vadd.f32 %v1399_v13, %v1339_v6  ;;  %v1341_v48 = vmul.f32 %v6895_v22, %v6895_v22  ;;  %v1359_v35 = vadd.f32 %v1358_v7, %v6895_v22  ;;  %v6904_v36 = vpop.f32.mrb[27].mxu0  ;;  %v1657_v13 = vld [vmem:[#allocation2 + $0x80] sm:$0x1] }
 0x189   :  { %8388 = vst [vmem:[#allocation8_spill] sm:$0xff] %v6904_v36  ;;  %v1421_v40 = vadd.f32 %v1420_v1, %v1340_v19  ;;  %v1342_v42 = vmul.f32 %v6904_v36, %v6904_v36  ;;  %v1380_v55 = vadd.f32 %v1379_v21, %v6904_v36  ;;  %v1658_v49 = vsel %vm6616_vm6, 0, %v1657_v13 }
 0x18a   :  { %v1401_v50 = vadd.f32 %v1400_v32, %v1341_v48  ;;  %1659 = vst [vmem:[#allocation2 + $0x80] sm:$0x1] %v1658_v49 }
 0x18b   :  { %v1422_v25 = vadd.f32 %v1421_v40, %v1342_v42 }
 0x18d   :  { %v6911_v52 = vpop.f32.mrb[28].mxu0 }
 0x18e   :  { %v1343_v14 = vmul.f32 %v6911_v52, %v6911_v52  ;;  %v1360_v15 = vadd.f32 %v1359_v35, %v6911_v52  ;;  %v6916_v57 = vpop.f32.mrb[29].mxu0 }
 0x18f   :  { %8389 = vst [vmem:[#allocation9_spill] sm:$0xff] %v6916_v57  ;;  %v1344_v60 = vmul.f32 %v6916_v57, %v6916_v57  ;;  %v1381_v61 = vadd.f32 %v1380_v55, %v6916_v57  ;;  %v6921_v0 = vpop.f32.mrb[30].mxu0 }
 0x190   :  { %v1402_v1 = vadd.f32 %v1401_v50, %v1343_v14  ;;  %v1345_v17 = vmul.f32 %v6921_v0, %v6921_v0  ;;  %v1361_v6 = vadd.f32 %v1360_v15, %v6921_v0  ;;  %v6926_v7 = vpop.f32.mrb[31].mxu0 }
 0x191   :  { %v1423_v45 = vadd.f32 %v1422_v25, %v1344_v60  ;;  %v1346_v19 = vmul.f32 %v6926_v7, %v6926_v7  ;;  %v1382_v21 = vadd.f32 %v1381_v61, %v6926_v7 }
 0x192   :  { %v1362_v29 = vrot.slane %v1361_v6, 4  ;;  %v1403_v12 = vadd.f32 %v1402_v1, %v1345_v17 }
 0x193   :  { %v1383_v32 = vrot.slane %v1382_v21, 4  ;;  %v1424_v48 = vadd.f32 %v1423_v45, %v1346_v19 }
 0x194   :  { %v1363_v35 = vadd.f32 %v1362_v29, %v1361_v6  ;;  %v1404_v39 = vrot.slane %v1403_v12, 4 }
 0x195   :  { %v1384_v40 = vadd.f32 %v1383_v32, %v1382_v21  ;;  %v1425_v42 = vrot.slane %v1424_v48, 4 }
 0x196   :  { %v1364_v55 = vrot.slane %v1363_v35, 2  ;;  %v1405_v50 = vadd.f32 %v1404_v39, %v1403_v12 }
 0x197   :  { %v1385_v25 = vrot.slane %v1384_v40, 2  ;;  %v1426_v14 = vadd.f32 %v1425_v42, %v1424_v48 }
 0x198   :  { %v1365_v15 = vadd.f32 %v1364_v55, %v1363_v35  ;;  %v1406_v60 = vrot.slane %v1405_v50, 2 }
 0x199   :  { %v1386_v61 = vadd.f32 %v1385_v25, %v1384_v40  ;;  %v1427_v13 = vrot.slane %v1426_v14, 2 }
 0x19a   :  { %v1366_v49 = vrot.slane %v1365_v15, 1  ;;  %v1407_v57 = vadd.f32 %v1406_v60, %v1405_v50 }
 0x19b   :  { %v1387_v9 = vrot.slane %v1386_v61, 1  ;;  %v1428_v36 = vadd.f32 %v1427_v13, %v1426_v14  ;;  %v1660_v14 = vld [vmem:[#allocation2 + $0x88] sm:$0x1] }
 0x19c   :  { %v1367_v1 = vadd.f32 %v1366_v49, %v1365_v15  ;;  %v1408_v17 = vrot.slane %v1407_v57, 1  ;;  %v1710_v15 = vld [vmem:[#allocation2 + $0x8c] sm:$0x1] }
 0x19d   :  { %v1388_v24 = vadd.f32 %v1387_v9, %v1386_v61  ;;  %v1429_v45 = vrot.slane %v1428_v36, 1  ;;  %v1661_v9 = vsel %vm6616_vm6, 0, %v1660_v14  ;;  %v5929_v14 = vld [vmem:[%s8358_s3] sm:$0x3] }
 0x19e   :  { %v1409_v6 = vadd.f32 %v1408_v17, %v1407_v57  ;;  %v6935_v19 = vmul.f32 0.0078125, %v1367_v1  ;;  %v1711_v1 = vsel %vm6623_vm7, 0, %v1710_v15  ;;  %1662 = vst [vmem:[#allocation2 + $0x88] sm:$0x1] %v1661_v9 }
 0x19f   :  { %v1430_v21 = vadd.f32 %v1429_v45, %v1428_v36  ;;  %v6937_v29 = vmul.f32 0.0078125, %v1388_v24  ;;  %1712 = vst [vmem:[#allocation2 + $0x8c] sm:$0x1] %v1711_v1  ;;  %v6982_v24 = vsub.s32 0, %v6591_v30  ;;  %v6984_v45 = vld [vmem:[#allocation2 + $0x48] sm:$0xf] }
 0x1a0   :  { %v1433_v12 = vmul.f32 0.0078125, %v1409_v6  ;;  %v1435_v32 = vmul.f32 %v6935_v19, %v6935_v19  ;;  %v1488_v48 = vsub.f32 %v6921_v0, %v6935_v19  ;;  %v1458_v35 = vsub.f32 %v6692_v3, %v6935_v19 }
 0x1a1   :  { %v1434_v39 = vmul.f32 0.0078125, %v1430_v21  ;;  %v1436_v40 = vmul.f32 %v6937_v29, %v6937_v29  ;;  %v1489_v57 = vsub.f32 %v6926_v7, %v6937_v29  ;;  %v1460_v36 = vsub.f32 %v6702_v5, %v6935_v19  ;;  %8390 = vst [vmem:[#allocation10_spill] sm:$0xff] %v6982_v24 }
 0x1a2   :  { %v1437_v42 = vsub.f32 %v1433_v12, %v1435_v32  ;;  %v1462_v55 = vsub.f32 %v6736_v23, %v6935_v19  ;;  %v1464_v0 = vsub.f32 %v6750_v37, %v6935_v19  ;;  %v1466_v3 = vsub.f32 %v6779_v4, %v6935_v19 }
 0x1a3   :  { %v1438_v50 = vsub.f32 %v1434_v39, %v1436_v40  ;;  %v1468_v25 = vsub.f32 %v6793_v46, %v6935_v19  ;;  %v1470_v7 = vsub.f32 %v6809_v62, %v6935_v19  ;;  %v1472_v5 = vsub.f32 %v6821_v10, %v6935_v19 }
 0x1a4   :  { %v1439_v60 = vmax.f32 %v1437_v42, 0.0  ;;  %v3905_v6 = vshrl.u32 %v6984_v45, 16  ;;  %v3908_v21 = vshll.u32 %v6984_v45, 16  ;;  %v1449_v12 = vrot.slane %v6596_v31, %v6982_v24 }
 0x1a5   :  { %v1440_v61 = vmax.f32 %v1438_v50, 0.0  ;;  %v7002_v15 = vrot.slane %v5929_v14, %v6982_v24 }
 0x1a6   :  { %v1441_v13 = vadd.f32 1e-05, %v1439_v60  ;;  %v6990_v41 = vrot.slane %v3905_v6, 4  ;;  %v6992_v39 = vrot.slane %v3908_v21, 5 }
 0x1a7   :  { %v1442_v17 = vadd.f32 1e-05, %v1440_v61 }
 0x1a8   :  { %5923 = vrsqrt.f32 %v1441_v13 }
 0x1a9   :  { %5925 = vrsqrt.f32 %v1442_v17 }
 0x1b2   :  { %v5924_v32 = vpop.eup %5923 }
 0x1b3   :  { %v5926_v40 = vpop.eup %5925  ;;  %v1456_v42 = vmul.f32 %v5924_v32, %v1449_v12 }
 0x1b4   :  { %v1457_v50 = vmul.f32 %v5926_v40, %v6600_v34 }
 0x1b5   :  { %v6996_v30 = vrot.slane %v1456_v42, %v6982_v24 }
 0x1b6   :  { %v7005_v31 = vrot.slane %v1457_v50, %v6982_v24  ;;  %v1957_v24 = vld [vmem:[#allocation2 + $0x1c] sm:$0x1] }
 0x1b7   :  { %v1528_v61 = vmul.f32 %v6996_v30, %v1488_v48  ;;  %v1498_v34 = vmul.f32 %v6996_v30, %v1458_v35  ;;  %v1500_v13 = vmul.f32 %v6996_v30, %v1460_v36  ;;  %v1502_v9 = vmul.f32 %v6996_v30, %v1462_v55 }
 0x1b8   :  { %8391 = vst [vmem:[#allocation11_spill] sm:$0xff] %v7005_v31  ;;  %v1529_v1 = vmul.f32 %v7005_v31, %v1489_v57  ;;  %v1504_v17 = vmul.f32 %v6996_v30, %v1464_v0  ;;  %v1506_v6 = vmul.f32 %v6996_v30, %v1466_v3  ;;  %v1508_v21 = vmul.f32 %v6996_v30, %v1468_v25 }
 0x1b9   :  { %v1571_v12 = vadd.f32 %v7002_v15, %v1528_v61  ;;  %v1541_v32 = vadd.f32 %v7002_v15, %v1498_v34  ;;  %v1543_v48 = vadd.f32 %v7002_v15, %v1500_v13  ;;  %v1545_v35 = vadd.f32 %v7002_v15, %v1502_v9 }
 0x1ba   :  { %v7022_v36 = vadd.f32 %v6605_v54, %v1529_v1  ;;  %v1547_v57 = vadd.f32 %v7002_v15, %v1504_v17  ;;  %v1549_v55 = vadd.f32 %v7002_v15, %v1506_v6  ;;  %v1551_v0 = vadd.f32 %v7002_v15, %v1508_v21 }
 0x1bb   :  { %v1588_v3 = vmul.f32 0.01, %v1571_v12  ;;  %v1573_v25 = vmul.f32 0.01, %v1541_v32  ;;  %v1574_v40 = vmul.f32 0.01, %v1543_v48  ;;  %v1510_v42 = vmul.f32 %v6996_v30, %v1470_v7 }
 0x1bc   :  { %8392 = vst [vmem:[#allocation12_spill] sm:$0xff] %v7022_v36  ;;  %v1575_v50 = vmul.f32 0.01, %v1545_v35  ;;  %v1576_v14 = vmul.f32 0.01, %v1547_v57  ;;  %v7029_v34 = vmul.f32 %v6996_v30, %v1472_v5 }
 0x1bd   :  { %v1577_v61 = vmul.f32 0.01, %v1549_v55  ;;  %v1604_v13 = vmax.f32 %v1571_v12, %v1588_v3  ;;  %v1589_v9 = vmax.f32 %v1541_v32, %v1573_v25  ;;  %v1590_v1 = vmax.f32 %v1543_v48, %v1574_v40  ;;  %v1942_v40 = vld [vmem:[#allocation2 + $0x8] sm:$0xf]  ;;  %v1954_v36 = vld [vmem:[#allocation2 + $0x18] sm:$0xf] }
 0x1be   :  { %v1578_v49 = vmul.f32 0.01, %v1551_v0  ;;  %v1591_v17 = vmax.f32 %v1545_v35, %v1575_v50  ;;  %v1592_v10 = vmax.f32 %v1547_v57, %v1576_v14  ;;  %v7032_v21 = vadd.f32 %v7002_v15, %v1510_v42  ;;  %v2032_v57 = vld [vmem:[#allocation2 + $0x90] sm:$0xf] }
 0x1bf   :  { %v1593_v6 = vmax.f32 %v1549_v55, %v1577_v61  ;;  %v5218_v62 = vpack.c.bf16 %v1604_v13, %v1604_v13  ;;  %v5203_v46 = vpack.c.bf16 %v1589_v9, %v1589_v9  ;;  %v5204_v4 = vpack.c.bf16 %v1590_v1, %v1590_v1  ;;  %v2035_v55 = vld [vmem:[#allocation2 + $0x94] sm:$0x1] }
 0x1c0   :  { %v1594_v7 = vmax.f32 %v1551_v0, %v1578_v49  ;;  %v5205_v37 = vpack.c.bf16 %v1591_v17, %v1591_v17  ;;  %v7034_v23 = vpack.c.bf16 %v1592_v10, %v1592_v10  ;;  %v1579_v5 = vmul.f32 0.01, %v7032_v21  ;;  %v1945_v0 = vld [vmem:[#allocation2 + $0xc] sm:$0x1]  ;;  %v1948_v10 = vld [vmem:[#allocation2 + $0x10] sm:$0xf] }
 0x1c1   :  { %v7036_v60 = vpack.c.bf16 %v1593_v6, %v1593_v6  ;;  %v1901_v12 = vshrl.u32 %v5218_v62, 16  ;;  %v1904_v32 = vshll.u32 %v5218_v62, 16  ;;  %v1781_v48 = vshrl.u32 %v5203_v46, 16  ;;  %v1951_v9 = vld [vmem:[#allocation2 + $0x14] sm:$0x1] }
 0x1c2   :  { %v1784_v35 = vshll.u32 %v5203_v46, 16  ;;  %v1789_v3 = vshrl.u32 %v5204_v4, 16  ;;  %v1792_v25 = vshll.u32 %v5204_v4, 16  ;;  %v1797_v42 = vshrl.u32 %v5205_v37, 16 }
 0x1c3   :  { %v1800_v50 = vshll.u32 %v5205_v37, 16  ;;  %v1903_v14 = vrot.slane %v1901_v12, 7  ;;  %v1783_v49 = vrot.slane %v1781_v48, 7  ;;  %v1805_v61 = vshrl.u32 %v7034_v23, 16 }
 0x1c4   :  { %v1808_v13 = vshll.u32 %v7034_v23, 16  ;;  %v1791_v46 = vrot.slane %v1789_v3, 7  ;;  %v1799_v4 = vrot.slane %v1797_v42, 7  ;;  %v1813_v1 = vshrl.u32 %v7036_v60, 16 }
 0x1c5   :  { %v1816_v37 = vshll.u32 %v7036_v60, 16  ;;  %v1906_v17 = vor.u32 %v1904_v32, %v1903_v14  ;;  %v1907_v6 = vrot.slane %v1903_v14, 4  ;;  %v1786_v12 = vor.u32 %v1784_v35, %v1783_v49 }
 0x1c6   :  { %v1787_v48 = vrot.slane %v1783_v49, 4  ;;  %v1794_v23 = vor.u32 %v1792_v25, %v1791_v46  ;;  %v1795_v54 = vrot.slane %v1791_v46, 4  ;;  %v1802_v31 = vor.u32 %v1800_v50, %v1799_v4  ;;  %v1960_v25 = vld [vmem:[#allocation2 + $0x20] sm:$0xf] }
 0x1c7   :  { %v1803_v8 = vrot.slane %v1799_v4, 4  ;;  %v2033_v59 = vsel %vm7043_vm9, %v1906_v17, %v2032_v57  ;;  %v2036_v3 = vsel %vm6616_vm6, %v1907_v6, %v2035_v55  ;;  %v1943_v42 = vsel %vm7043_vm9, %v1786_v12, %v1942_v40  ;;  %v1963_v40 = vld [vmem:[#allocation2 + $0x24] sm:$0x1] }
 0x1c8   :  { %v1946_v60 = vsel %vm6616_vm6, %v1787_v48, %v1945_v0  ;;  %2034 = vst [vmem:[#allocation2 + $0x90] sm:$0xf] %v2033_v59  ;;  %2037 = vst [vmem:[#allocation2 + $0x94] sm:$0x1] %v2036_v3  ;;  %v1949_v32 = vsel %vm7043_vm9, %v1794_v23, %v1948_v10  ;;  %v1952_v35 = vsel %vm6616_vm6, %v1795_v54, %v1951_v9  ;;  %v1807_v59 = vrot.slane %v1805_v61, 7 }
 0x1c9   :  { %1944 = vst [vmem:[#allocation2 + $0x8] sm:$0xf] %v1943_v42  ;;  %1947 = vst [vmem:[#allocation2 + $0xc] sm:$0x1] %v1946_v60  ;;  %v1955_v57 = vsel %vm7043_vm9, %v1802_v31, %v1954_v36  ;;  %v1958_v55 = vsel %vm6616_vm6, %v1803_v8, %v1957_v24  ;;  %v1815_v50 = vrot.slane %v1813_v1, 7  ;;  %v7065_v14 = vpack.c.bf16 %v1594_v7, %v1594_v7 }
 0x1ca   :  { %1950 = vst [vmem:[#allocation2 + $0x10] sm:$0xf] %v1949_v32  ;;  %1953 = vst [vmem:[#allocation2 + $0x14] sm:$0x1] %v1952_v35  ;;  %v1595_v49 = vmax.f32 %v7032_v21, %v1579_v5  ;;  %v3797_v0 = vld [vmem:[#allocation2 + $0x4c] sm:$0x1]  ;;  %v1555_v31 = vadd.f32 %v7002_v15, %v7029_v34  ;;  %v8395_v8 = vor.u32 %v6992_v39, %v6990_v41 }
 0x1cb   :  { %1956 = vst [vmem:[#allocation2 + $0x18] sm:$0xf] %v1955_v57  ;;  %1959 = vst [vmem:[#allocation2 + $0x1c] sm:$0x1] %v1958_v55  ;;  %v1966_v54 = vld [vmem:[#allocation2 + $0x28] sm:$0xf]  ;;  %v1810_v46 = vor.u32 %v1808_v13, %v1807_v59  ;;  %v1818_v9 = vor.u32 %v1816_v37, %v1815_v50  ;;  %v8396_v5 = vsub.f32 %v6839_v11, %v6935_v19 }
 0x1cc   :  { %v1969_v10 = vld [vmem:[#allocation2 + $0x2c] sm:$0x1]  ;;  %v7073_v24 = vrot.slane %v8395_v8, 4  ;;  %v3914_v36 = vshll.u32 %v3797_v0, 16  ;;  %v1811_v61 = vrot.slane %v1807_v59, 4  ;;  %v1819_v4 = vrot.slane %v1815_v50, 4 }
 0x1cd   :  { %v1821_v7 = vshrl.u32 %v7065_v14, 16  ;;  %v7076_v1 = vpack.c.bf16 %v1595_v49, %v1595_v49  ;;  %v1580_v21 = vmul.f32 0.01, %v1555_v31  ;;  %v1514_v34 = vmul.f32 %v6996_v30, %v8396_v5 }
 0x1ce   :  { %v1961_v41 = vsel %vm7043_vm9, %v1810_v46, %v1960_v25  ;;  %v1964_v39 = vsel %vm6616_vm6, %v1811_v61, %v1963_v40  ;;  %v1967_v13 = vsel %vm7043_vm9, %v1818_v9, %v1966_v54  ;;  %v1970_v37 = vsel %vm6616_vm6, %v1819_v4, %v1969_v10 }
 0x1cf   :  { %1962 = vst [vmem:[#allocation2 + $0x20] sm:$0xf] %v1961_v41  ;;  %1965 = vst [vmem:[#allocation2 + $0x24] sm:$0x1] %v1964_v39  ;;  %v7090_v17 = vrot.slane %v1821_v7, 7  ;;  %v1824_v11 = vshll.u32 %v7065_v14, 16  ;;  %v8397_v12 = vsub.f32 %v6849_v20, %v6935_v19  ;;  %v8398_v32 = vsub.f32 %v6863_v43, %v6935_v19 }
 0x1d0   :  { %1968 = vst [vmem:[#allocation2 + $0x28] sm:$0xf] %v1967_v13  ;;  %1971 = vst [vmem:[#allocation2 + $0x2c] sm:$0x1] %v1970_v37  ;;  %v7093_v6 = vrot.slane %v3914_v36, 5  ;;  %v7115_v59 = vmax.f32 %v1555_v31, %v1580_v21  ;;  %v7123_v43 = vadd.f32 %v7002_v15, %v1514_v34 }
 0x1d1   :  { %v1516_v48 = vmul.f32 %v6996_v30, %v8397_v12  ;;  %v7099_v23 = vld [vmem:[#allocation2 + $0x8] sm:$0xf]  ;;  %v7101_v3 = vld [vmem:[#allocation2 + $0xc] sm:$0x1]  ;;  %v1518_v35 = vmul.f32 %v6996_v30, %v8398_v32  ;;  %v7109_v57 = vld [vmem:[#allocation2 + $0x10] sm:$0xf] }
 0x1d2   :  { %v7111_v55 = vld [vmem:[#allocation2 + $0x14] sm:$0x1]  ;;  %v2602_v20 = vshrl.u32 %v7099_v23, 16  ;;  %v2605_v25 = vshll.u32 %v7099_v23, 16  ;;  %v2611_v40 = vshll.u32 %v7101_v3, 16  ;;  %v2616_v50 = vshrl.u32 %v7109_v57, 16 }
 0x1d3   :  { %v2619_v49 = vshll.u32 %v7109_v57, 16  ;;  %v7120_v0 = vld [vmem:[#allocation2 + $0x10] sm:$0xf]  ;;  %v2625_v8 = vshll.u32 %v7111_v55, 16  ;;  %v7126_v36 = vld [vmem:[#allocation2 + $0x18] sm:$0xf]  ;;  %v7129_v31 = vadd.f32 %v7002_v15, %v1516_v48  ;;  %v7132_v7 = vadd.f32 %v7002_v15, %v1518_v35 }
 0x1d4   :  { %v2604_v54 = vrot.slane %v2602_v20, 4  ;;  %v2607_v10 = vrot.slane %v2605_v25, 5  ;;  %v2613_v46 = vrot.slane %v2611_v40, 5  ;;  %v2618_v61 = vrot.slane %v2616_v50, 4  ;;  %v3790_v4 = vld [vmem:[#allocation2 + $0x14] sm:$0x1] }
 0x1d5   :  { %v2621_v9 = vrot.slane %v2619_v49, 5  ;;  %v3791_v5 = vld [vmem:[#allocation2 + $0x1c] sm:$0x1]  ;;  %v3807_v34 = vshrl.u32 %v7120_v0, 16  ;;  %v3810_v41 = vshll.u32 %v7120_v0, 16  ;;  %v3816_v39 = vshll.u32 %v3790_v4, 16 }
 0x1d6   :  { %v2608_v21 = vor.u32 %v2607_v10, %v2604_v54  ;;  %v3821_v37 = vshrl.u32 %v7126_v36, 16  ;;  %v3824_v12 = vshll.u32 %v7126_v36, 16  ;;  %v3830_v48 = vshll.u32 %v3791_v5, 16  ;;  %v7138_v32 = vld [vmem:[#allocation2 + $0x18] sm:$0xf] }
 0x1d7   :  { %v2622_v13 = vor.u32 %v2621_v9, %v2618_v61  ;;  %v2627_v25 = vrot.slane %v2625_v8, 5  ;;  %v3809_v40 = vrot.slane %v3807_v34, 4  ;;  %v3812_v35 = vrot.slane %v3810_v41, 5  ;;  %v7140_v50 = vld [vmem:[#allocation2 + $0x20] sm:$0xf] }
 0x1d8   :  { %v2609_v20 = vrot.slane %v2608_v21, 4  ;;  %v3818_v54 = vrot.slane %v3816_v39, 5  ;;  %v3823_v10 = vrot.slane %v3821_v37, 4  ;;  %v3826_v60 = vrot.slane %v3824_v12, 5  ;;  %v7142_v42 = vld [vmem:[#allocation2 + $0x1c] sm:$0x1] }
 0x1d9   :  { %v2623_v49 = vrot.slane %v2622_v13, 4  ;;  %v3813_v9 = vor.u32 %v3812_v35, %v3809_v40  ;;  %v3832_v4 = vrot.slane %v3830_v48, 5  ;;  %v5066_v5 = vcombine.low %v7099_v23, %v7109_v57  ;;  %v7152_v37 = vld [vmem:[#allocation2 + $0x24] sm:$0x1]  ;;  %v5863_v23 = vld [vmem:[%s8359_s4 + $0x148] sm:$0xff]  }
 0x1da   :  { %v2614_v61 = vsel %vm6060_vm2, %v2609_v20, %v2613_v46  ;;  %v3827_v21 = vor.u32 %v3826_v60, %v3823_v10  ;;  %v2630_v34 = vshrl.u32 %v7138_v32, 16  ;;  %v2633_v41 = vshll.u32 %v7138_v32, 16  ;;  %v7192_v51 = vld [vmem:[#allocation2 + $0x28] sm:$0xf]  ;;  %v2827_v62 = vld [vmem:[#allocation2 + $0x18] sm:$0xe] }
 0x1db   :  { %v2628_v8 = vsel %vm6060_vm2, %v2623_v49, %v2627_v25  ;;  %v3814_v13 = vrot.slane %v3813_v9, 4  ;;  %v2639_v12 = vshll.u32 %v7142_v42, 16  ;;  %v2644_v46 = vshrl.u32 %v7140_v50, 16  ;;  %v7160_v25 = vld [vmem:[#allocation2 + $0x20] sm:$0xf] }
 0x1dc   :  { %v5074_v39 = vcombine.low %v2614_v61, %v2628_v8  ;;  %v3828_v57 = vrot.slane %v3827_v21, 4  ;;  %v2632_v48 = vrot.slane %v2630_v34, 4  ;;  %v2635_v20 = vrot.slane %v2633_v41, 5  ;;  %v3792_v49 = vld [vmem:[#allocation2 + $0x24] sm:$0x1] }
 0x1dd   :  { %v2647_v60 = vshll.u32 %v7140_v50, 16  ;;  %v3819_v40 = vsel %vm6060_vm2, %v3814_v13, %v3818_v54  ;;  %v2646_v35 = vrot.slane %v2644_v46, 4  ;;  %v1826_v10 = vor.u32 %v1824_v11, %v7090_v17  ;;  %v7176_v41 = vld [vmem:[#allocation2 + $0x28] sm:$0xf] }
 0x1de   :  { %3273 = vmatprep.mubr.bf16.mxu1 %v5074_v39  ;;  %v8399_v61 = vsub.f32 %v6873_v53, %v6935_v19  ;;  %v3833_v8 = vsel %vm6060_vm2, %v3828_v57, %v3832_v4  ;;  %v2636_v21 = vor.u32 %v2635_v20, %v2632_v48  ;;  %v2653_v54 = vshll.u32 %v7152_v37, 16  ;;  %v3793_v39 = vld [vmem:[#allocation2 + $0x2c] sm:$0x1]  ;;  %v5930_v53 = vld [vmem:[%s8359_s4 + $0x140] sm:$0xff]   ;;  %v5866_v20 = vld [vmem:[%s8359_s4 + $0x150] sm:$0xff]  }
 0x1df   :  { %3274 = vmatmul.mubr.bf16.vlgmr.msra.gmra.mrb[0].mxu1 %v5066_v5  ;;  %v2649_v34 = vrot.slane %v2647_v60, 5  ;;  %v5162_v13 = vcombine.low %v3819_v40, %v3833_v8  ;;  %v5154_v14 = vcombine.low %v7120_v0, %v7126_v36  ;;  %v2641_v11 = vrot.slane %v2639_v12, 5 }
 0x1e0   :  { %v7171_v9 = vmul.f32 %v6996_v30, %v8399_v61  ;;  %5507 = vmatpush3.bf16.msra.mxu1 %v5930_v53  ;;  %v3835_v4 = vshrl.u32 %v7160_v25, 16  ;;  %v2637_v5 = vrot.slane %v2636_v21, 4  ;;  %v3838_v57 = vshll.u32 %v7160_v25, 16 }
 0x1e1   :  { %v2650_v46 = vor.u32 %v2649_v34, %v2646_v35  ;;  %v3844_v48 = vshll.u32 %v3792_v49, 16  ;;  %5508 = vmatprep.subr.bf16.mxu1 %v5863_v23  ;;  %4478 = vmatprep.mubr.bf16.mxu0 %v5162_v13  ;;  %v3849_v36 = vshrl.u32 %v7176_v41, 16  ;;  %v3852_v12 = vshll.u32 %v7176_v41, 16  ;;  %v1972_v49 = vld [vmem:[#allocation2 + $0x30] sm:$0xf] }
 0x1e2   :  { %v3837_v0 = vrot.slane %v3835_v4, 4  ;;  %v3858_v60 = vshll.u32 %v3793_v39, 16  ;;  %4479 = vmatmul.mubr.bf16.vlgmr.msra.gmra.mrb[32].mxu0 %v5154_v14  ;;  %v2642_v40 = vsel %vm6060_vm2, %v2637_v5, %v2641_v11  ;;  %v2655_v61 = vrot.slane %v2653_v54, 5  ;;  %v1975_v54 = vld [vmem:[#allocation2 + $0x34] sm:$0x1] }
 0x1e3   :  { %v2651_v35 = vrot.slane %v2650_v46, 4  ;;  %v3840_v8 = vrot.slane %v3838_v57, 5  ;;  %v3846_v21 = vrot.slane %v3844_v48, 5  ;;  %v3851_v34 = vrot.slane %v3849_v36, 4  ;;  %v7200_v5 = vld [vmem:[#allocation2 + $0x2c] sm:$0x1] }
 0x1e4   :  { %v3854_v53 = vrot.slane %v3852_v12, 5  ;;  %5509 = vmatpush3.bf16.msra.mxu1 %v5863_v23  ;;  %v5210_v13 = vpack.c.bf16 %v7115_v59, %v7115_v59  ;;  %v3860_v4 = vrot.slane %v3858_v60, 5  ;;  %v5067_v11 = vcombine.low %v7138_v32, %v7140_v50  ;;  %v5869_v46 = vld [vmem:[%s8359_s4 + $0x158] sm:$0xff]  }
 0x1e5   :  { %v2656_v39 = vsel %vm6060_vm2, %v2651_v35, %v2655_v61  ;;  %v3841_v14 = vor.u32 %v3840_v8, %v3837_v0  ;;  %5510 = vmatprep.subr.bf16.mxu1 %v5866_v20  ;;  %v5155_v59 = vcombine.low %v7160_v25, %v7176_v41  ;;  %v1827_v48 = vrot.slane %v7090_v17, 4  ;;  %v1978_v17 = vld [vmem:[#allocation2 + $0x38] sm:$0xf]  ;;  %v1981_v8 = vld [vmem:[#allocation2 + $0x3c] sm:$0x1] }
 0x1e6   :  { %v5075_v23 = vcombine.low %v2642_v40, %v2656_v39  ;;  %v3855_v57 = vor.u32 %v3854_v53, %v3851_v34  ;;  %v1973_v36 = vsel %vm7043_vm9, %v1826_v10, %v1972_v49  ;;  %v2658_v32 = vshrl.u32 %v7192_v51, 16  ;;  %v5872_v34 = vld [vmem:[%s8359_s4 + $0x160] sm:$0xff]  }
 0x1e7   :  { %v3842_v0 = vrot.slane %v3841_v14, 4  ;;  %v2661_v50 = vshll.u32 %v7192_v51, 16  ;;  %1974 = vst [vmem:[#allocation2 + $0x30] sm:$0xf] %v1973_v36  ;;  %v1976_v60 = vsel %vm6616_vm6, %v1827_v48, %v1975_v54  ;;  %v2667_v40 = vshll.u32 %v7200_v5, 16 }
 0x1e8   :  { %3281 = vmatprep.mubr.bf16.mxu1 %v5075_v23  ;;  %v3856_v12 = vrot.slane %v3855_v57, 4  ;;  %v8400_v25 = vshrl.u32 %v7076_v1, 16  ;;  %5511 = vmatpush3.bf16.msra.mxu1 %v5866_v20  ;;  %1977 = vst [vmem:[#allocation2 + $0x34] sm:$0x1] %v1976_v60  ;;  %v2660_v35 = vrot.slane %v2658_v32, 4  ;;  %v1837_v49 = vshrl.u32 %v5210_v13, 16 }
 0x1e9   :  { %v3847_v10 = vsel %vm6060_vm2, %v3842_v0, %v3846_v21  ;;  %3282 = vmatmul.mubr.bf16.gmra.mrb[4].mxu1 %v5067_v11  ;;  %v2663_v61 = vrot.slane %v2661_v50, 5  ;;  %5512 = vmatprep.subr.bf16.mxu1 %v5869_v46  ;;  %v7224_v39 = vrot.slane %v2667_v40, 5  ;;  %v8401_v20 = vshll.u32 %v7076_v1, 16  ;;  %v1984_v48 = vld [vmem:[#allocation2 + $0x40] sm:$0xf]  ;;  %v5875_v40 = vld [vmem:[%s8359_s4 + $0x168] sm:$0xff]  }
 0x1ea   :  { %v1831_v41 = vrot.slane %v8400_v25, 7  ;;  %v3861_v53 = vsel %vm6060_vm2, %v3856_v12, %v3860_v4  ;;  %v1839_v23 = vrot.slane %v1837_v49, 7  ;;  %v1840_v57 = vshll.u32 %v5210_v13, 16  ;;  %v1987_v32 = vld [vmem:[#allocation2 + $0x44] sm:$0x1] }
 0x1eb   :  { %v5163_v11 = vcombine.low %v3847_v10, %v3861_v53  ;;  %v2664_v54 = vor.u32 %v2663_v61, %v2660_v35  ;;  %v1581_v4 = vmul.f32 0.01, %v7123_v43  ;;  %v1582_v50 = vmul.f32 0.01, %v7129_v31 }
 0x1ec   :  { %v1834_v14 = vor.u32 %v8401_v20, %v1831_v41  ;;  %v1835_v21 = vrot.slane %v1831_v41, 4  ;;  %5513 = vmatpush3.bf16.msra.mxu1 %v5869_v46  ;;  %v1842_v12 = vor.u32 %v1840_v57, %v1839_v23  ;;  %v1843_v13 = vrot.slane %v1839_v23, 4  ;;  %v5878_v23 = vld [vmem:[%s8359_s4 + $0x170] sm:$0xff]  }
 0x1ed   :  { %4486 = vmatprep.mubr.bf16.mxu0 %v5163_v11  ;;  %v7234_v1 = vrot.slane %v2664_v54, 4  ;;  %v1583_v60 = vmul.f32 0.01, %v7132_v7  ;;  %5514 = vmatprep.subr.bf16.mxu1 %v5872_v34  ;;  %v1597_v25 = vmax.f32 %v7123_v43, %v1581_v4  ;;  %v1598_v41 = vmax.f32 %v7129_v31, %v1582_v50 }
 0x1ee   :  { %v1979_v0 = vsel %vm7043_vm9, %v1834_v14, %v1978_v17  ;;  %v1982_v36 = vsel %vm6616_vm6, %v1835_v21, %v1981_v8  ;;  %4487 = vmatmul.mubr.bf16.gmra.mrb[36].mxu0 %v5155_v59  ;;  %v7248_v17 = vadd.f32 %v7002_v15, %v7171_v9  ;;  %v7250_v10 = vld [vmem:[#allocation2 + $0x30] sm:$0xf]  ;;  %v1985_v61 = vsel %vm7043_vm9, %v1842_v12, %v1984_v48 }
 0x1ef   :  { %1980 = vst [vmem:[#allocation2 + $0x38] sm:$0xf] %v1979_v0  ;;  %1983 = vst [vmem:[#allocation2 + $0x3c] sm:$0x1] %v1982_v36  ;;  %v2670_v59 = vsel %vm6060_vm2, %v7234_v1, %v7224_v39  ;;  %v7256_v35 = vld [vmem:[#allocation2 + $0x30] sm:$0xf]  ;;  %v1988_v43 = vsel %vm6616_vm6, %v1843_v13, %v1987_v32  ;;  %v8402_v31 = vsub.f32 %v6883_v2, %v6935_v19 }
 0x1f0   :  { %v7266_v8 = vld [vmem:[#allocation2 + $0x34] sm:$0x1]  ;;  %v2672_v49 = vshrl.u32 %v7250_v10, 16  ;;  %v2675_v53 = vshll.u32 %v7250_v10, 16  ;;  %1986 = vst [vmem:[#allocation2 + $0x40] sm:$0xf] %v1985_v61  ;;  %v7270_v20 = vpack.c.bf16 %v1597_v25, %v1597_v25  ;;  %v1599_v14 = vmax.f32 %v7132_v7, %v1583_v60  ;;  %5515 = vmatpush3.bf16.msra.mxu1 %v5872_v34 }
 0x1f1   :  { %v1522_v9 = vmul.f32 %v6996_v30, %v8402_v31  ;;  %v3794_v39 = vld [vmem:[#allocation2 + $0x34] sm:$0x1]  ;;  %1989 = vst [vmem:[#allocation2 + $0x44] sm:$0x1] %v1988_v43  ;;  %v2681_v21 = vshll.u32 %v7266_v8, 16  ;;  %v3863_v2 = vshrl.u32 %v7256_v35, 16  ;;  %5516 = vmatprep.subr.bf16.mxu1 %v5875_v40  ;;  %v5068_v0 = vcombine.low %v7192_v51, %v7250_v10 }
 0x1f2   :  { %v3866_v11 = vshll.u32 %v7256_v35, 16  ;;  %v3872_v54 = vshll.u32 %v3794_v39, 16  ;;  %v2674_v57 = vrot.slane %v2672_v49, 4  ;;  %v2677_v48 = vrot.slane %v2675_v53, 5 }
 0x1f3   :  { %v2683_v34 = vrot.slane %v2681_v21, 5  ;;  %v3865_v36 = vrot.slane %v3863_v2, 4  ;;  %v7286_v60 = vpack.c.bf16 %v1598_v41, %v1598_v41  ;;  %v7288_v25 = vpack.c.bf16 %v1599_v14, %v1599_v14  ;;  %v5881_v41 = vld [vmem:[%s8359_s4 + $0x178] sm:$0xff]  }
 0x1f4   :  { %v3868_v32 = vrot.slane %v3866_v11, 5  ;;  %v3874_v4 = vrot.slane %v3872_v54, 5  ;;  %v2678_v50 = vor.u32 %v2677_v48, %v2674_v57  ;;  %v7291_v61 = vadd.f32 %v7002_v15, %v1522_v9  ;;  %5517 = vmatpush3.bf16.msra.mxu1 %v5875_v40 }
 0x1f5   :  { %5518 = vmatprep.subr.bf16.mxu1 %v5878_v23  ;;  %v8403_v40 = vsub.f32 %v6895_v22, %v6935_v19 }
 0x1f6   :  { %v7282_v1 = vld [vmem:[#allocation2 + $0x38] sm:$0xf]  ;;  %v3795_v12 = vld [vmem:[#allocation2 + $0x3c] sm:$0x1]  ;;  %v3869_v51 = vor.u32 %v3868_v32, %v3865_v36  ;;  %v2679_v53 = vrot.slane %v2678_v50, 4 }
 0x1f7   :  { %v7284_v13 = vld [vmem:[#allocation2 + $0x38] sm:$0xf]  ;;  %v3877_v10 = vshrl.u32 %v7282_v1, 16  ;;  %v3880_v43 = vshll.u32 %v7282_v1, 16  ;;  %v3886_v31 = vshll.u32 %v3795_v12, 16  ;;  %v7306_v14 = vmul.f32 %v6996_v30, %v8403_v40 }
 0x1f8   :  { %v7295_v49 = vld [vmem:[#allocation2 + $0x3c] sm:$0x1]  ;;  %v2686_v39 = vshrl.u32 %v7284_v13, 16  ;;  %v2689_v9 = vshll.u32 %v7284_v13, 16  ;;  %v3870_v21 = vrot.slane %v3869_v51, 4  ;;  %v5156_v54 = vcombine.low %v7256_v35, %v7282_v1  ;;  %5519 = vmatpush3.bf16.msra.mxu1 %v5878_v23 }
 0x1f9   :  { %v3879_v2 = vrot.slane %v3877_v10, 4  ;;  %v3882_v11 = vrot.slane %v3880_v43, 5  ;;  %v7310_v57 = vld [vmem:[#allocation2 + $0x40] sm:$0xf]  ;;  %v2684_v48 = vsel %vm6060_vm2, %v2679_v53, %v2683_v34  ;;  %v7314_v36 = vld [vmem:[#allocation2 + $0x44] sm:$0x1]  ;;  %5520 = vmatprep.subr.bf16.mxu1 %v5881_v41 }
 0x1fa   :  { %v2688_v32 = vrot.slane %v2686_v39, 4  ;;  %v2691_v50 = vrot.slane %v2689_v9, 5  ;;  %v2695_v22 = vshll.u32 %v7295_v49, 16  ;;  %v5076_v12 = vcombine.low %v2670_v59, %v2684_v48  ;;  %v7318_v43 = vld [vmem:[#allocation2 + $0x40] sm:$0xf] }
 0x1fb   :  { %v3883_v40 = vor.u32 %v3882_v11, %v3879_v2  ;;  %v3888_v51 = vrot.slane %v3886_v31, 5  ;;  %v2700_v10 = vshrl.u32 %v7310_v57, 16  ;;  %v3796_v35 = vld [vmem:[#allocation2 + $0x44] sm:$0x1]  ;;  %v3875_v1 = vsel %vm6060_vm2, %v3870_v21, %v3874_v4 }
 0x1fc   :  { %v2692_v34 = vor.u32 %v2691_v50, %v2688_v32  ;;  %v2703_v53 = vshll.u32 %v7310_v57, 16  ;;  %v2709_v39 = vshll.u32 %v7314_v36, 16  ;;  %v5883_v59 = vld [vmem:[%s8359_s4 + $0x40] sm:$0xff]   ;;  %3289 = vmatprep.mubr.bf16.mxu1 %v5076_v12  ;;  %v3891_v9 = vshrl.u32 %v7318_v43, 16  ;;  %5521 = vmatpush3.bf16.msra.mxu1 %v5881_v41 }
 0x1fd   :  { %v3884_v23 = vrot.slane %v3883_v40, 4  ;;  %v2702_v31 = vrot.slane %v2700_v10, 4  ;;  %v3894_v2 = vshll.u32 %v7318_v43, 16  ;;  %3290 = vmatmul.mubr.bf16.gmra.mrb[8].mxu1 %v5068_v0  ;;  %v2697_v48 = vrot.slane %v2695_v22, 5  ;;  %5346 = vmatprep.subr.bf16.mxu1 %v5883_v59 }
 0x1fe   :  { %v2693_v11 = vrot.slane %v2692_v34, 4  ;;  %v2705_v4 = vrot.slane %v2703_v53, 5  ;;  %v3900_v21 = vshll.u32 %v3796_v35, 16  ;;  %v2711_v50 = vrot.slane %v2709_v39, 5  ;;  %v1990_v53 = vld [vmem:[#allocation2 + $0x58] sm:$0xf] }
 0x1ff   :  { %v3889_v32 = vsel %vm6060_vm2, %v3884_v23, %v3888_v51  ;;  %v3893_v46 = vrot.slane %v3891_v9, 4  ;;  %v3896_v7 = vrot.slane %v3894_v2, 5  ;;  %v5069_v10 = vcombine.low %v7284_v13, %v7310_v57  ;;  %v1993_v23 = vld [vmem:[#allocation2 + $0x5c] sm:$0x1] }
 0x200   :  { %v5164_v28 = vcombine.low %v3875_v1, %v3889_v32  ;;  %v2698_v12 = vsel %vm6060_vm2, %v2693_v11, %v2697_v48  ;;  %v2706_v40 = vor.u32 %v2705_v4, %v2702_v31  ;;  %v3902_v22 = vrot.slane %v3900_v21, 5  ;;  %v1996_v48 = vld [vmem:[#allocation2 + $0x60] sm:$0xf]  ;;  %v1999_v4 = vld [vmem:[#allocation2 + $0x64] sm:$0x1] }
 0x201   :  { %v3897_v0 = vor.u32 %v3896_v7, %v3893_v46  ;;  %v8404_v35 = vshrl.u32 %v7270_v20, 16  ;;  %v1848_v51 = vshll.u32 %v7270_v20, 16  ;;  %v1853_v41 = vshrl.u32 %v7286_v60, 16 }
 0x202   :  { %4494 = vmatprep.mubr.bf16.mxu0 %v5164_v28  ;;  %v2707_v39 = vrot.slane %v2706_v40, 4  ;;  %v1856_v1 = vshll.u32 %v7286_v60, 16  ;;  %v1861_v31 = vshrl.u32 %v7288_v25, 16  ;;  %v1864_v7 = vshll.u32 %v7288_v25, 16  ;;  %v2002_v25 = vld [vmem:[#allocation2 + $0x68] sm:$0xf] }
 0x203   :  { %v1847_v34 = vrot.slane %v8404_v35, 7  ;;  %4495 = vmatmul.mubr.bf16.gmra.mrb[40].mxu0 %v5156_v54  ;;  %v3898_v13 = vrot.slane %v3897_v0, 4  ;;  %v1855_v20 = vrot.slane %v1853_v41, 7  ;;  %v1584_v28 = vmul.f32 0.01, %v7248_v17 }
 0x204   :  { %v2712_v59 = vsel %vm6060_vm2, %v2707_v39, %v2711_v50  ;;  %v1863_v9 = vrot.slane %v1861_v31, 7  ;;  %v8405_v21 = vsel %vm6060_vm2, %v7073_v24, %v7093_v6  ;;  %v2005_v0 = vld [vmem:[#allocation2 + $0x6c] sm:$0x1]  ;;  %v5157_v39 = vcombine.low %v7318_v43, %v6984_v45 }
 0x205   :  { %v1850_v57 = vor.u32 %v1848_v51, %v1847_v34  ;;  %v1851_v46 = vrot.slane %v1847_v34, 4  ;;  %v5077_v2 = vcombine.low %v2698_v12, %v2712_v59  ;;  %v3903_v60 = vsel %vm6060_vm2, %v3898_v13, %v3902_v22 }
 0x206   :  { %v5165_v32 = vcombine.low %v3903_v60, %v8405_v21  ;;  %v1858_v50 = vor.u32 %v1856_v1, %v1855_v20  ;;  %v1859_v12 = vrot.slane %v1855_v20, 4  ;;  %v1866_v40 = vor.u32 %v1864_v7, %v1863_v9  ;;  %v2008_v20 = vld [vmem:[#allocation2 + $0x70] sm:$0xf] }
 0x207   :  { %v1991_v11 = vsel %vm7043_vm9, %v1850_v57, %v1990_v53  ;;  %v1994_v54 = vsel %vm6616_vm6, %v1851_v46, %v1993_v23  ;;  %3297 = vmatprep.mubr.bf16.mxu1 %v5077_v2  ;;  %v1867_v22 = vrot.slane %v1863_v9, 4  ;;  %v1600_v35 = vmax.f32 %v7248_v17, %v1584_v28 }
 0x208   :  { %1992 = vst [vmem:[#allocation2 + $0x58] sm:$0xf] %v1991_v11  ;;  %1995 = vst [vmem:[#allocation2 + $0x5c] sm:$0x1] %v1994_v54  ;;  %v1585_v34 = vmul.f32 0.01, %v7291_v61  ;;  %v1567_v51 = vadd.f32 %v7002_v15, %v7306_v14  ;;  %4502 = vmatprep.mubr.bf16.mxu0 %v5165_v32  ;;  %3298 = vmatmul.mubr.bf16.gmra.mrb[12].mxu1 %v5069_v10  ;;  %v1997_v24 = vsel %vm7043_vm9, %v1858_v50, %v1996_v48 }
 0x209   :  { %v2000_v6 = vsel %vm6616_vm6, %v1859_v12, %v1999_v4  ;;  %v2003_v53 = vsel %vm7043_vm9, %v1866_v40, %v2002_v25  ;;  %1998 = vst [vmem:[#allocation2 + $0x60] sm:$0xf] %v1997_v24  ;;  %v2006_v17 = vsel %vm6616_vm6, %v1867_v22, %v2005_v0  ;;  %v5214_v14 = vpack.c.bf16 %v1600_v35, %v1600_v35 }
 0x20a   :  { %2001 = vst [vmem:[#allocation2 + $0x64] sm:$0x1] %v2000_v6  ;;  %2004 = vst [vmem:[#allocation2 + $0x68] sm:$0xf] %v2003_v53  ;;  %v1601_v10 = vmax.f32 %v7291_v61, %v1585_v34  ;;  %v1586_v41 = vmul.f32 0.01, %v1567_v51  ;;  %v8406_v13 = vsub.f32 %v6911_v52, %v6935_v19 }
 0x20b   :  { %2007 = vst [vmem:[#allocation2 + $0x6c] sm:$0x1] %v2006_v17  ;;  %4503 = vmatmul.mubr.bf16.gmra.mrb[44].mxu0 %v5157_v39  ;;  %v1869_v1 = vshrl.u32 %v5214_v14, 16  ;;  %v1872_v31 = vshll.u32 %v5214_v14, 16  ;;  %v2011_v52 = vld [vmem:[#allocation2 + $0x74] sm:$0x1] }
 0x20c   :  { %v7371_v23 = vpack.c.bf16 %v1601_v10, %v1601_v10  ;;  %v1526_v45 = vmul.f32 %v6996_v30, %v8406_v13  ;;  %v1602_v9 = vmax.f32 %v1567_v51, %v1586_v41 }
 0x20d   :  { %v1871_v46 = vrot.slane %v1869_v1, 7 }
 0x20e   :  { %v1877_v7 = vshrl.u32 %v7371_v23, 16  ;;  %v1880_v19 = vshll.u32 %v7371_v23, 16  ;;  %v7391_v4 = vadd.f32 %v7002_v15, %v1526_v45  ;;  %v7406_v51 = vpack.c.bf16 %v1602_v9, %v1602_v9 }
 0x20f   :  { %v7377_v43 = vld [vmem:[#allocation2 + $0x58] sm:$0xf]  ;;  %v7379_v57 = vld [vmem:[#allocation2 + $0x5c] sm:$0x1]  ;;  %v1874_v2 = vor.u32 %v1872_v31, %v1871_v46  ;;  %v1875_v60 = vrot.slane %v1871_v46, 4 }
 0x210   :  { %v2714_v61 = vshrl.u32 %v7377_v43, 16  ;;  %v2717_v59 = vshll.u32 %v7377_v43, 16  ;;  %v2723_v28 = vshll.u32 %v7379_v57, 16  ;;  %v7386_v30 = vld [vmem:[#allocation2 + $0x60] sm:$0xf]  ;;  %v7398_v12 = vrot.slane %v1877_v7, 7 }
 0x211   :  { %v7388_v11 = vld [vmem:[#allocation2 + $0x64] sm:$0x1]  ;;  %v2728_v25 = vshrl.u32 %v7386_v30, 16  ;;  %v2731_v21 = vshll.u32 %v7386_v30, 16  ;;  %v7396_v50 = vld [vmem:[#allocation2 + $0x60] sm:$0xf]  ;;  %v2009_v34 = vsel %vm7043_vm9, %v1874_v2, %v2008_v20  ;;  %v2012_v15 = vsel %vm6616_vm6, %v1875_v60, %v2011_v52 }
 0x212   :  { %v2716_v54 = vrot.slane %v2714_v61, 4  ;;  %v2719_v48 = vrot.slane %v2717_v59, 5  ;;  %v2737_v32 = vshll.u32 %v7388_v11, 16  ;;  %v7400_v0 = vld [vmem:[#allocation2 + $0x68] sm:$0xf]  ;;  %v2725_v24 = vrot.slane %v2723_v28, 5 }
 0x213   :  { %v3798_v22 = vld [vmem:[#allocation2 + $0x64] sm:$0x1]  ;;  %v3799_v35 = vld [vmem:[#allocation2 + $0x6c] sm:$0x1]  ;;  %v2730_v6 = vrot.slane %v2728_v25, 4  ;;  %v2733_v53 = vrot.slane %v2731_v21, 5 }
 0x214   :  { %v2720_v40 = vor.u32 %v2719_v48, %v2716_v54  ;;  %v3919_v39 = vshrl.u32 %v7396_v50, 16  ;;  %2010 = vst [vmem:[#allocation2 + $0x70] sm:$0xf] %v2009_v34  ;;  %2013 = vst [vmem:[#allocation2 + $0x74] sm:$0x1] %v2012_v15  ;;  %v3922_v14 = vshll.u32 %v7396_v50, 16 }
 0x215   :  { %v3928_v10 = vshll.u32 %v3798_v22, 16  ;;  %v3933_v41 = vshrl.u32 %v7400_v0, 16  ;;  %v2734_v1 = vor.u32 %v2733_v53, %v2730_v6  ;;  %v3936_v31 = vshll.u32 %v7400_v0, 16  ;;  %v7412_v45 = vld [vmem:[#allocation2 + $0x68] sm:$0xf] }
 0x216   :  { %v2721_v17 = vrot.slane %v2720_v40, 4  ;;  %v3921_v23 = vrot.slane %v3919_v39, 4  ;;  %v3942_v13 = vshll.u32 %v3799_v35, 16  ;;  %v2739_v46 = vrot.slane %v2737_v32, 5  ;;  %v2014_v60 = vld [vmem:[#allocation2 + $0x78] sm:$0xf] }
 0x217   :  { %v3924_v7 = vrot.slane %v3922_v14, 5  ;;  %v3935_v61 = vrot.slane %v3933_v41, 4  ;;  %v1885_v59 = vshrl.u32 %v7406_v51, 16  ;;  %v2735_v9 = vrot.slane %v2734_v1, 4  ;;  %v7417_v48 = vld [vmem:[#allocation2 + $0x6c] sm:$0x1] }
 0x218   :  { %v2726_v20 = vsel %vm6060_vm2, %v2721_v17, %v2725_v24  ;;  %v3930_v28 = vrot.slane %v3928_v10, 5  ;;  %v3938_v2 = vrot.slane %v3936_v31, 5  ;;  %v3944_v54 = vrot.slane %v3942_v13, 5  ;;  %v2017_v34 = vld [vmem:[#allocation2 + $0x7c] sm:$0x1] }
 0x219   :  { %v3925_v52 = vor.u32 %v3924_v7, %v3921_v23  ;;  %v2742_v25 = vshrl.u32 %v7412_v45, 16  ;;  %v2745_v21 = vshll.u32 %v7412_v45, 16  ;;  %v2740_v32 = vsel %vm6060_vm2, %v2735_v9, %v2739_v46  ;;  %v7425_v15 = vld [vmem:[#allocation2 + $0x98] sm:$0xf] }
 0x21a   :  { %v3939_v40 = vor.u32 %v3938_v2, %v3935_v61  ;;  %v1882_v22 = vor.u32 %v1880_v19, %v7398_v12  ;;  %v1883_v35 = vrot.slane %v7398_v12, 4  ;;  %v5078_v24 = vcombine.low %v2726_v20, %v2740_v32  ;;  %v2023_v32 = vld [vmem:[#allocation2 + $0x84] sm:$0x1] }
 0x21b   :  { %v3926_v6 = vrot.slane %v3925_v52, 4  ;;  %v5070_v53 = vcombine.low %v7377_v43, %v7386_v30  ;;  %v7429_v39 = vld [vmem:[#allocation2 + $0x70] sm:$0xf]  ;;  %v7431_v17 = vld [vmem:[#allocation2 + $0x74] sm:$0x1]  ;;  %v2744_v14 = vrot.slane %v2742_v25, 4 }
 0x21c   :  { %v3940_v10 = vrot.slane %v3939_v40, 4  ;;  %v2747_v41 = vrot.slane %v2745_v21, 5  ;;  %v2751_v1 = vshll.u32 %v7417_v48, 16  ;;  %v2756_v19 = vshrl.u32 %v7429_v39, 16  ;;  %v7435_v12 = vld [vmem:[#allocation2 + $0x70] sm:$0xf]  ;;  %3305 = vmatprep.mubr.bf16.mxu1 %v5078_v24 }
 0x21d   :  { %v3931_v23 = vsel %vm6060_vm2, %v3926_v6, %v3930_v28  ;;  %v2759_v31 = vshll.u32 %v7429_v39, 16  ;;  %v2765_v43 = vshll.u32 %v7431_v17, 16  ;;  %v2015_v30 = vsel %vm7043_vm9, %v1882_v22, %v2014_v60  ;;  %3306 = vmatmul.mubr.bf16.gmra.mrb[16].mxu1 %v5070_v53  ;;  %v2020_v21 = vld [vmem:[#allocation2 + $0x80] sm:$0xf]  ;;  %v7453_v24 = vld [vmem:[#allocation2 + $0x90] sm:$0xf] }
 0x21e   :  { %v3945_v13 = vsel %vm6060_vm2, %v3940_v10, %v3944_v54  ;;  %v2748_v46 = vor.u32 %v2747_v41, %v2744_v14  ;;  %v2758_v7 = vrot.slane %v2756_v19, 4  ;;  %2016 = vst [vmem:[#allocation2 + $0x78] sm:$0xf] %v2015_v30  ;;  %v2018_v61 = vsel %vm6616_vm6, %v1883_v35, %v2017_v34  ;;  %v3800_v41 = vld [vmem:[#allocation2 + $0x74] sm:$0x1] }
 0x21f   :  { %v5166_v20 = vcombine.low %v3931_v23, %v3945_v13  ;;  %v2761_v9 = vrot.slane %v2759_v31, 5  ;;  %2019 = vst [vmem:[#allocation2 + $0x7c] sm:$0x1] %v2018_v61  ;;  %v3947_v28 = vshrl.u32 %v7435_v12, 16  ;;  %v4017_v2 = vshrl.u32 %v7425_v15, 16 }
 0x220   :  { %v5158_v60 = vcombine.low %v7396_v50, %v7400_v0  ;;  %v2749_v52 = vrot.slane %v2748_v46, 4  ;;  %v2753_v25 = vrot.slane %v2751_v1, 5  ;;  %v3950_v54 = vshll.u32 %v7435_v12, 16 }
 0x221   :  { %4510 = vmatprep.mubr.bf16.mxu0 %v5166_v20  ;;  %v2762_v40 = vor.u32 %v2761_v9, %v2758_v7  ;;  %v3949_v22 = vrot.slane %v3947_v28, 4  ;;  %v1887_v35 = vrot.slane %v1885_v59, 7  ;;  %v1888_v34 = vshll.u32 %v7406_v51, 16 }
 0x222   :  { %4511 = vmatmul.mubr.bf16.gmra.mrb[48].mxu0 %v5158_v60  ;;  %v2767_v6 = vrot.slane %v2765_v43, 5  ;;  %v3952_v53 = vrot.slane %v3950_v54, 5  ;;  %v1587_v14 = vmul.f32 0.01, %v7391_v4  ;;  %v4020_v50 = vshll.u32 %v7425_v15, 16 }
 0x223   :  { %v2754_v0 = vsel %vm6060_vm2, %v2749_v52, %v2753_v25  ;;  %v2763_v10 = vrot.slane %v2762_v40, 4  ;;  %v1890_v1 = vor.u32 %v1888_v34, %v1887_v35  ;;  %v1891_v19 = vrot.slane %v1887_v35, 4  ;;  %v7480_v34 = vld [vmem:[#allocation2 + $0x90] sm:$0xf] }
 0x224   :  { %v2875_v59 = vrot.slane %v7101_v3, 5  ;;  %v3953_v23 = vor.u32 %v3952_v53, %v3949_v22  ;;  %v2812_v51 = vshrl.u32 %v7453_v24, 16  ;;  %v2815_v31 = vshll.u32 %v7453_v24, 16  ;;  %v3805_v3 = vld [vmem:[#allocation2 + $0x9c] sm:$0x1] }
 0x225   :  { %v2768_v43 = vsel %vm6060_vm2, %v2763_v10, %v2767_v6  ;;  %v7464_v30 = vld [vmem:[#allocation2 + $0x78] sm:$0xf]  ;;  %v2021_v13 = vsel %vm7043_vm9, %v1890_v1, %v2020_v21  ;;  %v2024_v46 = vsel %vm6616_vm6, %v1891_v19, %v2023_v32  ;;  %v1603_v61 = vmax.f32 %v7391_v4, %v1587_v14 }
 0x226   :  { %v7470_v7 = vld [vmem:[#allocation2 + $0x78] sm:$0xf]  ;;  %v5079_v20 = vcombine.low %v2754_v0, %v2768_v43  ;;  %v3801_v9 = vld [vmem:[#allocation2 + $0x7c] sm:$0x1]  ;;  %v3956_v28 = vshll.u32 %v3800_v41, 16  ;;  %v3961_v60 = vshrl.u32 %v7464_v30, 16  ;;  %v5071_v54 = vcombine.low %v7412_v45, %v7429_v39 }
 0x227   :  { %v3964_v52 = vshll.u32 %v7464_v30, 16  ;;  %2022 = vst [vmem:[#allocation2 + $0x80] sm:$0xf] %v2021_v13  ;;  %2025 = vst [vmem:[#allocation2 + $0x84] sm:$0x1] %v2024_v46  ;;  %v2770_v21 = vshrl.u32 %v7470_v7, 16  ;;  %v5217_v10 = vpack.c.bf16 %v1603_v61, %v1603_v61 }
 0x228   :  { %v2773_v32 = vshll.u32 %v7470_v7, 16  ;;  %3313 = vmatprep.mubr.bf16.mxu1 %v5079_v20  ;;  %v3954_v4 = vrot.slane %v3953_v23, 4  ;;  %v3963_v40 = vrot.slane %v3961_v60, 4  ;;  %v3970_v35 = vshll.u32 %v3801_v9, 16  ;;  %v7483_v53 = vld [vmem:[#allocation2 + $0x7c] sm:$0x1] }
 0x229   :  { %v3966_v22 = vrot.slane %v3964_v52, 5  ;;  %3314 = vmatmul.mubr.bf16.gmra.mrb[20].mxu1 %v5071_v54  ;;  %v2772_v14 = vrot.slane %v2770_v21, 4  ;;  %v3958_v45 = vrot.slane %v3956_v28, 5  ;;  %v7485_v41 = vrot.slane %v2812_v51, 4  ;;  %v2026_v28 = vld [vmem:[#allocation2 + $0x88] sm:$0xf] }
 0x22a   :  { %v2775_v0 = vrot.slane %v2773_v32, 5  ;;  %v7487_v1 = vrot.slane %v2815_v31, 5  ;;  %v1893_v23 = vshrl.u32 %v5217_v10, 16  ;;  %v4003_v43 = vshrl.u32 %v7480_v34, 16  ;;  %v2029_v60 = vld [vmem:[#allocation2 + $0x8c] sm:$0x1] }
 0x22b   :  { %v3967_v39 = vor.u32 %v3966_v22, %v3963_v40  ;;  %v4006_v13 = vshll.u32 %v7480_v34, 16  ;;  %v3959_v46 = vsel %vm6060_vm2, %v3954_v4, %v3958_v45  ;;  %v3972_v9 = vrot.slane %v3970_v35, 5 }
 0x22c   :  { %v2776_v19 = vor.u32 %v2775_v0, %v2772_v14  ;;  %v2779_v61 = vshll.u32 %v7483_v53, 16  ;;  %v1895_v52 = vrot.slane %v1893_v23, 7  ;;  %v1896_v54 = vshll.u32 %v5217_v10, 16 }
 0x22d   :  { %v3968_v20 = vrot.slane %v3967_v39, 4  ;;  %v7505_v39 = vld [vmem:[#allocation2 + $0x94] sm:$0x1]  ;;  %v5159_v10 = vcombine.low %v7435_v12, %v7464_v30  ;;  %v2818_v12 = vor.u32 %v7487_v1, %v7485_v41  ;;  %v4019_v41 = vrot.slane %v4017_v2, 4 }
 0x22e   :  { %v7494_v51 = vld [vmem:[#allocation2 + $0x80] sm:$0xf]  ;;  %v7496_v31 = vld [vmem:[#allocation2 + $0x84] sm:$0x1]  ;;  %v2777_v32 = vrot.slane %v2776_v19, 4  ;;  %v1898_v0 = vor.u32 %v1896_v54, %v1895_v52  ;;  %v1899_v45 = vrot.slane %v1895_v52, 4 }
 0x22f   :  { %v3973_v21 = vsel %vm6060_vm2, %v3968_v20, %v3972_v9  ;;  %v2784_v40 = vshrl.u32 %v7494_v51, 16  ;;  %v2787_v4 = vshll.u32 %v7494_v51, 16  ;;  %v7502_v22 = vld [vmem:[#allocation2 + $0x80] sm:$0xf]  ;;  %v2793_v14 = vshll.u32 %v7496_v31, 16 }
 0x230   :  { %v5167_v35 = vcombine.low %v3959_v46, %v3973_v21  ;;  %v3975_v19 = vshrl.u32 %v7502_v22, 16  ;;  %v2781_v20 = vrot.slane %v2779_v61, 5  ;;  %v2027_v9 = vsel %vm7043_vm9, %v1898_v0, %v2026_v28  ;;  %v2825_v52 = vld [vmem:[#allocation2 + $0x8] sm:$0xe]  ;;  %v2826_v61 = vld [vmem:[#allocation2 + $0x10] sm:$0xe] }
 0x231   :  { %v2786_v23 = vrot.slane %v2784_v40, 4  ;;  %v2789_v6 = vrot.slane %v2787_v4, 5  ;;  %v2030_v46 = vsel %vm6616_vm6, %v1899_v45, %v2029_v60  ;;  %v3978_v54 = vshll.u32 %v7502_v22, 16  ;;  %2028 = vst [vmem:[#allocation2 + $0x88] sm:$0xf] %v2027_v9 }
 0x232   :  { %4518 = vmatprep.mubr.bf16.mxu0 %v5167_v35  ;;  %v2887_v21 = vrot.slane %v7152_v37, 5  ;;  %2031 = vst [vmem:[#allocation2 + $0x8c] sm:$0x1] %v2030_v46  ;;  %v2821_v30 = vshll.u32 %v7505_v39, 16  ;;  %v2782_v38 = vsel %vm6060_vm2, %v2777_v32, %v2781_v20  ;;  %v2795_v28 = vrot.slane %v2793_v14, 5 }
 0x233   :  { %4519 = vmatmul.mubr.bf16.gmra.mrb[52].mxu0 %v5159_v10  ;;  %v2790_v25 = vor.u32 %v2789_v6, %v2786_v23  ;;  %v3977_v60 = vrot.slane %v3975_v19, 4  ;;  %v4005_v40 = vrot.slane %v4003_v43, 4  ;;  %v2828_v4 = vld [vmem:[#allocation2 + $0x20] sm:$0xe]  ;;  %v3802_v37 = vld [vmem:[#allocation2 + $0x84] sm:$0x1] }
 0x234   :  { %v3980_v0 = vrot.slane %v3978_v54, 5  ;;  %v5050_v6 = vrot.slane %v2825_v52, 9  ;;  %v4008_v45 = vrot.slane %v4006_v13, 5  ;;  %v4022_v1 = vrot.slane %v4020_v50, 5  ;;  %v3804_v46 = vld [vmem:[#allocation2 + $0x94] sm:$0x1] }
 0x235   :  { %v2791_v35 = vrot.slane %v2790_v25, 4  ;;  %v5051_v32 = vrot.slane %v2826_v61, 9  ;;  %v5052_v13 = vrot.slane %v2827_v62, 9  ;;  %v5053_v2 = vrot.slane %v2828_v4, 9 }
 0x236   :  { %v7536_v43 = vsel %vm7526_vm12, %v5050_v6, %v2875_v59  ;;  %v3984_v23 = vshll.u32 %v3802_v37, 16  ;;  %v5072_v50 = vcombine.low %v7470_v7, %v7494_v51  ;;  %v8409_v19 = vrot.slane %v7111_v55, 5 }
 0x237   :  { %v2796_v25 = vsel %vm6060_vm2, %v2791_v35, %v2795_v28  ;;  %v3981_v9 = vor.u32 %v3980_v0, %v3977_v60  ;;  %v8410_v54 = vrot.slane %v7142_v42, 5  ;;  %v7556_v7 = vsel %vm7526_vm12, %v5053_v2, %v2887_v21 }
 0x238   :  { %v5080_v14 = vcombine.low %v2782_v38, %v2796_v25  ;;  %v7544_v20 = vsel %vm7526_vm12, %v5051_v32, %v8409_v19  ;;  %v3787_v55 = vld [vmem:[#allocation2 + $0x88] sm:$0xf]  ;;  %v4009_v62 = vor.u32 %v4008_v45, %v4005_v40  ;;  %v4023_v4 = vor.u32 %v4022_v1, %v4019_v41 }
 0x239   :  { %v5082_v59 = vcombine.low %v7536_v43, %v7544_v20  ;;  %v7552_v52 = vsel %vm7526_vm12, %v5052_v13, %v8410_v54  ;;  %v3803_v51 = vld [vmem:[#allocation2 + $0x8c] sm:$0x1]  ;;  %v2583_v61 = vld [vmem:[#allocation2 + $0x88] sm:$0xf]  ;;  %v3989_v28 = vshrl.u32 %v3787_v55, 16  ;;  %v3992_v60 = vshll.u32 %v3787_v55, 16 }
 0x23a   :  { %3321 = vmatprep.mubr.bf16.mxu1 %v5080_v14  ;;  %v7560_v42 = vld [vmem:[#allocation2 + $0x8c] sm:$0x1]  ;;  %v4026_v35 = vshll.u32 %v3805_v3, 16  ;;  %v2798_v37 = vshrl.u32 %v2583_v61, 16  ;;  %v2801_v0 = vshll.u32 %v2583_v61, 16  ;;  %v2819_v6 = vrot.slane %v2818_v12, 4 }
 0x23b   :  { %3322 = vmatmul.mubr.bf16.gmra.mrb[24].mxu1 %v5072_v50  ;;  %v4012_v21 = vshll.u32 %v3804_v46, 16  ;;  %v3982_v32 = vrot.slane %v3981_v9, 4  ;;  %v3991_v25 = vrot.slane %v3989_v28, 4  ;;  %v3994_v43 = vrot.slane %v3992_v60, 5 }
 0x23c   :  { %v3998_v13 = vshll.u32 %v3803_v51, 16  ;;  %v2800_v2 = vrot.slane %v2798_v37, 4  ;;  %v2803_v40 = vrot.slane %v2801_v0, 5  ;;  %v2807_v45 = vshll.u32 %v7560_v42, 16  ;;  %v2830_v0 = vld [vmem:[#allocation2 + $0x30] sm:$0xe] }
 0x23d   :  { %v4010_v14 = vrot.slane %v4009_v62, 4  ;;  %v3986_v19 = vrot.slane %v3984_v23, 5  ;;  %v3995_v20 = vor.u32 %v3994_v43, %v3991_v25  ;;  %v4024_v50 = vrot.slane %v4023_v4, 4 }
 0x23e   :  { %v4028_v54 = vrot.slane %v4026_v35, 5  ;;  %v2804_v38 = vor.u32 %v2803_v40, %v2800_v2  ;;  %v2823_v41 = vrot.slane %v2821_v30, 5  ;;  %v4000_v46 = vrot.slane %v3998_v13, 5  ;;  %v2829_v35 = vld [vmem:[#allocation2 + $0x28] sm:$0xe] }
 0x23f   :  { %v3987_v1 = vsel %vm6060_vm2, %v3982_v32, %v3986_v19  ;;  %v3996_v12 = vrot.slane %v3995_v20, 4  ;;  %v4014_v9 = vrot.slane %v4012_v21, 5  ;;  %v2809_v28 = vrot.slane %v2807_v45, 5  ;;  %v2831_v2 = vld [vmem:[#allocation2 + $0x38] sm:$0xe]  ;;  %v5885_v20 = vld [vmem:[%s8359_s4 + $0x48] sm:$0xff]  }
 0x240   :  { %v2805_v3 = vrot.slane %v2804_v38, 4  ;;  %v2824_v51 = vsel %vm6060_vm2, %v2819_v6, %v2823_v41  ;;  %v4029_v30 = vsel %vm6060_vm2, %v4024_v50, %v4028_v54  ;;  %v5160_v38 = vcombine.low %v7502_v22, %v3787_v55  ;;  %v2832_v40 = vld [vmem:[#allocation2 + $0x40] sm:$0xe]  ;;  %v2833_v45 = vld [vmem:[#allocation2 + $0x58] sm:$0xe] }
 0x241   :  { %v4001_v62 = vsel %vm6060_vm2, %v3996_v12, %v4000_v46  ;;  %v4015_v23 = vsel %vm6060_vm2, %v4010_v14, %v4014_v9  ;;  %v5073_v21 = vcombine.low %v2583_v61, %v7453_v24  ;;  %v5054_v32 = vrot.slane %v2829_v35, 9  ;;  %v2834_v19 = vld [vmem:[#allocation2 + $0x60] sm:$0xe]  ;;  %v5886_v12 = vld [vmem:[%s8359_s4 + $0x8] sm:$0xff]   ;;  %v5888_v35 = vld [vmem:[%s8359_s4 + $0x10] sm:$0xff]  }
 0x242   :  { %v5168_v60 = vcombine.low %v3987_v1, %v4001_v62  ;;  %v2810_v4 = vsel %vm6060_vm2, %v2805_v3, %v2809_v28  ;;  %v5169_v6 = vcombine.low %v4015_v23, %v4029_v30  ;;  %v2891_v25 = vrot.slane %v7200_v5, 5  ;;  %v7607_v46 = vld [vmem:[#allocation2 + $0x8] sm:$0xf]  ;;  %v2838_v62 = vld [vmem:[#allocation2 + $0x80] sm:$0xe] }
 0x243   :  { %v5081_v37 = vcombine.low %v2810_v4, %v2824_v51  ;;  %v5055_v43 = vrot.slane %v2830_v0, 9  ;;  %v2895_v13 = vrot.slane %v7266_v8, 5  ;;  %v5056_v55 = vrot.slane %v2831_v2, 9  ;;  %v2837_v51 = vld [vmem:[#allocation2 + $0x78] sm:$0xe] }
 0x244   :  { %4526 = vmatprep.mubr.bf16.mxu0 %v5168_v60  ;;  %v2892_v22 = vsel %vm7526_vm12, %v5054_v32, %v2891_v25  ;;  %v2899_v61 = vrot.slane %v7295_v49, 5  ;;  %v5057_v14 = vrot.slane %v2832_v40, 9  ;;  %v2903_v5 = vrot.slane %v7314_v36, 5  ;;  %v7630_v40 = vld [vmem:[#allocation2 + $0x10] sm:$0xf] }
 0x245   :  { %4527 = vmatmul.mubr.bf16.gmra.mrb[56].mxu0 %v5160_v38  ;;  %3329 = vmatprep.mubr.bf16.mxu1 %v5081_v37  ;;  %v2896_v24 = vsel %vm7526_vm12, %v5055_v43, %v2895_v13  ;;  %v5161_v8 = vcombine.low %v7480_v34, %v7425_v15  ;;  %v5058_v50 = vrot.slane %v2833_v45, 9  ;;  %v2907_v49 = vrot.slane %v7379_v57, 5  ;;  %v7605_v57 = vld [vmem:[#allocation2] sm:$0xf] }
 0x246   :  { %4534 = vmatprep.mubr.bf16.mxu0 %v5169_v6  ;;  %3330 = vmatmul.mubr.bf16.gmra.mrb[28].mxu1 %v5073_v21  ;;  %v5084_v54 = vcombine.low %v2892_v22, %v2896_v24  ;;  %v5059_v41 = vrot.slane %v2834_v19, 9  ;;  %v2911_v36 = vrot.slane %v7388_v11, 5  ;;  %v8411_v1 = vcombine.low %v7552_v52, %v7556_v7  ;;  %v5887_v11 = vld [vmem:[%s8359_s4 + $0x50] sm:$0xff]   ;;  %v2835_v52 = vld [vmem:[#allocation2 + $0x68] sm:$0xe]  ;;  %v5889_v21 = vld [vmem:[%s8359_s4 + $0x58] sm:$0xff]  }
 0x247   :  { %5522 = vmatprep.mubr.bf16.mxu1 %v5082_v59  ;;  %v5884_v59 = vld [vmem:[%s8359_s4] sm:$0xff]   ;;  %v2900_v15 = vsel %vm7526_vm12, %v5056_v55, %v2899_v61  ;;  %v2904_v34 = vsel %vm7526_vm12, %v5057_v14, %v2903_v5  ;;  %v2836_v7 = vld [vmem:[#allocation2 + $0x70] sm:$0xe]  ;;  %v2908_v3 = vsel %vm7526_vm12, %v5058_v50, %v2907_v49  ;;  %v2071_v23 = vshrl.u32 %v7605_v57, 16  ;;  %v5890_v24 = vld [vmem:[%s8359_s4 + $0x18] sm:$0xff]  }
 0x248   :  { %v5085_v9 = vcombine.low %v2900_v15, %v2904_v34  ;;  %v2912_v28 = vsel %vm7526_vm12, %v5059_v41, %v2911_v36  ;;  %v2074_v30 = vshll.u32 %v7605_v57, 16  ;;  %v2085_v60 = vshrl.u32 %v7607_v46, 16  ;;  %v5891_v14 = vld [vmem:[%s8359_s4 + $0x60] sm:$0xff]  }
 0x249   :  { %v2088_v4 = vshll.u32 %v7607_v46, 16  ;;  %v5060_v38 = vrot.slane %v2835_v52, 9  ;;  %v2915_v37 = vrot.slane %v7417_v48, 5  ;;  %v5061_v0 = vrot.slane %v2836_v7, 9 }
 0x24a   :  { %v2919_v6 = vrot.slane %v7431_v17, 5  ;;  %v5062_v32 = vrot.slane %v2837_v51, 9  ;;  %v2923_v25 = vrot.slane %v7483_v53, 5  ;;  %v5063_v43 = vrot.slane %v2838_v62, 9  ;;  %v7632_v17 = vld [vmem:[#allocation2 + $0x18] sm:$0xf] }
 0x24b   :  { %v2927_v13 = vrot.slane %v7496_v31, 5  ;;  %v5086_v2 = vcombine.low %v2908_v3, %v2912_v28  ;;  %v2073_v22 = vrot.slane %v2071_v23, 4  ;;  %v2076_v48 = vrot.slane %v2074_v30, 5  ;;  %v2839_v53 = vld [vmem:[#allocation2 + $0x88] sm:$0xe] }
 0x24c   :  { %v2087_v55 = vrot.slane %v2085_v60, 4  ;;  %v2090_v45 = vrot.slane %v2088_v4, 5  ;;  %v2916_v31 = vsel %vm7526_vm12, %v5060_v38, %v2915_v37  ;;  %v2920_v61 = vsel %vm7526_vm12, %v5061_v0, %v2919_v6  ;;  %v5893_v51 = vld [vmem:[%s8359_s4 + $0x68] sm:$0xff]   ;;  %v7666_v62 = vld [vmem:[#allocation2 + $0x20] sm:$0xf] }
 0x24d   :  { %4535 = vmatmul.mubr.bf16.gmra.mrb[60].mxu0 %v5161_v8  ;;  %v2924_v5 = vsel %vm7526_vm12, %v5062_v32, %v2923_v25  ;;  %v2928_v19 = vsel %vm7526_vm12, %v5063_v43, %v2927_v13  ;;  %v2840_v8 = vld [vmem:[#allocation2 + $0x90] sm:$0xe]  ;;  %v2099_v50 = vshrl.u32 %v7630_v40, 16  ;;  %v2113_v49 = vshrl.u32 %v7632_v17, 16  ;;  %v5894_v37 = vld [vmem:[%s8359_s4 + $0x28] sm:$0xff]  }
 0x24e   :  { %5523 = vmatmul.mubr.bf16.vlgmr.msra.gmra.mrb[32].mxu1 %v8411_v1  ;;  %v2116_v41 = vshll.u32 %v7632_v17, 16  ;;  %v5064_v36 = vrot.slane %v2839_v53, 9  ;;  %v2077_v1 = vor.u32 %v2076_v48, %v2073_v22  ;;  %v2091_v34 = vor.u32 %v2090_v45, %v2087_v55  ;;  %v7680_v25 = vld [vmem:[#allocation2 + $0x14] sm:$0x1]  ;;  %v7682_v43 = vld [vmem:[#allocation2 + $0x1c] sm:$0x1] }
 0x24f   :  { %5526 = vmatprep.mubr.bf16.mxu1 %v5084_v54  ;;  %5347 = vmatpush3.bf16.msra.mxu1 %v5884_v59  ;;  %v7648_v59 = vld [vmem:[#allocation2 + $0xc] sm:$0x1]  ;;  %v2102_v54 = vshll.u32 %v7630_v40, 16  ;;  %v5065_v52 = vrot.slane %v2840_v8, 9  ;;  %v2935_v7 = vrot.slane %v7505_v39, 5  ;;  %v5087_v3 = vcombine.low %v2916_v31, %v2920_v61  ;;  %v5896_v61 = vld [vmem:[%s8359_s4 + $0x30] sm:$0xff]  }
 0x250   :  { %5348 = vmatprep.subr.bf16.mxu1 %v5885_v20  ;;  %v7650_v20 = vld [vmem:[#allocation2 + $0x4] sm:$0x1]  ;;  %v5088_v28 = vcombine.low %v2924_v5, %v2928_v19  ;;  %v2101_v23 = vrot.slane %v2099_v50, 4  ;;  %v2115_v60 = vrot.slane %v2113_v49, 4  ;;  %v2118_v4 = vrot.slane %v2116_v41, 5 }
 0x251   :  { %v2080_v15 = vshll.u32 %v7650_v20, 16  ;;  %v2104_v30 = vrot.slane %v2102_v54, 5  ;;  %v2092_v38 = vrot.slane %v2091_v34, 4  ;;  %v2936_v6 = vsel %vm7526_vm12, %v5065_v52, %v2935_v7  ;;  %v7700_v8 = vld [vmem:[#allocation2 + $0x24] sm:$0x1] }
 0x252   :  { %v2127_v13 = vshrl.u32 %v7666_v62, 16  ;;  %v2119_v45 = vor.u32 %v2118_v4, %v2115_v60  ;;  %v2108_v5 = vshll.u32 %v7680_v25, 16  ;;  %v2122_v19 = vshll.u32 %v7682_v43, 16  ;;  %v7702_v34 = vld [vmem:[#allocation2 + $0x2c] sm:$0x1] }
 0x253   :  { %5349 = vmatpush3.bf16.msra.mxu1 %v5886_v12  ;;  %v5892_v12 = vld [vmem:[%s8359_s4 + $0x20] sm:$0xff]   ;;  %v2082_v39 = vrot.slane %v2080_v15, 5  ;;  %v2105_v55 = vor.u32 %v2104_v30, %v2101_v23  ;;  %v2150_v30 = vshll.u32 %v7702_v34, 16 }
 0x254   :  { %5350 = vmatprep.subr.bf16.mxu1 %v5887_v11  ;;  %v2931_v11 = vrot.slane %v7560_v42, 5  ;;  %v2078_v42 = vrot.slane %v2077_v1, 4  ;;  %v2129_v50 = vrot.slane %v2127_v13, 4  ;;  %v2120_v15 = vrot.slane %v2119_v45, 4  ;;  %v5902_v45 = vld [vmem:[%s8359_s4 + $0x88] sm:$0xff]  }
 0x255   :  { %v2106_v1 = vrot.slane %v2105_v55, 4  ;;  %v2110_v52 = vrot.slane %v2108_v5, 5  ;;  %v2124_v7 = vrot.slane %v2122_v19, 5  ;;  %v2359_v13 = vrot.slane %v7682_v43, 5  ;;  %v2297_v43 = vld [vmem:[#allocation2 + $0x18] sm:$0xe] }
 0x256   :  { %5527 = vmatmul.mubr.bf16.gmra.mrb[36].mxu1 %v5085_v9  ;;  %v2094_v9 = vshll.u32 %v7648_v59, 16  ;;  %v2932_v0 = vsel %vm7526_vm12, %v5064_v36, %v2931_v11  ;;  %v5898_v11 = vld [vmem:[%s8359_s4 + $0x38] sm:$0xff]  }
 0x257   :  { %5530 = vmatprep.mubr.bf16.mxu1 %v5086_v2  ;;  %5351 = vmatpush3.bf16.msra.mxu1 %v5888_v35  ;;  %v7668_v35 = vld [vmem:[#allocation2 + $0x28] sm:$0xf]  ;;  %v2130_v2 = vshll.u32 %v7666_v62, 16  ;;  %v5089_v31 = vcombine.low %v2932_v0, %v2936_v6  ;;  %v2111_v60 = vsel %vm6060_vm2, %v2106_v1, %v2110_v52  ;;  %v2125_v4 = vsel %vm6060_vm2, %v2120_v15, %v2124_v7  ;;  %v7724_v0 = vld [vmem:[#allocation2 + $0x50] sm:$0xf] }
 0x258   :  { %5352 = vmatprep.subr.bf16.mxu1 %v5889_v21  ;;  %v5895_v21 = vld [vmem:[%s8359_s4 + $0x70] sm:$0xff]   ;;  %v2096_v32 = vrot.slane %v2094_v9, 5  ;;  %v2141_v22 = vshrl.u32 %v7668_v35, 16  ;;  %v2144_v48 = vshll.u32 %v7668_v35, 16  ;;  %v2136_v9 = vshll.u32 %v7700_v8, 16 }
 0x259   :  { %v2132_v54 = vrot.slane %v2130_v2, 5  ;;  %v2294_v6 = vld [vmem:[#allocation2] sm:$0xe]  ;;  %v5035_v55 = vcombine.low %v2111_v60, %v2125_v4  ;;  %v2351_v1 = vrot.slane %v7648_v59, 5  ;;  %v5904_v52 = vld [vmem:[%s8359_s4 + $0x90] sm:$0xff]  }
 0x25a   :  { %v2097_v53 = vsel %vm6060_vm2, %v2092_v38, %v2096_v32  ;;  %v2143_v49 = vrot.slane %v2141_v22, 4  ;;  %v2146_v41 = vrot.slane %v2144_v48, 5  ;;  %v2355_v32 = vrot.slane %v7680_v25, 5  ;;  %v7730_v22 = vld [vmem:[#allocation2 + $0x34] sm:$0x1] }
 0x25b   :  { %5353 = vmatpush3.bf16.msra.mxu1 %v5890_v24  ;;  %v2083_v24 = vsel %vm6060_vm2, %v2078_v42, %v2082_v39  ;;  %v2138_v2 = vrot.slane %v2136_v9, 5  ;;  %v2295_v48 = vld [vmem:[#allocation2 + $0x8] sm:$0xe]  ;;  %v2347_v25 = vrot.slane %v7650_v20, 5  ;;  %v7752_v7 = vld [vmem:[#allocation2 + $0x3c] sm:$0x1] }
 0x25c   :  { %5354 = vmatprep.subr.bf16.mxu1 %v5891_v14  ;;  %v5897_v14 = vld [vmem:[%s8359_s4 + $0x78] sm:$0xff]   ;;  %v5034_v36 = vcombine.low %v2083_v24, %v2097_v53  ;;  %v2147_v23 = vor.u32 %v2146_v41, %v2143_v49  ;;  %v5011_v49 = vrot.slane %v2295_v48, 9  ;;  %v2186_v41 = vshll.u32 %v7724_v0, 16  ;;  %v7778_v48 = vld [vmem:[#allocation2 + $0x24] sm:$0x1] }
 0x25d   :  { %v2164_v9 = vshll.u32 %v7730_v22, 16 }
 0x25e   :  { %5531 = vmatmul.mubr.bf16.gmra.mrb[40].mxu1 %v5087_v3  ;;  %v7710_v3 = vld [vmem:[#allocation2 + $0x38] sm:$0xf]  ;;  %v2148_v53 = vrot.slane %v2147_v23, 4  ;;  %v7759_v23 = vsel %vm7526_vm12, %v5011_v49, %v2351_v1  ;;  %v5908_v1 = vld [vmem:[%s8359_s4 + $0xa0] sm:$0xff]  }
 0x25f   :  { %5534 = vmatprep.mubr.bf16.mxu1 %v5088_v28  ;;  %5355 = vmatpush3.bf16.msra.mxu1 %v5892_v12  ;;  %v7704_v12 = vld [vmem:[#allocation2 + $0x30] sm:$0xf]  ;;  %v5900_v28 = vld [vmem:[%s8359_s4 + $0x80] sm:$0xff]   ;;  %v2169_v38 = vshrl.u32 %v7710_v3, 16 }
 0x260   :  { %5356 = vmatprep.subr.bf16.mxu1 %v5893_v51  ;;  %v2133_v51 = vor.u32 %v2132_v54, %v2129_v50  ;;  %v2155_v42 = vshrl.u32 %v7704_v12, 16  ;;  %v2158_v39 = vshll.u32 %v7704_v12, 16  ;;  %v7736_v50 = vld [vmem:[#allocation2 + $0x58] sm:$0xf]  ;;  %v2183_v54 = vshrl.u32 %v7724_v0, 16 }
 0x261   :  { %v2171_v5 = vrot.slane %v2169_v38, 4  ;;  %v2200_v59 = vshll.u32 %v7736_v50, 16 }
 0x262   :  { %v2134_v24 = vrot.slane %v2133_v51, 4  ;;  %v2197_v51 = vshrl.u32 %v7736_v50, 16 }
 0x263   :  { %5357 = vmatpush3.bf16.msra.mxu1 %v5894_v37  ;;  %v2172_v37 = vshll.u32 %v7710_v3, 16 }
 0x264   :  { %5358 = vmatprep.subr.bf16.mxu1 %v5895_v21  ;;  %v5026_v21 = vcombine.low %v7605_v57, %v7607_v46  ;;  %v2160_v57 = vrot.slane %v2158_v39, 5  ;;  %v5010_v46 = vrot.slane %v2294_v6, 9  ;;  %v2139_v15 = vsel %vm6060_vm2, %v2134_v24, %v2138_v2  ;;  %v7774_v2 = vld [vmem:[#allocation2 + $0x68] sm:$0xf] }
 0x265   :  { %v2174_v19 = vrot.slane %v2172_v37, 5  ;;  %v2178_v37 = vshll.u32 %v7752_v7, 16  ;;  %v2185_v6 = vrot.slane %v2183_v54, 4  ;;  %v5027_v24 = vcombine.low %v7630_v40, %v7632_v17  ;;  %v7792_v40 = vld [vmem:[#allocation2 + $0x54] sm:$0x1] }
 0x266   :  { %5535 = vmatmul.mubr.bf16.gmra.mrb[44].mxu1 %v5089_v31  ;;  %v2152_v31 = vrot.slane %v2150_v30, 5  ;;  %8413 = vst [vmem:[#allocation14_spill] sm:$0xff] %v7792_v40  ;;  %v2225_v17 = vshrl.u32 %v7774_v2, 16  ;;  %v5028_v39 = vcombine.low %v7666_v62, %v7668_v35 }
 0x267   :  { %5359 = vmatpush3.bf16.msra.mxu1 %v5896_v61  ;;  %3611 = vmatprep.mubr.bf16.mxu1 %v5034_v36  ;;  %v2296_v61 = vld [vmem:[#allocation2 + $0x10] sm:$0xe]  ;;  %v7742_v36 = vsel %vm7526_vm12, %v5010_v46, %v2347_v25  ;;  %v2175_v4 = vor.u32 %v2174_v19, %v2171_v5  ;;  %v7790_v46 = vld [vmem:[#allocation2 + $0x78] sm:$0xf]  ;;  %v2228_v5 = vshll.u32 %v7774_v2, 16  ;;  %v2166_v19 = vrot.slane %v2164_v9, 5 }
 0x268   :  { %5360 = vmatprep.subr.bf16.mxu1 %v5897_v14  ;;  %v2157_v14 = vrot.slane %v2155_v42, 4  ;;  %v5012_v20 = vrot.slane %v2296_v61, 9  ;;  %v7765_v42 = vld [vmem:[#allocation2 + $0x60] sm:$0xf]  ;;  %v2202_v61 = vrot.slane %v2200_v59, 5  ;;  %v2180_v54 = vrot.slane %v2178_v37, 5 }
 0x269   :  { %v2256_v9 = vshll.u32 %v7790_v46, 16  ;;  %v8424_v33 = vcombine.low %v7742_v36, %v7759_v23  ;;  %v2375_v23 = vrot.slane %v7752_v7, 5 }
 0x26a   :  { %v7763_v30 = vsel %vm7526_vm12, %v5012_v20, %v2355_v32  ;;  %v2161_v60 = vor.u32 %v2160_v57, %v2157_v14  ;;  %v2211_v14 = vshrl.u32 %v7765_v42, 16  ;;  %v2214_v57 = vshll.u32 %v7765_v42, 16  ;;  %v7800_v20 = vld [vmem:[#allocation2 + $0x5c] sm:$0x1]  ;;  %v4033_v32 = vld [vmem:[#allocation2 + $0x28] sm:$0xe] }
 0x26b   :  { %5361 = vmatpush3.bf16.msra.mxu1 %v5898_v11  ;;  %v2153_v11 = vsel %vm6060_vm2, %v2148_v53, %v2152_v31  ;;  %v2199_v31 = vrot.slane %v2197_v51, 4  ;;  %8414 = vst [vmem:[#allocation15_spill] sm:$0xff] %v7800_v20  ;;  %v5932_v51 = vld [vmem:[#allocation2 + $0x2c] sm:$0x1] }
 0x26c   :  { %5538 = vmatprep.subr.bf16.mxu1 %v5900_v28  ;;  %v5036_v53 = vcombine.low %v2139_v15, %v2153_v11  ;;  %v2162_v25 = vrot.slane %v2161_v60, 4  ;;  %v2213_v60 = vrot.slane %v2211_v14, 4  ;;  %v7818_v14 = vld [vmem:[#allocation2 + $0x6c] sm:$0x1] }
 0x26d   :  { %v2203_v59 = vor.u32 %v2202_v61, %v2199_v31  ;;  %v7813_v31 = vld [vmem:[#allocation2 + $0x64] sm:$0x1]  ;;  %v5910_v61 = vld [vmem:[%s8359_s4 + $0xa8] sm:$0xff]  }
 0x26e   :  { %3612 = vmatmul.mubr.bf16.vlgmr.msra.gmra.mrb[48].mxu1 %v5026_v21  ;;  %v2188_v21 = vrot.slane %v2186_v41, 5  ;;  %v2192_v41 = vshll.u32 %v7792_v40, 16  ;;  %v2167_v37 = vsel %vm6060_vm2, %v2162_v25, %v2166_v19 }
 0x26f   :  { %3619 = vmatprep.mubr.bf16.mxu1 %v5035_v55  ;;  %5539 = vmatpush3.bf16.msra.mxu1 %v5900_v28  ;;  %v5013_v28 = vrot.slane %v2297_v43, 9  ;;  %v2176_v43 = vrot.slane %v2175_v4, 4  ;;  %v2216_v4 = vrot.slane %v2214_v57, 5  ;;  %v2204_v62 = vrot.slane %v2203_v59, 4  ;;  %v5912_v59 = vld [vmem:[%s8359_s4 + $0xb0] sm:$0xff]  }
 0x270   :  { %5540 = vmatprep.subr.bf16.mxu1 %v5902_v45  ;;  %v2189_v49 = vor.u32 %v2188_v21, %v2185_v6  ;;  %v2227_v21 = vrot.slane %v2225_v17, 4  ;;  %v2194_v40 = vrot.slane %v2192_v41, 5  ;;  %v2258_v17 = vrot.slane %v2256_v9, 5 }
 0x271   :  { %v7771_v38 = vsel %vm7526_vm12, %v5013_v28, %v2359_v13  ;;  %v5906_v13 = vld [vmem:[%s8359_s4 + $0x98] sm:$0xff]   ;;  %v2253_v28 = vshrl.u32 %v7790_v46, 16  ;;  %v2181_v6 = vsel %vm6060_vm2, %v2176_v43, %v2180_v54  ;;  %v2217_v35 = vor.u32 %v2216_v4, %v2213_v60  ;;  %v7820_v54 = vld [vmem:[#allocation2 + $0x74] sm:$0x1] }
 0x272   :  { %8412 = vst [vmem:[#allocation13_spill] sm:$0xff] %v7771_v38  ;;  %v2190_v55 = vrot.slane %v2189_v49, 4  ;;  %v5141_v41 = vrot.slane %v4033_v32, 9  ;;  %v8415_v32 = vrot.slane %v7778_v48, 5  ;;  %v2248_v4 = vshll.u32 %v7820_v54, 16 }
 0x273   :  { %5541 = vmatpush3.bf16.msra.mxu1 %v5902_v45  ;;  %v7786_v45 = vld [vmem:[#allocation2 + $0x70] sm:$0xf]  ;;  %v2255_v43 = vrot.slane %v2253_v28, 4  ;;  %v7828_v28 = vld [vmem:[#allocation2 + $0x80] sm:$0xf]  ;;  %v2218_v60 = vrot.slane %v2217_v35, 4 }
 0x274   :  { %5542 = vmatprep.subr.bf16.mxu1 %v5904_v52  ;;  %v2239_v15 = vshrl.u32 %v7786_v45, 16  ;;  %v2242_v11 = vshll.u32 %v7786_v45, 16 }
 0x275   :  { %v2259_v9 = vor.u32 %v2258_v17, %v2255_v43 }
 0x276   :  { %3620 = vmatmul.mubr.bf16.gmra.mrb[52].mxu1 %v5027_v24  ;;  %v2230_v24 = vrot.slane %v2228_v5, 5  ;;  %v2241_v57 = vrot.slane %v2239_v15, 4  ;;  %v2244_v25 = vrot.slane %v2242_v11, 5  ;;  %v5037_v5 = vcombine.low %v2167_v37, %v2181_v6  ;;  %v7846_v37 = vld [vmem:[#allocation2 + $0x88] sm:$0xf] }
 0x277   :  { %3627 = vmatprep.mubr.bf16.mxu1 %v5036_v53  ;;  %5543 = vmatpush3.bf16.msra.mxu1 %v5904_v52  ;;  %v4092_v52 = vrot.slane %v5932_v51, 5  ;;  %v4032_v53 = vld [vmem:[#allocation2 + $0x20] sm:$0xe]  ;;  %v2206_v51 = vshll.u32 %v7800_v20, 16  ;;  %v2195_v20 = vsel %vm6060_vm2, %v2190_v55, %v2194_v40  ;;  %v2220_v15 = vshll.u32 %v7813_v31, 16 }
 0x278   :  { %5544 = vmatprep.subr.bf16.mxu1 %v5906_v13  ;;  %v2231_v19 = vor.u32 %v2230_v24, %v2227_v21  ;;  %v5140_v49 = vrot.slane %v4032_v53, 9  ;;  %v2234_v11 = vshll.u32 %v7818_v14, 16  ;;  %v2267_v24 = vshrl.u32 %v7828_v28, 16 }
 0x279   :  { %v2208_v38 = vrot.slane %v2206_v51, 5  ;;  %v7841_v40 = vsel %vm7526_vm12, %v5141_v41, %v4092_v52  ;;  %v2270_v53 = vshll.u32 %v7828_v28, 16  ;;  %v5029_v52 = vcombine.low %v7704_v12, %v7710_v3 }
 0x27a   :  { %v7837_v55 = vsel %vm7526_vm12, %v5140_v49, %v8415_v32  ;;  %v2232_v48 = vrot.slane %v2231_v19, 4  ;;  %v2222_v51 = vrot.slane %v2220_v15, 5  ;;  %v2281_v43 = vshrl.u32 %v7846_v37, 16  ;;  %v7870_v15 = vld [vmem:[#allocation2 + $0x8c] sm:$0x1]  ;;  %v7879_v32 = vld [vmem:[%s8359_s4 + $0x200] sm:$0xff]  }
 0x27b   :  { %5545 = vmatpush3.bf16.msra.mxu1 %v5906_v13  ;;  %v7822_v13 = vld [vmem:[#allocation2 + $0x7c] sm:$0x1]  ;;  %v5171_v6 = vcombine.low %v7837_v55, %v7841_v40  ;;  %v2284_v17 = vshll.u32 %v7846_v37, 16  ;;  %v2250_v19 = vrot.slane %v2248_v4, 5  ;;  %v7866_v49 = vrot.slane %v2267_v24, 4 }
 0x27c   :  { %5546 = vmatprep.subr.bf16.mxu1 %v5908_v1  ;;  %v2262_v21 = vshll.u32 %v7822_v13, 16  ;;  %v2223_v35 = vsel %vm6060_vm2, %v2218_v60, %v2222_v51  ;;  %v7868_v41 = vrot.slane %v2270_v53, 5  ;;  %v1459_v24 = vsub.f32 %v6697_v18, %v6937_v29  ;;  %v4041_v40 = vld [vmem:[#allocation2 + $0x78] sm:$0xe] }
 0x27d   :  { %v1461_v53 = vsub.f32 %v6713_v63, %v6937_v29  ;;  %v1469_v18 = vsub.f32 %v6800_v27, %v6937_v29  ;;  %v1471_v63 = vsub.f32 %v6816_v47, %v6937_v29  ;;  %v1473_v51 = vsub.f32 %v6828_v56, %v6937_v29  ;;  %v8419_v27 = vld [vmem:[#allocation7_spill] sm:$0xff]  ;;  %v8420_v47 = vld [vmem:[#allocation8_spill] sm:$0xff]  ;;  %v8421_v56 = vld [vmem:[#allocation9_spill] sm:$0xff] }
 0x27e   :  { %3628 = vmatmul.mubr.bf16.gmra.mrb[56].mxu1 %v5028_v39  ;;  %v2245_v39 = vor.u32 %v2244_v25, %v2241_v57  ;;  %v2260_v25 = vrot.slane %v2259_v9, 4  ;;  %v2264_v3 = vrot.slane %v2262_v21, 5  ;;  %v2286_v9 = vrot.slane %v2284_v17, 5 }
 0x27f   :  { %3635 = vmatprep.mubr.bf16.mxu1 %v5037_v5  ;;  %5547 = vmatpush3.bf16.msra.mxu1 %v5908_v1  ;;  %v2209_v1 = vsel %vm6060_vm2, %v2204_v62, %v2208_v38  ;;  %v2236_v38 = vrot.slane %v2234_v11, 5  ;;  %v5914_v5 = vld [vmem:[%s8359_s4 + $0xb8] sm:$0xff]   ;;  %v2290_v21 = vshll.u32 %v7870_v15, 16  ;;  %v1483_v17 = vsub.f32 %v8419_v27, %v6937_v29 }
 0x280   :  { %5548 = vmatprep.subr.bf16.mxu1 %v5910_v61  ;;  %v2246_v57 = vrot.slane %v2245_v39, 4  ;;  %v5038_v62 = vcombine.low %v2195_v20, %v2209_v1  ;;  %v2265_v11 = vsel %vm6060_vm2, %v2260_v25, %v2264_v3  ;;  %v2283_v39 = vrot.slane %v2281_v43, 4  ;;  %v8418_v25 = vld [vmem:[#allocation6_spill] sm:$0xff] }
 0x281   :  { %v2237_v12 = vsel %vm6060_vm2, %v2232_v48, %v2236_v38  ;;  %v5030_v1 = vcombine.low %v7724_v0, %v7736_v50  ;;  %v2273_v48 = vor.u32 %v7868_v41, %v7866_v49  ;;  %v1463_v0 = vsub.f32 %v6741_v58, %v6937_v29 }
 0x282   :  { %v2251_v20 = vsel %vm6060_vm2, %v2246_v57, %v2250_v19  ;;  %v5039_v60 = vcombine.low %v2223_v35, %v2237_v12  ;;  %v1465_v50 = vsub.f32 %v6757_v44, %v6937_v29  ;;  %v1475_v58 = vsub.f32 %v6844_v16, %v6937_v29  ;;  %v8416_v44 = vld [vmem:[#allocation4_spill] sm:$0xff]  ;;  %v8422_v16 = vld [vmem:[#allocation11_spill] sm:$0xff] }
 0x283   :  { %5549 = vmatpush3.bf16.msra.mxu1 %v5910_v61  ;;  %v7864_v61 = vld [vmem:[#allocation2 + $0x84] sm:$0x1]  ;;  %v1477_v38 = vsub.f32 %v8416_v44, %v6937_v29  ;;  %v1481_v43 = vsub.f32 %v8418_v25, %v6937_v29  ;;  %v1499_v35 = vmul.f32 %v8422_v16, %v1459_v24  ;;  %v1501_v19 = vmul.f32 %v8422_v16, %v1461_v53 }
 0x284   :  { %5550 = vmatprep.subr.bf16.mxu1 %v5912_v59  ;;  %v2276_v4 = vshll.u32 %v7864_v61, 16  ;;  %v1503_v12 = vmul.f32 %v8422_v16, %v1463_v0  ;;  %v1505_v3 = vmul.f32 %v8422_v16, %v1465_v50  ;;  %v1509_v41 = vmul.f32 %v8422_v16, %v1469_v18  ;;  %v8423_v0 = vld [vmem:[#allocation3_spill] sm:$0xff] }
 0x285   :  { %v7936_v50 = vadd.f32 %v8423_v0, %v1499_v35 }
 0x286   :  { %3636 = vmatmul.mubr.bf16.gmra.mrb[60].mxu1 %v5029_v52  ;;  %v5040_v52 = vcombine.low %v2251_v20, %v2265_v11  ;;  %v1511_v20 = vmul.f32 %v8422_v16, %v1471_v63  ;;  %v1513_v11 = vmul.f32 %v8422_v16, %v1473_v51  ;;  %v7942_v18 = vadd.f32 %v8423_v0, %v1503_v12 }
 0x287   :  { %3643 = vmatprep.mubr.bf16.mxu1 %v5038_v62  ;;  %5551 = vmatpush3.bf16.msra.mxu1 %v5912_v59  ;;  %v5031_v59 = vcombine.low %v7765_v42, %v7774_v2  ;;  %v1467_v42 = vsub.f32 %v6786_v26, %v6937_v29  ;;  %v2287_v2 = vor.u32 %v2286_v9, %v2283_v39  ;;  %v8417_v26 = vld [vmem:[#allocation5_spill] sm:$0xff] }
 0x288   :  { %5552 = vmatprep.subr.bf16.mxu1 %v5914_v5  ;;  %v1479_v57 = vsub.f32 %v8417_v26, %v6937_v29  ;;  %v1487_v62 = vsub.f32 %v8421_v56, %v6937_v29  ;;  %v1515_v39 = vmul.f32 %v8422_v16, %v1475_v58  ;;  %v7945_v63 = vadd.f32 %v8423_v0, %v1505_v3 }
 0x289   :  { %v1507_v49 = vmul.f32 %v8422_v16, %v1467_v42  ;;  %v7939_v42 = vadd.f32 %v8423_v0, %v1501_v19  ;;  %v7951_v58 = vadd.f32 %v8423_v0, %v1509_v41  ;;  %v7954_v44 = vadd.f32 %v8423_v0, %v1511_v20  ;;  %v2301_v20 = vld [vmem:[#allocation2 + $0x38] sm:$0xe] }
 0x28a   :  { %v1519_v9 = vmul.f32 %v8422_v16, %v1479_v57  ;;  %v1527_v53 = vmul.f32 %v8422_v16, %v1487_v62  ;;  %v7960_v26 = vadd.f32 %v8423_v0, %v1515_v39  ;;  %v2278_v62 = vrot.slane %v2276_v4, 5 }
 0x28b   :  { %5553 = vmatpush3.bf16.msra.mxu1 %v5914_v5  ;;  %v1485_v5 = vsub.f32 %v8420_v47, %v6937_v29  ;;  %v1517_v29 = vmul.f32 %v8422_v16, %v1477_v38  ;;  %v7948_v51 = vadd.f32 %v8423_v0, %v1507_v49  ;;  %v7957_v38 = vadd.f32 %v8423_v0, %v1513_v11 }
 0x28c   :  { %5570 = vmatprep.subr.bf16.mxu1 %v7879_v32  ;;  %v7966_v25 = vadd.f32 %v8423_v0, %v1519_v9  ;;  %v2274_v47 = vrot.slane %v2273_v48, 4  ;;  %v7978_v56 = vadd.f32 %v8423_v0, %v1527_v53  ;;  %v5032_v12 = vcombine.low %v7786_v45, %v7790_v46  ;;  %v2299_v48 = vld [vmem:[#allocation2 + $0x28] sm:$0xe]  ;;  %v2300_v45 = vld [vmem:[#allocation2 + $0x30] sm:$0xe] }
 0x28d   :  { %v1525_v24 = vmul.f32 %v8422_v16, %v1485_v5  ;;  %v7963_v57 = vadd.f32 %v8423_v0, %v1517_v29  ;;  %v2288_v5 = vrot.slane %v2287_v2, 4  ;;  %v5033_v2 = vcombine.low %v7828_v28, %v7846_v37  ;;  %v2302_v28 = vld [vmem:[#allocation2 + $0x50] sm:$0xe]  ;;  %v2303_v37 = vld [vmem:[#allocation2 + $0x58] sm:$0xe] }
 0x28e   :  { %3644 = vmatmul.mubr.bf16.gmra.mrb[64].mxu1 %v5030_v1  ;;  %v1521_v1 = vmul.f32 %v8422_v16, %v1481_v43  ;;  %v2279_v35 = vsel %vm6060_vm2, %v2274_v47, %v2278_v62  ;;  %v2367_v49 = vrot.slane %v7702_v34, 5  ;;  %v5016_v11 = vrot.slane %v2300_v45, 9  ;;  %v8425_v29 = vld [vmem:[#allocation13_spill] sm:$0xff] }
 0x28f   :  { %3651 = vmatprep.mubr.bf16.mxu1 %v5039_v60  ;;  %v1523_v60 = vmul.f32 %v8422_v16, %v1483_v17  ;;  %v7975_v17 = vadd.f32 %v8423_v0, %v1525_v24  ;;  %v2292_v16 = vrot.slane %v2290_v21, 5  ;;  %v2363_v21 = vrot.slane %v7700_v8, 5  ;;  %v5916_v8 = vld [vmem:[%s8359_s4 + $0x208] sm:$0xff]  }
 0x290   :  { %v7969_v43 = vadd.f32 %v8423_v0, %v1521_v1  ;;  %v2371_v39 = vrot.slane %v7730_v22, 5  ;;  %v5017_v36 = vrot.slane %v2301_v20, 9  ;;  %v8426_v9 = vcombine.low %v7763_v30, %v8425_v29  ;;  %v5917_v22 = vld [vmem:[%s8359_s4 + $0x210] sm:$0xff]  }
 0x291   :  { %v7972_v27 = vadd.f32 %v8423_v0, %v1523_v60  ;;  %v2293_v19 = vsel %vm6060_vm2, %v2288_v5, %v2292_v16  ;;  %v5018_v1 = vrot.slane %v2302_v28, 9  ;;  %v8427_v60 = vld [vmem:[#allocation14_spill] sm:$0xff]  ;;  %v5019_v53 = vrot.slane %v2303_v37, 9  ;;  %v8428_v0 = vld [vmem:[#allocation15_spill] sm:$0xff] }
 0x292   :  { %v5041_v3 = vcombine.low %v2279_v35, %v2293_v19  ;;  %v2379_v24 = vrot.slane %v8427_v60, 5  ;;  %v2383_v47 = vrot.slane %v8428_v0, 5  ;;  %v2372_v7 = vsel %vm7526_vm12, %v5016_v11, %v2371_v39  ;;  %v2304_v5 = vld [vmem:[#allocation2 + $0x60] sm:$0xe]  ;;  %v2305_v35 = vld [vmem:[#allocation2 + $0x68] sm:$0xe] }
 0x293   :  { %v2376_v30 = vsel %vm7526_vm12, %v5017_v36, %v2375_v23  ;;  %v2307_v19 = vld [vmem:[#allocation2 + $0x78] sm:$0xe]  ;;  %v2395_v45 = vrot.slane %v7820_v54, 5  ;;  %v2308_v11 = vld [vmem:[#allocation2 + $0x80] sm:$0xe]  ;;  %v5920_v0 = vld [vmem:[%s8359_s4 + $0x228] sm:$0xff]  }
 0x294   :  { %v2380_v62 = vsel %vm7526_vm12, %v5018_v1, %v2379_v24  ;;  %v2384_v16 = vsel %vm7526_vm12, %v5019_v53, %v2383_v47  ;;  %v2309_v23 = vld [vmem:[#allocation2 + $0x88] sm:$0xe]  ;;  %v4030_v1 = vld [vmem:[#allocation2 + $0x10] sm:$0xe]  ;;  %v4031_v60 = vld [vmem:[#allocation2 + $0x18] sm:$0xe] }
 0x295   :  { %v5024_v47 = vrot.slane %v2308_v11, 9 }
 0x296   :  { %3652 = vmatmul.mubr.bf16.gmra.mrb[68].mxu1 %v5031_v59  ;;  %v2298_v59 = vld [vmem:[#allocation2 + $0x20] sm:$0xe] }
 0x297   :  { %3659 = vmatprep.mubr.bf16.mxu1 %v5040_v52  ;;  %v5014_v4 = vrot.slane %v2298_v59, 9  ;;  %v5015_v52 = vrot.slane %v2299_v48, 9  ;;  %v5020_v59 = vrot.slane %v2304_v5, 9  ;;  %v2387_v48 = vrot.slane %v7813_v31, 5  ;;  %v5919_v31 = vld [vmem:[%s8359_s4 + $0x220] sm:$0xff]  }
 0x298   :  { %v5025_v5 = vrot.slane %v2309_v23, 9 }
 0x299   :  { %v2364_v46 = vsel %vm7526_vm12, %v5014_v4, %v2363_v21  ;;  %v2368_v41 = vsel %vm7526_vm12, %v5015_v52, %v2367_v49  ;;  %v5046_v4 = vcombine.low %v2380_v62, %v2384_v16  ;;  %v5021_v21 = vrot.slane %v2305_v35, 9  ;;  %v5933_v35 = vld [vmem:[#allocation2 + $0x14] sm:$0x1] }
 0x29a   :  { %v5044_v34 = vcombine.low %v2364_v46, %v2368_v41  ;;  %v2391_v52 = vrot.slane %v7818_v14, 5  ;;  %v5023_v46 = vrot.slane %v2307_v19, 9  ;;  %v2399_v41 = vrot.slane %v7822_v13, 5 }
 0x29b   :  { %v2388_v54 = vsel %vm7526_vm12, %v5020_v59, %v2387_v48  ;;  %v2407_v62 = vrot.slane %v7870_v15, 5  ;;  %v5138_v16 = vrot.slane %v4030_v1, 9  ;;  %v5139_v19 = vrot.slane %v4031_v60, 9 }
 0x29c   :  { %v2392_v13 = vsel %vm7526_vm12, %v5021_v21, %v2391_v52  ;;  %v2400_v36 = vsel %vm7526_vm12, %v5023_v46, %v2399_v41  ;;  %v4034_v46 = vld [vmem:[#allocation2 + $0x30] sm:$0xe]  ;;  %v4035_v41 = vld [vmem:[#allocation2 + $0x38] sm:$0xe] }
 0x29d   :  { %v5047_v53 = vcombine.low %v2388_v54, %v2392_v13  ;;  %v2408_v21 = vsel %vm7526_vm12, %v5025_v5, %v2407_v62  ;;  %v5143_v23 = vrot.slane %v4035_v41, 9  ;;  %v4039_v5 = vld [vmem:[#allocation2 + $0x68] sm:$0xe] }
 0x29e   :  { %3660 = vmatmul.mubr.bf16.gmra.mrb[72].mxu1 %v5032_v12  ;;  %v5045_v12 = vcombine.low %v2372_v7, %v2376_v30  ;;  %v2403_v30 = vrot.slane %v7864_v61, 5 }
 0x29f   :  { %3667 = vmatprep.mubr.bf16.mxu1 %v5041_v3  ;;  %v5918_v3 = vld [vmem:[%s8359_s4 + $0x218] sm:$0xff]  }
 0x2a0   :  { %v2404_v15 = vsel %vm7526_vm12, %v5024_v47, %v2403_v30  ;;  %v4038_v30 = vld [vmem:[#allocation2 + $0x60] sm:$0xe] }
 0x2a6   :  { %3668 = vmatmul.mubr.bf16.gmra.mrb[76].mxu1 %v5033_v2 }
 0x2a7   :  { %5554 = vmatprep.mubr.bf16.mxu1 %v8424_v33 }
 0x2ae   :  { %5555 = vmatmul.mubr.bf16.vlgmr.msra.gmra.mrb[32].mxu1 %v8426_v9 }
 0x2af   :  { %5558 = vmatprep.mubr.bf16.mxu1 %v5044_v34  ;;  %5571 = vmatpush3.bf16.msra.mxu1 %v7879_v32  ;;  %v2306_v32 = vld [vmem:[#allocation2 + $0x70] sm:$0xe] }
 0x2b0   :  { %5572 = vmatprep.subr.bf16.mxu1 %v5916_v8  ;;  %v5022_v49 = vrot.slane %v2306_v32, 9  ;;  %v4080_v32 = vrot.slane %v5933_v35, 5  ;;  %v5937_v35 = vld [vmem:[#allocation2 + $0x44] sm:$0x1] }
 0x2b2   :  { %v5282_v2 = vpop.f32.mrb[0].mxu1  ;;  %v2396_v39 = vsel %vm7526_vm12, %v5022_v49, %v2395_v45  ;;  %v4081_v49 = vsel %vm7526_vm12, %v5138_v16, %v4080_v32  ;;  %v4104_v32 = vrot.slane %v5937_v35, 5 }
 0x2b3   :  { %5573 = vmatpush3.bf16.msra.mxu1 %v5916_v8  ;;  %v5283_v33 = vpop.f32.mrb[1].mxu1  ;;  %v5048_v7 = vcombine.low %v2396_v39, %v2400_v36  ;;  %v5935_v39 = vld [vmem:[#allocation2 + $0x34] sm:$0x1] }
 0x2b4   :  { %5574 = vmatprep.subr.bf16.mxu1 %v5917_v22  ;;  %v8026_v20 = vadd.f32 %v5283_v33, %v5282_v2  ;;  %v5285_v28 = vpop.f32.mrb[2].mxu1  ;;  %v5921_v2 = vld [vmem:[%s8359_s4 + $0x230] sm:$0xff]   ;;  %v4096_v36 = vrot.slane %v5935_v39, 5 }
 0x2b5   :  { %v5286_v37 = vpop.f32.mrb[3].mxu1  ;;  %v5442_v14 = vpop.f32.mrb[32].mxu0 }
 0x2b6   :  { %5559 = vmatmul.mubr.bf16.gmra.mrb[36].mxu1 %v5045_v12  ;;  %v8031_v8 = vadd.f32 %v5286_v37, %v5285_v28  ;;  %v5443_v34 = vpop.f32.mrb[33].mxu0  ;;  %v5934_v12 = vld [vmem:[#allocation2 + $0x1c] sm:$0x1]  ;;  %v5049_v37 = vcombine.low %v2404_v15, %v2408_v21  ;;  %v5940_v15 = vld [vmem:[#allocation2 + $0x6c] sm:$0x1] }
 0x2b7   :  { %5562 = vmatprep.mubr.bf16.mxu1 %v5046_v4  ;;  %5575 = vmatpush3.bf16.msra.mxu1 %v5917_v22  ;;  %v8041_v29 = vadd.f32 %v5443_v34, %v5442_v14  ;;  %v5445_v9 = vpop.f32.mrb[34].mxu0  ;;  %v5142_v34 = vrot.slane %v4034_v46, 9  ;;  %v4116_v21 = vrot.slane %v5940_v15, 5  ;;  %v4045_v15 = vld [vmem:[#allocation2 + $0x98] sm:$0xe] }
 0x2b8   :  { %5576 = vmatprep.subr.bf16.mxu1 %v5918_v3  ;;  %v5446_v24 = vpop.f32.mrb[35].mxu0 }
 0x2b9   :  { %v8046_v22 = vadd.f32 %v5446_v24, %v5445_v9  ;;  %v5936_v9 = vld [vmem:[#allocation2 + $0x3c] sm:$0x1] }
 0x2ba   :  { %v4100_v1 = vrot.slane %v5936_v9, 5  ;;  %v5149_v9 = vrot.slane %v4041_v40, 9 }
 0x2bb   :  { %5577 = vmatpush3.bf16.msra.mxu1 %v5918_v3  ;;  %v4084_v3 = vrot.slane %v5934_v12, 5  ;;  %v5938_v12 = vld [vmem:[#allocation2 + $0x4c] sm:$0x1] }
 0x2bc   :  { %5578 = vmatprep.subr.bf16.mxu1 %v5919_v31  ;;  %v5288_v59 = vpop.f32.mrb[4].mxu1  ;;  %v4101_v47 = vsel %vm7526_vm12, %v5143_v23, %v4100_v1  ;;  %v5942_v1 = vld [vmem:[#allocation2 + $0x7c] sm:$0x1] }
 0x2bd   :  { %v5289_v48 = vpop.f32.mrb[5].mxu1  ;;  %v4085_v33 = vsel %vm7526_vm12, %v5139_v19, %v4084_v3  ;;  %v4108_v3 = vrot.slane %v5938_v12, 5 }
 0x2be   :  { %5563 = vmatmul.mubr.bf16.gmra.mrb[40].mxu1 %v5047_v53  ;;  %v8053_v61 = vadd.f32 %v5289_v48, %v5288_v59  ;;  %v5291_v4 = vpop.f32.mrb[6].mxu1  ;;  %v5170_v54 = vcombine.low %v4081_v49, %v4085_v33  ;;  %v4036_v53 = vld [vmem:[#allocation2 + $0x40] sm:$0xe]  ;;  %v5146_v59 = vrot.slane %v4038_v30, 9  ;;  %v5939_v48 = vld [vmem:[#allocation2 + $0x64] sm:$0x1] }
 0x2bf   :  { %5566 = vmatprep.mubr.bf16.mxu1 %v5048_v7  ;;  %5579 = vmatpush3.bf16.msra.mxu1 %v5919_v31  ;;  %v5292_v52 = vpop.f32.mrb[7].mxu1  ;;  %v5922_v31 = vld [vmem:[%s8359_s4 + $0x238] sm:$0xff]   ;;  %v4037_v7 = vld [vmem:[#allocation2 + $0x48] sm:$0xe]  ;;  %v5144_v62 = vrot.slane %v4036_v53, 9 }
 0x2c0   :  { %5580 = vmatprep.subr.bf16.mxu1 %v5920_v0  ;;  %v8063_v45 = vadd.f32 %v5292_v52, %v5291_v4  ;;  %v5145_v19 = vrot.slane %v4037_v7, 9  ;;  %v5147_v4 = vrot.slane %v4039_v5, 9  ;;  %v4040_v33 = vld [vmem:[#allocation2 + $0x70] sm:$0xe]  ;;  %v5944_v5 = vld [vmem:[#allocation2 + $0x8c] sm:$0x1] }
 0x2c1   :  { %v5448_v28 = vpop.f32.mrb[36].mxu0  ;;  %v4105_v52 = vsel %vm7526_vm12, %v5144_v62, %v4104_v32  ;;  %v4132_v62 = vrot.slane %v5944_v5, 5 }
 0x2c2   :  { %v5449_v14 = vpop.f32.mrb[37].mxu0  ;;  %v4109_v49 = vsel %vm7526_vm12, %v5145_v19, %v4108_v3  ;;  %v4117_v55 = vsel %vm7526_vm12, %v5147_v4, %v4116_v21 }
 0x2c3   :  { %5581 = vmatpush3.bf16.msra.mxu1 %v5920_v0  ;;  %v8068_v13 = vadd.f32 %v5449_v14, %v5448_v28  ;;  %v5451_v11 = vpop.f32.mrb[38].mxu0  ;;  %v4097_v0 = vsel %vm7526_vm12, %v5142_v34, %v4096_v36  ;;  %v4042_v28 = vld [vmem:[#allocation2 + $0x80] sm:$0xe]  ;;  %v5941_v34 = vld [vmem:[#allocation2 + $0x74] sm:$0x1] }
 0x2c4   :  { %5582 = vmatprep.subr.bf16.mxu1 %v5921_v2  ;;  %v5452_v60 = vpop.f32.mrb[39].mxu0  ;;  %v5172_v16 = vcombine.low %v4097_v0, %v4101_v47  ;;  %v4120_v39 = vrot.slane %v5941_v34, 5  ;;  %v5150_v0 = vrot.slane %v4042_v28, 9  ;;  %v5943_v47 = vld [vmem:[#allocation2 + $0x84] sm:$0x1] }
 0x2c5   :  { %v8070_v24 = vadd.f32 %v5452_v60, %v5451_v11  ;;  %v5148_v11 = vrot.slane %v4040_v33, 9  ;;  %v4124_v60 = vrot.slane %v5942_v1, 5  ;;  %v4128_v7 = vrot.slane %v5943_v47, 5  ;;  %v5946_v28 = vld [vmem:[#allocation2 + $0x9c] sm:$0x1] }
 0x2c6   :  { %5567 = vmatmul.mubr.bf16.gmra.mrb[44].mxu1 %v5049_v37  ;;  %v4043_v37 = vld [vmem:[#allocation2 + $0x88] sm:$0xe] }
 0x2c7   :  { %5583 = vmatpush3.bf16.msra.mxu1 %v5921_v2  ;;  %5586 = vmatprep.mubr.bf16.mxu1 %v5170_v54  ;;  %v4112_v2 = vrot.slane %v5939_v48, 5  ;;  %v5173_v54 = vcombine.low %v4105_v52, %v4109_v49  ;;  %v5151_v30 = vrot.slane %v4043_v37, 9  ;;  %v4121_v12 = vsel %vm7526_vm12, %v5148_v11, %v4120_v39 }
 0x2c8   :  { %5584 = vmatprep.subr.bf16.mxu1 %v5922_v31  ;;  %v4125_v3 = vsel %vm7526_vm12, %v5149_v9, %v4124_v60  ;;  %v4140_v37 = vrot.slane %v5946_v28, 5 }
 0x2c9   :  { %v4113_v41 = vsel %vm7526_vm12, %v5146_v59, %v4112_v2  ;;  %v4044_v59 = vld [vmem:[#allocation2 + $0x90] sm:$0xe]  ;;  %v4129_v2 = vsel %vm7526_vm12, %v5150_v0, %v4128_v7  ;;  %v4133_v4 = vsel %vm7526_vm12, %v5151_v30, %v4132_v62  ;;  %v5175_v49 = vcombine.low %v4121_v12, %v4125_v3 }
 0x2ca   :  { %v5174_v23 = vcombine.low %v4113_v41, %v4117_v55  ;;  %v5152_v33 = vrot.slane %v4044_v59, 9  ;;  %v5176_v40 = vcombine.low %v4129_v2, %v4133_v4 }
 0x2cb   :  { %5585 = vmatpush3.bf16.msra.mxu1 %v5922_v31 }
 0x2ce   :  { %5587 = vmatmul.mubr.bf16.vlgmr.msra.gmra.mrb[32].mxu1 %v5171_v6 }
 0x2cf   :  { %5590 = vmatprep.mubr.bf16.mxu1 %v5172_v16 }
 0x2d0   :  { %v5294_v46 = vpop.f32.mrb[8].mxu1 }
 0x2d1   :  { %v5295_v6 = vpop.f32.mrb[9].mxu1 }
 0x2d2   :  { %v8087_v31 = vadd.f32 %v5295_v6, %v5294_v46  ;;  %v5297_v14 = vpop.f32.mrb[10].mxu1  ;;  %v5945_v46 = vld [vmem:[#allocation2 + $0x94] sm:$0x1]  ;;  %v5153_v6 = vrot.slane %v4045_v15, 9 }
 0x2d3   :  { %v5298_v36 = vpop.f32.mrb[11].mxu1  ;;  %v4136_v41 = vrot.slane %v5945_v46, 5 }
 0x2d4   :  { %v8089_v53 = vadd.f32 %v5298_v36, %v5297_v14  ;;  %v4141_v60 = vsel %vm7526_vm12, %v5153_v6, %v4140_v37 }
 0x2d5   :  { %v4137_v1 = vsel %vm7526_vm12, %v5152_v33, %v4136_v41 }
 0x2d6   :  { %5591 = vmatmul.mubr.bf16.gmra.mrb[36].mxu1 %v5173_v54  ;;  %v5454_v16 = vpop.f32.mrb[40].mxu0  ;;  %v5177_v7 = vcombine.low %v4137_v1, %v4141_v60 }
 0x2d7   :  { %5594 = vmatprep.mubr.bf16.mxu1 %v5174_v23  ;;  %v5455_v35 = vpop.f32.mrb[41].mxu0 }
 0x2d8   :  { %v8091_v32 = vadd.f32 %v5455_v35, %v5454_v16  ;;  %v5457_v19 = vpop.f32.mrb[42].mxu0 }
 0x2d9   :  { %v5458_v48 = vpop.f32.mrb[43].mxu0 }
 0x2da   :  { %v8101_v21 = vadd.f32 %v5458_v48, %v5457_v19 }
 0x2db   :  { %v5300_v52 = vpop.f32.mrb[12].mxu1 }
 0x2dc   :  { %v5301_v55 = vpop.f32.mrb[13].mxu1 }
 0x2dd   :  { %v8103_v14 = vadd.f32 %v5301_v55, %v5300_v52  ;;  %v5303_v54 = vpop.f32.mrb[14].mxu1 }
 0x2de   :  { %5595 = vmatmul.mubr.bf16.gmra.mrb[40].mxu1 %v5175_v49  ;;  %v5460_v11 = vpop.f32.mrb[44].mxu0  ;;  %v5304_v34 = vpop.f32.mrb[15].mxu1 }
 0x2df   :  { %5598 = vmatprep.mubr.bf16.mxu1 %v5176_v40  ;;  %v5461_v39 = vpop.f32.mrb[45].mxu0  ;;  %v8105_v36 = vadd.f32 %v5304_v34, %v5303_v54 }
 0x2e0   :  { %v8107_v23 = vadd.f32 %v5461_v39, %v5460_v11  ;;  %v5463_v9 = vpop.f32.mrb[46].mxu0 }
 0x2e1   :  { %v5464_v0 = vpop.f32.mrb[47].mxu0 }
 0x2e2   :  { %v8113_v47 = vadd.f32 %v5464_v0, %v5463_v9 }
 0x2e6   :  { %5599 = vmatmul.mubr.bf16.gmra.mrb[44].mxu1 %v5177_v7 }
 0x2f0   :  { %v5306_v30 = vpop.f32.mrb[16].mxu1 }
 0x2f1   :  { %v5307_v5 = vpop.f32.mrb[17].mxu1 }
 0x2f2   :  { %v8115_v62 = vadd.f32 %v5307_v5, %v5306_v30  ;;  %v5309_v16 = vpop.f32.mrb[18].mxu1 }
 0x2f3   :  { %v5310_v35 = vpop.f32.mrb[19].mxu1 }
 0x2f4   :  { %v8117_v12 = vadd.f32 %v5310_v35, %v5309_v16 }
 0x2f5   :  { %v5466_v19 = vpop.f32.mrb[48].mxu0 }
 0x2f6   :  { %v5467_v3 = vpop.f32.mrb[49].mxu0 }
 0x2f7   :  { %v8119_v59 = vadd.f32 %v5467_v3, %v5466_v19  ;;  %v5469_v48 = vpop.f32.mrb[50].mxu0 }
 0x2f8   :  { %v5470_v10 = vpop.f32.mrb[51].mxu0 }
 0x2f9   :  { %v8121_v2 = vadd.f32 %v5470_v10, %v5469_v48 }
 0x2fc   :  { %v5312_v4 = vpop.f32.mrb[20].mxu1 }
 0x2fd   :  { %v5313_v15 = vpop.f32.mrb[21].mxu1 }
 0x2fe   :  { %v8123_v52 = vadd.f32 %v5313_v15, %v5312_v4  ;;  %v5315_v49 = vpop.f32.mrb[22].mxu1 }
 0x2ff   :  { %v5316_v33 = vpop.f32.mrb[23].mxu1 }
 0x300   :  { %v8125_v46 = vadd.f32 %v5316_v33, %v5315_v49 }
 0x306   :  { %v5472_v41 = vpop.f32.mrb[52].mxu0 }
 0x307   :  { %v5473_v55 = vpop.f32.mrb[53].mxu0 }
 0x308   :  { %v8127_v40 = vadd.f32 %v5473_v55, %v5472_v41  ;;  %v5475_v6 = vpop.f32.mrb[54].mxu0 }
 0x309   :  { %v5476_v28 = vpop.f32.mrb[55].mxu0 }
 0x30a   :  { %v8129_v37 = vadd.f32 %v5476_v28, %v5475_v6 }
 0x30e   :  { %v5318_v54 = vpop.f32.mrb[24].mxu1 }
 0x30f   :  { %v5319_v11 = vpop.f32.mrb[25].mxu1 }
 0x310   :  { %v8131_v34 = vadd.f32 %v5319_v11, %v5318_v54  ;;  %v5321_v39 = vpop.f32.mrb[26].mxu1 }
 0x311   :  { %v5322_v9 = vpop.f32.mrb[27].mxu1 }
 0x312   :  { %v8133_v1 = vadd.f32 %v5322_v9, %v5321_v39 }
 0x318   :  { %v5478_v60 = vpop.f32.mrb[56].mxu0 }
 0x319   :  { %v5479_v0 = vpop.f32.mrb[57].mxu0  ;;  %v5324_v7 = vpop.f32.mrb[28].mxu1 }
 0x31a   :  { %v8135_v30 = vadd.f32 %v5479_v0, %v5478_v60  ;;  %v5481_v5 = vpop.f32.mrb[58].mxu0  ;;  %v5325_v16 = vpop.f32.mrb[29].mxu1 }
 0x31b   :  { %v5482_v35 = vpop.f32.mrb[59].mxu0  ;;  %v8137_v19 = vadd.f32 %v5325_v16, %v5324_v7  ;;  %v5327_v3 = vpop.f32.mrb[30].mxu1 }
 0x31c   :  { %v8139_v48 = vadd.f32 %v5482_v35, %v5481_v5  ;;  %v5328_v10 = vpop.f32.mrb[31].mxu1 }
 0x31d   :  { %v8141_v4 = vadd.f32 %v5328_v10, %v5327_v3 }
 0x320   :  { %v5484_v15 = vpop.f32.mrb[60].mxu0 }
 0x321   :  { %v5485_v49 = vpop.f32.mrb[61].mxu0 }
 0x322   :  { %v8143_v33 = vadd.f32 %v5485_v49, %v5484_v15  ;;  %v5487_v41 = vpop.f32.mrb[62].mxu0 }
 0x323   :  { %v5488_v55 = vpop.f32.mrb[63].mxu0 }
 0x324   :  { %v8145_v6 = vadd.f32 %v5488_v55, %v5487_v41 }
 0x341   :  { %v5362_v28 = vpop.f32.mrb[48].mxu1 }
 0x342   :  { %v5363_v54 = vpop.f32.mrb[49].mxu1 }
 0x343   :  { %v5364_v11 = vadd.f32 %v5363_v54, %v5362_v28  ;;  %v5365_v39 = vpop.f32.mrb[50].mxu1 }
 0x344   :  { %v5366_v9 = vpop.f32.mrb[51].mxu1 }
 0x345   :  { %v5605_v60 = vadd.f32 %v5364_v11, %v8026_v20  ;;  %v5367_v0 = vadd.f32 %v5366_v9, %v5365_v39 }
 0x347   :  { %v5611_v7 = vadd.f32 %v5367_v0, %v8031_v8  ;;  %v8150_v5 = vadd.f32 %v5605_v60, %v8041_v29 }
 0x349   :  { %v5368_v16 = vpop.f32.mrb[52].mxu1  ;;  %v8153_v35 = vadd.f32 %v5611_v7, %v8046_v22 }
 0x34a   :  { %v5369_v3 = vpop.f32.mrb[53].mxu1 }
 0x34b   :  { %v5370_v10 = vadd.f32 %v5369_v3, %v5368_v16  ;;  %v5371_v15 = vpop.f32.mrb[54].mxu1 }
 0x34c   :  { %v5372_v49 = vpop.f32.mrb[55].mxu1 }
 0x34d   :  { %v5602_v41 = vadd.f32 %v5370_v10, %v8053_v61  ;;  %v5373_v55 = vadd.f32 %v5372_v49, %v5371_v15 }
 0x34f   :  { %v5608_v28 = vadd.f32 %v5373_v55, %v8063_v45  ;;  %v8158_v20 = vadd.f32 %v5602_v41, %v8068_v13 }
 0x351   :  { %v5374_v8 = vpop.f32.mrb[56].mxu1  ;;  %v8161_v29 = vadd.f32 %v5608_v28, %v8070_v24 }
 0x352   :  { %v5375_v54 = vpop.f32.mrb[57].mxu1 }
 0x353   :  { %v5376_v11 = vadd.f32 %v5375_v54, %v5374_v8  ;;  %v5377_v22 = vpop.f32.mrb[58].mxu1 }
 0x354   :  { %v5378_v39 = vpop.f32.mrb[59].mxu1 }
 0x355   :  { %v5617_v9 = vadd.f32 %v5376_v11, %v8087_v31  ;;  %v5379_v60 = vadd.f32 %v5378_v39, %v5377_v22 }
 0x357   :  { %v5623_v0 = vadd.f32 %v5379_v60, %v8089_v53  ;;  %v8166_v61 = vadd.f32 %v5617_v9, %v8091_v32 }
 0x359   :  { %v5380_v45 = vpop.f32.mrb[60].mxu1  ;;  %v8169_v13 = vadd.f32 %v5623_v0, %v8101_v21 }
 0x35a   :  { %v5381_v7 = vpop.f32.mrb[61].mxu1 }
 0x35b   :  { %v5382_v16 = vadd.f32 %v5381_v7, %v5380_v45  ;;  %v5383_v24 = vpop.f32.mrb[62].mxu1 }
 0x35c   :  { %v5384_v3 = vpop.f32.mrb[63].mxu1 }
 0x35d   :  { %v5614_v10 = vadd.f32 %v5382_v16, %v8103_v14  ;;  %v5385_v15 = vadd.f32 %v5384_v3, %v5383_v24 }
 0x35f   :  { %v5620_v49 = vadd.f32 %v5385_v15, %v8105_v36  ;;  %v5615_v31 = vadd.f32 %v5614_v10, %v8107_v23 }
 0x361   :  { %v5386_v41 = vpop.f32.mrb[64].mxu1  ;;  %v5621_v53 = vadd.f32 %v5620_v49, %v8113_v47 }
 0x362   :  { %v5387_v32 = vpop.f32.mrb[65].mxu1 }
 0x363   :  { %v5388_v55 = vadd.f32 %v5387_v32, %v5386_v41  ;;  %v5389_v28 = vpop.f32.mrb[66].mxu1 }
 0x364   :  { %v5390_v8 = vpop.f32.mrb[67].mxu1 }
 0x365   :  { %v5629_v21 = vadd.f32 %v5388_v55, %v8115_v62  ;;  %v5391_v54 = vadd.f32 %v5390_v8, %v5389_v28 }
 0x367   :  { %v5635_v11 = vadd.f32 %v5391_v54, %v8117_v12  ;;  %v8178_v22 = vadd.f32 %v5629_v21, %v8119_v59 }
 0x369   :  { %v5392_v14 = vpop.f32.mrb[68].mxu1  ;;  %v8181_v36 = vadd.f32 %v5635_v11, %v8121_v2 }
 0x36a   :  { %v5393_v23 = vpop.f32.mrb[69].mxu1 }
 0x36b   :  { %v5394_v39 = vadd.f32 %v5393_v23, %v5392_v14  ;;  %v5395_v9 = vpop.f32.mrb[70].mxu1 }
 0x36c   :  { %v5396_v47 = vpop.f32.mrb[71].mxu1 }
 0x36d   :  { %v5626_v60 = vadd.f32 %v5394_v39, %v8123_v52  ;;  %v5397_v0 = vadd.f32 %v5396_v47, %v5395_v9 }
 0x36f   :  { %v5632_v45 = vadd.f32 %v5397_v0, %v8125_v46  ;;  %v5627_v62 = vadd.f32 %v5626_v60, %v8127_v40 }
 0x371   :  { %v5398_v7 = vpop.f32.mrb[72].mxu1  ;;  %v5633_v12 = vadd.f32 %v5632_v45, %v8129_v37 }
 0x372   :  { %v5399_v59 = vpop.f32.mrb[73].mxu1 }
 0x373   :  { %v5400_v16 = vadd.f32 %v5399_v59, %v5398_v7  ;;  %v5401_v24 = vpop.f32.mrb[74].mxu1 }
 0x374   :  { %v5402_v3 = vpop.f32.mrb[75].mxu1 }
 0x375   :  { %v5641_v2 = vadd.f32 %v5400_v16, %v8131_v34  ;;  %v5403_v10 = vadd.f32 %v5402_v3, %v5401_v24 }
 0x377   :  { %v5647_v15 = vadd.f32 %v5403_v10, %v8133_v1  ;;  %v8190_v49 = vadd.f32 %v5641_v2, %v8135_v30 }
 0x379   :  { %v5404_v52 = vpop.f32.mrb[76].mxu1  ;;  %v8193_v46 = vadd.f32 %v5647_v15, %v8139_v48 }
 0x37a   :  { %v5405_v40 = vpop.f32.mrb[77].mxu1 }
 0x37b   :  { %v5406_v41 = vadd.f32 %v5405_v40, %v5404_v52  ;;  %v5407_v32 = vpop.f32.mrb[78].mxu1 }
 0x37c   :  { %v5408_v37 = vpop.f32.mrb[79].mxu1 }
 0x37d   :  { %v5638_v55 = vadd.f32 %v5406_v41, %v8137_v19  ;;  %v5409_v28 = vadd.f32 %v5408_v37, %v5407_v32 }
 0x37f   :  { %v5644_v8 = vadd.f32 %v5409_v28, %v8141_v4  ;;  %v5639_v34 = vadd.f32 %v5638_v55, %v8143_v33 }
 0x381   :  { %v8199_v1 = vadd.f32 %v5644_v8, %v8145_v6 }
 0x3a1   :  { %v5588_v30 = vpop.f32.mrb[32].mxu1 }
 0x3a2   :  { %v8202_v21 = vadd.f32 %v8158_v20, %v5588_v30  ;;  %v4577_v48 = vpop.f32.mrb[33].mxu1 }
 0x3a3   :  { %v8205_v54 = vadd.f32 %v8150_v5, %v4577_v48  ;;  %v5589_v11 = vpop.f32.mrb[34].mxu1 }
 0x3a4   :  { %v8208_v14 = vadd.f32 %v8161_v29, %v5589_v11  ;;  %v4580_v19 = vpop.f32.mrb[35].mxu1  ;;  %v4660_v5 = vmul.f32 %v8202_v21, %v8202_v21 }
 0x3a5   :  { %v8211_v4 = vadd.f32 %v8153_v35, %v4580_v19  ;;  %v4658_v33 = vmul.f32 %v8205_v54, %v8205_v54 }
 0x3a6   :  { %v4661_v47 = vmul.f32 %v8208_v14, %v8208_v14 }
 0x3a7   :  { %v4659_v6 = vmul.f32 %v8211_v4, %v8211_v4  ;;  %v4674_v20 = vadd.f32 %v8211_v4, %v8205_v54 }
 0x3a9   :  { %v4675_v23 = vadd.f32 %v8202_v21, %v4674_v20  ;;  %v4695_v29 = vadd.f32 %v4659_v6, %v4658_v33  ;;  %v5592_v39 = vpop.f32.mrb[36].mxu1 }
 0x3aa   :  { %v8222_v9 = vadd.f32 %v5615_v31, %v5592_v39  ;;  %v4593_v35 = vpop.f32.mrb[37].mxu1 }
 0x3ab   :  { %v4696_v60 = vadd.f32 %v4695_v29, %v4660_v5  ;;  %v8227_v0 = vadd.f32 %v8166_v61, %v4593_v35  ;;  %v4676_v45 = vadd.f32 %v8208_v14, %v4675_v23  ;;  %v5593_v7 = vpop.f32.mrb[38].mxu1 }
 0x3ac   :  { %v8230_v59 = vadd.f32 %v5621_v53, %v5593_v7  ;;  %v4596_v16 = vpop.f32.mrb[39].mxu1  ;;  %v4664_v53 = vmul.f32 %v8222_v9, %v8222_v9 }
 0x3ad   :  { %v4662_v24 = vmul.f32 %v8227_v0, %v8227_v0  ;;  %v4677_v31 = vadd.f32 %v8227_v0, %v4676_v45  ;;  %v4697_v3 = vadd.f32 %v4696_v60, %v4661_v47  ;;  %v8236_v2 = vadd.f32 %v8169_v13, %v4596_v16 }
 0x3ae   :  { %v4665_v13 = vmul.f32 %v8230_v59, %v8230_v59 }
 0x3af   :  { %v4698_v10 = vadd.f32 %v4697_v3, %v4662_v24  ;;  %v4663_v61 = vmul.f32 %v8236_v2, %v8236_v2  ;;  %v4678_v15 = vadd.f32 %v8236_v2, %v4677_v31 }
 0x3b1   :  { %v4679_v52 = vadd.f32 %v8222_v9, %v4678_v15  ;;  %v4699_v40 = vadd.f32 %v4698_v10, %v4663_v61  ;;  %v5596_v41 = vpop.f32.mrb[40].mxu1 }
 0x3b2   :  { %v8244_v32 = vadd.f32 %v5627_v62, %v5596_v41  ;;  %v4609_v37 = vpop.f32.mrb[41].mxu1 }
 0x3b3   :  { %v4700_v55 = vadd.f32 %v4699_v40, %v4664_v53  ;;  %v8249_v28 = vadd.f32 %v8178_v22, %v4609_v37  ;;  %v4680_v8 = vadd.f32 %v8230_v59, %v4679_v52  ;;  %v5597_v30 = vpop.f32.mrb[42].mxu1 }
 0x3b4   :  { %v8252_v48 = vadd.f32 %v5633_v12, %v5597_v30  ;;  %v4612_v11 = vpop.f32.mrb[43].mxu1  ;;  %v4668_v12 = vmul.f32 %v8244_v32, %v8244_v32 }
 0x3b5   :  { %v4666_v19 = vmul.f32 %v8249_v28, %v8249_v28  ;;  %v4681_v62 = vadd.f32 %v8249_v28, %v4680_v8  ;;  %v4701_v33 = vadd.f32 %v4700_v55, %v4665_v13  ;;  %v8258_v6 = vadd.f32 %v8181_v36, %v4612_v11 }
 0x3b6   :  { %v4669_v36 = vmul.f32 %v8252_v48, %v8252_v48 }
 0x3b7   :  { %v4702_v20 = vadd.f32 %v4701_v33, %v4666_v19  ;;  %v4667_v22 = vmul.f32 %v8258_v6, %v8258_v6  ;;  %v4682_v5 = vadd.f32 %v8258_v6, %v4681_v62 }
 0x3b9   :  { %v4683_v23 = vadd.f32 %v8244_v32, %v4682_v5  ;;  %v4703_v29 = vadd.f32 %v4702_v20, %v4667_v22  ;;  %v5600_v39 = vpop.f32.mrb[44].mxu1 }
 0x3ba   :  { %v8266_v35 = vadd.f32 %v5639_v34, %v5600_v39  ;;  %v4625_v47 = vpop.f32.mrb[45].mxu1 }
 0x3bb   :  { %v4704_v60 = vadd.f32 %v4703_v29, %v4668_v12  ;;  %v8271_v45 = vadd.f32 %v8190_v49, %v4625_v47  ;;  %v4684_v7 = vadd.f32 %v8252_v48, %v4683_v23  ;;  %v5601_v16 = vpop.f32.mrb[46].mxu1 }
 0x3bc   :  { %v8275_v24 = vadd.f32 %v8199_v1, %v5601_v16  ;;  %v4628_v31 = vpop.f32.mrb[47].mxu1  ;;  %v4672_v1 = vmul.f32 %v8266_v35, %v8266_v35 }
 0x3bd   :  { %v4670_v3 = vmul.f32 %v8271_v45, %v8271_v45  ;;  %v4685_v34 = vadd.f32 %v8271_v45, %v4684_v7  ;;  %v4705_v10 = vadd.f32 %v4704_v60, %v4669_v36  ;;  %v8281_v61 = vadd.f32 %v8193_v46, %v4628_v31 }
 0x3be   :  { %v4673_v41 = vmul.f32 %v8275_v24, %v8275_v24 }
 0x3bf   :  { %v4706_v15 = vadd.f32 %v4705_v10, %v4670_v3  ;;  %v4671_v49 = vmul.f32 %v8281_v61, %v8281_v61  ;;  %v4686_v53 = vadd.f32 %v8281_v61, %v4685_v34 }
 0x3c1   :  { %v4687_v52 = vadd.f32 %v8266_v35, %v4686_v53  ;;  %v4707_v40 = vadd.f32 %v4706_v15, %v4671_v49 }
 0x3c3   :  { %v4688_v37 = vadd.f32 %v8275_v24, %v4687_v52  ;;  %v4708_v13 = vadd.f32 %v4707_v40, %v4672_v1 }
 0x3c5   :  { %v4689_v46 = vrot.slane %v4688_v37, 4  ;;  %v4709_v55 = vadd.f32 %v4708_v13, %v4673_v41 }
 0x3c7   :  { %v4690_v8 = vadd.f32 %v4689_v46, %v4688_v37  ;;  %v4710_v30 = vrot.slane %v4709_v55, 4 }
 0x3c9   :  { %v4691_v11 = vrot.slane %v4690_v8, 2  ;;  %v4711_v19 = vadd.f32 %v4710_v30, %v4709_v55 }
 0x3cb   :  { %v4692_v62 = vadd.f32 %v4691_v11, %v4690_v8  ;;  %v4712_v33 = vrot.slane %v4711_v19, 2 }
 0x3cd   :  { %v4693_v20 = vrot.slane %v4692_v62, 1  ;;  %v4713_v22 = vadd.f32 %v4712_v33, %v4711_v19 }
 0x3cf   :  { %v4694_v5 = vadd.f32 %v4693_v20, %v4692_v62  ;;  %v4714_v12 = vrot.slane %v4713_v22, 1 }
 0x3d1   :  { %v4715_v23 = vadd.f32 %v4714_v12, %v4713_v22  ;;  %v4716_v29 = vmul.f32 0.0078125, %v4694_v5 }
 0x3d3   :  { %v4717_v39 = vmul.f32 0.0078125, %v4715_v23  ;;  %v4718_v47 = vmul.f32 %v4716_v29, %v4716_v29  ;;  %v4724_v36 = vsub.f32 %v8205_v54, %v4716_v29  ;;  %v4725_v60 = vsub.f32 %v8211_v4, %v4716_v29 }
 0x3d4   :  { %v4726_v7 = vsub.f32 %v8202_v21, %v4716_v29  ;;  %v4727_v16 = vsub.f32 %v8208_v14, %v4716_v29  ;;  %v4728_v31 = vsub.f32 %v8227_v0, %v4716_v29  ;;  %v4729_v3 = vsub.f32 %v8236_v2, %v4716_v29 }
 0x3d5   :  { %v4719_v34 = vsub.f32 %v4717_v39, %v4718_v47  ;;  %v4730_v10 = vsub.f32 %v8222_v9, %v4716_v29  ;;  %v4731_v15 = vsub.f32 %v8230_v59, %v4716_v29  ;;  %v4732_v49 = vsub.f32 %v8249_v28, %v4716_v29  ;;  %v4656_v59 = vld [vmem:[%s8360_s5] sm:$0x1] }
 0x3d6   :  { %v4733_v53 = vsub.f32 %v8258_v6, %v4716_v29  ;;  %v4734_v54 = vsub.f32 %v8244_v32, %v4716_v29  ;;  %v4735_v4 = vsub.f32 %v8252_v48, %v4716_v29  ;;  %v4736_v21 = vsub.f32 %v8271_v45, %v4716_v29  ;;  %v8429_v32 = vld [vmem:[#allocation10_spill] sm:$0xff] }
 0x3d7   :  { %v4720_v14 = vmax.f32 %v4719_v34, 0.0  ;;  %v4737_v0 = vsub.f32 %v8281_v61, %v4716_v29  ;;  %v4738_v2 = vsub.f32 %v8266_v35, %v4716_v29  ;;  %v4739_v1 = vsub.f32 %v8275_v24, %v4716_v29  ;;  %v5202_v35 = vld [vmem:[%s8361_s6] ss:$0 sm:$0xff] }
 0x3d9   :  { %v4721_v9 = vadd.f32 1e-05, %v4720_v14 }
 0x3db   :  { %5927 = vrsqrt.f32 %v4721_v9  ;;  %v8430_v9 = vld [vmem:[#allocation12_spill] sm:$0xff] }
 0x3e5   :  { %v5928_v28 = vpop.eup %5927 }
 0x3e6   :  { %v4723_v6 = vmul.f32 %v5928_v28, %v4656_v59 }
 0x3e8   :  { %v4743_v52 = vrot.slane %v4723_v6, %v8429_v32 }
 0x3ea   :  { %v4744_v48 = vmul.f32 %v4743_v52, %v4724_v36  ;;  %v4745_v40 = vmul.f32 %v4743_v52, %v4725_v60  ;;  %v4746_v45 = vmul.f32 %v4743_v52, %v4726_v7  ;;  %v4747_v41 = vmul.f32 %v4743_v52, %v4727_v16 }
 0x3eb   :  { %v4748_v61 = vmul.f32 %v4743_v52, %v4728_v31  ;;  %v4749_v24 = vmul.f32 %v4743_v52, %v4729_v3  ;;  %v4750_v37 = vmul.f32 %v4743_v52, %v4730_v10  ;;  %v4751_v13 = vmul.f32 %v4743_v52, %v4731_v15 }
 0x3ec   :  { %v4752_v46 = vmul.f32 %v4743_v52, %v4732_v49  ;;  %v4753_v55 = vmul.f32 %v4743_v52, %v4733_v53  ;;  %v4754_v8 = vmul.f32 %v4743_v52, %v4734_v54  ;;  %v4755_v30 = vmul.f32 %v4743_v52, %v4735_v4 }
 0x3ed   :  { %v4756_v11 = vmul.f32 %v4743_v52, %v4736_v21  ;;  %v4757_v19 = vmul.f32 %v4743_v52, %v4737_v0  ;;  %v4758_v62 = vmul.f32 %v4743_v52, %v4738_v2  ;;  %v4759_v33 = vmul.f32 %v4743_v52, %v4739_v1 }
 0x3ee   :  { %v4766_v20 = vadd.f32 %v5202_v35, %v4744_v48  ;;  %v4767_v22 = vadd.f32 %v5202_v35, %v4745_v40  ;;  %v4768_v5 = vadd.f32 %v5202_v35, %v4746_v45  ;;  %v4769_v12 = vadd.f32 %v5202_v35, %v4747_v41 }
 0x3ef   :  { %v4770_v23 = vadd.f32 %v5202_v35, %v4748_v61  ;;  %v4771_v29 = vadd.f32 %v5202_v35, %v4749_v24  ;;  %v4772_v39 = vadd.f32 %v5202_v35, %v4750_v37  ;;  %v4773_v47 = vadd.f32 %v5202_v35, %v4751_v13 }
 0x3f0   :  { %v4774_v36 = vadd.f32 %v5202_v35, %v4752_v46  ;;  %v4775_v60 = vadd.f32 %v5202_v35, %v4753_v55  ;;  %v4776_v7 = vadd.f32 %v5202_v35, %v4754_v8  ;;  %v4777_v16 = vadd.f32 %v5202_v35, %v4755_v30 }
 0x3f1   :  { %v4778_v31 = vadd.f32 %v5202_v35, %v4756_v11  ;;  %v4779_v3 = vadd.f32 %v5202_v35, %v4757_v19  ;;  %v4780_v34 = vadd.f32 %v5202_v35, %v4758_v62  ;;  %v4781_v10 = vadd.f32 %v5202_v35, %v4759_v33 }
 0x3f2   :  { %v4782_v15 = vadd.f32 %v4766_v20, %v7936_v50  ;;  %v4783_v49 = vadd.f32 %v4767_v22, %v7939_v42  ;;  %v4784_v53 = vadd.f32 %v4768_v5, %v7942_v18  ;;  %v4785_v54 = vadd.f32 %v4769_v12, %v7945_v63 }
 0x3f3   :  { %v4786_v4 = vadd.f32 %v4770_v23, %v7948_v51  ;;  %v4787_v21 = vadd.f32 %v4771_v29, %v7951_v58  ;;  %v4788_v14 = vadd.f32 %v4772_v39, %v7954_v44  ;;  %v4789_v0 = vadd.f32 %v4773_v47, %v7957_v38 }
 0x3f4   :  { %v4790_v2 = vadd.f32 %v4774_v36, %v7960_v26  ;;  %v4791_v1 = vadd.f32 %v4775_v60, %v7963_v57  ;;  %v4792_v50 = vadd.f32 %v4776_v7, %v7966_v25  ;;  %v4793_v42 = vadd.f32 %v4777_v16, %v7969_v43 }
 0x3f5   :  { %v4794_v18 = vadd.f32 %v4778_v31, %v7972_v27  ;;  %v4795_v63 = vadd.f32 %v4779_v3, %v7975_v17  ;;  %v4796_v51 = vadd.f32 %v4780_v34, %v7978_v56  ;;  %v4797_v58 = vadd.f32 %v4781_v10, %v8430_v9 }
 0x3f6   :  { %v4798_v59 = vmul.f32 0.01, %v4782_v15  ;;  %v4799_v44 = vmul.f32 0.01, %v4783_v49  ;;  %v4800_v28 = vmul.f32 0.01, %v4784_v53 }
 0x3f7   :  { %v4801_v38 = vmul.f32 0.01, %v4785_v54  ;;  %v4802_v6 = vmul.f32 0.01, %v4786_v4  ;;  %v4803_v26 = vmul.f32 0.01, %v4787_v21 }
 0x3f8   :  { %v4804_v32 = vmul.f32 0.01, %v4788_v14  ;;  %v4805_v57 = vmul.f32 0.01, %v4789_v0  ;;  %v4806_v52 = vmul.f32 0.01, %v4790_v2  ;;  %v4814_v25 = vmax.f32 %v4782_v15, %v4798_v59 }
 0x3f9   :  { %v4807_v48 = vmul.f32 0.01, %v4791_v1  ;;  %v4808_v43 = vmul.f32 0.01, %v4792_v50  ;;  %v4809_v40 = vmul.f32 0.01, %v4793_v42  ;;  %v4815_v27 = vmax.f32 %v4783_v49, %v4799_v44 }
 0x3fa   :  { %v4810_v45 = vmul.f32 0.01, %v4794_v18  ;;  %v4811_v17 = vmul.f32 0.01, %v4795_v63  ;;  %v4812_v41 = vmul.f32 0.01, %v4796_v51  ;;  %v4816_v56 = vmax.f32 %v4784_v53, %v4800_v28 }
 0x3fb   :  { %v4813_v35 = vmul.f32 0.01, %v4797_v58  ;;  %v4817_v61 = vmax.f32 %v4785_v54, %v4801_v38  ;;  %v4818_v24 = vmax.f32 %v4786_v4, %v4802_v6  ;;  %v4819_v37 = vmax.f32 %v4787_v21, %v4803_v26 }
 0x3fc   :  { %v4820_v13 = vmax.f32 %v4788_v14, %v4804_v32  ;;  %v4821_v46 = vmax.f32 %v4789_v0, %v4805_v57  ;;  %v4822_v55 = vmax.f32 %v4790_v2, %v4806_v52  ;;  %v4823_v8 = vmax.f32 %v4791_v1, %v4807_v48 }
 0x3fd   :  { %v4824_v30 = vmax.f32 %v4792_v50, %v4808_v43  ;;  %v4825_v11 = vmax.f32 %v4793_v42, %v4809_v40  ;;  %v4826_v19 = vmax.f32 %v4794_v18, %v4810_v45  ;;  %v4827_v62 = vmax.f32 %v4795_v63, %v4811_v17 }
 0x3fe   :  { %v4828_v33 = vmax.f32 %v4796_v51, %v4812_v41  ;;  %v4829_v20 = vmax.f32 %v4797_v58, %v4813_v35  ;;  %v5222_v22 = vpack.c.bf16 %v4815_v27, %v4814_v25  ;;  %v5227_v5 = vpack.c.bf16 %v4817_v61, %v4816_v56 }
 0x3ff   :  { %v5232_v12 = vpack.c.bf16 %v4819_v37, %v4818_v24  ;;  %v5237_v23 = vpack.c.bf16 %v4821_v46, %v4820_v13  ;;  %v5242_v29 = vpack.c.bf16 %v4823_v8, %v4822_v55  ;;  %v5247_v39 = vpack.c.bf16 %v4825_v11, %v4824_v30 }
 0x400   :  { %5223 = vst [vmem:[%s8362_s7] sm:$0xff] %v5222_v22   ;;  %5259 = vst [vmem:[%s8362_s7 + $0x8] sm:$0xff] %v5227_v5   ;;  %v5252_v47 = vpack.c.bf16 %v4827_v62, %v4826_v19  ;;  %v5257_v36 = vpack.c.bf16 %v4829_v20, %v4828_v33 }
 0x401   :  { %5260 = vst [vmem:[%s8362_s7 + $0x10] sm:$0xff] %v5232_v12   ;;  %5261 = vst [vmem:[%s8362_s7 + $0x18] sm:$0xff] %v5237_v23  }
 0x402   :  { %5262 = vst [vmem:[%s8362_s7 + $0x20] sm:$0xff] %v5242_v29   ;;  %5263 = vst [vmem:[%s8362_s7 + $0x28] sm:$0xff] %v5247_v39  }
 0x403   :  { %5264 = vst [vmem:[%s8362_s7 + $0x30] sm:$0xff] %v5252_v47   ;;  %5265 = vst [vmem:[%s8362_s7 + $0x38] sm:$0xff] %v5257_v36  }

// kernel: resnet18_block_forward.3
= control target key start
LH: loop header
LB: loop body
LE: loop exit
PB: predicated region body
PF: predicated region fallthrough
CT: control target
= control target key end

     0   :  { %vm59_vm0 = vsmask.f32 3328  ;;  %vm60_vm1 = vsmask.f32 7440  ;;  %vm334_vm3 = vcmask 1042432   ;;  %vm335_vm4 = vcmask 1046532   ;;  %s10804_s1 = inlined_call_operand.vmem [shape: bf16[1152,128], index: 1, kind: input, shape index: {}]   ;;  %s10805_s0 = inlined_call_operand.vmem [shape: bf16[2,10,10,128], index: 0, kind: input, shape index: {}]   ;;  %s10806_s4 = inlined_call_operand.vmem [shape: bf16[1152,128], index: 4, kind: input, shape index: {}]   ;;  %s10807_s2 = inlined_call_operand.vmem [shape: f32[1,128], index: 2, kind: input, shape index: {}]   ;;  %s10808_s3 = inlined_call_operand.vmem [shape: f32[1,128], index: 3, kind: input, shape index: {}]   ;;  %s10809_s5 = inlined_call_operand.vmem [shape: f32[1,128], index: 5, kind: input, shape index: {}]   ;;  %s10810_s6 = inlined_call_operand.vmem [shape: f32[1,128], index: 6, kind: input, shape index: {}]   ;;  %s10811_s7 = inlined_call_operand.vmem [shape: bf16[2,8,8,128], index: 7, kind: output, shape index: {}]  }
   0x1   :  { %v7491_v0 = vld [vmem:[%s10804_s1 + $0x100] sm:$0xff]   ;;  %v7495_v4 = vld [vmem:[%s10804_s1 + $0x108] sm:$0xff]   ;;  %v7499_v8 = vld [vmem:[%s10804_s1 + $0x110] sm:$0xff]   ;;  %vm2849_vm6 = vcmask 1040384   ;;  %vm2850_vm7 = vsmask.f32 256 }
   0x2   :  { %v7492_v1 = vld [vmem:[%s10804_s1 + $0x40] sm:$0xff]   ;;  %6658 = vmatprep.subr.bf16.mxu0 %v7491_v0  ;;  %v7496_v5 = vld [vmem:[%s10804_s1 + $0x48] sm:$0xff]   ;;  %v7500_v9 = vld [vmem:[%s10804_s1 + $0x50] sm:$0xff]   ;;  %vm2900_vm9 = vsmask.f32 7938  ;;  %vm3174_vm11 = vcmask 1043456  }
   0x3   :  { %v7493_v2 = vld [vmem:[%s10804_s1 + $0xc0] sm:$0xff]   ;;  %6738 = vmatprep.subr.bf16.mxu1 %v7492_v1  ;;  %v7497_v6 = vld [vmem:[%s10804_s1 + $0xc8] sm:$0xff]   ;;  %v7501_v10 = vld [vmem:[%s10804_s1 + $0xd0] sm:$0xff]  }
   0x4   :  { %v7494_v3 = vld [vmem:[%s10804_s1] sm:$0xff]   ;;  %6659 = vmatpush3.bf16.msra.mxu0 %v7493_v2  ;;  %v7498_v7 = vld [vmem:[%s10804_s1 + $0x8] sm:$0xff]   ;;  %v7502_v11 = vld [vmem:[%s10804_s1 + $0x10] sm:$0xff]  }
   0x5   :  { %6739 = vmatpush3.bf16.msra.mxu1 %v7494_v3  ;;  %6660 = vmatprep.subr.bf16.mxu0 %v7495_v4  ;;  %v7503_v12 = vld [vmem:[%s10804_s1 + $0x118] sm:$0xff]   ;;  %v7507_v16 = vld [vmem:[%s10804_s1 + $0x120] sm:$0xff]   ;;  %v7511_v20 = vld [vmem:[%s10804_s1 + $0x128] sm:$0xff]  }
   0x6   :  { %6740 = vmatprep.subr.bf16.mxu1 %v7496_v5  ;;  %v7504_v13 = vld [vmem:[%s10804_s1 + $0x58] sm:$0xff]   ;;  %v7508_v17 = vld [vmem:[%s10804_s1 + $0x60] sm:$0xff]   ;;  %v7512_v21 = vld [vmem:[%s10804_s1 + $0x68] sm:$0xff]  }
   0x7   :  { %v7505_v14 = vld [vmem:[%s10804_s1 + $0xd8] sm:$0xff]   ;;  %v7509_v18 = vld [vmem:[%s10804_s1 + $0xe0] sm:$0xff]   ;;  %v7513_v22 = vld [vmem:[%s10804_s1 + $0xe8] sm:$0xff]  }
   0x8   :  { %6661 = vmatpush3.bf16.msra.mxu0 %v7497_v6  ;;  %v7506_v15 = vld [vmem:[%s10804_s1 + $0x18] sm:$0xff]   ;;  %v7510_v19 = vld [vmem:[%s10804_s1 + $0x20] sm:$0xff]   ;;  %v7514_v23 = vld [vmem:[%s10804_s1 + $0x28] sm:$0xff]  }
   0x9   :  { %6741 = vmatpush3.bf16.msra.mxu1 %v7498_v7  ;;  %6662 = vmatprep.subr.bf16.mxu0 %v7499_v8  ;;  %v7515_v24 = vld [vmem:[%s10804_s1 + $0x130] sm:$0xff]   ;;  %v7519_v28 = vld [vmem:[%s10804_s1 + $0x138] sm:$0xff]   ;;  %v7830_v32 = vld [vmem:[%s10805_s0 + $0x8] sm:$0xf] }
   0xa   :  { %6742 = vmatprep.subr.bf16.mxu1 %v7500_v9  ;;  %v7516_v25 = vld [vmem:[%s10804_s1 + $0x70] sm:$0xff]   ;;  %v7520_v29 = vld [vmem:[%s10804_s1 + $0x78] sm:$0xff]   ;;  %v7840_v34 = vld [vmem:[%s10805_s0 + $0xc] sm:$0x1]  ;;  %v595_v36 = vshrl.u32 %v7830_v32, 16  ;;  %v598_v37 = vshll.u32 %v7830_v32, 16 }
   0xb   :  { %v7517_v26 = vld [vmem:[%s10804_s1 + $0xf0] sm:$0xff]   ;;  %v7521_v30 = vld [vmem:[%s10804_s1 + $0xf8] sm:$0xff]   ;;  %v604_v38 = vshll.u32 %v7840_v34, 16  ;;  %v7856_v42 = vld [vmem:[%s10805_s0] sm:$0xf] }
   0xc   :  { %6663 = vmatpush3.bf16.msra.mxu0 %v7501_v10  ;;  %v7518_v27 = vld [vmem:[%s10804_s1 + $0x30] sm:$0xff]   ;;  %v7522_v31 = vld [vmem:[%s10804_s1 + $0x38] sm:$0xff]   ;;  %v597_v43 = vrot.slane %v595_v36, 4  ;;  %v600_v44 = vrot.slane %v598_v37, 5  ;;  %v7861_v45 = vld [vmem:[%s10805_s0 + $0x8] sm:$0xf] }
   0xd   :  { %6743 = vmatpush3.bf16.msra.mxu1 %v7502_v11  ;;  %6664 = vmatprep.subr.bf16.mxu0 %v7503_v12  ;;  %v7835_v33 = vld [vmem:[%s10805_s0 + $0x10] sm:$0xf]  ;;  %v7845_v35 = vld [vmem:[%s10805_s0 + $0x14] sm:$0x1]  ;;  %v606_v46 = vrot.slane %v604_v38, 5  ;;  %v63_v53 = vshrl.u32 %v7856_v42, 16  ;;  %vm7881_vm2 = vmor %vm59_vm0, %vm60_vm1 }
   0xe   :  { %6744 = vmatprep.subr.bf16.mxu1 %v7504_v13  ;;  %v609_v39 = vshrl.u32 %v7835_v33, 16  ;;  %v612_v40 = vshll.u32 %v7835_v33, 16  ;;  %v618_v41 = vshll.u32 %v7845_v35, 16  ;;  %v7866_v50 = vld [vmem:[%s10805_s0 + $0x4] sm:$0x1]  ;;  %v601_v51 = vor.u32 %v600_v44, %v597_v43  ;;  %v7530_v44 = vld [vmem:[%s10804_s1 + $0x150] sm:$0xff]   ;;  %vm8447_vm5 = vmor %vm334_vm3, %vm335_vm4 }
   0xf   :  { %v7871_v52 = vld [vmem:[%s10805_s0 + $0xc] sm:$0x1]  ;;  %v66_v54 = vshll.u32 %v7856_v42, 16  ;;  %v72_v55 = vshll.u32 %v7866_v50, 16  ;;  %v7524_v56 = vld [vmem:[%s10804_s1 + $0x140] sm:$0xff]   ;;  %v77_v59 = vshrl.u32 %v7861_v45, 16  ;;  %v6201_v13 = vcombine.low %v7830_v32, %v7835_v33  ;;  %vm9175_vm8 = vmand %vm2849_vm6, %vm2850_vm7 }
  0x10   :  { %6665 = vmatpush3.bf16.msra.mxu0 %v7505_v14  ;;  %v611_v47 = vrot.slane %v609_v39, 4  ;;  %v614_v48 = vrot.slane %v612_v40, 5  ;;  %v620_v49 = vrot.slane %v618_v41, 5  ;;  %v80_v60 = vshll.u32 %v7861_v45, 16  ;;  %v7891_v4 = vld [vmem:[%s10805_s0 + $0x18] sm:$0xf]  ;;  %vm9190_vm10 = vmand %vm2849_vm6, %vm2900_vm9 }
  0x11   :  { %6745 = vmatpush3.bf16.msra.mxu1 %v7506_v15  ;;  %6666 = vmatprep.subr.bf16.mxu0 %v7507_v16  ;;  %v86_v61 = vshll.u32 %v7871_v52, 16  ;;  %v602_v62 = vrot.slane %v601_v51, 4  ;;  %v65_v63 = vrot.slane %v63_v53, 4  ;;  %v68_v0 = vrot.slane %v66_v54, 5  ;;  %v7900_v8 = vld [vmem:[%s10805_s0 + $0x20] sm:$0xf]  ;;  %vm9569_vm12 = vmand %vm3174_vm11, %vm2900_vm9 }
  0x12   :  { %6746 = vmatprep.subr.bf16.mxu1 %v7508_v17  ;;  %v615_v58 = vor.u32 %v614_v48, %v611_v47  ;;  %v79_v2 = vrot.slane %v77_v59, 4  ;;  %v82_v3 = vrot.slane %v80_v60, 5  ;;  %v74_v7 = vrot.slane %v72_v55, 5  ;;  %v7905_v9 = vld [vmem:[%s10805_s0 + $0x1c] sm:$0x1]  ;;  %v7539_v51 = vld [vmem:[%s10804_s1 + $0x88] sm:$0xff]  }
  0x13   :  { %v7895_v5 = vsel %vm7881_vm2, %v602_v62, %v606_v46  ;;  %v69_v6 = vor.u32 %v68_v0, %v65_v63  ;;  %v88_v12 = vrot.slane %v86_v61, 5  ;;  %v7916_v14 = vld [vmem:[%s10805_s0 + $0x24] sm:$0x1]  ;;  %v623_v17 = vshrl.u32 %v7891_v4, 16  ;;  %v7943_v32 = vld [vmem:[%s10805_s0 + $0x18] sm:$0xf] }
  0x14   :  { %6667 = vmatpush3.bf16.msra.mxu0 %v7509_v18  ;;  %v616_v1 = vrot.slane %v615_v58, 4  ;;  %10829 = vst [vmem:[#allocation3_spill] sm:$0xff] %v7895_v5  ;;  %v83_v11 = vor.u32 %v82_v3, %v79_v2  ;;  %v7924_v18 = vld [vmem:[%s10805_s0 + $0x10] sm:$0xf]  ;;  %v7948_v33 = vld [vmem:[%s10805_s0 + $0x14] sm:$0x1] }
  0x15   :  { %6747 = vmatpush3.bf16.msra.mxu1 %v7510_v19  ;;  %6668 = vmatprep.subr.bf16.mxu0 %v7511_v20  ;;  %v70_v16 = vrot.slane %v69_v6, 4  ;;  %v7527_v19 = vld [vmem:[%s10804_s1 + $0x148] sm:$0xff]   ;;  %v7953_v39 = vld [vmem:[%s10805_s0 + $0x1c] sm:$0x1]  ;;  %v94_v43 = vshll.u32 %v7924_v18, 16  ;;  %v100_v47 = vshll.u32 %v7948_v33, 16 }
  0x16   :  { %6748 = vmatprep.subr.bf16.mxu1 %v7512_v21  ;;  %v7909_v10 = vsel %vm7881_vm2, %v616_v1, %v620_v49  ;;  %v84_v20 = vrot.slane %v83_v11, 4  ;;  %v626_v21 = vshll.u32 %v7891_v4, 16  ;;  %v105_v48 = vshrl.u32 %v7943_v32, 16  ;;  %v7973_v61 = vld [vmem:[%s10805_s0 + $0x28] sm:$0xf]  ;;  %v7533_v3 = vld [vmem:[%s10804_s1 + $0x158] sm:$0xff]  }
  0x17   :  { %10830 = vst [vmem:[#allocation4_spill] sm:$0xff] %v7909_v10  ;;  %v6209_v15 = vcombine.low %v7895_v5, %v7909_v10  ;;  %v108_v49 = vshll.u32 %v7943_v32, 16  ;;  %v96_v55 = vrot.slane %v94_v43, 5  ;;  %v102_v0 = vrot.slane %v100_v47, 5  ;;  %v7982_v1 = vld [vmem:[%s10805_s0 + $0x30] sm:$0xf] }
  0x18   :  { %6669 = vmatpush3.bf16.msra.mxu0 %v7513_v22  ;;  %v632_v22 = vshll.u32 %v7905_v9, 16  ;;  %v107_v59 = vrot.slane %v105_v48, 4  ;;  %v7987_v2 = vld [vmem:[%s10805_s0 + $0x2c] sm:$0x1] }
  0x19   :  { %6749 = vmatpush3.bf16.msra.mxu1 %v7514_v23  ;;  %6670 = vmatprep.subr.bf16.mxu0 %v7515_v24  ;;  %v637_v23 = vshrl.u32 %v7900_v8, 16  ;;  %v75_v24 = vsel %vm7881_vm2, %v70_v16, %v74_v7  ;;  %v110_v60 = vrot.slane %v108_v49, 5  ;;  %v8003_v16 = vld [vmem:[%s10805_s0 + $0x34] sm:$0x1] }
  0x1a   :  { %6750 = vmatprep.subr.bf16.mxu1 %v7516_v25  ;;  %1282 = vmatprep.mubr.bf16.mxu0 %v6209_v15  ;;  %v625_v25 = vrot.slane %v623_v17, 4  ;;  %v634_v37 = vrot.slane %v632_v22, 5  ;;  %v6202_v15 = vcombine.low %v7891_v4, %v7900_v8  ;;  %v7543_v17 = vld [vmem:[%s10804_s1 + $0x90] sm:$0xff]   ;;  %v654_v22 = vshll.u32 %v7973_v61, 16  ;;  %v8015_v4 = vld [vmem:[%s10805_s0 + $0x20] sm:$0xf] }
  0x1b   :  { %v111_v7 = vor.u32 %v110_v60, %v107_v59 }
  0x1c   :  { %6671 = vmatpush3.bf16.msra.mxu0 %v7517_v26  ;;  %v640_v26 = vshll.u32 %v7900_v8, 16 }
  0x1d   :  { %6751 = vmatpush3.bf16.msra.mxu1 %v7518_v27  ;;  %6672 = vmatprep.subr.bf16.mxu0 %v7519_v28  ;;  %v646_v27 = vshll.u32 %v7916_v14, 16  ;;  %v89_v28 = vsel %vm7881_vm2, %v84_v20, %v88_v12  ;;  %v6114_v20 = vcombine.low %v7924_v18, %v7943_v32  ;;  %v7544_v32 = vld [vmem:[%s10804_s1 + $0x98] sm:$0xff]  }
  0x1e   :  { %6752 = vmatprep.subr.bf16.mxu1 %v7520_v29  ;;  %v6113_v29 = vcombine.low %v7856_v42, %v7861_v45  ;;  %v6121_v36 = vcombine.low %v75_v24, %v89_v28  ;;  %v642_v38 = vrot.slane %v640_v26, 5  ;;  %v91_v42 = vshrl.u32 %v7924_v18, 16  ;;  %v7538_v45 = vld [vmem:[%s10804_s1 + $0x80] sm:$0xff]  }
  0x1f   :  { %v648_v41 = vrot.slane %v646_v27, 5  ;;  %v665_v24 = vshrl.u32 %v7982_v1, 16  ;;  %v668_v18 = vshll.u32 %v7982_v1, 16  ;;  %v7536_v26 = vld [vmem:[%s10804_s1 + $0x160] sm:$0xff]  }
  0x20   :  { %6673 = vmatpush3.bf16.msra.mxu0 %v7521_v30  ;;  %v628_v30 = vrot.slane %v626_v21, 5  ;;  %1620 = vmatprep.mubr.bf16.mxu1 %v6121_v36  ;;  %v93_v54 = vrot.slane %v91_v42, 4  ;;  %v651_v21 = vshrl.u32 %v7973_v61, 16 }
  0x21   :  { %6753 = vmatpush3.bf16.msra.mxu1 %v7522_v31  ;;  %7138 = vmatprep.subr.bf16.mxu0 %v7524_v56  ;;  %v639_v31 = vrot.slane %v637_v23, 4  ;;  %v660_v23 = vshll.u32 %v7987_v2, 16 }
  0x22   :  { %v629_v40 = vor.u32 %v628_v30, %v625_v25  ;;  %7170 = vmatprep.subr.bf16.mxu1 %v7538_v45  ;;  %v97_v63 = vor.u32 %v96_v55, %v93_v54  ;;  %v8025_v25 = vld [vmem:[%s10805_s0 + $0x28] sm:$0xf]  ;;  %v653_v28 = vrot.slane %v651_v21, 4  ;;  %v674_v30 = vshll.u32 %v8003_v16, 16  ;;  %v7548_v54 = vld [vmem:[%s10804_s1 + $0xa0] sm:$0xff]  }
  0x23   :  { %1283 = vmatmul.mubr.bf16.vlgmr.msra.gmra.mrb[0].mxu0 %v6201_v13  ;;  %v643_v46 = vor.u32 %v642_v38, %v639_v31  ;;  %v8036_v31 = vld [vmem:[%s10805_s0 + $0x24] sm:$0x1]  ;;  %v667_v38 = vrot.slane %v665_v24, 4  ;;  %v133_v49 = vshrl.u32 %v8025_v25, 16 }
  0x24   :  { %7139 = vmatpush3.bf16.msra.mxu0 %v7524_v56  ;;  %1621 = vmatmul.mubr.bf16.vlgmr.msra.gmra.mrb[0].mxu1 %v6113_v29  ;;  %v630_v53 = vrot.slane %v629_v40, 4  ;;  %v114_v56 = vshll.u32 %v7953_v39, 16  ;;  %v98_v13 = vrot.slane %v97_v63, 4  ;;  %v656_v29 = vrot.slane %v654_v22, 5  ;;  %v8086_v21 = vld [vmem:[%s10805_s0 + $0x44] sm:$0x1] }
  0x25   :  { %7140 = vmatprep.subr.bf16.mxu0 %v7527_v19  ;;  %v644_v58 = vrot.slane %v643_v46, 4  ;;  %7171 = vmatpush3.bf16.msra.mxu1 %v7538_v45  ;;  %v670_v40 = vrot.slane %v668_v18, 5  ;;  %v676_v43 = vrot.slane %v674_v30, 5  ;;  %v122_v45 = vshll.u32 %v8015_v4, 16  ;;  %v7541_v46 = vld [vmem:[%s10804_s1 + $0x168] sm:$0xff]  }
  0x26   :  { %v7977_v62 = vsel %vm7881_vm2, %v630_v53, %v634_v37  ;;  %7172 = vmatprep.subr.bf16.mxu1 %v7539_v51  ;;  %v116_v11 = vrot.slane %v114_v56, 5  ;;  %v103_v8 = vsel %vm7881_vm2, %v98_v13, %v102_v0  ;;  %v662_v37 = vrot.slane %v660_v23, 5  ;;  %v8057_v53 = vld [vmem:[%s10805_s0 + $0x38] sm:$0xf]  ;;  %v8075_v13 = vld [vmem:[%s10805_s0 + $0x3c] sm:$0x1] }
  0x27   :  { %10831 = vst [vmem:[#allocation5_spill] sm:$0xff] %v7977_v62  ;;  %v7994_v6 = vsel %vm7881_vm2, %v644_v58, %v648_v41  ;;  %v8044_v41 = vld [vmem:[%s10805_s0 + $0x2c] sm:$0x1]  ;;  %v657_v42 = vor.u32 %v656_v29, %v653_v28  ;;  %v671_v47 = vor.u32 %v670_v40, %v667_v38  ;;  %v128_v48 = vshll.u32 %v8036_v31, 16  ;;  %v8091_v22 = vld [vmem:[%s10805_s0 + $0x30] sm:$0xf] }
  0x28   :  { %7141 = vmatpush3.bf16.msra.mxu0 %v7527_v19  ;;  %10832 = vst [vmem:[#allocation6_spill] sm:$0xff] %v7994_v6  ;;  %v6210_v12 = vcombine.low %v7977_v62, %v7994_v6  ;;  %v112_v19 = vrot.slane %v111_v7, 4  ;;  %v124_v58 = vrot.slane %v122_v45, 5  ;;  %v142_v59 = vshll.u32 %v8044_v41, 16  ;;  %v8104_v18 = vld [vmem:[%s10805_s0 + $0x38] sm:$0xf] }
  0x29   :  { %7142 = vmatprep.subr.bf16.mxu0 %v7530_v44  ;;  %7173 = vmatpush3.bf16.msra.mxu1 %v7539_v51  ;;  %v136_v51 = vshll.u32 %v8025_v25, 16  ;;  %v658_v55 = vrot.slane %v657_v42, 4  ;;  %v672_v60 = vrot.slane %v671_v47, 4  ;;  %v135_v63 = vrot.slane %v133_v49, 4  ;;  %v8120_v30 = vld [vmem:[%s10805_s0 + $0x3c] sm:$0x1] }
  0x2a   :  { %1290 = vmatprep.mubr.bf16.mxu0 %v6210_v12  ;;  %v117_v27 = vsel %vm7881_vm2, %v112_v19, %v116_v11  ;;  %7174 = vmatprep.subr.bf16.mxu1 %v7543_v17  ;;  %v130_v11 = vrot.slane %v128_v48, 5  ;;  %v8070_v12 = vld [vmem:[%s10805_s0 + $0x40] sm:$0xf]  ;;  %v144_v19 = vrot.slane %v142_v59, 5  ;;  %v679_v24 = vshrl.u32 %v8057_v53, 16  ;;  %v7551_v45 = vld [vmem:[%s10804_s1 + $0x178] sm:$0xff]  }
  0x2b   :  { %1291 = vmatmul.mubr.bf16.gmra.mrb[4].mxu0 %v6202_v15  ;;  %v6122_v36 = vcombine.low %v103_v8, %v117_v27  ;;  %v138_v0 = vrot.slane %v136_v51, 5  ;;  %v8079_v15 = vsel %vm7881_vm2, %v672_v60, %v676_v43  ;;  %v7546_v8 = vld [vmem:[%s10804_s1 + $0x170] sm:$0xff]   ;;  %v7549_v27 = vld [vmem:[%s10804_s1 + $0xa8] sm:$0xff]   ;;  %v682_v29 = vshll.u32 %v8057_v53, 16 }
  0x2c   :  { %7143 = vmatpush3.bf16.msra.mxu0 %v7530_v44  ;;  %v119_v44 = vshrl.u32 %v8015_v4, 16  ;;  %10834 = vst [vmem:[#allocation8_spill] sm:$0xff] %v8079_v15  ;;  %v702_v38 = vshll.u32 %v8086_v21, 16  ;;  %v147_v51 = vshrl.u32 %v8091_v22, 16  ;;  %v161_v59 = vshrl.u32 %v8104_v18, 16  ;;  %v7553_v60 = vld [vmem:[%s10804_s1 + $0xb0] sm:$0xff]  }
  0x2d   :  { %7144 = vmatprep.subr.bf16.mxu0 %v7533_v3  ;;  %7175 = vmatpush3.bf16.msra.mxu1 %v7543_v17  ;;  %v139_v17 = vor.u32 %v138_v0, %v135_v63  ;;  %v684_v42 = vrot.slane %v682_v29, 5  ;;  %v8152_v29 = vld [vmem:[%s10805_s0 + $0x60] sm:$0xf] }
  0x2e   :  { %1628 = vmatprep.mubr.bf16.mxu1 %v6122_v36  ;;  %v121_v56 = vrot.slane %v119_v44, 4  ;;  %7176 = vmatprep.subr.bf16.mxu1 %v7544_v32  ;;  %v681_v36 = vrot.slane %v679_v24, 4  ;;  %v704_v49 = vrot.slane %v702_v38, 5  ;;  %v149_v0 = vrot.slane %v147_v51, 4 }
  0x2f   :  { %1629 = vmatmul.mubr.bf16.gmra.mrb[4].mxu1 %v6114_v20  ;;  %v6203_v20 = vcombine.low %v7973_v61, %v7982_v1  ;;  %v6115_v1 = vcombine.low %v8015_v4, %v8025_v25  ;;  %v140_v28 = vrot.slane %v139_v17, 4  ;;  %v688_v4 = vshll.u32 %v8075_v13, 16 }
  0x30   :  { %7145 = vmatpush3.bf16.msra.mxu0 %v7533_v3  ;;  %v8065_v3 = vsel %vm7881_vm2, %v658_v55, %v662_v37  ;;  %v125_v7 = vor.u32 %v124_v58, %v121_v56  ;;  %v693_v25 = vshrl.u32 %v8070_v12, 16  ;;  %v696_v37 = vshll.u32 %v8070_v12, 16 }
  0x31   :  { %7146 = vmatprep.subr.bf16.mxu0 %v7536_v26  ;;  %10833 = vst [vmem:[#allocation7_spill] sm:$0xff] %v8065_v3  ;;  %7177 = vmatpush3.bf16.msra.mxu1 %v7544_v32  ;;  %v6211_v23 = vcombine.low %v8065_v3, %v8079_v15  ;;  %v145_v40 = vsel %vm7881_vm2, %v140_v28, %v144_v19  ;;  %v690_v43 = vrot.slane %v688_v4, 5  ;;  %v150_v56 = vshll.u32 %v8091_v22, 16 }
  0x32   :  { %7178 = vmatprep.subr.bf16.mxu1 %v7548_v54  ;;  %v126_v61 = vrot.slane %v125_v7, 4  ;;  %v695_v44 = vrot.slane %v693_v25, 4  ;;  %v698_v48 = vrot.slane %v696_v37, 5  ;;  %v685_v55 = vor.u32 %v684_v42, %v681_v36  ;;  %v8161_v25 = vld [vmem:[%s10805_s0 + $0x5c] sm:$0x1] }
  0x33   :  { %1298 = vmatprep.mubr.bf16.mxu0 %v6211_v23  ;;  %v164_v7 = vshll.u32 %v8104_v18, 16  ;;  %v152_v17 = vrot.slane %v150_v56, 5  ;;  %v163_v19 = vrot.slane %v161_v59, 4  ;;  %v7554_v36 = vld [vmem:[%s10804_s1 + $0xb8] sm:$0xff]   ;;  %v6204_v38 = vcombine.low %v8057_v53, %v8070_v12  ;;  %v8194_v12 = vld [vmem:[%s10805_s0 + $0x54] sm:$0x1] }
  0x34   :  { %7147 = vmatpush3.bf16.msra.mxu0 %v7536_v26  ;;  %v8109_v26 = vld [vmem:[%s10805_s0 + $0x34] sm:$0x1]  ;;  %v131_v32 = vsel %vm7881_vm2, %v126_v61, %v130_v11  ;;  %v699_v63 = vor.u32 %v698_v48, %v695_v44  ;;  %v170_v11 = vshll.u32 %v8120_v30, 16  ;;  %v8189_v53 = vld [vmem:[%s10805_s0 + $0x58] sm:$0xf]  ;;  %v724_v59 = vshll.u32 %v8152_v29, 16 }
  0x35   :  { %7148 = vmatprep.subr.bf16.mxu0 %v7541_v46  ;;  %1299 = vmatmul.mubr.bf16.gmra.mrb[8].mxu0 %v6203_v20  ;;  %v6123_v47 = vcombine.low %v131_v32, %v145_v40  ;;  %v156_v58 = vshll.u32 %v8109_v26, 16  ;;  %v7555_v20 = vld [vmem:[%s10804_s1 + $0x1c0] sm:$0xff]   ;;  %v166_v28 = vrot.slane %v164_v7, 5  ;;  %v8201_v56 = vld [vmem:[%s10805_s0 + $0x5c] sm:$0x1] }
  0x36   :  { %7179 = vmatpush3.bf16.msra.mxu1 %v7548_v54  ;;  %v686_v54 = vrot.slane %v685_v55, 4  ;;  %v700_v61 = vrot.slane %v699_v63, 4  ;;  %v172_v4 = vrot.slane %v170_v11, 5  ;;  %v8176_v40 = vld [vmem:[%s10805_s0 + $0x64] sm:$0x1]  ;;  %v721_v55 = vshrl.u32 %v8152_v29, 16 }
  0x37   :  { %7180 = vmatprep.subr.bf16.mxu1 %v7549_v27  ;;  %1636 = vmatprep.mubr.bf16.mxu1 %v6123_v47  ;;  %v158_v24 = vrot.slane %v156_v58, 5  ;;  %v167_v37 = vor.u32 %v166_v28, %v163_v19  ;;  %v730_v63 = vshll.u32 %v8176_v40, 16  ;;  %v8211_v7 = vld [vmem:[%s10804_s1 + $0x200] sm:$0xff]   ;;  %v8220_v28 = vld [vmem:[%s10805_s0 + $0x68] sm:$0xf] }
  0x38   :  { %7149 = vmatpush3.bf16.msra.mxu0 %v7541_v46  ;;  %v8135_v46 = vld [vmem:[%s10805_s0 + $0x58] sm:$0xf]  ;;  %1637 = vmatmul.mubr.bf16.gmra.mrb[8].mxu1 %v6115_v1  ;;  %v153_v1 = vor.u32 %v152_v17, %v149_v0  ;;  %v723_v17 = vrot.slane %v721_v55, 4 }
  0x39   :  { %7150 = vmatprep.subr.bf16.mxu0 %v7546_v8  ;;  %v707_v32 = vshrl.u32 %v8135_v46, 16  ;;  %v710_v42 = vshll.u32 %v8135_v46, 16 }
  0x3a   :  { %7181 = vmatpush3.bf16.msra.mxu1 %v7549_v27  ;;  %v8169_v27 = vsel %vm7881_vm2, %v700_v61, %v704_v49  ;;  %v154_v47 = vrot.slane %v153_v1, 4  ;;  %v168_v49 = vrot.slane %v167_v37, 4  ;;  %v726_v61 = vrot.slane %v724_v59, 5  ;;  %v8244_v59 = vld [vmem:[%s10805_s0 + $0x6c] sm:$0x1] }
  0x3b   :  { %7182 = vmatprep.subr.bf16.mxu1 %v7553_v60  ;;  %10836 = vst [vmem:[#allocation10_spill] sm:$0xff] %v8169_v27  ;;  %v709_v48 = vrot.slane %v707_v32, 4  ;;  %v712_v51 = vrot.slane %v710_v42, 5  ;;  %v189_v37 = vshrl.u32 %v8189_v53, 16  ;;  %v198_v42 = vshll.u32 %v8201_v56, 16 }
  0x3c   :  { %7151 = vmatpush3.bf16.msra.mxu0 %v7546_v8  ;;  %v8156_v8 = vsel %vm7881_vm2, %v686_v54, %v690_v43  ;;  %v8182_v43 = vld [vmem:[%s10805_s0 + $0x50] sm:$0xf]  ;;  %v159_v58 = vsel %vm7881_vm2, %v154_v47, %v158_v24  ;;  %v173_v11 = vsel %vm7881_vm2, %v168_v49, %v172_v4  ;;  %v184_v4 = vshll.u32 %v8194_v12, 16 }
  0x3d   :  { %7152 = vmatprep.subr.bf16.mxu0 %v7551_v45  ;;  %10835 = vst [vmem:[#allocation9_spill] sm:$0xff] %v8156_v8  ;;  %v6212_v44 = vcombine.low %v8156_v8, %v8169_v27  ;;  %v175_v0 = vshrl.u32 %v8182_v43, 16  ;;  %v713_v54 = vor.u32 %v712_v51, %v709_v48  ;;  %v6124_v19 = vcombine.low %v159_v58, %v173_v11  ;;  %v8249_v11 = vld [vmem:[%s10805_s0 + $0x74] sm:$0x1] }
  0x3e   :  { %7183 = vmatpush3.bf16.msra.mxu1 %v7553_v60  ;;  %v6116_v60 = vcombine.low %v8091_v22, %v8104_v18  ;;  %v178_v32 = vshll.u32 %v8182_v43, 16  ;;  %v727_v22 = vor.u32 %v726_v61, %v723_v17  ;;  %v732_v18 = vrot.slane %v730_v63, 5  ;;  %v8266_v61 = vld [vmem:[%s10805_s0 + $0x64] sm:$0x1] }
  0x3f   :  { %1306 = vmatprep.mubr.bf16.mxu0 %v6212_v44  ;;  %7184 = vmatprep.subr.bf16.mxu1 %v7554_v36  ;;  %v177_v24 = vrot.slane %v175_v0, 4  ;;  %v714_v1 = vrot.slane %v713_v54, 4  ;;  %v191_v49 = vrot.slane %v189_v37, 4  ;;  %v6205_v58 = vcombine.low %v8135_v46, %v8152_v29  ;;  %v8274_v37 = vld [vmem:[%s10805_s0 + $0x68] sm:$0xf] }
  0x40   :  { %7153 = vmatpush3.bf16.msra.mxu0 %v7551_v45  ;;  %v716_v45 = vshll.u32 %v8161_v25, 16  ;;  %1644 = vmatprep.mubr.bf16.mxu1 %v6124_v19  ;;  %v180_v48 = vrot.slane %v178_v32, 5  ;;  %v186_v0 = vrot.slane %v184_v4, 5  ;;  %v738_v54 = vshll.u32 %v8220_v28, 16 }
  0x41   :  { %6818 = vmatprep.subr.bf16.mxu0 %v7555_v20  ;;  %1307 = vmatmul.mubr.bf16.gmra.mrb[12].mxu0 %v6204_v38  ;;  %v192_v38 = vshll.u32 %v8189_v53, 16  ;;  %v200_v29 = vrot.slane %v198_v42, 5  ;;  %v744_v4 = vshll.u32 %v8244_v59, 16  ;;  %v217_v23 = vshrl.u32 %v8274_v37, 16 }
  0x42   :  { %v718_v20 = vrot.slane %v716_v45, 5  ;;  %7185 = vmatpush3.bf16.msra.mxu1 %v7554_v36  ;;  %v8233_v36 = vld [vmem:[%s10805_s0 + $0x70] sm:$0xf]  ;;  %v728_v45 = vrot.slane %v727_v22, 4  ;;  %v181_v63 = vor.u32 %v180_v48, %v177_v24  ;;  %v8281_v48 = vld [vmem:[%s10805_s0 + $0x6c] sm:$0x1] }
  0x43   :  { %7202 = vmatprep.subr.bf16.mxu1 %v8211_v7  ;;  %1645 = vmatmul.mubr.bf16.gmra.mrb[12].mxu1 %v6116_v60  ;;  %v194_v55 = vrot.slane %v192_v38, 5  ;;  %v735_v60 = vshrl.u32 %v8220_v28, 16  ;;  %v749_v19 = vshrl.u32 %v8233_v36, 16  ;;  %v740_v38 = vrot.slane %v738_v54, 5 }
  0x44   :  { %v8237_v51 = vsel %vm7881_vm2, %v714_v1, %v718_v20  ;;  %v8255_v17 = vsel %vm7881_vm2, %v728_v45, %v732_v18  ;;  %v8261_v20 = vld [vmem:[%s10805_s0 + $0x60] sm:$0xf]  ;;  %v182_v1 = vrot.slane %v181_v63, 4  ;;  %v6117_v18 = vcombine.low %v8182_v43, %v8189_v53 }
  0x45   :  { %10837 = vst [vmem:[#allocation11_spill] sm:$0xff] %v8237_v51  ;;  %10838 = vst [vmem:[#allocation12_spill] sm:$0xff] %v8255_v17  ;;  %v195_v46 = vor.u32 %v194_v55, %v191_v49  ;;  %v6213_v24 = vcombine.low %v8237_v51, %v8255_v17  ;;  %v737_v32 = vrot.slane %v735_v60, 4  ;;  %v751_v42 = vrot.slane %v749_v19, 4 }
  0x46   :  { %v187_v49 = vsel %vm7881_vm2, %v182_v1, %v186_v0  ;;  %v752_v45 = vshll.u32 %v8233_v36, 16  ;;  %v758_v55 = vshll.u32 %v8249_v11, 16  ;;  %v203_v63 = vshrl.u32 %v8261_v20, 16 }
  0x47   :  { %v196_v22 = vrot.slane %v195_v46, 4  ;;  %1314 = vmatprep.mubr.bf16.mxu0 %v6213_v24  ;;  %v741_v53 = vor.u32 %v740_v38, %v737_v32  ;;  %v206_v60 = vshll.u32 %v8261_v20, 16  ;;  %v212_v54 = vshll.u32 %v8266_v61, 16  ;;  %v8304_v38 = vld [vmem:[%s10805_s0 + $0x7c] sm:$0x1] }
  0x48   :  { %v746_v19 = vrot.slane %v744_v4, 5  ;;  %v754_v24 = vrot.slane %v752_v45, 5  ;;  %v205_v47 = vrot.slane %v203_v63, 4  ;;  %v760_v32 = vrot.slane %v758_v55, 5 }
  0x49   :  { %v201_v43 = vsel %vm7881_vm2, %v196_v22, %v200_v29  ;;  %1315 = vmatmul.mubr.bf16.gmra.mrb[16].mxu0 %v6205_v58  ;;  %v742_v1 = vrot.slane %v741_v53, 4  ;;  %v208_v44 = vrot.slane %v206_v60, 5  ;;  %v8297_v29 = vld [vmem:[%s10805_s0 + $0x78] sm:$0xf]  ;;  %v220_v22 = vshll.u32 %v8274_v37, 16 }
  0x4a   :  { %v6125_v46 = vcombine.low %v187_v49, %v201_v43  ;;  %v755_v58 = vor.u32 %v754_v24, %v751_v42  ;;  %v226_v4 = vshll.u32 %v8281_v48, 16  ;;  %v214_v45 = vrot.slane %v212_v54, 5  ;;  %v8311_v42 = vld [vmem:[%s10805_s0 + $0x80] sm:$0xf]  ;;  %v8333_v54 = vld [vmem:[%s10805_s0 + $0x78] sm:$0xf] }
  0x4b   :  { %v209_v49 = vor.u32 %v208_v44, %v205_v47  ;;  %v219_v63 = vrot.slane %v217_v23, 4  ;;  %v6206_v43 = vcombine.low %v8220_v28, %v8233_v36  ;;  %v8315_v55 = vsel %vm7881_vm2, %v742_v1, %v746_v19  ;;  %v8320_v44 = vld [vmem:[%s10805_s0 + $0x84] sm:$0x1]  ;;  %v8325_v23 = vld [vmem:[%s10805_s0 + $0x70] sm:$0xf] }
  0x4c   :  { %1652 = vmatprep.mubr.bf16.mxu1 %v6125_v46  ;;  %10839 = vst [vmem:[#allocation13_spill] sm:$0xff] %v8315_v55  ;;  %v756_v53 = vrot.slane %v755_v58, 4  ;;  %v222_v60 = vrot.slane %v220_v22, 5  ;;  %v228_v46 = vrot.slane %v226_v4, 5  ;;  %v763_v47 = vshrl.u32 %v8297_v29, 16 }
  0x4d   :  { %1653 = vmatmul.mubr.bf16.gmra.mrb[16].mxu1 %v6117_v18  ;;  %v210_v28 = vrot.slane %v209_v49, 4  ;;  %v766_v36 = vshll.u32 %v8297_v29, 16  ;;  %v772_v18 = vshll.u32 %v8304_v38, 16  ;;  %v777_v1 = vshrl.u32 %v8311_v42, 16  ;;  %v8344_v22 = vld [vmem:[%s10805_s0 + $0x74] sm:$0x1] }
  0x4e   :  { %v8337_v19 = vsel %vm7881_vm2, %v756_v53, %v760_v32  ;;  %v223_v24 = vor.u32 %v222_v60, %v219_v63  ;;  %v780_v58 = vshll.u32 %v8311_v42, 16  ;;  %v6118_v32 = vcombine.low %v8261_v20, %v8274_v37  ;;  %v8360_v20 = vld [vmem:[%s10805_s0 + $0x7c] sm:$0x1] }
  0x4f   :  { %10840 = vst [vmem:[#allocation14_spill] sm:$0xff] %v8337_v19  ;;  %v6214_v4 = vcombine.low %v8315_v55, %v8337_v19  ;;  %v215_v49 = vsel %vm7881_vm2, %v210_v28, %v214_v45  ;;  %v765_v53 = vrot.slane %v763_v47, 4  ;;  %v768_v60 = vrot.slane %v766_v36, 5 }
  0x50   :  { %v224_v63 = vrot.slane %v223_v24, 4  ;;  %v774_v0 = vrot.slane %v772_v18, 5  ;;  %v779_v17 = vrot.slane %v777_v1, 4  ;;  %v782_v51 = vrot.slane %v780_v58, 5  ;;  %v8367_v1 = vld [vmem:[%s10805_s0 + $0x88] sm:$0xf] }
  0x51   :  { %1322 = vmatprep.mubr.bf16.mxu0 %v6214_v4  ;;  %v786_v27 = vshll.u32 %v8320_v44, 16  ;;  %v231_v8 = vshrl.u32 %v8325_v23, 16  ;;  %v234_v15 = vshll.u32 %v8325_v23, 16  ;;  %v769_v45 = vor.u32 %v768_v60, %v765_v53 }
  0x52   :  { %v229_v19 = vsel %vm7881_vm2, %v224_v63, %v228_v46  ;;  %1323 = vmatmul.mubr.bf16.gmra.mrb[20].mxu0 %v6206_v43  ;;  %v240_v37 = vshll.u32 %v8344_v22, 16  ;;  %v245_v28 = vshrl.u32 %v8333_v54, 16  ;;  %v783_v36 = vor.u32 %v782_v51, %v779_v17 }
  0x53   :  { %v6126_v47 = vcombine.low %v215_v49, %v229_v19  ;;  %v788_v18 = vrot.slane %v786_v27, 5  ;;  %v233_v24 = vrot.slane %v231_v8, 4  ;;  %v770_v58 = vrot.slane %v769_v45, 4  ;;  %v8376_v8 = vld [vmem:[%s10805_s0 + $0x90] sm:$0xf] }
  0x54   :  { %v236_v4 = vrot.slane %v234_v15, 5  ;;  %v784_v53 = vrot.slane %v783_v36, 4  ;;  %v247_v63 = vrot.slane %v245_v28, 4  ;;  %v248_v60 = vshll.u32 %v8333_v54, 16  ;;  %v8385_v19 = vld [vmem:[%s10805_s0 + $0x8c] sm:$0x1] }
  0x55   :  { %1660 = vmatprep.mubr.bf16.mxu1 %v6126_v47  ;;  %v254_v51 = vshll.u32 %v8360_v20, 16  ;;  %v8380_v27 = vsel %vm7881_vm2, %v770_v58, %v774_v0  ;;  %v242_v17 = vrot.slane %v240_v37, 5  ;;  %v8390_v49 = vld [vmem:[%s10805_s0 + $0x94] sm:$0x1]  ;;  %v791_v45 = vshrl.u32 %v8367_v1, 16 }
  0x56   :  { %1661 = vmatmul.mubr.bf16.gmra.mrb[20].mxu1 %v6118_v32  ;;  %10841 = vst [vmem:[#allocation15_spill] sm:$0xff] %v8380_v27  ;;  %v237_v15 = vor.u32 %v236_v4, %v233_v24  ;;  %v8395_v32 = vsel %vm7881_vm2, %v784_v53, %v788_v18  ;;  %v250_v0 = vrot.slane %v248_v60, 5  ;;  %v6207_v37 = vcombine.low %v8297_v29, %v8311_v42  ;;  %v8402_v47 = vld [vmem:[%s10805_s0 + $0x80] sm:$0xf]  ;;  %v8411_v18 = vld [vmem:[%s10805_s0 + $0x88] sm:$0xf] }
  0x57   :  { %10842 = vst [vmem:[#allocation16_spill] sm:$0xff] %v8395_v32  ;;  %v256_v28 = vrot.slane %v254_v51, 5  ;;  %v6215_v36 = vcombine.low %v8380_v27, %v8395_v32  ;;  %v6119_v58 = vcombine.low %v8325_v23, %v8333_v54  ;;  %v793_v4 = vrot.slane %v791_v45, 4  ;;  %v8416_v29 = vld [vmem:[%s10805_s0 + $0x84] sm:$0x1] }
  0x58   :  { %v238_v24 = vrot.slane %v237_v15, 4  ;;  %v251_v42 = vor.u32 %v250_v0, %v247_v63  ;;  %v794_v53 = vshll.u32 %v8367_v1, 16  ;;  %v800_v60 = vshll.u32 %v8385_v19, 16  ;;  %v8428_v45 = vld [vmem:[%s10805_s0 + $0x8c] sm:$0x1] }
  0x59   :  { %v805_v51 = vshrl.u32 %v8376_v8, 16  ;;  %1330 = vmatprep.mubr.bf16.mxu0 %v6215_v36  ;;  %v808_v54 = vshll.u32 %v8376_v8, 16  ;;  %v814_v15 = vshll.u32 %v8390_v49, 16  ;;  %v259_v63 = vshrl.u32 %v8402_v47, 16 }
  0x5a   :  { %v243_v23 = vsel %vm7881_vm2, %v238_v24, %v242_v17  ;;  %v252_v0 = vrot.slane %v251_v42, 4  ;;  %1331 = vmatmul.mubr.bf16.gmra.mrb[24].mxu0 %v6207_v37  ;;  %v796_v46 = vrot.slane %v794_v53, 5  ;;  %v802_v43 = vrot.slane %v800_v60, 5  ;;  %v6169_v24 = vld [vmem:[%s10805_s0 + $0x8] sm:$0xe] }
  0x5b   :  { %v807_v32 = vrot.slane %v805_v51, 4  ;;  %v810_v36 = vrot.slane %v808_v54, 5  ;;  %v816_v27 = vrot.slane %v814_v15, 5  ;;  %v261_v55 = vrot.slane %v259_v63, 4  ;;  %v6170_v54 = vld [vmem:[%s10805_s0 + $0x10] sm:$0xe] }
  0x5c   :  { %v262_v17 = vshll.u32 %v8402_v47, 16  ;;  %v257_v3 = vsel %vm7881_vm2, %v252_v0, %v256_v28  ;;  %v797_v6 = vor.u32 %v796_v46, %v793_v4  ;;  %v268_v62 = vshll.u32 %v8416_v29, 16 }
  0x5d   :  { %v273_v37 = vshrl.u32 %v8411_v18, 16  ;;  %v6127_v42 = vcombine.low %v243_v23, %v257_v3  ;;  %v811_v53 = vor.u32 %v810_v36, %v807_v32  ;;  %v276_v51 = vshll.u32 %v8411_v18, 16  ;;  %v286_v32 = vld [vmem:[%s10805_s0] sm:$0xe]  ;;  %v287_v23 = vld [vmem:[%s10805_s0 + $0x8] sm:$0xe] }
  0x5e   :  { %v264_v60 = vrot.slane %v262_v17, 5  ;;  %v347_v15 = vrot.slane %v7948_v33, 5  ;;  %v798_v63 = vrot.slane %v797_v6, 4  ;;  %v282_v28 = vshll.u32 %v8428_v45, 16  ;;  %v6171_v36 = vld [vmem:[%s10805_s0 + $0x18] sm:$0xe] }
  0x5f   :  { %v275_v10 = vrot.slane %v273_v37, 4  ;;  %1668 = vmatprep.mubr.bf16.mxu1 %v6127_v42  ;;  %v812_v46 = vrot.slane %v811_v53, 4  ;;  %v270_v0 = vrot.slane %v268_v62, 5  ;;  %v278_v5 = vrot.slane %v276_v51, 5  ;;  %v289_v42 = vld [vmem:[%s10805_s0 + $0x18] sm:$0xe] }
  0x60   :  { %v265_v4 = vor.u32 %v264_v60, %v261_v55  ;;  %v351_v33 = vrot.slane %v7953_v39, 5  ;;  %1669 = vmatmul.mubr.bf16.gmra.mrb[24].mxu1 %v6119_v58  ;;  %v8457_v6 = vsel %vm7881_vm2, %v798_v63, %v802_v43  ;;  %v6208_v62 = vcombine.low %v8367_v1, %v8376_v8  ;;  %v6172_v1 = vld [vmem:[%s10805_s0 + $0x20] sm:$0xe]  ;;  %v288_v8 = vld [vmem:[%s10805_s0 + $0x10] sm:$0xe] }
  0x61   :  { %v6185_v55 = vrot.slane %v6169_v24, 9  ;;  %v8469_v39 = vsel %vm7881_vm2, %v812_v46, %v816_v27  ;;  %v279_v17 = vor.u32 %v278_v5, %v275_v10  ;;  %v284_v43 = vrot.slane %v282_v28, 5  ;;  %v6173_v53 = vld [vmem:[%s10805_s0 + $0x28] sm:$0xe] }
  0x62   :  { %v266_v58 = vrot.slane %v265_v4, 4  ;;  %v6216_v24 = vcombine.low %v8457_v6, %v8469_v39  ;;  %v6120_v37 = vcombine.low %v8402_v47, %v8411_v18  ;;  %v10845_v27 = vrot.slane %v7840_v34, 5  ;;  %v6174_v34 = vld [vmem:[%s10805_s0 + $0x30] sm:$0xe]  ;;  %v290_v18 = vld [vmem:[%s10805_s0 + $0x20] sm:$0xe] }
  0x63   :  { %v6186_v10 = vrot.slane %v6170_v54, 9  ;;  %v280_v51 = vrot.slane %v279_v17, 4  ;;  %v6097_v63 = vrot.slane %v286_v32, 9  ;;  %v6098_v47 = vrot.slane %v287_v23, 9  ;;  %v291_v32 = vld [vmem:[%s10805_s0 + $0x28] sm:$0xe] }
  0x64   :  { %v885_v5 = vsel %vm8447_vm5, %v6185_v55, %v10845_v27  ;;  %v271_v60 = vsel %vm7881_vm2, %v266_v58, %v270_v0  ;;  %1338 = vmatprep.mubr.bf16.mxu0 %v6216_v24  ;;  %v10846_v54 = vrot.slane %v7845_v35, 5  ;;  %v6187_v46 = vrot.slane %v6171_v36, 9 }
  0x65   :  { %v6188_v4 = vrot.slane %v6172_v1, 9  ;;  %v6099_v0 = vrot.slane %v288_v8, 9  ;;  %v285_v55 = vsel %vm7881_vm2, %v280_v51, %v284_v43  ;;  %1339 = vmatmul.mubr.bf16.gmra.mrb[28].mxu0 %v6208_v62  ;;  %v10847_v58 = vrot.slane %v7866_v50, 5  ;;  %v6175_v1 = vld [vmem:[%s10805_s0 + $0x38] sm:$0xe] }
  0x66   :  { %v889_v28 = vsel %vm8447_vm5, %v6186_v10, %v10846_v54  ;;  %v10848_v17 = vrot.slane %v7871_v52, 5  ;;  %v6128_v8 = vcombine.low %v271_v60, %v285_v55  ;;  %v10849_v43 = vrot.slane %v7905_v9, 5  ;;  %v6176_v60 = vld [vmem:[%s10805_s0 + $0x40] sm:$0xe]  ;;  %v292_v9 = vld [vmem:[%s10805_s0 + $0x30] sm:$0xe] }
  0x67   :  { %v6217_v23 = vcombine.low %v885_v5, %v889_v28  ;;  %v340_v35 = vsel %vm8447_vm5, %v6097_v63, %v10847_v58  ;;  %v10850_v50 = vrot.slane %v7916_v14, 5  ;;  %v348_v5 = vsel %vm8447_vm5, %v6099_v0, %v347_v15  ;;  %v294_v55 = vld [vmem:[%s10805_s0 + $0x50] sm:$0xe] }
  0x68   :  { %v344_v36 = vsel %vm8447_vm5, %v6098_v47, %v10848_v17  ;;  %v893_v62 = vsel %vm8447_vm5, %v6187_v46, %v10849_v43  ;;  %v6100_v10 = vrot.slane %v289_v42, 9  ;;  %v6189_v51 = vrot.slane %v6173_v53, 9  ;;  %1676 = vmatprep.mubr.bf16.mxu1 %v6128_v8 }
  0x69   :  { %v6129_v24 = vcombine.low %v340_v35, %v344_v36  ;;  %v897_v27 = vsel %vm8447_vm5, %v6188_v4, %v10850_v50  ;;  %7154 = vmatprep.mubr.bf16.mxu0 %v6217_v23  ;;  %v900_v14 = vrot.slane %v7987_v2, 5  ;;  %v6190_v63 = vrot.slane %v6174_v34, 9  ;;  %1677 = vmatmul.mubr.bf16.gmra.mrb[28].mxu1 %v6120_v37  ;;  %v7557_v4 = vld [vmem:[%s10804_s1 + $0x180] sm:$0xff]   ;;  %v295_v36 = vld [vmem:[%s10805_s0 + $0x58] sm:$0xe]  ;;  %v7560_v50 = vld [vmem:[%s10804_s1 + $0x188] sm:$0xff]  }
  0x6a   :  { %v6218_v52 = vcombine.low %v893_v62, %v897_v27  ;;  %v904_v47 = vrot.slane %v8003_v16, 5  ;;  %v6101_v54 = vrot.slane %v290_v18, 9  ;;  %v352_v15 = vsel %vm8447_vm5, %v6100_v10, %v351_v33  ;;  %v7558_v33 = vld [vmem:[%s10804_s1 + $0x1c8] sm:$0xff]   ;;  %v6180_v62 = vld [vmem:[%s10805_s0 + $0x70] sm:$0xe] }
  0x6b   :  { %v355_v42 = vrot.slane %v8036_v31, 5  ;;  %v6102_v53 = vrot.slane %v291_v32, 9  ;;  %v359_v28 = vrot.slane %v8044_v41, 5  ;;  %7186 = vmatprep.mubr.bf16.mxu1 %v6129_v24  ;;  %v6130_v46 = vcombine.low %v348_v5, %v352_v15  ;;  %v293_v31 = vld [vmem:[%s10805_s0 + $0x38] sm:$0xe]  ;;  %v7562_v15 = vld [vmem:[%s10804_s1 + $0x210] sm:$0xff]  }
  0x6c   :  { %v901_v2 = vsel %vm8447_vm5, %v6189_v51, %v900_v14  ;;  %v905_v16 = vsel %vm8447_vm5, %v6190_v63, %v904_v47  ;;  %v6191_v37 = vrot.slane %v6175_v1, 9  ;;  %v6177_v41 = vld [vmem:[%s10805_s0 + $0x58] sm:$0xe]  ;;  %v908_v0 = vrot.slane %v8075_v13, 5  ;;  %v6178_v32 = vld [vmem:[%s10805_s0 + $0x60] sm:$0xe] }
  0x6d   :  { %v6219_v34 = vcombine.low %v901_v2, %v905_v16  ;;  %v356_v18 = vsel %vm8447_vm5, %v6101_v54, %v355_v42  ;;  %v360_v23 = vsel %vm8447_vm5, %v6102_v53, %v359_v28  ;;  %v6192_v58 = vrot.slane %v6176_v60, 9  ;;  %v6179_v13 = vld [vmem:[%s10805_s0 + $0x68] sm:$0xe]  ;;  %7155 = vmatmul.mubr.bf16.vlgmr.msra.gmra.mrb[32].mxu0 %v6218_v52  ;;  %v7561_v60 = vld [vmem:[%s10804_s1 + $0x1d0] sm:$0xff]  }
  0x6e   :  { %v912_v35 = vrot.slane %v8086_v21, 5  ;;  %v6103_v17 = vrot.slane %v292_v9, 9  ;;  %v7559_v1 = vld [vmem:[%s10804_s1 + $0x208] sm:$0xff]   ;;  %v909_v8 = vsel %vm8447_vm5, %v6191_v37, %v908_v0  ;;  %v363_v24 = vrot.slane %v8109_v26, 5  ;;  %6819 = vmatpush3.bf16.msra.mxu0 %v7557_v4  ;;  %v7564_v37 = vld [vmem:[%s10804_s1 + $0x1d8] sm:$0xff]  }
  0x6f   :  { %v6104_v21 = vrot.slane %v293_v31, 9  ;;  %v367_v43 = vrot.slane %v8120_v30, 5  ;;  %7158 = vmatprep.mubr.bf16.mxu0 %v6219_v34  ;;  %v6193_v52 = vrot.slane %v6177_v41, 9  ;;  %v916_v5 = vrot.slane %v8161_v25, 5  ;;  %v8594_v30 = vld [vmem:[%s10805_s0 + $0x60] sm:$0xe]  ;;  %6820 = vmatprep.subr.bf16.mxu0 %v7558_v33 }
  0x70   :  { %v913_v27 = vsel %vm8447_vm5, %v6192_v58, %v912_v35  ;;  %v6194_v26 = vrot.slane %v6178_v32, 9  ;;  %v6131_v10 = vcombine.low %v356_v18, %v360_v23  ;;  %v920_v9 = vrot.slane %v8176_v40, 5  ;;  %v8603_v14 = vld [vmem:[%s10805_s0 + $0x68] sm:$0xe]  ;;  %v7563_v40 = vld [vmem:[%s10804_s1 + $0x190] sm:$0xff]  }
  0x71   :  { %v6220_v51 = vcombine.low %v909_v8, %v913_v27  ;;  %v364_v25 = vsel %vm8447_vm5, %v6103_v17, %v363_v24  ;;  %v917_v63 = vsel %vm8447_vm5, %v6193_v52, %v916_v5  ;;  %v6105_v47 = vrot.slane %v294_v55, 9  ;;  %7187 = vmatmul.mubr.bf16.vlgmr.msra.gmra.mrb[32].mxu1 %v6130_v46  ;;  %v7567_v55 = vld [vmem:[%s10804_s1 + $0x1e0] sm:$0xff]   ;;  %v6181_v23 = vld [vmem:[%s10805_s0 + $0x78] sm:$0xe]  ;;  %v298_v8 = vld [vmem:[%s10805_s0 + $0x70] sm:$0xe] }
  0x72   :  { %v371_v54 = vrot.slane %v8194_v12, 5  ;;  %v921_v42 = vsel %vm8447_vm5, %v6194_v26, %v920_v9  ;;  %v6106_v53 = vrot.slane %v295_v36, 9  ;;  %v375_v28 = vrot.slane %v8201_v56, 5  ;;  %7203 = vmatpush3.bf16.msra.mxu1 %v8211_v7  ;;  %6821 = vmatpush3.bf16.msra.mxu0 %v7560_v50  ;;  %v299_v24 = vld [vmem:[%s10805_s0 + $0x78] sm:$0xe]  ;;  %v7568_v27 = vld [vmem:[%s10804_s1 + $0x220] sm:$0xff]  }
  0x73   :  { %v6195_v4 = vrot.slane %v6179_v13, 9  ;;  %v368_v12 = vsel %vm8447_vm5, %v6104_v21, %v367_v43  ;;  %v6221_v46 = vcombine.low %v917_v63, %v921_v42  ;;  %v924_v2 = vrot.slane %v8244_v59, 5  ;;  %7204 = vmatprep.subr.bf16.mxu1 %v7559_v1  ;;  %7190 = vmatprep.mubr.bf16.mxu1 %v6131_v10  ;;  %v7566_v59 = vld [vmem:[%s10804_s1 + $0x198] sm:$0xff]   ;;  %v6183_v50 = vld [vmem:[%s10805_s0 + $0x88] sm:$0xe] }
  0x74   :  { %v6196_v16 = vrot.slane %v6180_v62, 9  ;;  %v372_v56 = vsel %vm8447_vm5, %v6105_v47, %v371_v54  ;;  %v928_v31 = vrot.slane %v8249_v11, 5  ;;  %v6107_v7 = vrot.slane %v8594_v30, 9  ;;  %6822 = vmatprep.subr.bf16.mxu0 %v7561_v60  ;;  %v300_v30 = vld [vmem:[%s10805_s0 + $0x80] sm:$0xe]  ;;  %v7570_v60 = vld [vmem:[%s10804_s1 + $0x1e8] sm:$0xff]  }
  0x75   :  { %v379_v41 = vrot.slane %v8266_v61, 5  ;;  %v376_v33 = vsel %vm8447_vm5, %v6106_v53, %v375_v28  ;;  %v925_v34 = vsel %vm8447_vm5, %v6195_v4, %v924_v2  ;;  %v6108_v18 = vrot.slane %v8603_v14, 9  ;;  %7159 = vmatmul.mubr.bf16.gmra.mrb[36].mxu0 %v6220_v51  ;;  %v7565_v61 = vld [vmem:[%s10804_s1 + $0x218] sm:$0xff]   ;;  %v7572_v54 = vld [vmem:[%s10804_s1 + $0x1a8] sm:$0xff]  }
  0x76   :  { %v383_v0 = vrot.slane %v8281_v48, 5  ;;  %v6132_v11 = vcombine.low %v364_v25, %v368_v12  ;;  %v929_v32 = vsel %vm8447_vm5, %v6196_v16, %v928_v31  ;;  %7205 = vmatpush3.bf16.msra.mxu1 %v7559_v1  ;;  %6823 = vmatpush3.bf16.msra.mxu0 %v7563_v40  ;;  %v6182_v48 = vld [vmem:[%s10805_s0 + $0x80] sm:$0xe]  ;;  %v932_v58 = vrot.slane %v8304_v38, 5  ;;  %v8725_v16 = vld [vmem:[%s10805_s0 + $0x10] sm:$0xf] }
  0x77   :  { %v936_v35 = vrot.slane %v8320_v44, 5  ;;  %7206 = vmatprep.subr.bf16.mxu1 %v7562_v15  ;;  %6824 = vmatprep.subr.bf16.mxu0 %v7564_v37  ;;  %v6133_v17 = vcombine.low %v372_v56, %v376_v33  ;;  %v6222_v36 = vcombine.low %v925_v34, %v929_v32  ;;  %v6197_v13 = vrot.slane %v6181_v23, 9  ;;  %v7569_v38 = vld [vmem:[%s10804_s1 + $0x1a0] sm:$0xff]   ;;  %v7575_v31 = vld [vmem:[%s10804_s1 + $0x1b0] sm:$0xff]   ;;  %v7576_v34 = vld [vmem:[%s10804_s1 + $0x1f8] sm:$0xff]  }
  0x78   :  { %v6198_v1 = vrot.slane %v6182_v48, 9  ;;  %7162 = vmatprep.mubr.bf16.mxu0 %v6221_v46  ;;  %v6109_v44 = vrot.slane %v298_v8, 9  ;;  %v387_v21 = vrot.slane %v8344_v22, 5  ;;  %v6110_v43 = vrot.slane %v299_v24, 9  ;;  %v6184_v22 = vld [vmem:[%s10805_s0 + $0x90] sm:$0xe] }
  0x79   :  { %v391_v62 = vrot.slane %v8360_v20, 5  ;;  %7191 = vmatmul.mubr.bf16.gmra.mrb[36].mxu1 %v6132_v11  ;;  %v933_v52 = vsel %vm8447_vm5, %v6197_v13, %v932_v58  ;;  %v6199_v20 = vrot.slane %v6183_v50, 9  ;;  %v940_v26 = vrot.slane %v8385_v19, 5  ;;  %v301_v19 = vld [vmem:[%s10805_s0 + $0x88] sm:$0xe]  ;;  %v7573_v46 = vld [vmem:[%s10804_s1 + $0x1f0] sm:$0xff]  }
  0x7a   :  { %v937_v5 = vsel %vm8447_vm5, %v6198_v1, %v936_v35  ;;  %7207 = vmatpush3.bf16.msra.mxu1 %v7562_v15  ;;  %6825 = vmatpush3.bf16.msra.mxu0 %v7566_v59  ;;  %v380_v10 = vsel %vm8447_vm5, %v6107_v7, %v379_v41  ;;  %v384_v51 = vsel %vm8447_vm5, %v6108_v18, %v383_v0  ;;  %v6200_v9 = vrot.slane %v6184_v22, 9  ;;  %v8735_v7 = vld [vmem:[%s10805_s0 + $0x18] sm:$0xf]  ;;  %v6289_v41 = vld [vmem:[%s10805_s0 + $0x14] sm:$0x1] }
  0x7b   :  { %7208 = vmatprep.subr.bf16.mxu1 %v7565_v61  ;;  %7194 = vmatprep.mubr.bf16.mxu1 %v6133_v17  ;;  %v6223_v14 = vcombine.low %v933_v52, %v937_v5  ;;  %v388_v25 = vsel %vm8447_vm5, %v6109_v44, %v387_v21  ;;  %v944_v63 = vrot.slane %v8390_v49, 5  ;;  %v6111_v47 = vrot.slane %v300_v30, 9  ;;  %v7571_v49 = vld [vmem:[%s10804_s1 + $0x228] sm:$0xff]   ;;  %v6290_v59 = vld [vmem:[%s10805_s0 + $0x1c] sm:$0x1]  ;;  %v7574_v33 = vld [vmem:[%s10804_s1 + $0x230] sm:$0xff]  }
  0x7c   :  { %6826 = vmatprep.subr.bf16.mxu0 %v7567_v55  ;;  %v392_v15 = vsel %vm8447_vm5, %v6110_v43, %v391_v62  ;;  %v395_v40 = vrot.slane %v8416_v29, 5  ;;  %v6112_v42 = vrot.slane %v301_v19, 9  ;;  %v399_v53 = vrot.slane %v8428_v45, 5  ;;  %v6305_v32 = vld [vmem:[%s10805_s0 + $0x10] sm:$0xe] }
  0x7d   :  { %7163 = vmatmul.mubr.bf16.gmra.mrb[40].mxu0 %v6222_v36  ;;  %v6134_v28 = vcombine.low %v380_v10, %v384_v51  ;;  %v941_v4 = vsel %vm8447_vm5, %v6199_v20, %v940_v26  ;;  %v945_v12 = vsel %vm8447_vm5, %v6200_v9, %v944_v63  ;;  %v6135_v2 = vcombine.low %v388_v25, %v392_v15  ;;  %v6306_v48 = vld [vmem:[%s10805_s0 + $0x18] sm:$0xe]  ;;  %v6291_v8 = vld [vmem:[%s10805_s0 + $0x24] sm:$0x1]  ;;  %v6292_v43 = vld [vmem:[%s10805_s0 + $0x2c] sm:$0x1] }
  0x7e   :  { %7209 = vmatpush3.bf16.msra.mxu1 %v7565_v61  ;;  %6827 = vmatpush3.bf16.msra.mxu0 %v7569_v38  ;;  %v8713_v29 = vsel %vm8447_vm5, %v6111_v47, %v395_v40  ;;  %v8717_v45 = vsel %vm8447_vm5, %v6112_v42, %v399_v53  ;;  %v6224_v37 = vcombine.low %v941_v4, %v945_v12  ;;  %v1816_v18 = vshrl.u32 %v8725_v16, 16  ;;  %v6307_v52 = vld [vmem:[%s10805_s0 + $0x20] sm:$0xe]  ;;  %v6308_v5 = vld [vmem:[%s10805_s0 + $0x28] sm:$0xe]  ;;  %v7578_v20 = vld [vmem:[%s10804_s1 + $0x1b8] sm:$0xff]  }
  0x7f   :  { %7210 = vmatprep.subr.bf16.mxu1 %v7568_v27  ;;  %6828 = vmatprep.subr.bf16.mxu0 %v7570_v60  ;;  %v6136_v56 = vcombine.low %v8713_v29, %v8717_v45  ;;  %v1819_v0 = vshll.u32 %v8725_v16, 16  ;;  %v1825_v11 = vshll.u32 %v6289_v41, 16  ;;  %v1830_v61 = vshrl.u32 %v8735_v7, 16  ;;  %v8781_v60 = vld [vmem:[%s10805_s0 + $0x20] sm:$0xf]  ;;  %v7577_v9 = vld [vmem:[%s10804_s1 + $0x238] sm:$0xff]  }
  0x80   :  { %7166 = vmatprep.mubr.bf16.mxu0 %v6223_v14  ;;  %v1833_v55 = vshll.u32 %v8735_v7, 16  ;;  %v1839_v23 = vshll.u32 %v6290_v59, 16  ;;  %v6321_v58 = vrot.slane %v6305_v32, 9  ;;  %v2089_v35 = vrot.slane %v6289_v41, 5  ;;  %v8791_v25 = vld [vmem:[%s10805_s0 + $0x28] sm:$0xf] }
  0x81   :  { %7195 = vmatmul.mubr.bf16.gmra.mrb[40].mxu1 %v6134_v28  ;;  %v1818_v17 = vrot.slane %v1816_v18, 4  ;;  %v1821_v36 = vrot.slane %v1819_v0, 5  ;;  %v1827_v13 = vrot.slane %v1825_v11, 5  ;;  %v1832_v1 = vrot.slane %v1830_v61, 4  ;;  %v8802_v53 = vld [vmem:[%s10805_s0 + $0x34] sm:$0x1] }
  0x82   :  { %7211 = vmatpush3.bf16.msra.mxu1 %v7568_v27  ;;  %6829 = vmatpush3.bf16.msra.mxu0 %v7572_v54  ;;  %v1835_v24 = vrot.slane %v1833_v55, 5  ;;  %v1841_v38 = vrot.slane %v1839_v23, 5  ;;  %v2090_v44 = vsel %vm8447_vm5, %v6321_v58, %v2089_v35  ;;  %v6322_v21 = vrot.slane %v6306_v48, 9  ;;  %v8807_v28 = vld [vmem:[%s10805_s0 + $0x3c] sm:$0x1] }
  0x83   :  { %7212 = vmatprep.subr.bf16.mxu1 %v7571_v49  ;;  %7198 = vmatprep.mubr.bf16.mxu1 %v6135_v2  ;;  %v1822_v62 = vor.u32 %v1821_v36, %v1818_v17  ;;  %v2093_v50 = vrot.slane %v6290_v59, 5  ;;  %v6337_v27 = vcombine.low %v8725_v16, %v8735_v7  ;;  %v2097_v22 = vrot.slane %v6291_v8, 5  ;;  %v6309_v45 = vld [vmem:[%s10805_s0 + $0x30] sm:$0xe]  ;;  %v6311_v18 = vld [vmem:[%s10805_s0 + $0x40] sm:$0xe] }
  0x84   :  { %6830 = vmatprep.subr.bf16.mxu0 %v7573_v46  ;;  %v1836_v26 = vor.u32 %v1835_v24, %v1832_v1  ;;  %v6323_v30 = vrot.slane %v6307_v52, 9  ;;  %v6324_v10 = vrot.slane %v6308_v5, 9  ;;  %v2101_v51 = vrot.slane %v6292_v43, 5  ;;  %v6310_v46 = vld [vmem:[%s10805_s0 + $0x38] sm:$0xe] }
  0x85   :  { %7167 = vmatmul.mubr.bf16.gmra.mrb[44].mxu0 %v6224_v37  ;;  %v1823_v19 = vrot.slane %v1822_v62, 4  ;;  %v2094_v14 = vsel %vm8447_vm5, %v6322_v21, %v2093_v50  ;;  %v1844_v63 = vshrl.u32 %v8781_v60, 16  ;;  %v1847_v47 = vshll.u32 %v8781_v60, 16  ;;  %v6312_v55 = vld [vmem:[%s10805_s0 + $0x48] sm:$0xe] }
  0x86   :  { %7213 = vmatpush3.bf16.msra.mxu1 %v7571_v49  ;;  %6831 = vmatpush3.bf16.msra.mxu0 %v7575_v31  ;;  %v1837_v54 = vrot.slane %v1836_v26, 4  ;;  %v6353_v15 = vcombine.low %v2090_v44, %v2094_v14  ;;  %v2098_v40 = vsel %vm8447_vm5, %v6323_v30, %v2097_v22  ;;  %v2102_v42 = vsel %vm8447_vm5, %v6324_v10, %v2101_v51  ;;  %v8824_v31 = vld [vmem:[%s10805_s0 + $0x44] sm:$0x1]  ;;  %v8842_v17 = vld [vmem:[%s10805_s0 + $0x30] sm:$0xf] }
  0x87   :  { %7214 = vmatprep.subr.bf16.mxu1 %v7574_v33  ;;  %6832 = vmatprep.subr.bf16.mxu0 %v7576_v34  ;;  %v1828_v49 = vsel %vm7881_vm2, %v1823_v19, %v1827_v13  ;;  %v6354_v4 = vcombine.low %v2098_v40, %v2102_v42  ;;  %v1846_v12 = vrot.slane %v1844_v63, 4  ;;  %v1849_v29 = vrot.slane %v1847_v47, 5  ;;  %v8829_v34 = vld [vmem:[%s10805_s0 + $0x4c] sm:$0x1]  ;;  %v8851_v24 = vld [vmem:[%s10805_s0 + $0x38] sm:$0xf] }
  0x88   :  { %v1842_v2 = vsel %vm7881_vm2, %v1837_v54, %v1841_v38  ;;  %v1853_v16 = vshll.u32 %v6291_v8, 16  ;;  %v1858_v37 = vshrl.u32 %v8791_v25, 16  ;;  %v1867_v59 = vshll.u32 %v6292_v43, 16  ;;  %v8863_v5 = vld [vmem:[%s10805_s0 + $0x64] sm:$0x1] }
  0x89   :  { %7199 = vmatmul.mubr.bf16.gmra.mrb[44].mxu1 %v6136_v56  ;;  %v1861_v56 = vshll.u32 %v8791_v25, 16  ;;  %v6345_v7 = vcombine.low %v1828_v49, %v1842_v2  ;;  %v1850_v41 = vor.u32 %v1849_v29, %v1846_v12  ;;  %v2105_v32 = vrot.slane %v8802_v53, 5  ;;  %v6313_v10 = vld [vmem:[%s10805_s0 + $0x60] sm:$0xe]  ;;  %v8881_v14 = vld [vmem:[%s10805_s0 + $0x6c] sm:$0x1] }
  0x8a   :  { %7215 = vmatpush3.bf16.msra.mxu1 %v7574_v33  ;;  %6833 = vmatpush3.bf16.msra.mxu0 %v7578_v20  ;;  %v6325_v33 = vrot.slane %v6309_v45, 9  ;;  %v1855_v0 = vrot.slane %v1853_v16, 5  ;;  %v1860_v11 = vrot.slane %v1858_v37, 4  ;;  %v1869_v48 = vrot.slane %v1867_v59, 5  ;;  %v8889_v40 = vld [vmem:[%s10805_s0 + $0x74] sm:$0x1] }
  0x8b   :  { %7216 = vmatprep.subr.bf16.mxu1 %v7577_v9  ;;  %7218 = vmatprep.mubr.bf16.mxu1 %v6353_v15  ;;  %v1863_v61 = vrot.slane %v1861_v56, 5  ;;  %v1851_v23 = vrot.slane %v1850_v41, 4  ;;  %v6326_v58 = vrot.slane %v6310_v46, 9  ;;  %v2109_v35 = vrot.slane %v8807_v28, 5  ;;  %v6315_v42 = vld [vmem:[%s10805_s0 + $0x70] sm:$0xe] }
  0x8c   :  { %2487 = vmatprep.mubr.bf16.mxu0 %v6345_v7  ;;  %v2106_v13 = vsel %vm8447_vm5, %v6325_v33, %v2105_v32  ;;  %v6338_v1 = vcombine.low %v8781_v60, %v8791_v25  ;;  %v6327_v8 = vrot.slane %v6311_v18, 9  ;;  %v2113_v21 = vrot.slane %v8824_v31, 5  ;;  %v6314_v25 = vld [vmem:[%s10805_s0 + $0x68] sm:$0xe]  ;;  %v8898_v29 = vld [vmem:[%s10805_s0 + $0x7c] sm:$0x1] }
  0x8d   :  { %2488 = vmatmul.mubr.bf16.vlgmr.msra.gmra.mrb[48].mxu0 %v6337_v27  ;;  %v1864_v36 = vor.u32 %v1863_v61, %v1860_v11  ;;  %v1856_v38 = vsel %vm7881_vm2, %v1851_v23, %v1855_v0  ;;  %v2110_v44 = vsel %vm8447_vm5, %v6326_v58, %v2109_v35  ;;  %v6328_v43 = vrot.slane %v6312_v55, 9  ;;  %v6316_v37 = vld [vmem:[%s10805_s0 + $0x78] sm:$0xe]  ;;  %v8910_v59 = vld [vmem:[%s10805_s0 + $0x40] sm:$0xf] }
  0x8e   :  { %7217 = vmatpush3.bf16.msra.mxu1 %v7577_v9  ;;  %v6355_v50 = vcombine.low %v2106_v13, %v2110_v44  ;;  %v2117_v27 = vrot.slane %v8829_v34, 5  ;;  %v1872_v52 = vshrl.u32 %v8842_v17, 16  ;;  %v2114_v22 = vsel %vm8447_vm5, %v6327_v8, %v2113_v21  ;;  %v8920_v61 = vld [vmem:[%s10805_s0 + $0x48] sm:$0xf]  ;;  %v8932_v13 = vld [vmem:[%s10805_s0 + $0x84] sm:$0x1] }
  0x8f   :  { %v1865_v62 = vrot.slane %v1864_v36, 4  ;;  %v1875_v20 = vshll.u32 %v8842_v17, 16  ;;  %v1881_v26 = vshll.u32 %v8802_v53, 16  ;;  %v1886_v30 = vshrl.u32 %v8851_v24, 16  ;;  %v6317_v21 = vld [vmem:[%s10805_s0 + $0x80] sm:$0xe] }
  0x90   :  { %v2118_v60 = vsel %vm8447_vm5, %v6328_v43, %v2117_v27  ;;  %v1874_v9 = vrot.slane %v1872_v52, 4  ;;  %v1889_v19 = vshll.u32 %v8851_v24, 16  ;;  %v6329_v12 = vrot.slane %v6313_v10, 9  ;;  %v6318_v43 = vld [vmem:[%s10805_s0 + $0x88] sm:$0xe] }
  0x91   :  { %7219 = vmatmul.mubr.bf16.vlgmr.msra.gmra.mrb[32].mxu1 %v6354_v4  ;;  %v1870_v51 = vsel %vm7881_vm2, %v1865_v62, %v1869_v48  ;;  %v6356_v47 = vcombine.low %v2114_v22, %v2118_v60  ;;  %v1877_v54 = vrot.slane %v1875_v20, 5  ;;  %v1883_v15 = vrot.slane %v1881_v26, 5  ;;  %v8954_v22 = vld [vmem:[%s10805_s0 + $0x94] sm:$0x1] }
  0x92   :  { %7222 = vmatprep.mubr.bf16.mxu1 %v6355_v50  ;;  %v6346_v63 = vcombine.low %v1856_v38, %v1870_v51  ;;  %v1888_v53 = vrot.slane %v1886_v30, 4  ;;  %v1891_v49 = vrot.slane %v1889_v19, 5  ;;  %v1895_v4 = vshll.u32 %v8807_v28, 16  ;;  %v6319_v51 = vld [vmem:[%s10805_s0 + $0x90] sm:$0xe] }
  0x93   :  { %v1878_v45 = vor.u32 %v1877_v54, %v1874_v9  ;;  %v2121_v46 = vrot.slane %v8863_v5, 5  ;;  %v6330_v2 = vrot.slane %v6314_v25, 9  ;;  %v2125_v16 = vrot.slane %v8881_v14, 5 }
  0x94   :  { %2495 = vmatprep.mubr.bf16.mxu0 %v6346_v63  ;;  %v1892_v56 = vor.u32 %v1891_v49, %v1888_v53  ;;  %v1897_v28 = vrot.slane %v1895_v4, 5  ;;  %v6339_v7 = vcombine.low %v8842_v17, %v8851_v24  ;;  %v6331_v41 = vrot.slane %v6315_v42, 9  ;;  %v6320_v63 = vld [vmem:[%s10805_s0 + $0x98] sm:$0xe] }
  0x95   :  { %2496 = vmatmul.mubr.bf16.gmra.mrb[52].mxu0 %v6338_v1  ;;  %v1879_v33 = vrot.slane %v1878_v45, 4  ;;  %v2122_v18 = vsel %vm8447_vm5, %v6329_v12, %v2121_v46  ;;  %v2126_v0 = vsel %vm8447_vm5, %v6330_v2, %v2125_v16  ;;  %v2129_v11 = vrot.slane %v8889_v40, 5  ;;  %v8937_v1 = vld [vmem:[%s10805_s0 + $0x8c] sm:$0x1]  ;;  %v8985_v16 = vld [vmem:[%s10805_s0 + $0x68] sm:$0xf] }
  0x96   :  { %v1893_v32 = vrot.slane %v1892_v56, 4  ;;  %v6357_v55 = vcombine.low %v2122_v18, %v2126_v0  ;;  %v6332_v23 = vrot.slane %v6316_v37, 9  ;;  %v2133_v48 = vrot.slane %v8898_v29, 5 }
  0x97   :  { %v1884_v58 = vsel %vm7881_vm2, %v1879_v33, %v1883_v15  ;;  %v2130_v35 = vsel %vm8447_vm5, %v6331_v41, %v2129_v11  ;;  %v1900_v17 = vshrl.u32 %v8910_v59, 16  ;;  %v1903_v36 = vshll.u32 %v8910_v59, 16 }
  0x98   :  { %v1898_v8 = vsel %vm7881_vm2, %v1893_v32, %v1897_v28  ;;  %v2134_v24 = vsel %vm8447_vm5, %v6332_v23, %v2133_v48  ;;  %v1909_v38 = vshll.u32 %v8824_v31, 16  ;;  %v1914_v44 = vshrl.u32 %v8920_v61, 16  ;;  %v8959_v31 = vld [vmem:[%s10805_s0 + $0x9c] sm:$0x1]  ;;  %v9003_v48 = vld [vmem:[%s10805_s0 + $0x70] sm:$0xf] }
  0x99   :  { %7223 = vmatmul.mubr.bf16.gmra.mrb[36].mxu1 %v6356_v47  ;;  %v6347_v62 = vcombine.low %v1884_v58, %v1898_v8  ;;  %v6358_v50 = vcombine.low %v2130_v35, %v2134_v24  ;;  %v1902_v27 = vrot.slane %v1900_v17, 4  ;;  %v1905_v52 = vrot.slane %v1903_v36, 5 }
  0x9a   :  { %7226 = vmatprep.mubr.bf16.mxu1 %v6357_v55  ;;  %v1911_v20 = vrot.slane %v1909_v38, 5  ;;  %v1916_v26 = vrot.slane %v1914_v44, 4  ;;  %v1917_v30 = vshll.u32 %v8920_v61, 16  ;;  %v1923_v10 = vshll.u32 %v8829_v34, 16  ;;  %v8974_v34 = vld [vmem:[%s10805_s0 + $0x60] sm:$0xf] }
  0x9b   :  { %2503 = vmatprep.mubr.bf16.mxu0 %v6347_v62  ;;  %v1906_v60 = vor.u32 %v1905_v52, %v1902_v27  ;;  %v6333_v9 = vrot.slane %v6317_v21, 9  ;;  %v2137_v19 = vrot.slane %v8932_v13, 5  ;;  %v6334_v25 = vrot.slane %v6318_v43, 9 }
  0x9c   :  { %v1919_v47 = vrot.slane %v1917_v30, 5  ;;  %v1925_v54 = vrot.slane %v1923_v10, 5  ;;  %v2141_v15 = vrot.slane %v8937_v1, 5  ;;  %v6335_v49 = vrot.slane %v6319_v51, 9  ;;  %v9022_v10 = vld [vmem:[%s10805_s0 + $0x80] sm:$0xf] }
  0x9d   :  { %2504 = vmatmul.mubr.bf16.gmra.mrb[56].mxu0 %v6339_v7  ;;  %v1907_v42 = vrot.slane %v1906_v60, 4  ;;  %v2138_v53 = vsel %vm8447_vm5, %v6333_v9, %v2137_v19  ;;  %v2145_v4 = vrot.slane %v8954_v22, 5  ;;  %v6336_v46 = vrot.slane %v6320_v63, 9  ;;  %v6286_v19 = vld [vmem:[%s10805_s0 + $0x88] sm:$0xf] }
  0x9e   :  { %v1920_v12 = vor.u32 %v1919_v47, %v1916_v26  ;;  %v2142_v45 = vsel %vm8447_vm5, %v6334_v25, %v2141_v15  ;;  %v2149_v2 = vrot.slane %v8959_v31, 5  ;;  %v1928_v7 = vshrl.u32 %v8974_v34, 16 }
  0x9f   :  { %v1912_v37 = vsel %vm7881_vm2, %v1907_v42, %v1911_v20  ;;  %v6359_v56 = vcombine.low %v2138_v53, %v2142_v45  ;;  %v2146_v28 = vsel %vm8447_vm5, %v6335_v49, %v2145_v4  ;;  %v1931_v18 = vshll.u32 %v8974_v34, 16 }
  0xa0   :  { %v1921_v41 = vrot.slane %v1920_v12, 4  ;;  %v2150_v33 = vsel %vm8447_vm5, %v6336_v46, %v2149_v2  ;;  %v1937_v0 = vshll.u32 %v8863_v5, 16  ;;  %v6340_v11 = vcombine.low %v8910_v59, %v8920_v61  ;;  %v9011_v59 = vld [vmem:[%s10805_s0 + $0x78] sm:$0xf] }
  0xa1   :  { %7227 = vmatmul.mubr.bf16.gmra.mrb[40].mxu1 %v6358_v50  ;;  %v1930_v32 = vrot.slane %v1928_v7, 4  ;;  %v1942_v55 = vshrl.u32 %v8985_v16, 16  ;;  %v1945_v23 = vshll.u32 %v8985_v16, 16  ;;  %v6360_v35 = vcombine.low %v2146_v28, %v2150_v33 }
  0xa2   :  { %7230 = vmatprep.mubr.bf16.mxu1 %v6359_v56  ;;  %v1926_v58 = vsel %vm7881_vm2, %v1921_v41, %v1925_v54  ;;  %v1933_v17 = vrot.slane %v1931_v18, 5  ;;  %v1951_v5 = vshll.u32 %v8881_v14, 16  ;;  %v1939_v36 = vrot.slane %v1937_v0, 5 }
  0xa3   :  { %v6348_v61 = vcombine.low %v1912_v37, %v1926_v58  ;;  %v1944_v8 = vrot.slane %v1942_v55, 4  ;;  %v1947_v24 = vrot.slane %v1945_v23, 5  ;;  %v1956_v21 = vshrl.u32 %v9003_v48, 16  ;;  %v6287_v37 = vld [vmem:[%s10805_s0 + $0x90] sm:$0xf] }
  0xa4   :  { %v1934_v38 = vor.u32 %v1933_v17, %v1930_v32  ;;  %v1953_v44 = vrot.slane %v1951_v5, 5  ;;  %v1959_v43 = vshll.u32 %v9003_v48, 16  ;;  %v1965_v50 = vshll.u32 %v8889_v40, 16 }
  0xa5   :  { %2511 = vmatprep.mubr.bf16.mxu0 %v6348_v61  ;;  %v1948_v62 = vor.u32 %v1947_v24, %v1944_v8  ;;  %v1970_v14 = vshrl.u32 %v9011_v59, 16  ;;  %v1973_v27 = vshll.u32 %v9011_v59, 16  ;;  %v1958_v20 = vrot.slane %v1956_v21, 4 }
  0xa6   :  { %2512 = vmatmul.mubr.bf16.gmra.mrb[60].mxu0 %v6340_v11  ;;  %v1935_v52 = vrot.slane %v1934_v38, 4  ;;  %v1961_v26 = vrot.slane %v1959_v43, 5  ;;  %v1979_v30 = vshll.u32 %v8898_v29, 16  ;;  %v6341_v40 = vcombine.low %v8974_v34, %v8985_v16 }
  0xa7   :  { %v1949_v51 = vrot.slane %v1948_v62, 4  ;;  %v1972_v60 = vrot.slane %v1970_v14, 4  ;;  %v1975_v9 = vrot.slane %v1973_v27, 5  ;;  %v1967_v63 = vrot.slane %v1965_v50, 5 }
  0xa8   :  { %v1940_v25 = vsel %vm7881_vm2, %v1935_v52, %v1939_v36  ;;  %v1962_v29 = vor.u32 %v1961_v26, %v1958_v20  ;;  %v1981_v47 = vrot.slane %v1979_v30, 5  ;;  %v1984_v42 = vshrl.u32 %v9022_v10, 16 }
  0xa9   :  { %7231 = vmatmul.mubr.bf16.gmra.mrb[44].mxu1 %v6360_v35  ;;  %v1954_v54 = vsel %vm7881_vm2, %v1949_v51, %v1953_v44  ;;  %v1976_v15 = vor.u32 %v1975_v9, %v1972_v60  ;;  %v1987_v34 = vshll.u32 %v9022_v10, 16  ;;  %v1993_v4 = vshll.u32 %v8932_v13, 16  ;;  %v6288_v13 = vld [vmem:[%s10805_s0 + $0x98] sm:$0xf] }
  0xaa   :  { %v6349_v53 = vcombine.low %v1940_v25, %v1954_v54  ;;  %v1963_v49 = vrot.slane %v1962_v29, 4  ;;  %v1998_v12 = vshrl.u32 %v6286_v19, 16  ;;  %v1986_v46 = vrot.slane %v1984_v42, 4 }
  0xab   :  { %v1977_v45 = vrot.slane %v1976_v15, 4  ;;  %v1989_v2 = vrot.slane %v1987_v34, 5  ;;  %v2001_v16 = vshll.u32 %v6286_v19, 16  ;;  %v2007_v7 = vshll.u32 %v8937_v1, 16 }
  0xac   :  { %2519 = vmatprep.mubr.bf16.mxu0 %v6349_v53  ;;  %v1968_v56 = vsel %vm7881_vm2, %v1963_v49, %v1967_v63  ;;  %v2000_v28 = vrot.slane %v1998_v12, 4  ;;  %v1995_v18 = vrot.slane %v1993_v4, 5  ;;  %v2012_v55 = vshrl.u32 %v6287_v37, 16 }
  0xad   :  { %v1982_v41 = vsel %vm7881_vm2, %v1977_v45, %v1981_v47  ;;  %v1990_v33 = vor.u32 %v1989_v2, %v1986_v46  ;;  %v2003_v0 = vrot.slane %v2001_v16, 5  ;;  %v2009_v32 = vrot.slane %v2007_v7, 5 }
  0xae   :  { %2520 = vmatmul.mubr.bf16.gmra.mrb[64].mxu0 %v6341_v40  ;;  %v6350_v11 = vcombine.low %v1968_v56, %v1982_v41  ;;  %v2015_v23 = vshll.u32 %v6287_v37, 16  ;;  %v2021_v17 = vshll.u32 %v8954_v22, 16  ;;  %v2026_v1 = vshrl.u32 %v6288_v13, 16 }
  0xaf   :  { %v1991_v58 = vrot.slane %v1990_v33, 4  ;;  %v2004_v35 = vor.u32 %v2003_v0, %v2000_v28  ;;  %v2014_v5 = vrot.slane %v2012_v55, 4  ;;  %v2029_v36 = vshll.u32 %v6288_v13, 16 }
  0xb0   :  { %2527 = vmatprep.mubr.bf16.mxu0 %v6350_v11  ;;  %v2017_v61 = vrot.slane %v2015_v23, 5  ;;  %v2035_v8 = vshll.u32 %v8959_v31, 16  ;;  %v2028_v44 = vrot.slane %v2026_v1, 4  ;;  %v6342_v21 = vcombine.low %v9003_v48, %v9011_v59 }
  0xb1   :  { %v1996_v24 = vsel %vm7881_vm2, %v1991_v58, %v1995_v18  ;;  %v2005_v38 = vrot.slane %v2004_v35, 4  ;;  %v2031_v62 = vrot.slane %v2029_v36, 5  ;;  %v2023_v50 = vrot.slane %v2021_v17, 5 }
  0xb2   :  { %v2018_v43 = vor.u32 %v2017_v61, %v2014_v5  ;;  %v2037_v20 = vrot.slane %v2035_v8, 5  ;;  %v6343_v48 = vcombine.low %v9022_v10, %v6286_v19  ;;  %v6344_v51 = vcombine.low %v6287_v37, %v6288_v13 }
  0xb3   :  { %v2010_v22 = vsel %vm7881_vm2, %v2005_v38, %v2009_v32  ;;  %v2032_v52 = vor.u32 %v2031_v62, %v2028_v44 }
  0xb4   :  { %v6351_v14 = vcombine.low %v1996_v24, %v2010_v22  ;;  %v2019_v27 = vrot.slane %v2018_v43, 4 }
  0xb5   :  { %v2033_v31 = vrot.slane %v2032_v52, 4 }
  0xb6   :  { %2528 = vmatmul.mubr.bf16.gmra.mrb[68].mxu0 %v6342_v21  ;;  %v2024_v26 = vsel %vm7881_vm2, %v2019_v27, %v2023_v50 }
  0xb7   :  { %2535 = vmatprep.mubr.bf16.mxu0 %v6351_v14  ;;  %v2038_v30 = vsel %vm7881_vm2, %v2033_v31, %v2037_v20 }
  0xb8   :  { %v6352_v59 = vcombine.low %v2024_v26, %v2038_v30 }
  0xbe   :  { %2536 = vmatmul.mubr.bf16.gmra.mrb[72].mxu0 %v6343_v48 }
  0xbf   :  { %2543 = vmatprep.mubr.bf16.mxu0 %v6352_v59 }
  0xc6   :  { %2544 = vmatmul.mubr.bf16.gmra.mrb[76].mxu0 %v6344_v51 }
  0xf6   :  { %v6674_v40 = vpop.f32.mrb[0].mxu0 }
  0xf7   :  { %v6675_v60 = vpop.f32.mrb[1].mxu0  ;;  %v6754_v47 = vpop.f32.mrb[0].mxu1 }
  0xf8   :  { %v9060_v9 = vadd.f32 %v6675_v60, %v6674_v40  ;;  %v6677_v25 = vpop.f32.mrb[2].mxu0  ;;  %v6755_v54 = vpop.f32.mrb[1].mxu1 }
  0xf9   :  { %v6678_v29 = vpop.f32.mrb[3].mxu0  ;;  %v9064_v15 = vadd.f32 %v6755_v54, %v6754_v47  ;;  %v6757_v42 = vpop.f32.mrb[2].mxu1 }
  0xfa   :  { %v9062_v63 = vadd.f32 %v6678_v29, %v6677_v25  ;;  %v6758_v34 = vpop.f32.mrb[3].mxu1 }
  0xfb   :  { %v9066_v10 = vadd.f32 %v6758_v34, %v6757_v42 }
  0xfe   :  { %v6680_v19 = vpop.f32.mrb[4].mxu0 }
  0xff   :  { %v6681_v53 = vpop.f32.mrb[5].mxu0 }
 0x100   :  { %v9068_v49 = vadd.f32 %v6681_v53, %v6680_v19  ;;  %v6683_v4 = vpop.f32.mrb[6].mxu0 }
 0x101   :  { %v6684_v12 = vpop.f32.mrb[7].mxu0 }
 0x102   :  { %v9070_v45 = vadd.f32 %v6684_v12, %v6683_v4  ;;  %v6760_v46 = vpop.f32.mrb[4].mxu1 }
 0x103   :  { %v6761_v2 = vpop.f32.mrb[5].mxu1 }
 0x104   :  { %v9072_v16 = vadd.f32 %v6761_v2, %v6760_v46  ;;  %v6763_v37 = vpop.f32.mrb[6].mxu1 }
 0x105   :  { %v6764_v56 = vpop.f32.mrb[7].mxu1 }
 0x106   :  { %v9074_v28 = vadd.f32 %v6764_v56, %v6763_v37 }
 0x108   :  { %v6686_v7 = vpop.f32.mrb[8].mxu0 }
 0x109   :  { %v6687_v13 = vpop.f32.mrb[9].mxu0 }
 0x10a   :  { %v9076_v41 = vadd.f32 %v6687_v13, %v6686_v7  ;;  %v6689_v33 = vpop.f32.mrb[10].mxu0 }
 0x10b   :  { %v6690_v18 = vpop.f32.mrb[11].mxu0  ;;  %v6766_v11 = vpop.f32.mrb[8].mxu1 }
 0x10c   :  { %v9078_v0 = vadd.f32 %v6690_v18, %v6689_v33  ;;  %v6767_v32 = vpop.f32.mrb[9].mxu1 }
 0x10d   :  { %v9080_v55 = vadd.f32 %v6767_v32, %v6766_v11  ;;  %v6769_v23 = vpop.f32.mrb[10].mxu1 }
 0x10e   :  { %v6770_v58 = vpop.f32.mrb[11].mxu1 }
 0x10f   :  { %v9082_v35 = vadd.f32 %v6770_v58, %v6769_v23 }
 0x114   :  { %v6692_v17 = vpop.f32.mrb[12].mxu0 }
 0x115   :  { %v6693_v1 = vpop.f32.mrb[13].mxu0 }
 0x116   :  { %v9084_v5 = vadd.f32 %v6693_v1, %v6692_v17  ;;  %v6695_v61 = vpop.f32.mrb[14].mxu0  ;;  %v6772_v24 = vpop.f32.mrb[12].mxu1 }
 0x117   :  { %v6696_v36 = vpop.f32.mrb[15].mxu0  ;;  %v6773_v38 = vpop.f32.mrb[13].mxu1 }
 0x118   :  { %v9086_v8 = vadd.f32 %v6696_v36, %v6695_v61  ;;  %v9088_v44 = vadd.f32 %v6773_v38, %v6772_v24  ;;  %v6775_v21 = vpop.f32.mrb[14].mxu1 }
 0x119   :  { %v6776_v43 = vpop.f32.mrb[15].mxu1 }
 0x11a   :  { %v9090_v62 = vadd.f32 %v6776_v43, %v6775_v21 }
 0x11c   :  { %v6698_v22 = vpop.f32.mrb[16].mxu0 }
 0x11d   :  { %v6699_v50 = vpop.f32.mrb[17].mxu0 }
 0x11e   :  { %v9092_v14 = vadd.f32 %v6699_v50, %v6698_v22  ;;  %v6701_v27 = vpop.f32.mrb[18].mxu0 }
 0x11f   :  { %v6702_v52 = vpop.f32.mrb[19].mxu0 }
 0x120   :  { %v9094_v20 = vadd.f32 %v6702_v52, %v6701_v27  ;;  %v6778_v31 = vpop.f32.mrb[16].mxu1 }
 0x121   :  { %v6779_v26 = vpop.f32.mrb[17].mxu1 }
 0x122   :  { %v9096_v30 = vadd.f32 %v6779_v26, %v6778_v31  ;;  %v6781_v48 = vpop.f32.mrb[18].mxu1 }
 0x123   :  { %v6782_v59 = vpop.f32.mrb[19].mxu1 }
 0x124   :  { %v9098_v51 = vadd.f32 %v6782_v59, %v6781_v48 }
 0x125   :  { %v6704_v40 = vpop.f32.mrb[20].mxu0 }
 0x126   :  { %v6705_v60 = vpop.f32.mrb[21].mxu0 }
 0x127   :  { %v9100_v25 = vadd.f32 %v6705_v60, %v6704_v40  ;;  %v6707_v29 = vpop.f32.mrb[22].mxu0 }
 0x128   :  { %v6708_v47 = vpop.f32.mrb[23].mxu0 }
 0x129   :  { %v9102_v54 = vadd.f32 %v6708_v47, %v6707_v29  ;;  %v6784_v42 = vpop.f32.mrb[20].mxu1 }
 0x12a   :  { %v6785_v34 = vpop.f32.mrb[21].mxu1 }
 0x12b   :  { %v9104_v19 = vadd.f32 %v6785_v34, %v6784_v42  ;;  %v6787_v53 = vpop.f32.mrb[22].mxu1 }
 0x12c   :  { %v6788_v4 = vpop.f32.mrb[23].mxu1 }
 0x12d   :  { %v9106_v12 = vadd.f32 %v6788_v4, %v6787_v53  ;;  %v6710_v46 = vpop.f32.mrb[24].mxu0 }
 0x12e   :  { %v6711_v2 = vpop.f32.mrb[25].mxu0 }
 0x12f   :  { %v9108_v37 = vadd.f32 %v6711_v2, %v6710_v46  ;;  %v6713_v56 = vpop.f32.mrb[26].mxu0 }
 0x130   :  { %v6714_v7 = vpop.f32.mrb[27].mxu0 }
 0x131   :  { %v9110_v13 = vadd.f32 %v6714_v7, %v6713_v56 }
 0x133   :  { %v6790_v33 = vpop.f32.mrb[24].mxu1 }
 0x134   :  { %v6791_v18 = vpop.f32.mrb[25].mxu1 }
 0x135   :  { %v9112_v11 = vadd.f32 %v6791_v18, %v6790_v33  ;;  %v6793_v32 = vpop.f32.mrb[26].mxu1  ;;  %v2897_v18 = vld [vmem:[#allocation2 + $0x90] sm:$0x1] }
 0x136   :  { %v6794_v23 = vpop.f32.mrb[27].mxu1 }
 0x137   :  { %v9114_v58 = vadd.f32 %v6794_v23, %v6793_v32 }
 0x138   :  { %v6716_v17 = vpop.f32.mrb[28].mxu0 }
 0x139   :  { %v6717_v1 = vpop.f32.mrb[29].mxu0 }
 0x13a   :  { %v9116_v61 = vadd.f32 %v6717_v1, %v6716_v17  ;;  %v6719_v36 = vpop.f32.mrb[30].mxu0  ;;  %v2947_v1 = vld [vmem:[#allocation2 + $0x94] sm:$0x1] }
 0x13b   :  { %v6720_v24 = vpop.f32.mrb[31].mxu0 }
 0x13c   :  { %v9118_v38 = vadd.f32 %v6720_v24, %v6719_v36  ;;  %v6796_v21 = vpop.f32.mrb[28].mxu1 }
 0x13d   :  { %v6797_v43 = vpop.f32.mrb[29].mxu1 }
 0x13e   :  { %v9120_v22 = vadd.f32 %v6797_v43, %v6796_v21  ;;  %v6799_v50 = vpop.f32.mrb[30].mxu1  ;;  %v7591_v21 = vld [vmem:[%s10806_s4 + $0x108] sm:$0xff]  }
 0x13f   :  { %v6800_v27 = vpop.f32.mrb[31].mxu1 }
 0x140   :  { %v7156_v52 = vpop.f32.mrb[32].mxu0  ;;  %v9122_v31 = vadd.f32 %v6800_v27, %v6799_v50 }
 0x141   :  { %v1390_v26 = vadd.f32 %v7156_v52, %v9068_v49  ;;  %v1381_v48 = vpop.f32.mrb[33].mxu0  ;;  %v7595_v52 = vld [vmem:[%s10806_s4 + $0x110] sm:$0xff]  }
 0x142   :  { %v1382_v59 = vadd.f32 %v9060_v9, %v1381_v48  ;;  %v7157_v40 = vpop.f32.mrb[34].mxu0 }
 0x143   :  { %v9127_v60 = vadd.f32 %v9072_v16, %v1390_v26  ;;  %v1393_v29 = vadd.f32 %v7157_v40, %v9070_v45  ;;  %v1384_v47 = vpop.f32.mrb[35].mxu0 }
 0x144   :  { %v9131_v42 = vadd.f32 %v9064_v15, %v1382_v59  ;;  %v1385_v34 = vadd.f32 %v9062_v63, %v1384_v47  ;;  %v7589_v15 = vld [vmem:[%s10806_s4 + $0x140] sm:$0xff]  }
 0x145   :  { %v9135_v53 = vadd.f32 %v9074_v28, %v1393_v29  ;;  %7234 = vmatprep.subr.bf16.mxu1 %v7589_v15  ;;  %v7597_v29 = vld [vmem:[%s10806_s4 + $0x160] sm:$0xff]  }
 0x146   :  { %v9138_v49 = vadd.f32 %v9066_v10, %v1385_v34  ;;  %7235 = vmatpush3.bf16.msra.mxu1 %v7589_v15 }
 0x148   :  { %v7160_v4 = vpop.f32.mrb[36].mxu0 }
 0x149   :  { %v1406_v9 = vadd.f32 %v7160_v4, %v9084_v5  ;;  %v1397_v46 = vpop.f32.mrb[37].mxu0 }
 0x14a   :  { %v1398_v16 = vadd.f32 %v9076_v41, %v1397_v46  ;;  %v7161_v2 = vpop.f32.mrb[38].mxu0 }
 0x14b   :  { %v9146_v45 = vadd.f32 %v9088_v44, %v1406_v9  ;;  %v1409_v63 = vadd.f32 %v7161_v2, %v9086_v8  ;;  %v1400_v28 = vpop.f32.mrb[39].mxu0  ;;  %v7590_v44 = vld [vmem:[%s10806_s4 + $0x148] sm:$0xff]  }
 0x14c   :  { %v9150_v10 = vadd.f32 %v9080_v55, %v1398_v16  ;;  %v1401_v56 = vadd.f32 %v9078_v0, %v1400_v28  ;;  %v7587_v55 = vld [vmem:[%s10806_s4 + $0x100] sm:$0xff]   ;;  %7236 = vmatprep.subr.bf16.mxu1 %v7590_v44  ;;  %v7603_v16 = vld [vmem:[%s10806_s4 + $0x170] sm:$0xff]  }
 0x14d   :  { %v9154_v5 = vadd.f32 %v9090_v62, %v1409_v63  ;;  %v7588_v62 = vld [vmem:[%s10806_s4 + $0xc0] sm:$0xff]   ;;  %7237 = vmatpush3.bf16.msra.mxu1 %v7590_v44  ;;  %6898 = vmatprep.subr.bf16.mxu0 %v7587_v55  ;;  %v7605_v63 = vld [vmem:[%s10806_s4 + $0xe8] sm:$0xff]   ;;  %v7606_v44 = vld [vmem:[%s10806_s4 + $0x178] sm:$0xff]  }
 0x14e   :  { %v9157_v41 = vadd.f32 %v9082_v35, %v1401_v56  ;;  %6899 = vmatpush3.bf16.msra.mxu0 %v7588_v62 }
 0x14f   :  { %6900 = vmatprep.subr.bf16.mxu0 %v7591_v21 }
 0x150   :  { %v7164_v7 = vpop.f32.mrb[40].mxu0 }
 0x151   :  { %v1422_v0 = vadd.f32 %v7164_v7, %v9100_v25  ;;  %v1413_v8 = vpop.f32.mrb[41].mxu0  ;;  %v2852_v7 = vld [vmem:[#allocation2 + $0x8] sm:$0x1] }
 0x152   :  { %v1414_v35 = vadd.f32 %v9092_v14, %v1413_v8  ;;  %v7165_v33 = vpop.f32.mrb[42].mxu0  ;;  %v7593_v14 = vld [vmem:[%s10806_s4 + $0x150] sm:$0xff]   ;;  %v2853_v62 = vsel %vm9175_vm8, 0, %v2852_v7 }
 0x153   :  { %v9171_v32 = vadd.f32 %v9104_v19, %v1422_v0  ;;  %v1425_v23 = vadd.f32 %v7165_v33, %v9102_v54  ;;  %v1416_v17 = vpop.f32.mrb[43].mxu0  ;;  %v2898_v54 = vsel %vm9175_vm8, 0, %v2897_v18  ;;  %7238 = vmatprep.subr.bf16.mxu1 %v7593_v14  ;;  %v7607_v8 = vld [vmem:[%s10806_s4 + $0x130] sm:$0xff]   ;;  %2854 = vst [vmem:[#allocation2 + $0x8] sm:$0x1] %v2853_v62  ;;  %v7609_v62 = vld [vmem:[%s10806_s4 + $0x80] sm:$0xff]  }
 0x154   :  { %v9183_v36 = vadd.f32 %v9096_v30, %v1414_v35  ;;  %v1417_v19 = vadd.f32 %v9094_v20, %v1416_v17  ;;  %2899 = vst [vmem:[#allocation2 + $0x90] sm:$0x1] %v2898_v54  ;;  %v2948_v20 = vsel %vm9190_vm10, 0, %v2947_v1  ;;  %v7592_v30 = vld [vmem:[%s10806_s4 + $0xc8] sm:$0xff]   ;;  %7239 = vmatpush3.bf16.msra.mxu1 %v7593_v14  ;;  %v2855_v35 = vld [vmem:[#allocation2 + $0x10] sm:$0x1] }
 0x155   :  { %v9198_v43 = vadd.f32 %v9106_v12, %v1425_v23  ;;  %2949 = vst [vmem:[#allocation2 + $0x94] sm:$0x1] %v2948_v20  ;;  %v7594_v12 = vld [vmem:[%s10806_s4 + $0x158] sm:$0xff]   ;;  %6901 = vmatpush3.bf16.msra.mxu0 %v7592_v30  ;;  %v2856_v17 = vsel %vm9175_vm8, 0, %v2855_v35  ;;  %v2902_v1 = vld [vmem:[#allocation2 + $0xc] sm:$0x1] }
 0x156   :  { %v9206_v50 = vadd.f32 %v9098_v51, %v1417_v19  ;;  %7240 = vmatprep.subr.bf16.mxu1 %v7594_v12  ;;  %v7596_v51 = vld [vmem:[%s10806_s4 + $0xd0] sm:$0xff]   ;;  %6902 = vmatprep.subr.bf16.mxu0 %v7595_v52  ;;  %2857 = vst [vmem:[#allocation2 + $0x10] sm:$0x1] %v2856_v17  ;;  %v2903_v21 = vsel %vm9190_vm10, 0, %v2902_v1  ;;  %v2858_v20 = vld [vmem:[#allocation2 + $0x18] sm:$0x1] }
 0x157   :  { %v2905_v14 = vld [vmem:[#allocation2 + $0x14] sm:$0x1]  ;;  %2904 = vst [vmem:[#allocation2 + $0xc] sm:$0x1] %v2903_v21  ;;  %v2859_v52 = vsel %vm9175_vm8, 0, %v2858_v20 }
 0x158   :  { %v7168_v27 = vpop.f32.mrb[44].mxu0  ;;  %7241 = vmatpush3.bf16.msra.mxu1 %v7594_v12  ;;  %v7608_v54 = vld [vmem:[%s10806_s4 + $0xf0] sm:$0xff]   ;;  %2860 = vst [vmem:[#allocation2 + $0x18] sm:$0x1] %v2859_v52 }
 0x159   :  { %v1438_v26 = vadd.f32 %v7168_v27, %v9116_v61  ;;  %v1429_v48 = vpop.f32.mrb[45].mxu0  ;;  %6903 = vmatpush3.bf16.msra.mxu0 %v7596_v51  ;;  %7242 = vmatprep.subr.bf16.mxu1 %v7597_v29 }
 0x15a   :  { %v1430_v59 = vadd.f32 %v9108_v37, %v1429_v48  ;;  %v7169_v40 = vpop.f32.mrb[46].mxu0  ;;  %v7598_v37 = vld [vmem:[%s10806_s4 + $0x118] sm:$0xff]  }
 0x15b   :  { %v9223_v47 = vadd.f32 %v9120_v22, %v1438_v26  ;;  %v1441_v34 = vadd.f32 %v7169_v40, %v9118_v38  ;;  %v1432_v61 = vpop.f32.mrb[47].mxu0  ;;  %v7599_v22 = vld [vmem:[%s10806_s4 + $0xd8] sm:$0xff]   ;;  %v7600_v38 = vld [vmem:[%s10806_s4 + $0x168] sm:$0xff]   ;;  %6904 = vmatprep.subr.bf16.mxu0 %v7598_v37  ;;  %v2861_v26 = vld [vmem:[#allocation2 + $0x20] sm:$0x1] }
 0x15c   :  { %v9227_v4 = vadd.f32 %v9112_v11, %v1430_v59  ;;  %v1433_v9 = vadd.f32 %v9110_v13, %v1432_v61  ;;  %7243 = vmatpush3.bf16.msra.mxu1 %v7597_v29  ;;  %v7601_v13 = vld [vmem:[%s10806_s4 + $0x120] sm:$0xff]   ;;  %v2908_v48 = vld [vmem:[#allocation2 + $0x1c] sm:$0x1]  ;;  %v2862_v51 = vsel %vm9175_vm8, 0, %v2861_v26  ;;  %v2864_v61 = vld [vmem:[#allocation2 + $0x28] sm:$0x1] }
 0x15d   :  { %v9234_v46 = vadd.f32 %v9122_v31, %v1441_v34  ;;  %v7602_v31 = vld [vmem:[%s10806_s4 + $0xe0] sm:$0xff]   ;;  %6905 = vmatpush3.bf16.msra.mxu0 %v7599_v22  ;;  %7244 = vmatprep.subr.bf16.mxu1 %v7600_v38  ;;  %v2909_v59 = vsel %vm9190_vm10, 0, %v2908_v48  ;;  %2863 = vst [vmem:[#allocation2 + $0x20] sm:$0x1] %v2862_v51  ;;  %v2865_v37 = vsel %vm9175_vm8, 0, %v2864_v61 }
 0x15e   :  { %v9243_v11 = vadd.f32 %v9114_v58, %v1433_v9  ;;  %6906 = vmatprep.subr.bf16.mxu0 %v7601_v13  ;;  %v7604_v58 = vld [vmem:[%s10806_s4 + $0x128] sm:$0xff]   ;;  %v2911_v40 = vld [vmem:[#allocation2 + $0x24] sm:$0x1]  ;;  %2910 = vst [vmem:[#allocation2 + $0x1c] sm:$0x1] %v2909_v59 }
 0x15f   :  { %v2912_v34 = vsel %vm9190_vm10, 0, %v2911_v40  ;;  %v2867_v22 = vld [vmem:[#allocation2 + $0x30] sm:$0x1]  ;;  %2866 = vst [vmem:[#allocation2 + $0x28] sm:$0x1] %v2865_v37 }
 0x160   :  { %v6834_v2 = vpop.f32.mrb[48].mxu0  ;;  %7245 = vmatpush3.bf16.msra.mxu1 %v7600_v38  ;;  %2913 = vst [vmem:[#allocation2 + $0x24] sm:$0x1] %v2912_v34  ;;  %v2914_v38 = vld [vmem:[#allocation2 + $0x2c] sm:$0x1] }
 0x161   :  { %v6835_v15 = vpop.f32.mrb[49].mxu0  ;;  %6907 = vmatpush3.bf16.msra.mxu0 %v7602_v31  ;;  %7246 = vmatprep.subr.bf16.mxu1 %v7603_v16  ;;  %v2870_v40 = vld [vmem:[#allocation2 + $0x38] sm:$0x1]  ;;  %v2920_v37 = vld [vmem:[#allocation2 + $0x3c] sm:$0x1] }
 0x162   :  { %v6836_v28 = vadd.f32 %v6835_v15, %v6834_v2  ;;  %v6837_v56 = vpop.f32.mrb[50].mxu0  ;;  %6908 = vmatprep.subr.bf16.mxu0 %v7604_v58  ;;  %v2917_v58 = vld [vmem:[#allocation2 + $0x34] sm:$0x1]  ;;  %v2871_v61 = vsel %vm9175_vm8, 0, %v2870_v40 }
 0x163   :  { %v6838_v0 = vpop.f32.mrb[51].mxu0  ;;  %2872 = vst [vmem:[#allocation2 + $0x38] sm:$0x1] %v2871_v61 }
 0x164   :  { %v9263_v55 = vpop.f32.mrb[32].mxu1  ;;  %v7336_v18 = vadd.f32 %v6836_v28, %v9131_v42  ;;  %v6839_v23 = vadd.f32 %v6838_v0, %v6837_v56  ;;  %7247 = vmatpush3.bf16.msra.mxu1 %v7603_v16  ;;  %v2906_v42 = vsel %vm9190_vm10, 0, %v2905_v14  ;;  %v2868_v16 = vsel %vm9175_vm8, 0, %v2867_v22 }
 0x165   :  { %v2586_v33 = vpop.f32.mrb[33].mxu1  ;;  %6909 = vmatpush3.bf16.msra.mxu0 %v7605_v63  ;;  %7248 = vmatprep.subr.bf16.mxu1 %v7606_v44  ;;  %2907 = vst [vmem:[#allocation2 + $0x14] sm:$0x1] %v2906_v42  ;;  %2869 = vst [vmem:[#allocation2 + $0x30] sm:$0x1] %v2868_v16  ;;  %v2915_v63 = vsel %vm9190_vm10, 0, %v2914_v38 }
 0x166   :  { %v7221_v19 = vpop.f32.mrb[34].mxu1  ;;  %v9280_v30 = vadd.f32 %v7336_v18, %v2586_v33  ;;  %v7344_v27 = vadd.f32 %v6839_v23, %v9138_v49  ;;  %6910 = vmatprep.subr.bf16.mxu0 %v7607_v8  ;;  %v2918_v28 = vsel %vm9190_vm10, 0, %v2917_v58  ;;  %2916 = vst [vmem:[#allocation2 + $0x2c] sm:$0x1] %v2915_v63  ;;  %v2923_v16 = vld [vmem:[#allocation2 + $0x44] sm:$0x1] }
 0x167   :  { %v2589_v12 = vpop.f32.mrb[35].mxu1  ;;  %2919 = vst [vmem:[#allocation2 + $0x34] sm:$0x1] %v2918_v28  ;;  %v2876_v63 = vld [vmem:[#allocation2 + $0x58] sm:$0x1] }
 0x168   :  { %v9289_v29 = vadd.f32 %v7344_v27, %v2589_v12  ;;  %v6840_v49 = vpop.f32.mrb[52].mxu0  ;;  %7249 = vmatpush3.bf16.msra.mxu1 %v7606_v44 }
 0x169   :  { %v6841_v9 = vpop.f32.mrb[53].mxu0  ;;  %6911 = vmatpush3.bf16.msra.mxu0 %v7608_v54  ;;  %7266 = vmatprep.subr.bf16.mxu1 %v7609_v62 }
 0x16a   :  { %v6842_v13 = vadd.f32 %v6841_v9, %v6840_v49  ;;  %v6843_v31 = vpop.f32.mrb[54].mxu0  ;;  %v2668_v0 = vmul.f32 %v9289_v29, %v9289_v29  ;;  %v2683_v23 = vadd.f32 %v9289_v29, %v9280_v30  ;;  %v2873_v49 = vld [vmem:[#allocation2 + $0x40] sm:$0x1] }
 0x16b   :  { %v6844_v15 = vpop.f32.mrb[55].mxu0  ;;  %v2874_v9 = vsel %vm9175_vm8, 0, %v2873_v49 }
 0x16c   :  { %v9297_v2 = vpop.f32.mrb[36].mxu1  ;;  %v7332_v56 = vadd.f32 %v6842_v13, %v9127_v60  ;;  %v6845_v7 = vadd.f32 %v6844_v15, %v6843_v31  ;;  %v2667_v60 = vmul.f32 %v9280_v30, %v9280_v30  ;;  %2875 = vst [vmem:[#allocation2 + $0x40] sm:$0x1] %v2874_v9  ;;  %v2921_v31 = vsel %vm9190_vm10, 0, %v2920_v37 }
 0x16d   :  { %v2602_v44 = vpop.f32.mrb[37].mxu1  ;;  %2922 = vst [vmem:[#allocation2 + $0x3c] sm:$0x1] %v2921_v31  ;;  %v2924_v15 = vsel %vm9190_vm10, 0, %v2923_v16 }
 0x16e   :  { %v9306_v8 = vpop.f32.mrb[38].mxu1  ;;  %v9312_v35 = vadd.f32 %v7332_v56, %v9263_v55  ;;  %v7340_v33 = vadd.f32 %v6845_v7, %v9135_v53  ;;  %v2704_v54 = vadd.f32 %v2668_v0, %v2667_v60  ;;  %v7610_v53 = vld [vmem:[%s10806_s4 + $0x138] sm:$0xff]   ;;  %2925 = vst [vmem:[#allocation2 + $0x44] sm:$0x1] %v2924_v15  ;;  %v2879_v7 = vld [vmem:[#allocation2 + $0x60] sm:$0x1] }
 0x16f   :  { %v2605_v18 = vpop.f32.mrb[39].mxu1  ;;  %v7611_v55 = vld [vmem:[%s10806_s4 + $0xf8] sm:$0xff]   ;;  %6912 = vmatprep.subr.bf16.mxu0 %v7610_v53  ;;  %v2880_v62 = vsel %vm9175_vm8, 0, %v2879_v7  ;;  %v2929_v60 = vld [vmem:[#allocation2 + $0x64] sm:$0x1] }
 0x170   :  { %v2669_v17 = vmul.f32 %v9312_v35, %v9312_v35  ;;  %v9321_v1 = vadd.f32 %v7340_v33, %v7221_v19  ;;  %v6846_v14 = vpop.f32.mrb[56].mxu0  ;;  %v2684_v42 = vadd.f32 %v9312_v35, %v2683_v23  ;;  %6913 = vmatpush3.bf16.msra.mxu0 %v7611_v55  ;;  %v2926_v0 = vld [vmem:[#allocation2 + $0x5c] sm:$0x1]  ;;  %2881 = vst [vmem:[#allocation2 + $0x60] sm:$0x1] %v2880_v62 }
 0x171   :  { %v6847_v21 = vpop.f32.mrb[57].mxu0  ;;  %v2927_v33 = vsel %vm9190_vm10, 0, %v2926_v0  ;;  %v2882_v15 = vld [vmem:[#allocation2 + $0x68] sm:$0x1] }
 0x172   :  { %v6848_v20 = vadd.f32 %v6847_v21, %v6846_v14  ;;  %v6849_v12 = vpop.f32.mrb[58].mxu0  ;;  %v2705_v27 = vadd.f32 %v2704_v54, %v2669_v17  ;;  %v2670_v19 = vmul.f32 %v9321_v1, %v9321_v1  ;;  %v2685_v22 = vadd.f32 %v9321_v1, %v2684_v42  ;;  %2928 = vst [vmem:[#allocation2 + $0x5c] sm:$0x1] %v2927_v33  ;;  %v2935_v33 = vld [vmem:[#allocation2 + $0x74] sm:$0x1] }
 0x173   :  { %v6850_v26 = vpop.f32.mrb[59].mxu0  ;;  %v2930_v54 = vsel %vm9190_vm10, 0, %v2929_v60  ;;  %v2936_v60 = vsel %vm9190_vm10, 0, %v2935_v33 }
 0x174   :  { %v9332_v52 = vpop.f32.mrb[40].mxu1  ;;  %v7352_v48 = vadd.f32 %v6848_v20, %v9150_v10  ;;  %v6851_v59 = vadd.f32 %v6850_v26, %v6849_v12  ;;  %v2706_v58 = vadd.f32 %v2705_v27, %v2670_v19  ;;  %2931 = vst [vmem:[#allocation2 + $0x64] sm:$0x1] %v2930_v54  ;;  %2937 = vst [vmem:[#allocation2 + $0x74] sm:$0x1] %v2936_v60 }
 0x175   :  { %v9335_v51 = vpop.f32.mrb[41].mxu1 }
 0x176   :  { %v9337_v34 = vpop.f32.mrb[42].mxu1  ;;  %v9344_v38 = vadd.f32 %v7352_v48, %v2602_v44  ;;  %v7360_v10 = vadd.f32 %v6851_v59, %v9157_v41  ;;  %v2877_v44 = vsel %vm9175_vm8, 0, %v2876_v63 }
 0x177   :  { %v9347_v13 = vpop.f32.mrb[43].mxu1  ;;  %2878 = vst [vmem:[#allocation2 + $0x58] sm:$0x1] %v2877_v44 }
 0x178   :  { %v2671_v28 = vmul.f32 %v9344_v38, %v9344_v38  ;;  %v2686_v56 = vadd.f32 %v9344_v38, %v2685_v22  ;;  %v9356_v41 = vadd.f32 %v7360_v10, %v2605_v18 }
 0x179   :  { %v6852_v14 = vpop.f32.mrb[60].mxu0 }
 0x17a   :  { %v2707_v23 = vadd.f32 %v2706_v58, %v2671_v28  ;;  %v2672_v17 = vmul.f32 %v9356_v41, %v9356_v41  ;;  %v2687_v18 = vadd.f32 %v9356_v41, %v2686_v56  ;;  %v6853_v53 = vpop.f32.mrb[61].mxu0  ;;  %v2883_v28 = vsel %vm9175_vm8, 0, %v2882_v15  ;;  %v2932_v56 = vld [vmem:[#allocation2 + $0x6c] sm:$0x1] }
 0x17b   :  { %v6854_v42 = vadd.f32 %v6853_v53, %v6852_v14  ;;  %v6855_v12 = vpop.f32.mrb[62].mxu0  ;;  %2884 = vst [vmem:[#allocation2 + $0x68] sm:$0x1] %v2883_v28  ;;  %v2933_v62 = vsel %vm9190_vm10, 0, %v2932_v56  ;;  %v2938_v53 = vld [vmem:[#allocation2 + $0x7c] sm:$0x1] }
 0x17c   :  { %v9369_v21 = vpop.f32.mrb[44].mxu1  ;;  %v2708_v55 = vadd.f32 %v2707_v23, %v2672_v17  ;;  %v6856_v19 = vpop.f32.mrb[63].mxu0  ;;  %2934 = vst [vmem:[#allocation2 + $0x6c] sm:$0x1] %v2933_v62  ;;  %v2888_v23 = vld [vmem:[#allocation2 + $0x78] sm:$0x1] }
 0x17d   :  { %v9371_v20 = vpop.f32.mrb[45].mxu1  ;;  %v7348_v26 = vadd.f32 %v6854_v42, %v9146_v45  ;;  %v6857_v48 = vadd.f32 %v6856_v19, %v6855_v12  ;;  %v2891_v17 = vld [vmem:[#allocation2 + $0x80] sm:$0x1]  ;;  %v2939_v42 = vsel %vm9190_vm10, 0, %v2938_v53  ;;  %v2894_v53 = vld [vmem:[#allocation2 + $0x88] sm:$0x1] }
 0x17e   :  { %v9373_v27 = vpop.f32.mrb[46].mxu1  ;;  %v2892_v54 = vsel %vm9175_vm8, 0, %v2891_v17  ;;  %2940 = vst [vmem:[#allocation2 + $0x7c] sm:$0x1] %v2939_v42 }
 0x17f   :  { %v9376_v59 = vpop.f32.mrb[47].mxu1  ;;  %v9379_v40 = vadd.f32 %v7348_v26, %v9297_v2  ;;  %v7356_v49 = vadd.f32 %v6857_v48, %v9154_v5  ;;  %v2885_v5 = vld [vmem:[#allocation2 + $0x70] sm:$0x1]  ;;  %2893 = vst [vmem:[#allocation2 + $0x80] sm:$0x1] %v2892_v54 }
 0x181   :  { %v2673_v61 = vmul.f32 %v9379_v40, %v9379_v40  ;;  %v2688_v9 = vadd.f32 %v9379_v40, %v2687_v18  ;;  %v9386_v37 = vadd.f32 %v7356_v49, %v9306_v8  ;;  %v6858_v22 = vpop.f32.mrb[64].mxu0  ;;  %v2886_v8 = vsel %vm9175_vm8, 0, %v2885_v5 }
 0x182   :  { %v6859_v10 = vpop.f32.mrb[65].mxu0  ;;  %2887 = vst [vmem:[#allocation2 + $0x70] sm:$0x1] %v2886_v8 }
 0x183   :  { %v2709_v31 = vadd.f32 %v2708_v55, %v2673_v61  ;;  %v2674_v45 = vmul.f32 %v9386_v37, %v9386_v37  ;;  %v2689_v16 = vadd.f32 %v9386_v37, %v2688_v9  ;;  %v6860_v2 = vadd.f32 %v6859_v10, %v6858_v22  ;;  %v6861_v58 = vpop.f32.mrb[66].mxu0  ;;  %v2941_v55 = vld [vmem:[#allocation2 + $0x84] sm:$0x1] }
 0x184   :  { %v6862_v63 = vpop.f32.mrb[67].mxu0 }
 0x185   :  { %v2710_v44 = vadd.f32 %v2709_v31, %v2674_v45  ;;  %v7368_v7 = vadd.f32 %v6860_v2, %v9183_v36  ;;  %v6863_v0 = vadd.f32 %v6862_v63, %v6861_v58  ;;  %v2889_v36 = vsel %vm9175_vm8, 0, %v2888_v23 }
 0x186   :  { %2890 = vst [vmem:[#allocation2 + $0x78] sm:$0x1] %v2889_v36 }
 0x187   :  { %v9401_v18 = vadd.f32 %v7368_v7, %v9335_v51  ;;  %v7376_v14 = vadd.f32 %v6863_v0, %v9206_v50  ;;  %v2942_v51 = vsel %vm9190_vm10, 0, %v2941_v55  ;;  %v2944_v55 = vld [vmem:[#allocation2 + $0x8c] sm:$0x1] }
 0x188   :  { %2943 = vst [vmem:[#allocation2 + $0x84] sm:$0x1] %v2942_v51 }
 0x189   :  { %v2675_v50 = vmul.f32 %v9401_v18, %v9401_v18  ;;  %v2690_v12 = vadd.f32 %v9401_v18, %v2689_v16  ;;  %v9416_v19 = vadd.f32 %v7376_v14, %v9347_v13  ;;  %v6864_v26 = vpop.f32.mrb[68].mxu0 }
 0x18a   :  { %v6865_v48 = vpop.f32.mrb[69].mxu0 }
 0x18b   :  { %v2711_v49 = vadd.f32 %v2710_v44, %v2675_v50  ;;  %v2676_v61 = vmul.f32 %v9416_v19, %v9416_v19  ;;  %v2691_v9 = vadd.f32 %v9416_v19, %v2690_v12  ;;  %v6866_v22 = vadd.f32 %v6865_v48, %v6864_v26  ;;  %v6867_v10 = vpop.f32.mrb[70].mxu0 }
 0x18c   :  { %v6868_v31 = vpop.f32.mrb[71].mxu0  ;;  %v2895_v12 = vsel %vm9175_vm8, 0, %v2894_v53 }
 0x18d   :  { %v2712_v45 = vadd.f32 %v2711_v49, %v2676_v61  ;;  %v7364_v2 = vadd.f32 %v6866_v22, %v9171_v32  ;;  %v6869_v16 = vadd.f32 %v6868_v31, %v6867_v10  ;;  %2896 = vst [vmem:[#allocation2 + $0x88] sm:$0x1] %v2895_v12 }
 0x18f   :  { %v9423_v13 = vadd.f32 %v7364_v2, %v9332_v52  ;;  %v7372_v58 = vadd.f32 %v6869_v16, %v9198_v43 }
 0x191   :  { %v2677_v15 = vmul.f32 %v9423_v13, %v9423_v13  ;;  %v2692_v5 = vadd.f32 %v9423_v13, %v2691_v9  ;;  %v9430_v63 = vadd.f32 %v7372_v58, %v9337_v34  ;;  %v6870_v28 = vpop.f32.mrb[72].mxu0 }
 0x192   :  { %v6871_v8 = vpop.f32.mrb[73].mxu0 }
 0x193   :  { %v2713_v56 = vadd.f32 %v2712_v45, %v2677_v15  ;;  %v2678_v32 = vmul.f32 %v9430_v63, %v9430_v63  ;;  %v2693_v44 = vadd.f32 %v9430_v63, %v2692_v5  ;;  %v6872_v52 = vadd.f32 %v6871_v8, %v6870_v28  ;;  %v6873_v7 = vpop.f32.mrb[74].mxu0 }
 0x194   :  { %v6874_v0 = vpop.f32.mrb[75].mxu0 }
 0x195   :  { %v2714_v43 = vadd.f32 %v2713_v56, %v2678_v32  ;;  %v7384_v62 = vadd.f32 %v6872_v52, %v9227_v4  ;;  %v6875_v33 = vadd.f32 %v6874_v0, %v6873_v7 }
 0x197   :  { %v9437_v60 = vadd.f32 %v7384_v62, %v9371_v20  ;;  %v7392_v34 = vadd.f32 %v6875_v33, %v9243_v11  ;;  %v7623_v33 = vld [vmem:[%s10806_s4 + $0x40] sm:$0xff]  }
 0x198   :  { %6978 = vmatprep.subr.bf16.mxu0 %v7623_v33 }
 0x199   :  { %v2679_v23 = vmul.f32 %v9437_v60, %v9437_v60  ;;  %v2694_v17 = vadd.f32 %v9437_v60, %v2693_v44  ;;  %v9444_v14 = vadd.f32 %v7392_v34, %v9376_v59  ;;  %v6876_v36 = vpop.f32.mrb[76].mxu0  ;;  %v2945_v59 = vsel %vm9190_vm10, 0, %v2944_v55 }
 0x19a   :  { %v6877_v54 = vpop.f32.mrb[77].mxu0  ;;  %2946 = vst [vmem:[#allocation2 + $0x8c] sm:$0x1] %v2945_v59 }
 0x19b   :  { %v2715_v42 = vadd.f32 %v2714_v43, %v2679_v23  ;;  %v2680_v4 = vmul.f32 %v9444_v14, %v9444_v14  ;;  %v2695_v20 = vadd.f32 %v9444_v14, %v2694_v17  ;;  %v6878_v51 = vadd.f32 %v6877_v54, %v6876_v36  ;;  %v6879_v11 = vpop.f32.mrb[78].mxu0 }
 0x19c   :  { %v6880_v50 = vpop.f32.mrb[79].mxu0 }
 0x19d   :  { %v2716_v26 = vadd.f32 %v2715_v42, %v2680_v4  ;;  %v7380_v48 = vadd.f32 %v6878_v51, %v9223_v47  ;;  %v6881_v49 = vadd.f32 %v6880_v50, %v6879_v11  ;;  %v2749_v51 = vlaneseq }
 0x19f   :  { %v9455_v61 = vadd.f32 %v7380_v48, %v9369_v21  ;;  %v7388_v9 = vadd.f32 %v6881_v49, %v9234_v46  ;;  %v7690_v21 = vmov 0   ;;  %v9500_v59 = vshrl.u32 %v2749_v51, 7 }
 0x1a0   :  { %2839 = vst [vmem:[#allocation2] sm:$0xf] %v7690_v21  ;;  %2840 = vst [vmem:[#allocation2 + $0x4] sm:$0x1] %v7690_v21 }
 0x1a1   :  { %v2681_v22 = vmul.f32 %v9455_v61, %v9455_v61  ;;  %v2696_v10 = vadd.f32 %v9455_v61, %v2695_v20  ;;  %v9462_v31 = vadd.f32 %v7388_v9, %v9373_v27  ;;  %2841 = vst [vmem:[#allocation2 + $0x50] sm:$0xf] %v7690_v21  ;;  %2842 = vst [vmem:[#allocation2 + $0x54] sm:$0x1] %v7690_v21 }
 0x1a2   :  { %2844 = vst [vmem:[#allocation2 + $0x48] sm:$0xf] %v7690_v21  ;;  %2845 = vst [vmem:[#allocation2 + $0x4c] sm:$0x1] %v7690_v21 }
 0x1a3   :  { %v2717_v24 = vadd.f32 %v2716_v26, %v2681_v22  ;;  %v2682_v47 = vmul.f32 %v9462_v31, %v9462_v31  ;;  %v2697_v45 = vadd.f32 %v9462_v31, %v2696_v10  ;;  %2846 = vst [vmem:[#allocation2 + $0x98] sm:$0xf] %v7690_v21  ;;  %2847 = vst [vmem:[#allocation2 + $0x9c] sm:$0x1] %v7690_v21  ;;  %v2665_v22 = vld [vmem:[%s10807_s2] sm:$0x1] }
 0x1a4   :  { %v10826_v10 = vsub.s32 0, %v9500_v59 }
 0x1a5   :  { %v2698_v2 = vrot.slane %v2697_v45, 4  ;;  %v2718_v16 = vadd.f32 %v2717_v24, %v2682_v47 }
 0x1a7   :  { %v2699_v46 = vadd.f32 %v2698_v2, %v2697_v45  ;;  %v2719_v27 = vrot.slane %v2718_v16, 4  ;;  %v3272_v11 = vld [vmem:[#allocation2] sm:$0xf]  ;;  %v9502_v49 = vld [vmem:[#allocation2 + $0x4] sm:$0x1] }
 0x1a8   :  { %v3305_v50 = vshrl.u32 %v3272_v11, 16  ;;  %v3308_v12 = vshll.u32 %v3272_v11, 16  ;;  %v3528_v9 = vld [vmem:[#allocation2] sm:$0xe]  ;;  %v3578_v45 = vrot.slane %v9502_v49, 5 }
 0x1a9   :  { %v2700_v58 = vrot.slane %v2699_v46, 2  ;;  %v2720_v15 = vadd.f32 %v2719_v27, %v2718_v16  ;;  %v6402_v47 = vrot.slane %v3528_v9, 9  ;;  %v9511_v2 = vld [vmem:[#allocation2 + $0x54] sm:$0x1] }
 0x1aa   :  { %v3307_v26 = vrot.slane %v3305_v50, 4  ;;  %v3310_v48 = vrot.slane %v3308_v12, 5 }
 0x1ab   :  { %v2701_v5 = vadd.f32 %v2700_v58, %v2699_v46  ;;  %v2721_v28 = vrot.slane %v2720_v15, 2 }
 0x1ac   :  { %v3311_v16 = vor.u32 %v3310_v48, %v3307_v26 }
 0x1ad   :  { %v2702_v8 = vrot.slane %v2701_v5, 1  ;;  %v2722_v56 = vadd.f32 %v2721_v28, %v2720_v15  ;;  %v9526_v28 = vld [vmem:[%s10808_s3] ss:$0 sm:$0xff] }
 0x1af   :  { %v2703_v32 = vadd.f32 %v2702_v8, %v2701_v5  ;;  %v2723_v44 = vrot.slane %v2722_v56, 1 }
 0x1b1   :  { %v2724_v52 = vadd.f32 %v2723_v44, %v2722_v56  ;;  %v9467_v7 = vmul.f32 0.0078125, %v2703_v32  ;;  %v9532_v56 = vsel %vm8447_vm5, %v6402_v47, %v3578_v45  ;;  %v9534_v32 = vrot.slane %v3311_v16, 4 }
 0x1b3   :  { %v2726_v0 = vmul.f32 0.0078125, %v2724_v52  ;;  %v2727_v43 = vmul.f32 %v9467_v7, %v9467_v7  ;;  %v2748_v62 = vsub.f32 %v9462_v31, %v9467_v7  ;;  %v2735_v34 = vsub.f32 %v9312_v35, %v9467_v7  ;;  %v9508_v31 = vld [vmem:[#allocation2 + $0x50] sm:$0xe] }
 0x1b4   :  { %v2737_v23 = vsub.f32 %v9344_v38, %v9467_v7  ;;  %v2738_v36 = vsub.f32 %v9356_v41, %v9467_v7  ;;  %v2739_v54 = vsub.f32 %v9379_v40, %v9467_v7  ;;  %v2740_v53 = vsub.f32 %v9386_v37, %v9467_v7 }
 0x1b5   :  { %v2728_v17 = vsub.f32 %v2726_v0, %v2727_v43  ;;  %v2741_v55 = vsub.f32 %v9401_v18, %v9467_v7  ;;  %v2742_v35 = vsub.f32 %v9416_v19, %v9467_v7  ;;  %v2743_v38 = vsub.f32 %v9423_v13, %v9467_v7 }
 0x1b6   :  { %v2744_v42 = vsub.f32 %v9430_v63, %v9467_v7  ;;  %v2745_v40 = vsub.f32 %v9437_v60, %v9467_v7  ;;  %v2733_v58 = vsub.f32 %v9280_v30, %v9467_v7  ;;  %v2734_v15 = vsub.f32 %v9289_v29, %v9467_v7  ;;  %v3191_v30 = vld [vmem:[#allocation2 + $0x1c] sm:$0x1] }
 0x1b7   :  { %v2729_v41 = vmax.f32 %v2728_v17, 0.0  ;;  %v2736_v8 = vsub.f32 %v9321_v1, %v9467_v7 }
 0x1b9   :  { %v2730_v20 = vadd.f32 1e-05, %v2729_v41 }
 0x1bb   :  { %7683 = vrsqrt.f32 %v2730_v20 }
 0x1c5   :  { %v7684_v24 = vpop.eup %7683 }
 0x1c6   :  { %v2732_v21 = vmul.f32 %v7684_v24, %v2665_v22 }
 0x1c8   :  { %v9516_v27 = vrot.slane %v2732_v21, %v10826_v10  ;;  %v3188_v10 = vld [vmem:[#allocation2 + $0x18] sm:$0xf] }
 0x1ca   :  { %v2768_v29 = vmul.f32 %v9516_v27, %v2748_v62  ;;  %v2753_v44 = vmul.f32 %v9516_v27, %v2733_v58  ;;  %v2754_v52 = vmul.f32 %v9516_v27, %v2734_v15  ;;  %v2755_v0 = vmul.f32 %v9516_v27, %v2735_v34 }
 0x1cb   :  { %v2756_v43 = vmul.f32 %v9516_v27, %v2736_v8  ;;  %v2757_v1 = vmul.f32 %v9516_v27, %v2737_v23  ;;  %v2758_v33 = vmul.f32 %v9516_v27, %v2738_v36  ;;  %v2759_v17 = vmul.f32 %v9516_v27, %v2739_v54 }
 0x1cc   :  { %v2790_v41 = vadd.f32 %v9526_v28, %v2768_v29  ;;  %v2775_v20 = vadd.f32 %v9526_v28, %v2753_v44  ;;  %v2776_v62 = vadd.f32 %v9526_v28, %v2754_v52  ;;  %v2777_v51 = vadd.f32 %v9526_v28, %v2755_v0 }
 0x1cd   :  { %v2778_v11 = vadd.f32 %v9526_v28, %v2756_v43  ;;  %v2779_v34 = vadd.f32 %v9526_v28, %v2757_v1  ;;  %v2780_v50 = vadd.f32 %v9526_v28, %v2758_v33  ;;  %v2760_v23 = vmul.f32 %v9516_v27, %v2740_v53 }
 0x1ce   :  { %v2806_v36 = vmul.f32 0.01, %v2790_v41  ;;  %v2791_v12 = vmul.f32 0.01, %v2775_v20  ;;  %v2792_v54 = vmul.f32 0.01, %v2776_v62  ;;  %v9554_v26 = vadd.f32 %v9526_v28, %v2759_v17 }
 0x1cf   :  { %v2793_v48 = vmul.f32 0.01, %v2777_v51  ;;  %v2794_v9 = vmul.f32 0.01, %v2778_v11  ;;  %v2795_v22 = vmul.f32 0.01, %v2779_v34  ;;  %v9557_v24 = vadd.f32 %v9526_v28, %v2760_v23 }
 0x1d0   :  { %v2822_v47 = vmax.f32 %v2790_v41, %v2806_v36  ;;  %v2807_v45 = vmax.f32 %v2775_v20, %v2791_v12  ;;  %v2808_v16 = vmax.f32 %v2776_v62, %v2792_v54  ;;  %v2796_v21 = vmul.f32 0.01, %v2780_v50  ;;  %v3176_v12 = vld [vmem:[#allocation2 + $0x8] sm:$0xf] }
 0x1d1   :  { %v2809_v58 = vmax.f32 %v2777_v51, %v2793_v48  ;;  %v2810_v15 = vmax.f32 %v2778_v11, %v2794_v9  ;;  %v2811_v8 = vmax.f32 %v2779_v34, %v2795_v22  ;;  %v9560_v53 = vmul.f32 0.01, %v9554_v26  ;;  %v3266_v11 = vld [vmem:[#allocation2 + $0x90] sm:$0xf]  ;;  %v3269_v34 = vld [vmem:[#allocation2 + $0x94] sm:$0x1] }
 0x1d2   :  { %v6610_v29 = vpack.c.bf16 %v2822_v47, %v2822_v47  ;;  %v6595_v44 = vpack.c.bf16 %v2807_v45, %v2807_v45  ;;  %v6596_v52 = vpack.c.bf16 %v2808_v16, %v2808_v16  ;;  %v2812_v0 = vmax.f32 %v2780_v50, %v2796_v21  ;;  %v3182_v22 = vld [vmem:[#allocation2 + $0x10] sm:$0xf] }
 0x1d3   :  { %v6597_v43 = vpack.c.bf16 %v2809_v58, %v2809_v58  ;;  %v6598_v1 = vpack.c.bf16 %v2810_v15, %v2810_v15  ;;  %v9562_v33 = vpack.c.bf16 %v2811_v8, %v2811_v8  ;;  %v9565_v17 = vmul.f32 0.01, %v9557_v24  ;;  %v3179_v58 = vld [vmem:[#allocation2 + $0xc] sm:$0x1] }
 0x1d4   :  { %v3135_v41 = vshrl.u32 %v6610_v29, 16  ;;  %v3138_v20 = vshll.u32 %v6610_v29, 16  ;;  %v3015_v62 = vshrl.u32 %v6595_v44, 16  ;;  %v3018_v51 = vshll.u32 %v6595_v44, 16 }
 0x1d5   :  { %v3023_v23 = vshrl.u32 %v6596_v52, 16  ;;  %v3026_v36 = vshll.u32 %v6596_v52, 16  ;;  %v3031_v54 = vshrl.u32 %v6597_v43, 16  ;;  %v3034_v48 = vshll.u32 %v6597_v43, 16 }
 0x1d6   :  { %v3137_v9 = vrot.slane %v3135_v41, 7  ;;  %v3017_v50 = vrot.slane %v3015_v62, 7  ;;  %v3039_v47 = vshrl.u32 %v6598_v1, 16  ;;  %v3042_v45 = vshll.u32 %v6598_v1, 16  ;;  %v3185_v62 = vld [vmem:[#allocation2 + $0x14] sm:$0x1] }
 0x1d7   :  { %v3025_v21 = vrot.slane %v3023_v23, 7  ;;  %v3033_v15 = vrot.slane %v3031_v54, 7  ;;  %v6600_v8 = vpack.c.bf16 %v2812_v0, %v2812_v0  ;;  %v3047_v29 = vshrl.u32 %v9562_v33, 16  ;;  %v3194_v54 = vld [vmem:[#allocation2 + $0x20] sm:$0xf] }
 0x1d8   :  { %v3140_v44 = vor.u32 %v3138_v20, %v3137_v9  ;;  %v3141_v52 = vrot.slane %v3137_v9, 4  ;;  %v3020_v43 = vor.u32 %v3018_v51, %v3017_v50  ;;  %v3021_v41 = vrot.slane %v3017_v50, 4 }
 0x1d9   :  { %v3028_v46 = vor.u32 %v3026_v36, %v3025_v21  ;;  %v3029_v1 = vrot.slane %v3025_v21, 4  ;;  %v3036_v5 = vor.u32 %v3034_v48, %v3033_v15  ;;  %v3037_v4 = vrot.slane %v3033_v15, 4 }
 0x1da   :  { %v3267_v37 = vsel %vm9569_vm12, %v3140_v44, %v3266_v11  ;;  %v3270_v23 = vsel %vm9175_vm8, %v3141_v52, %v3269_v34  ;;  %v3177_v0 = vsel %vm9569_vm12, %v3020_v43, %v3176_v12  ;;  %v3180_v20 = vsel %vm9175_vm8, %v3021_v41, %v3179_v58  ;;  %v3197_v12 = vld [vmem:[#allocation2 + $0x24] sm:$0x1]  ;;  %v3203_v58 = vld [vmem:[#allocation2 + $0x2c] sm:$0x1] }
 0x1db   :  { %3268 = vst [vmem:[#allocation2 + $0x90] sm:$0xf] %v3267_v37  ;;  %3271 = vst [vmem:[#allocation2 + $0x94] sm:$0x1] %v3270_v23  ;;  %v3183_v51 = vsel %vm9569_vm12, %v3028_v46, %v3182_v22  ;;  %v3186_v36 = vsel %vm9175_vm8, %v3029_v1, %v3185_v62  ;;  %v3041_v11 = vrot.slane %v3039_v47, 7  ;;  %v3189_v34 = vsel %vm9569_vm12, %v3036_v5, %v3188_v10 }
 0x1dc   :  { %3178 = vst [vmem:[#allocation2 + $0x8] sm:$0xf] %v3177_v0  ;;  %3181 = vst [vmem:[#allocation2 + $0xc] sm:$0x1] %v3180_v20  ;;  %v3192_v37 = vsel %vm9175_vm8, %v3037_v4, %v3191_v30  ;;  %v3049_v48 = vrot.slane %v3047_v29, 7  ;;  %v3050_v9 = vshll.u32 %v9562_v33, 16  ;;  %v2813_v10 = vmax.f32 %v9554_v26, %v9560_v53 }
 0x1dd   :  { %3184 = vst [vmem:[#allocation2 + $0x10] sm:$0xf] %v3183_v51  ;;  %3187 = vst [vmem:[#allocation2 + $0x14] sm:$0x1] %v3186_v36  ;;  %v3055_v50 = vshrl.u32 %v6600_v8, 16  ;;  %v3044_v46 = vor.u32 %v3042_v45, %v3041_v11  ;;  %v3045_v22 = vrot.slane %v3041_v11, 4  ;;  %v2814_v4 = vmax.f32 %v9557_v24, %v9565_v17 }
 0x1de   :  { %3190 = vst [vmem:[#allocation2 + $0x18] sm:$0xf] %v3189_v34  ;;  %3193 = vst [vmem:[#allocation2 + $0x1c] sm:$0x1] %v3192_v37  ;;  %v3058_v21 = vshll.u32 %v6600_v8, 16  ;;  %v3052_v5 = vor.u32 %v3050_v9, %v3049_v48  ;;  %v3053_v15 = vrot.slane %v3049_v48, 4  ;;  %v9599_v8 = vpack.c.bf16 %v2813_v10, %v2813_v10 }
 0x1df   :  { %v3200_v47 = vld [vmem:[#allocation2 + $0x28] sm:$0xf]  ;;  %v3057_v44 = vrot.slane %v3055_v50, 7  ;;  %v3195_v30 = vsel %vm9569_vm12, %v3044_v46, %v3194_v54  ;;  %v3198_v33 = vsel %vm9175_vm8, %v3045_v22, %v3197_v12  ;;  %v3206_v45 = vld [vmem:[#allocation2 + $0x30] sm:$0xf]  ;;  %v2761_v26 = vmul.f32 %v9516_v27, %v2741_v55 }
 0x1e0   :  { %v3209_v29 = vld [vmem:[#allocation2 + $0x34] sm:$0x1]  ;;  %3196 = vst [vmem:[#allocation2 + $0x20] sm:$0xf] %v3195_v30  ;;  %3199 = vst [vmem:[#allocation2 + $0x24] sm:$0x1] %v3198_v33  ;;  %v3201_v24 = vsel %vm9569_vm12, %v3052_v5, %v3200_v47  ;;  %v3204_v17 = vsel %vm9175_vm8, %v3053_v15, %v3203_v58  ;;  %v9609_v43 = vpack.c.bf16 %v2814_v4, %v2814_v4 }
 0x1e1   :  { %v3060_v53 = vor.u32 %v3058_v21, %v3057_v44  ;;  %v3061_v52 = vrot.slane %v3057_v44, 4  ;;  %3202 = vst [vmem:[#allocation2 + $0x28] sm:$0xf] %v3201_v24  ;;  %3205 = vst [vmem:[#allocation2 + $0x2c] sm:$0x1] %v3204_v17  ;;  %v3063_v41 = vshrl.u32 %v9599_v8, 16  ;;  %v2762_v55 = vmul.f32 %v9516_v27, %v2742_v35 }
 0x1e2   :  { %v3066_v18 = vshll.u32 %v9599_v8, 16  ;;  %v9624_v51 = vadd.f32 %v9526_v28, %v2761_v26  ;;  %v2763_v19 = vmul.f32 %v9516_v27, %v2743_v38  ;;  %v2764_v37 = vmul.f32 %v9516_v27, %v2744_v42 }
 0x1e3   :  { %v3816_v62 = vld [vmem:[#allocation2 + $0xc] sm:$0x1]  ;;  %v4056_v1 = vld [vmem:[#allocation2 + $0x8] sm:$0xe]  ;;  %v3207_v23 = vsel %vm9569_vm12, %v3060_v53, %v3206_v45  ;;  %v3210_v0 = vsel %vm9175_vm8, %v3061_v52, %v3209_v29  ;;  %v9633_v54 = vadd.f32 %v9526_v28, %v2762_v55  ;;  %v9647_v50 = vmul.f32 %v9516_v27, %v2745_v40 }
 0x1e4   :  { %v9621_v20 = vld [vmem:[#allocation2 + $0x8] sm:$0xf]  ;;  %v9630_v36 = vld [vmem:[#allocation2 + $0x14] sm:$0x1]  ;;  %v4057_v35 = vld [vmem:[#allocation2 + $0x10] sm:$0xe]  ;;  %v9641_v9 = vadd.f32 %v9526_v28, %v2763_v19  ;;  %v9671_v24 = vadd.f32 %v9526_v28, %v2764_v37 }
 0x1e5   :  { %v6442_v11 = vrot.slane %v4056_v1, 9  ;;  %v4106_v34 = vrot.slane %v3816_v62, 5  ;;  %3208 = vst [vmem:[#allocation2 + $0x30] sm:$0xf] %v3207_v23  ;;  %3211 = vst [vmem:[#allocation2 + $0x34] sm:$0x1] %v3210_v0 }
 0x1e6   :  { %v6443_v12 = vrot.slane %v4057_v35, 9  ;;  %v4110_v13 = vrot.slane %v9630_v36, 5  ;;  %v3818_v48 = vld [vmem:[#allocation2 + $0x1c] sm:$0x1]  ;;  %v4058_v38 = vld [vmem:[#allocation2 + $0x18] sm:$0xe] }
 0x1e7   :  { %v4107_v46 = vsel %vm8447_vm5, %v6442_v11, %v4106_v34  ;;  %v6444_v63 = vrot.slane %v4058_v38, 9  ;;  %v4114_v22 = vrot.slane %v3818_v48, 5  ;;  %v9651_v42 = vld [vmem:[#allocation2 + $0x10] sm:$0xf]  ;;  %v3833_v21 = vshrl.u32 %v9621_v20, 16 }
 0x1e8   :  { %v4111_v47 = vsel %vm8447_vm5, %v6443_v12, %v4110_v13  ;;  %v3836_v58 = vshll.u32 %v9621_v20, 16  ;;  %v3842_v10 = vshll.u32 %v3816_v62, 16  ;;  %v3847_v60 = vshrl.u32 %v9651_v42, 16  ;;  %v9658_v5 = vld [vmem:[#allocation2 + $0x18] sm:$0xf] }
 0x1e9   :  { %v6474_v40 = vcombine.low %v4107_v46, %v4111_v47  ;;  %v9660_v15 = vld [vmem:[#allocation2 + $0x24] sm:$0x1]  ;;  %v4059_v44 = vld [vmem:[#allocation2 + $0x20] sm:$0xe]  ;;  %v4115_v4 = vsel %vm8447_vm5, %v6444_v63, %v4114_v22  ;;  %v3835_v30 = vrot.slane %v3833_v21, 4  ;;  %v3850_v33 = vshll.u32 %v9651_v42, 16 }
 0x1ea   :  { %v6445_v45 = vrot.slane %v4059_v44, 9  ;;  %v4118_v29 = vrot.slane %v9660_v15, 5  ;;  %v9666_v26 = vld [vmem:[#allocation2 + $0x2c] sm:$0x1]  ;;  %v4060_v53 = vld [vmem:[#allocation2 + $0x28] sm:$0xe]  ;;  %v6458_v52 = vcombine.low %v9621_v20, %v9651_v42 }
 0x1eb   :  { %7250 = vmatprep.mubr.bf16.mxu1 %v6474_v40  ;;  %v6446_v17 = vrot.slane %v4060_v53, 9  ;;  %v4122_v55 = vrot.slane %v9666_v26, 5  ;;  %v3838_v62 = vrot.slane %v3836_v58, 5  ;;  %v3844_v1 = vrot.slane %v3842_v10, 5  ;;  %v9674_v23 = vld [vmem:[#allocation2 + $0x20] sm:$0xf] }
 0x1ec   :  { %v4119_v0 = vsel %vm8447_vm5, %v6445_v45, %v4118_v29  ;;  %v9678_v19 = vld [vmem:[#allocation2 + $0x34] sm:$0x1]  ;;  %v4061_v35 = vld [vmem:[#allocation2 + $0x30] sm:$0xe]  ;;  %v3849_v11 = vrot.slane %v3847_v60, 4  ;;  %v3852_v34 = vrot.slane %v3850_v33, 5  ;;  %v6459_v37 = vcombine.low %v9658_v5, %v9674_v23 }
 0x1ed   :  { %v6475_v12 = vcombine.low %v4115_v4, %v4119_v0  ;;  %v4123_v13 = vsel %vm8447_vm5, %v6446_v17, %v4122_v55  ;;  %v6447_v38 = vrot.slane %v4061_v35, 9  ;;  %v4126_v46 = vrot.slane %v9678_v19, 5  ;;  %v7612_v63 = vld [vmem:[%s10806_s4 + $0x88] sm:$0xff]   ;;  %v7687_v33 = vld [vmem:[%s10806_s4 + $0x80] sm:$0xff]  }
 0x1ee   :  { %v3839_v22 = vor.u32 %v3838_v62, %v3835_v30  ;;  %v3853_v21 = vor.u32 %v3852_v34, %v3849_v11  ;;  %v3856_v47 = vshll.u32 %v9630_v36, 16  ;;  %v3861_v58 = vshrl.u32 %v9658_v5, 16  ;;  %v3212_v34 = vld [vmem:[#allocation2 + $0x38] sm:$0xf]  ;;  %v7631_v20 = vld [vmem:[%s10806_s4 + $0x8] sm:$0xff]  }
 0x1ef   :  { %7251 = vmatmul.mubr.bf16.vlgmr.msra.gmra.mrb[48].mxu1 %v6475_v12  ;;  %v4127_v10 = vsel %vm8447_vm5, %v6447_v38, %v4126_v46  ;;  %v3864_v60 = vshll.u32 %v9658_v5, 16  ;;  %v3870_v40 = vshll.u32 %v3818_v48, 16  ;;  %v3875_v44 = vshrl.u32 %v9674_v23, 16  ;;  %v7614_v48 = vld [vmem:[%s10806_s4 + $0x90] sm:$0xff]  }
 0x1f0   :  { %v6476_v4 = vcombine.low %v4123_v13, %v4127_v10  ;;  %7267 = vmatpush3.bf16.msra.mxu1 %v7687_v33  ;;  %v3840_v30 = vrot.slane %v3839_v22, 4  ;;  %v3854_v45 = vrot.slane %v3853_v21, 4  ;;  %v3858_v36 = vrot.slane %v3856_v47, 5  ;;  %v9711_v22 = vld [vmem:[#allocation2 + $0x28] sm:$0xf] }
 0x1f1   :  { %7268 = vmatprep.subr.bf16.mxu1 %v7612_v63  ;;  %v3863_v29 = vrot.slane %v3861_v58, 4  ;;  %v3866_v53 = vrot.slane %v3864_v60, 5  ;;  %v9697_v17 = vrot.slane %v3870_v40, 5  ;;  %v3877_v55 = vrot.slane %v3875_v44, 4  ;;  %v3215_v33 = vld [vmem:[#allocation2 + $0x3c] sm:$0x1] }
 0x1f2   :  { %7254 = vmatprep.mubr.bf16.mxu1 %v6476_v4  ;;  %v3845_v62 = vsel %vm7881_vm2, %v3840_v30, %v3844_v1  ;;  %v3859_v0 = vsel %vm7881_vm2, %v3854_v45, %v3858_v36  ;;  %v3878_v35 = vshll.u32 %v9674_v23, 16  ;;  %v3884_v11 = vshll.u32 %v9660_v15, 16  ;;  %v7624_v1 = vld [vmem:[%s10806_s4] sm:$0xff]  }
 0x1f3   :  { %v6466_v12 = vcombine.low %v3845_v62, %v3859_v0  ;;  %v3867_v13 = vor.u32 %v3866_v53, %v3863_v29  ;;  %v3065_v38 = vrot.slane %v3063_v41, 7  ;;  %v3071_v46 = vshrl.u32 %v9609_v43, 16  ;;  %v3218_v15 = vld [vmem:[#allocation2 + $0x40] sm:$0xf]  ;;  %v7630_v41 = vld [vmem:[%s10806_s4 + $0x48] sm:$0xff]   ;;  %v7637_v0 = vld [vmem:[%s10806_s4 + $0x50] sm:$0xff]  }
 0x1f4   :  { %7269 = vmatpush3.bf16.msra.mxu1 %v7612_v63  ;;  %v3880_v21 = vrot.slane %v3878_v35, 5  ;;  %v3886_v47 = vrot.slane %v3884_v11, 5  ;;  %v3074_v58 = vshll.u32 %v9609_v43, 16  ;;  %v2799_v10 = vmul.f32 0.01, %v9624_v51  ;;  %v7615_v43 = vld [vmem:[%s10806_s4 + $0x98] sm:$0xff]  }
 0x1f5   :  { %4504 = vmatprep.mubr.bf16.mxu0 %v6466_v12  ;;  %v3868_v60 = vrot.slane %v3867_v13, 4  ;;  %v3068_v40 = vor.u32 %v3066_v18, %v3065_v38  ;;  %v3069_v44 = vrot.slane %v3065_v38, 4  ;;  %v3073_v4 = vrot.slane %v3071_v46, 7  ;;  %7270 = vmatprep.subr.bf16.mxu1 %v7614_v48  ;;  %v3221_v30 = vld [vmem:[#allocation2 + $0x44] sm:$0x1] }
 0x1f6   :  { %4505 = vmatmul.mubr.bf16.vlgmr.msra.gmra.mrb[80].mxu0 %v6458_v52  ;;  %v3881_v63 = vor.u32 %v3880_v21, %v3877_v55  ;;  %v2800_v45 = vmul.f32 0.01, %v9633_v54  ;;  %v2815_v36 = vmax.f32 %v9624_v51, %v2799_v10  ;;  %v3889_v8 = vshrl.u32 %v9711_v22, 16  ;;  %v3224_v21 = vld [vmem:[#allocation2 + $0x58] sm:$0xf] }
 0x1f7   :  { %v3873_v18 = vsel %vm7881_vm2, %v3868_v60, %v9697_v17  ;;  %v3076_v29 = vor.u32 %v3074_v58, %v3073_v4  ;;  %v3077_v53 = vrot.slane %v3073_v4, 4  ;;  %v3213_v62 = vsel %vm9569_vm12, %v3068_v40, %v3212_v34  ;;  %6979 = vmatpush3.bf16.msra.mxu0 %v7624_v1  ;;  %v9743_v17 = vld [vmem:[#allocation2 + $0x30] sm:$0xf] }
 0x1f8   :  { %v3882_v42 = vrot.slane %v3881_v63, 4  ;;  %3214 = vst [vmem:[#allocation2 + $0x38] sm:$0xf] %v3213_v62  ;;  %v3216_v51 = vsel %vm9175_vm8, %v3069_v44, %v3215_v33  ;;  %v2816_v52 = vmax.f32 %v9633_v54, %v2800_v45  ;;  %v6603_v55 = vpack.c.bf16 %v2815_v36, %v2815_v36  ;;  %7271 = vmatpush3.bf16.msra.mxu1 %v7614_v48  ;;  %v7617_v48 = vld [vmem:[%s10806_s4 + $0xa0] sm:$0xff]   ;;  %v3227_v44 = vld [vmem:[#allocation2 + $0x5c] sm:$0x1] }
 0x1f9   :  { %6980 = vmatprep.subr.bf16.mxu0 %v7630_v41  ;;  %3217 = vst [vmem:[#allocation2 + $0x3c] sm:$0x1] %v3216_v51  ;;  %v3219_v35 = vsel %vm9569_vm12, %v3076_v29, %v3218_v15  ;;  %v3222_v11 = vsel %vm9175_vm8, %v3077_v53, %v3221_v30  ;;  %7272 = vmatprep.subr.bf16.mxu1 %v7615_v43  ;;  %v3891_v34 = vrot.slane %v3889_v8, 4  ;;  %v3892_v54 = vshll.u32 %v9711_v22, 16  ;;  %v7638_v41 = vld [vmem:[%s10806_s4 + $0x10] sm:$0xff]   ;;  %v7641_v33 = vld [vmem:[%s10806_s4 + $0x58] sm:$0xff]  }
 0x1fa   :  { %v3887_v12 = vsel %vm7881_vm2, %v3882_v42, %v3886_v47  ;;  %3220 = vst [vmem:[#allocation2 + $0x40] sm:$0xf] %v3219_v35  ;;  %3223 = vst [vmem:[#allocation2 + $0x44] sm:$0x1] %v3222_v11  ;;  %v6604_v13 = vpack.c.bf16 %v2816_v52, %v2816_v52  ;;  %v3079_v38 = vshrl.u32 %v6603_v55, 16  ;;  %v3082_v46 = vshll.u32 %v6603_v55, 16 }
 0x1fb   :  { %v6467_v1 = vcombine.low %v3873_v18, %v3887_v12  ;;  %v3894_v58 = vrot.slane %v3892_v54, 5  ;;  %v3898_v15 = vshll.u32 %v9666_v26, 16  ;;  %v3903_v10 = vshrl.u32 %v9743_v17, 16  ;;  %6981 = vmatpush3.bf16.msra.mxu0 %v7631_v20  ;;  %v3230_v26 = vld [vmem:[#allocation2 + $0x60] sm:$0xf]  ;;  %v7618_v8 = vld [vmem:[%s10806_s4 + $0xa8] sm:$0xff]  }
 0x1fc   :  { %v3081_v60 = vrot.slane %v3079_v38, 7  ;;  %v3087_v40 = vshrl.u32 %v6604_v13, 16  ;;  %v3090_v47 = vshll.u32 %v6604_v13, 16  ;;  %7273 = vmatpush3.bf16.msra.mxu1 %v7615_v43  ;;  %v3906_v4 = vshll.u32 %v9743_v17, 16  ;;  %6982 = vmatprep.subr.bf16.mxu0 %v7637_v0  ;;  %v3233_v53 = vld [vmem:[#allocation2 + $0x64] sm:$0x1] }
 0x1fd   :  { %4512 = vmatprep.mubr.bf16.mxu0 %v6467_v1  ;;  %v3895_v63 = vor.u32 %v3894_v58, %v3891_v34  ;;  %v3900_v30 = vrot.slane %v3898_v15, 5  ;;  %v3905_v45 = vrot.slane %v3903_v10, 4  ;;  %v3912_v36 = vshll.u32 %v9678_v19, 16  ;;  %7274 = vmatprep.subr.bf16.mxu1 %v7617_v48  ;;  %v7642_v20 = vld [vmem:[%s10806_s4 + $0x18] sm:$0xff]   ;;  %v7646_v15 = vld [vmem:[%s10806_s4 + $0x60] sm:$0xff]  }
 0x1fe   :  { %v3084_v43 = vor.u32 %v3082_v46, %v3081_v60  ;;  %v3085_v18 = vrot.slane %v3081_v60, 4  ;;  %v3089_v29 = vrot.slane %v3087_v40, 7  ;;  %4513 = vmatmul.mubr.bf16.gmra.mrb[84].mxu0 %v6459_v37  ;;  %v3908_v62 = vrot.slane %v3906_v4, 5  ;;  %v7620_v46 = vld [vmem:[%s10806_s4 + $0xb0] sm:$0xff]  }
 0x1ff   :  { %v4062_v42 = vld [vmem:[#allocation2 + $0x38] sm:$0xe]  ;;  %v3896_v19 = vrot.slane %v3895_v63, 4  ;;  %v3914_v51 = vrot.slane %v3912_v36, 5  ;;  %v2801_v52 = vmul.f32 0.01, %v9641_v9  ;;  %v10857_v55 = vsub.f32 %v9444_v14, %v9467_v7  ;;  %6983 = vmatpush3.bf16.msra.mxu0 %v7638_v41 }
 0x200   :  { %v9782_v35 = vld [vmem:[#allocation2 + $0x3c] sm:$0x1]  ;;  %v6448_v5 = vrot.slane %v4062_v42, 9  ;;  %v3092_v23 = vor.u32 %v3090_v47, %v3089_v29  ;;  %v3093_v37 = vrot.slane %v3089_v29, 4  ;;  %v3225_v11 = vsel %vm9569_vm12, %v3084_v43, %v3224_v21  ;;  %7275 = vmatpush3.bf16.msra.mxu1 %v7617_v48  ;;  %6984 = vmatprep.subr.bf16.mxu0 %v7641_v33  ;;  %v9808_v47 = vld [vmem:[#allocation2 + $0x38] sm:$0xf] }
 0x201   :  { %v2766_v0 = vmul.f32 %v9516_v27, %v10857_v55  ;;  %v9786_v34 = vld [vmem:[#allocation2 + $0x44] sm:$0x1]  ;;  %v4063_v54 = vld [vmem:[#allocation2 + $0x40] sm:$0xe]  ;;  %v4130_v12 = vrot.slane %v9782_v35, 5  ;;  %v3228_v14 = vsel %vm9175_vm8, %v3085_v18, %v3227_v44  ;;  %v3901_v13 = vsel %vm7881_vm2, %v3896_v19, %v3900_v30  ;;  %7276 = vmatprep.subr.bf16.mxu1 %v7618_v8  ;;  %v7621_v18 = vld [vmem:[%s10806_s4 + $0xb8] sm:$0xff]  }
 0x202   :  { %3226 = vst [vmem:[#allocation2 + $0x58] sm:$0xf] %v3225_v11  ;;  %v3909_v38 = vor.u32 %v3908_v62, %v3905_v45  ;;  %v6449_v48 = vrot.slane %v4063_v54, 9  ;;  %v4134_v1 = vrot.slane %v9786_v34, 5  ;;  %3229 = vst [vmem:[#allocation2 + $0x5c] sm:$0x1] %v3228_v14  ;;  %v3231_v21 = vsel %vm9569_vm12, %v3092_v23, %v3230_v26 }
 0x203   :  { %v3234_v58 = vsel %vm9175_vm8, %v3093_v37, %v3233_v53  ;;  %v4131_v10 = vsel %vm8447_vm5, %v6448_v5, %v4130_v12  ;;  %3232 = vst [vmem:[#allocation2 + $0x60] sm:$0xf] %v3231_v21  ;;  %v2802_v60 = vmul.f32 0.01, %v9671_v24  ;;  %v2817_v40 = vmax.f32 %v9641_v9, %v2801_v52  ;;  %6985 = vmatpush3.bf16.msra.mxu0 %v7642_v20  ;;  %v7647_v44 = vld [vmem:[%s10806_s4 + $0x20] sm:$0xff]   ;;  %v7651_v19 = vld [vmem:[%s10806_s4 + $0x28] sm:$0xff]  }
 0x204   :  { %3235 = vst [vmem:[#allocation2 + $0x64] sm:$0x1] %v3234_v58  ;;  %v3910_v41 = vrot.slane %v3909_v38, 4  ;;  %v4135_v4 = vsel %vm8447_vm5, %v6449_v48, %v4134_v1  ;;  %v2787_v33 = vadd.f32 %v9526_v28, %v9647_v50  ;;  %v2788_v26 = vadd.f32 %v9526_v28, %v2766_v0  ;;  %7277 = vmatpush3.bf16.msra.mxu1 %v7618_v8  ;;  %v3236_v55 = vld [vmem:[#allocation2 + $0x68] sm:$0xf] }
 0x205   :  { %v10858_v63 = vshll.u32 %v9502_v49, 16  ;;  %v6477_v9 = vcombine.low %v4131_v10, %v4135_v4  ;;  %v2818_v36 = vmax.f32 %v9671_v24, %v2802_v60  ;;  %v6605_v43 = vpack.c.bf16 %v2817_v40, %v2817_v40  ;;  %7278 = vmatprep.subr.bf16.mxu1 %v7620_v46  ;;  %6986 = vmatprep.subr.bf16.mxu0 %v7646_v15  ;;  %v7650_v49 = vld [vmem:[%s10806_s4 + $0x68] sm:$0xff]   ;;  %v7656_v40 = vld [vmem:[%s10806_s4 + $0x30] sm:$0xff]  }
 0x206   :  { %v3915_v45 = vsel %vm7881_vm2, %v3910_v41, %v3914_v51  ;;  %v2803_v29 = vmul.f32 0.01, %v2787_v33  ;;  %v2804_v53 = vmul.f32 0.01, %v2788_v26  ;;  %v3917_v8 = vshrl.u32 %v9808_v47, 16 }
 0x207   :  { %v9820_v30 = vrot.slane %v10858_v63, 5  ;;  %v6468_v50 = vcombine.low %v3901_v13, %v3915_v45  ;;  %7255 = vmatmul.mubr.bf16.gmra.mrb[52].mxu1 %v6477_v9  ;;  %v6606_v62 = vpack.c.bf16 %v2818_v36, %v2818_v36  ;;  %v3095_v20 = vshrl.u32 %v6605_v43, 16  ;;  %6987 = vmatpush3.bf16.msra.mxu0 %v7647_v44  ;;  %v3239_v0 = vld [vmem:[#allocation2 + $0x6c] sm:$0x1]  ;;  %v7659_v63 = vld [vmem:[%s10806_s4 + $0x78] sm:$0xff]  }
 0x208   :  { %v6460_v24 = vcombine.low %v9711_v22, %v9743_v17  ;;  %v3920_v42 = vshll.u32 %v9808_v47, 16  ;;  %v3098_v52 = vshll.u32 %v6605_v43, 16  ;;  %v2819_v5 = vmax.f32 %v2787_v33, %v2803_v29  ;;  %7279 = vmatpush3.bf16.msra.mxu1 %v7620_v46  ;;  %v7625_v22 = vld [vmem:[%s10806_s4 + $0x1c0] sm:$0xff]   ;;  %v7655_v17 = vld [vmem:[%s10806_s4 + $0x70] sm:$0xff]   ;;  %6988 = vmatprep.subr.bf16.mxu0 %v7650_v49 }
 0x209   :  { %v4064_v51 = vld [vmem:[#allocation2 + $0x58] sm:$0xe]  ;;  %4520 = vmatprep.mubr.bf16.mxu0 %v6468_v50  ;;  %v2820_v23 = vmax.f32 %v2788_v26, %v2804_v53  ;;  %v9838_v37 = vrot.slane %v3917_v8, 4  ;;  %v9846_v11 = vld [vmem:[#allocation2 + $0x5c] sm:$0x1]  ;;  %v3097_v12 = vrot.slane %v3095_v20, 7  ;;  %7280 = vmatprep.subr.bf16.mxu1 %v7621_v18 }
 0x20a   :  { %v6450_v54 = vrot.slane %v4064_v51, 9  ;;  %v3103_v14 = vshrl.u32 %v6606_v62, 16  ;;  %v3106_v13 = vshll.u32 %v6606_v62, 16  ;;  %4521 = vmatmul.mubr.bf16.gmra.mrb[88].mxu0 %v6460_v24  ;;  %v4065_v48 = vld [vmem:[#allocation2 + $0x60] sm:$0xe]  ;;  %v4138_v46 = vrot.slane %v9846_v11, 5 }
 0x20b   :  { %v9848_v38 = vld [vmem:[#allocation2 + $0x64] sm:$0x1]  ;;  %v6607_v1 = vpack.c.bf16 %v2819_v5, %v2819_v5  ;;  %v6608_v21 = vpack.c.bf16 %v2820_v23, %v2820_v23  ;;  %v3922_v58 = vrot.slane %v3920_v42, 5  ;;  %v6451_v15 = vrot.slane %v4065_v48, 9  ;;  %6989 = vmatpush3.bf16.msra.mxu0 %v7651_v19  ;;  %v3242_v43 = vld [vmem:[#allocation2 + $0x70] sm:$0xf] }
 0x20c   :  { %v4142_v10 = vrot.slane %v9848_v38, 5  ;;  %v3100_v41 = vor.u32 %v3098_v52, %v3097_v12  ;;  %v3101_v60 = vrot.slane %v3097_v12, 4  ;;  %v4139_v44 = vsel %vm8447_vm5, %v6450_v54, %v4138_v46  ;;  %7281 = vmatpush3.bf16.msra.mxu1 %v7621_v18  ;;  %6990 = vmatprep.subr.bf16.mxu0 %v7655_v17  ;;  %v3245_v50 = vld [vmem:[#allocation2 + $0x74] sm:$0x1]  ;;  %v3248_v62 = vld [vmem:[#allocation2 + $0x78] sm:$0xf] }
 0x20d   :  { %v3105_v4 = vrot.slane %v3103_v14, 7  ;;  %v3111_v33 = vshrl.u32 %v6607_v1, 16  ;;  %v3114_v26 = vshll.u32 %v6607_v1, 16  ;;  %v3119_v29 = vshrl.u32 %v6608_v21, 16  ;;  %7058 = vmatprep.subr.bf16.mxu1 %v7625_v22  ;;  %v9866_v20 = vld [vmem:[#allocation2 + $0x40] sm:$0xf] }
 0x20e   :  { %v4143_v9 = vsel %vm8447_vm5, %v6451_v15, %v4142_v10  ;;  %v3237_v45 = vsel %vm9569_vm12, %v3100_v41, %v3236_v55  ;;  %v3240_v36 = vsel %vm9175_vm8, %v3101_v60, %v3239_v0  ;;  %v3122_v42 = vshll.u32 %v6608_v21, 16  ;;  %v3251_v19 = vld [vmem:[#allocation2 + $0x7c] sm:$0x1]  ;;  %v3254_v17 = vld [vmem:[#allocation2 + $0x80] sm:$0xf] }
 0x20f   :  { %v6478_v53 = vcombine.low %v4139_v44, %v4143_v9  ;;  %v3108_v18 = vor.u32 %v3106_v13, %v3105_v4  ;;  %v3109_v8 = vrot.slane %v3105_v4, 4  ;;  %3238 = vst [vmem:[#allocation2 + $0x68] sm:$0xf] %v3237_v45  ;;  %3241 = vst [vmem:[#allocation2 + $0x6c] sm:$0x1] %v3240_v36  ;;  %v3113_v49 = vrot.slane %v3111_v33, 7  ;;  %6991 = vmatpush3.bf16.msra.mxu0 %v7656_v40 }
 0x210   :  { %v3121_v24 = vrot.slane %v3119_v29, 7  ;;  %v3923_v51 = vor.u32 %v3922_v58, %v9838_v37  ;;  %v3926_v52 = vshll.u32 %v9782_v35, 16  ;;  %v7660_v55 = vld [vmem:[%s10806_s4 + $0x38] sm:$0xff]   ;;  %v3257_v54 = vld [vmem:[#allocation2 + $0x84] sm:$0x1]  ;;  %6992 = vmatprep.subr.bf16.mxu0 %v7659_v63  ;;  %v3931_v14 = vshrl.u32 %v9866_v20, 16 }
 0x211   :  { %7258 = vmatprep.mubr.bf16.mxu1 %v6478_v53  ;;  %v3243_v0 = vsel %vm9569_vm12, %v3108_v18, %v3242_v43  ;;  %v3246_v5 = vsel %vm9175_vm8, %v3109_v8, %v3245_v50  ;;  %v3116_v23 = vor.u32 %v3114_v26, %v3113_v49  ;;  %v3117_v22 = vrot.slane %v3113_v49, 4  ;;  %v9884_v21 = vld [vmem:[#allocation2 + $0x94] sm:$0x1]  ;;  %v4071_v58 = vld [vmem:[#allocation2 + $0x90] sm:$0xe] }
 0x212   :  { %3244 = vst [vmem:[#allocation2 + $0x70] sm:$0xf] %v3243_v0  ;;  %3247 = vst [vmem:[#allocation2 + $0x74] sm:$0x1] %v3246_v5  ;;  %v3124_v35 = vor.u32 %v3122_v42, %v3121_v24  ;;  %v3125_v37 = vrot.slane %v3121_v24, 4  ;;  %v3924_v12 = vrot.slane %v3923_v51, 4  ;;  %v10859_v33 = vsub.f32 %v9455_v61, %v9467_v7 }
 0x213   :  { %v3249_v13 = vsel %vm9569_vm12, %v3116_v23, %v3248_v62  ;;  %v3252_v48 = vsel %vm9175_vm8, %v3117_v22, %v3251_v19  ;;  %v3934_v46 = vshll.u32 %v9866_v20, 16  ;;  %v3940_v1 = vshll.u32 %v9786_v34, 16  ;;  %v9890_v40 = vld [vmem:[#allocation2 + $0xc] sm:$0x1]  ;;  %v3529_v44 = vld [vmem:[#allocation2 + $0x8] sm:$0xe]  ;;  %6993 = vmatpush3.bf16.msra.mxu0 %v7660_v55 }
 0x214   :  { %3250 = vst [vmem:[#allocation2 + $0x78] sm:$0xf] %v3249_v13  ;;  %3253 = vst [vmem:[#allocation2 + $0x7c] sm:$0x1] %v3252_v48  ;;  %v3255_v15 = vsel %vm9569_vm12, %v3124_v35, %v3254_v17  ;;  %v3258_v10 = vsel %vm9175_vm8, %v3125_v37, %v3257_v54  ;;  %v3928_v41 = vrot.slane %v3926_v52, 5  ;;  %v3933_v60 = vrot.slane %v3931_v14, 4 }
 0x215   :  { %3256 = vst [vmem:[#allocation2 + $0x80] sm:$0xf] %v3255_v15  ;;  %3259 = vst [vmem:[#allocation2 + $0x84] sm:$0x1] %v3258_v10  ;;  %v3936_v34 = vrot.slane %v3934_v46, 5  ;;  %v3942_v4 = vrot.slane %v3940_v1, 5  ;;  %v2767_v26 = vmul.f32 %v9516_v27, %v10859_v33  ;;  %v6461_v62 = vcombine.low %v9808_v47, %v9866_v20 }
 0x216   :  { %v9896_v63 = vld [vmem:[#allocation2 + $0x58] sm:$0xf]  ;;  %v9898_v9 = vld [vmem:[#allocation2 + $0x60] sm:$0xf]  ;;  %v10860_v45 = vrot.slane %v9511_v2, 5  ;;  %v10861_v36 = vrot.slane %v9508_v31, 9  ;;  %v3929_v61 = vsel %vm7881_vm2, %v3924_v12, %v3928_v41 }
 0x217   :  { %v9908_v50 = vld [vmem:[#allocation2 + $0x6c] sm:$0x1]  ;;  %v4066_v29 = vld [vmem:[#allocation2 + $0x68] sm:$0xe]  ;;  %v6457_v7 = vrot.slane %v4071_v58, 9  ;;  %v4166_v27 = vrot.slane %v9884_v21, 5  ;;  %v3937_v18 = vor.u32 %v3936_v34, %v3933_v60  ;;  %v2789_v8 = vadd.f32 %v9526_v28, %v2767_v26 }
 0x218   :  { %v9906_v43 = vsel %vm8447_vm5, %v10861_v36, %v10860_v45  ;;  %v6452_v53 = vrot.slane %v4066_v29, 9  ;;  %v4146_v31 = vrot.slane %v9908_v50, 5  ;;  %v6403_v49 = vrot.slane %v3529_v44, 9  ;;  %v9946_v60 = vld [vmem:[#allocation2 + $0x14] sm:$0x1] }
 0x219   :  { %v3945_v24 = vshrl.u32 %v9896_v63, 16  ;;  %v3948_v42 = vshll.u32 %v9896_v63, 16  ;;  %v9923_v19 = vld [vmem:[#allocation2 + $0x74] sm:$0x1]  ;;  %v4067_v51 = vld [vmem:[#allocation2 + $0x70] sm:$0xe]  ;;  %v6462_v28 = vcombine.low %v9896_v63, %v9898_v9  ;;  %v9938_v35 = vsel %vm8447_vm5, %v6457_v7, %v4166_v27 }
 0x21a   :  { %v4147_v52 = vsel %vm8447_vm5, %v6452_v53, %v4146_v31  ;;  %v3938_v55 = vrot.slane %v3937_v18, 4  ;;  %v3582_v0 = vrot.slane %v9890_v40, 5  ;;  %v6453_v5 = vrot.slane %v4067_v51, 9  ;;  %v3530_v44 = vld [vmem:[#allocation2 + $0x10] sm:$0xe] }
 0x21b   :  { %v4150_v23 = vrot.slane %v9923_v19, 5  ;;  %v2805_v47 = vmul.f32 0.01, %v2789_v8  ;;  %v3954_v20 = vshll.u32 %v9846_v11, 16  ;;  %v9932_v22 = vld [vmem:[#allocation2 + $0x7c] sm:$0x1] }
 0x21c   :  { %v4068_v17 = vld [vmem:[#allocation2 + $0x78] sm:$0xe]  ;;  %v3943_v54 = vsel %vm7881_vm2, %v3938_v55, %v3942_v4  ;;  %v3947_v37 = vrot.slane %v3945_v24, 4  ;;  %v3950_v12 = vrot.slane %v3948_v42, 5  ;;  %v9942_v13 = vld [vmem:[#allocation2 + $0x84] sm:$0x1]  ;;  %v9952_v4 = vsel %vm8447_vm5, %v6403_v49, %v3582_v0 }
 0x21d   :  { %v4151_v14 = vsel %vm8447_vm5, %v6453_v5, %v4150_v23  ;;  %v4069_v48 = vld [vmem:[#allocation2 + $0x80] sm:$0xe]  ;;  %v6454_v46 = vrot.slane %v4068_v17, 9  ;;  %v4154_v11 = vrot.slane %v9932_v22, 5  ;;  %v6469_v1 = vcombine.low %v3929_v61, %v3943_v54  ;;  %v9955_v45 = vld [vmem:[#allocation2 + $0x10] sm:$0xf] }
 0x21e   :  { %v6479_v58 = vcombine.low %v4147_v52, %v4151_v14  ;;  %v6455_v15 = vrot.slane %v4069_v48, 9  ;;  %v4158_v10 = vrot.slane %v9942_v13, 5  ;;  %v2821_v41 = vmax.f32 %v2789_v8, %v2805_v47  ;;  %v9957_v36 = vld [vmem:[#allocation2 + $0x18] sm:$0xf]  ;;  %v9963_v53 = vld [vmem:[#allocation2 + $0x1c] sm:$0x1] }
 0x21f   :  { %v4155_v34 = vsel %vm8447_vm5, %v6454_v46, %v4154_v11  ;;  %4528 = vmatprep.mubr.bf16.mxu0 %v6469_v1  ;;  %v3951_v33 = vor.u32 %v3950_v12, %v3947_v37  ;;  %v3959_v26 = vshrl.u32 %v9898_v9, 16  ;;  %v3962_v7 = vshll.u32 %v9898_v9, 16  ;;  %v3531_v31 = vld [vmem:[#allocation2 + $0x18] sm:$0xe]  ;;  %v9965_v42 = vld [vmem:[#allocation2 + $0x24] sm:$0x1] }
 0x220   :  { %7259 = vmatmul.mubr.bf16.gmra.mrb[56].mxu1 %v6479_v58  ;;  %v4159_v29 = vsel %vm8447_vm5, %v6455_v15, %v4158_v10  ;;  %v6609_v61 = vpack.c.bf16 %v2821_v41, %v2821_v41  ;;  %4529 = vmatmul.mubr.bf16.gmra.mrb[92].mxu0 %v6461_v62  ;;  %v3968_v27 = vshll.u32 %v9848_v38, 16  ;;  %v6404_v24 = vrot.slane %v3530_v44, 9  ;;  %v9969_v0 = vld [vmem:[#allocation2 + $0x2c] sm:$0x1]  ;;  %v3532_v62 = vld [vmem:[#allocation2 + $0x20] sm:$0xe] }
 0x221   :  { %v6480_v18 = vcombine.low %v4155_v34, %v4159_v29  ;;  %v3952_v8 = vrot.slane %v3951_v33, 4  ;;  %v3961_v49 = vrot.slane %v3959_v26, 4  ;;  %v6434_v52 = vcombine.low %v9532_v56, %v9952_v4  ;;  %v3533_v54 = vld [vmem:[#allocation2 + $0x28] sm:$0xe]  ;;  %v3263_v1 = vld [vmem:[#allocation2 + $0x8c] sm:$0x1] }
 0x222   :  { %v3127_v51 = vshrl.u32 %v6609_v61, 16  ;;  %v3964_v55 = vrot.slane %v3962_v7, 5  ;;  %v3956_v5 = vrot.slane %v3954_v20, 5  ;;  %v3586_v23 = vrot.slane %v9946_v60, 5  ;;  %v9975_v46 = vld [vmem:[#allocation2 + $0x68] sm:$0xf] }
 0x223   :  { %7262 = vmatprep.mubr.bf16.mxu1 %v6480_v18  ;;  %v6405_v47 = vrot.slane %v3531_v31, 9  ;;  %v3590_v17 = vrot.slane %v9963_v53, 5  ;;  %v3130_v12 = vshll.u32 %v6609_v61, 16  ;;  %v3970_v48 = vrot.slane %v3968_v27, 5  ;;  %v3260_v11 = vld [vmem:[#allocation2 + $0x88] sm:$0xf] }
 0x224   :  { %v3129_v37 = vrot.slane %v3127_v51, 7  ;;  %v3965_v14 = vor.u32 %v3964_v55, %v3961_v49  ;;  %v3957_v58 = vsel %vm7881_vm2, %v3952_v8, %v3956_v5  ;;  %v9981_v20 = vsel %vm8447_vm5, %v6404_v24, %v3586_v23  ;;  %v3534_v26 = vld [vmem:[#allocation2 + $0x30] sm:$0xe]  ;;  %v10001_v51 = vld [vmem:[#allocation2 + $0x34] sm:$0x1] }
 0x225   :  { %v9985_v15 = vsel %vm8447_vm5, %v6405_v47, %v3590_v17  ;;  %v6406_v10 = vrot.slane %v3532_v62, 9  ;;  %v3594_v33 = vrot.slane %v9965_v42, 5  ;;  %v6407_v29 = vrot.slane %v3533_v54, 9  ;;  %v9989_v7 = vld [vmem:[#allocation2 + $0x70] sm:$0xf] }
 0x226   :  { %v3132_v41 = vor.u32 %v3130_v12, %v3129_v37  ;;  %v3133_v44 = vrot.slane %v3129_v37, 4  ;;  %v3966_v34 = vrot.slane %v3965_v14, 4  ;;  %v3598_v61 = vrot.slane %v9969_v0, 5  ;;  %v10003_v55 = vld [vmem:[#allocation2 + $0x3c] sm:$0x1] }
 0x227   :  { %v3973_v27 = vshrl.u32 %v9975_v46, 16  ;;  %v3976_v31 = vshll.u32 %v9975_v46, 16  ;;  %v3535_v62 = vld [vmem:[#allocation2 + $0x38] sm:$0xe]  ;;  %v3982_v47 = vshll.u32 %v9908_v50, 16  ;;  %v10010_v17 = vsel %vm8447_vm5, %v6406_v10, %v3594_v33 }
 0x228   :  { %v3261_v18 = vsel %vm9569_vm12, %v3132_v41, %v3260_v11  ;;  %v3264_v8 = vsel %vm9175_vm8, %v3133_v44, %v3263_v1  ;;  %v3971_v49 = vsel %vm7881_vm2, %v3966_v34, %v3970_v48  ;;  %v10006_v25 = vld [vmem:[#allocation2 + $0x5c] sm:$0x1]  ;;  %v3987_v54 = vshrl.u32 %v9989_v7, 16  ;;  %v3537_v14 = vld [vmem:[#allocation2 + $0x58] sm:$0xe] }
 0x229   :  { %3262 = vst [vmem:[#allocation2 + $0x88] sm:$0xf] %v3261_v18  ;;  %3265 = vst [vmem:[#allocation2 + $0x8c] sm:$0x1] %v3264_v8  ;;  %v6470_v5 = vcombine.low %v3957_v58, %v3971_v49  ;;  %v3975_v23 = vrot.slane %v3973_v27, 4  ;;  %v3978_v16 = vrot.slane %v3976_v31, 5  ;;  %v10020_v41 = vsel %vm8447_vm5, %v6407_v29, %v3598_v61 }
 0x22a   :  { %v3990_v37 = vshll.u32 %v9989_v7, 16  ;;  %v6408_v12 = vrot.slane %v3534_v26, 9  ;;  %v3996_v11 = vshll.u32 %v9923_v19, 16  ;;  %v3602_v1 = vrot.slane %v10001_v51, 5  ;;  %v10016_v50 = vld [vmem:[#allocation2 + $0x78] sm:$0xf] }
 0x22b   :  { %4536 = vmatprep.mubr.bf16.mxu0 %v6470_v5  ;;  %v3979_v48 = vor.u32 %v3978_v16, %v3975_v23  ;;  %v6409_v58 = vrot.slane %v3535_v62, 9  ;;  %v3989_v10 = vrot.slane %v3987_v54, 4  ;;  %v3606_v34 = vrot.slane %v10003_v55, 5  ;;  %v10040_v8 = vld [vmem:[#allocation2 + $0x80] sm:$0xf] }
 0x22c   :  { %4537 = vmatmul.mubr.bf16.gmra.mrb[96].mxu0 %v6462_v28  ;;  %v3992_v44 = vrot.slane %v3990_v37, 5  ;;  %v3984_v26 = vrot.slane %v3982_v47, 5  ;;  %v10028_v19 = vsel %vm8447_vm5, %v6408_v12, %v3602_v1  ;;  %v6411_v27 = vrot.slane %v3537_v14, 9  ;;  %v10049_v37 = vld [vmem:[#allocation2 + $0x64] sm:$0x1] }
 0x22d   :  { %v3980_v33 = vrot.slane %v3979_v48, 4  ;;  %v10032_v29 = vsel %vm8447_vm5, %v6409_v58, %v3606_v34  ;;  %v3614_v61 = vrot.slane %v10006_v25, 5  ;;  %v4001_v63 = vshrl.u32 %v10016_v50, 16  ;;  %v3538_v12 = vld [vmem:[#allocation2 + $0x60] sm:$0xe] }
 0x22e   :  { %v3993_v31 = vor.u32 %v3992_v44, %v3989_v10  ;;  %v3998_v28 = vrot.slane %v3996_v11, 5  ;;  %v6463_v18 = vcombine.low %v9975_v46, %v9989_v7  ;;  %v4004_v49 = vshll.u32 %v10016_v50, 16  ;;  %v10053_v11 = vld [vmem:[#allocation2 + $0x6c] sm:$0x1]  ;;  %v3539_v34 = vld [vmem:[#allocation2 + $0x68] sm:$0xe] }
 0x22f   :  { %v3985_v23 = vsel %vm7881_vm2, %v3980_v33, %v3984_v26  ;;  %v4003_v54 = vrot.slane %v4001_v63, 4  ;;  %v4010_v48 = vshll.u32 %v9932_v22, 16  ;;  %v10059_v58 = vsel %vm8447_vm5, %v6411_v27, %v3614_v61  ;;  %v10063_v33 = vld [vmem:[#allocation2 + $0x74] sm:$0x1]  ;;  %v3541_v38 = vld [vmem:[#allocation2 + $0x78] sm:$0xe] }
 0x230   :  { %v10043_v62 = vld [vmem:[#allocation2 + $0x8c] sm:$0x1]  ;;  %v4070_v5 = vld [vmem:[#allocation2 + $0x88] sm:$0xe]  ;;  %v3994_v16 = vrot.slane %v3993_v31, 4  ;;  %v4006_v7 = vrot.slane %v4004_v49, 5 }
 0x231   :  { %v6456_v14 = vrot.slane %v4070_v5, 9  ;;  %v4162_v46 = vrot.slane %v10043_v62, 5  ;;  %v4015_v10 = vshrl.u32 %v10040_v8, 16  ;;  %v4018_v44 = vshll.u32 %v10040_v8, 16  ;;  %v10068_v49 = vld [vmem:[#allocation2 + $0x7c] sm:$0x1] }
 0x232   :  { %v3999_v1 = vsel %vm7881_vm2, %v3994_v16, %v3998_v28  ;;  %v4007_v31 = vor.u32 %v4006_v7, %v4003_v54  ;;  %v4024_v63 = vshll.u32 %v9942_v13, 16  ;;  %v3540_v28 = vld [vmem:[#allocation2 + $0x70] sm:$0xe]  ;;  %v4012_v61 = vrot.slane %v4010_v48, 5 }
 0x233   :  { %v4163_v26 = vsel %vm8447_vm5, %v6456_v14, %v4162_v46  ;;  %v6471_v22 = vcombine.low %v3985_v23, %v3999_v1  ;;  %v4017_v5 = vrot.slane %v4015_v10, 4  ;;  %v4020_v16 = vrot.slane %v4018_v44, 5  ;;  %v10072_v14 = vld [vmem:[#allocation2 + $0x88] sm:$0xf]  ;;  %v10082_v1 = vld [vmem:[#allocation2 + $0x90] sm:$0xf] }
 0x234   :  { %v6481_v27 = vcombine.low %v4163_v26, %v9938_v35  ;;  %v4008_v2 = vrot.slane %v4007_v31, 4  ;;  %v6412_v47 = vrot.slane %v3538_v12, 9  ;;  %v3618_v9 = vrot.slane %v10049_v37, 5  ;;  %v3542_v31 = vld [vmem:[#allocation2 + $0x80] sm:$0xe] }
 0x235   :  { %4544 = vmatprep.mubr.bf16.mxu0 %v6471_v22  ;;  %v6413_v24 = vrot.slane %v3539_v34, 9  ;;  %v4021_v13 = vor.u32 %v4020_v16, %v4017_v5  ;;  %v3622_v23 = vrot.slane %v10053_v11, 5  ;;  %v6414_v54 = vrot.slane %v3540_v28, 9  ;;  %v10104_v34 = vld [vmem:[#allocation2 + $0x84] sm:$0x1] }
 0x236   :  { %7263 = vmatmul.mubr.bf16.gmra.mrb[60].mxu1 %v6481_v27  ;;  %4545 = vmatmul.mubr.bf16.gmra.mrb[100].mxu0 %v6463_v18  ;;  %v3626_v35 = vrot.slane %v10063_v33, 5  ;;  %v6438_v12 = vcombine.low %v9906_v43, %v10059_v58  ;;  %v4026_v46 = vrot.slane %v4024_v63, 5  ;;  %v6415_v7 = vrot.slane %v3541_v38, 9  ;;  %v10111_v22 = vld [vmem:[#allocation2 + $0x8c] sm:$0x1]  ;;  %v7626_v63 = vld [vmem:[%s10806_s4 + $0x180] sm:$0xff]  }
 0x237   :  { %7282 = vmatprep.mubr.bf16.mxu1 %v6434_v52  ;;  %v3630_v48 = vrot.slane %v10068_v49, 5  ;;  %v4013_v18 = vsel %vm7881_vm2, %v4008_v2, %v4012_v61  ;;  %v4022_v10 = vrot.slane %v4021_v13, 4  ;;  %v10088_v44 = vsel %vm8447_vm5, %v6412_v47, %v3618_v9  ;;  %v3543_v16 = vld [vmem:[#allocation2 + $0x88] sm:$0xe] }
 0x238   :  { %v4029_v56 = vshrl.u32 %v10072_v14, 16  ;;  %v10093_v4 = vsel %vm8447_vm5, %v6413_v24, %v3622_v23  ;;  %v10097_v52 = vsel %vm8447_vm5, %v6414_v54, %v3626_v35  ;;  %v4032_v2 = vshll.u32 %v10072_v14, 16 }
 0x239   :  { %v10101_v38 = vsel %vm8447_vm5, %v6415_v7, %v3630_v48  ;;  %v4027_v9 = vsel %vm7881_vm2, %v4022_v10, %v4026_v46  ;;  %v6464_v47 = vcombine.low %v10016_v50, %v10040_v8  ;;  %v4043_v26 = vshrl.u32 %v10082_v1, 16  ;;  %v7627_v50 = vld [vmem:[%s10806_s4 + $0x1c8] sm:$0xff]   ;;  %v10127_v48 = vld [vmem:[#allocation2 + $0x14] sm:$0x1] }
 0x23a   :  { %v4031_v24 = vrot.slane %v4029_v56, 4  ;;  %v6472_v28 = vcombine.low %v4013_v18, %v4027_v9  ;;  %v4034_v27 = vrot.slane %v4032_v2, 5  ;;  %v4038_v61 = vshll.u32 %v10043_v62, 16  ;;  %v7628_v10 = vld [vmem:[%s10806_s4 + $0x188] sm:$0xff]  }
 0x23b   :  { %v4046_v5 = vshll.u32 %v10082_v1, 16  ;;  %v4045_v23 = vrot.slane %v4043_v26, 4  ;;  %v4052_v54 = vshll.u32 %v9884_v21, 16  ;;  %v6416_v62 = vrot.slane %v3542_v31, 9 }
 0x23c   :  { %4552 = vmatprep.mubr.bf16.mxu0 %v6472_v28  ;;  %v4035_v35 = vor.u32 %v4034_v27, %v4031_v24  ;;  %v3634_v7 = vrot.slane %v10104_v34, 5  ;;  %v10862_v18 = vcombine.low %v9981_v20, %v9985_v15  ;;  %v6417_v56 = vrot.slane %v3543_v16, 9  ;;  %v7632_v20 = vld [vmem:[%s10806_s4 + $0x1d0] sm:$0xff]   ;;  %v10144_v28 = vld [vmem:[#allocation2 + $0x1c] sm:$0x1] }
 0x23d   :  { %v4048_v46 = vrot.slane %v4046_v5, 5  ;;  %v3638_v21 = vrot.slane %v10111_v22, 5  ;;  %v5038_v2 = vshrl.u32 %v9955_v45, 16  ;;  %v5041_v9 = vshll.u32 %v9955_v45, 16 }
 0x23e   :  { %7283 = vmatmul.mubr.bf16.vlgmr.msra.gmra.mrb[48].mxu1 %v10862_v18  ;;  %4553 = vmatmul.mubr.bf16.gmra.mrb[104].mxu0 %v6464_v47  ;;  %v10863_v24 = vcombine.low %v10010_v17, %v10020_v41  ;;  %v4036_v15 = vrot.slane %v4035_v35, 4  ;;  %v4040_v26 = vrot.slane %v4038_v61, 5  ;;  %v4054_v47 = vrot.slane %v4052_v54, 5  ;;  %v10148_v17 = vld [vmem:[#allocation2 + $0x8] sm:$0xf] }
 0x23f   :  { %7059 = vmatpush3.bf16.msra.mxu1 %v7626_v63  ;;  %v4049_v31 = vor.u32 %v4048_v46, %v4045_v23  ;;  %v5040_v27 = vrot.slane %v5038_v2, 4  ;;  %v5043_v5 = vrot.slane %v5041_v9, 5  ;;  %v5047_v16 = vshll.u32 %v10127_v48, 16  ;;  %v10162_v2 = vld [vmem:[#allocation2 + $0x20] sm:$0xf]  ;;  %v7633_v9 = vld [vmem:[%s10806_s4 + $0x190] sm:$0xff]  }
 0x240   :  { %7286 = vmatprep.mubr.bf16.mxu1 %v10863_v24  ;;  %7060 = vmatprep.subr.bf16.mxu1 %v7627_v50  ;;  %v5052_v18 = vshrl.u32 %v9957_v36, 16  ;;  %v4041_v41 = vsel %vm7881_vm2, %v4036_v15, %v4040_v26  ;;  %v10154_v61 = vsel %vm8447_vm5, %v6416_v62, %v3634_v7  ;;  %v5055_v23 = vshll.u32 %v9957_v36, 16  ;;  %v7634_v15 = vld [vmem:[%s10806_s4 + $0x1d8] sm:$0xff]  }
 0x241   :  { %v4050_v63 = vrot.slane %v4049_v31, 4  ;;  %v10159_v50 = vsel %vm8447_vm5, %v6417_v56, %v3638_v21  ;;  %v5044_v54 = vor.u32 %v5043_v5, %v5040_v27  ;;  %v5061_v46 = vshll.u32 %v10144_v28, 16  ;;  %v10171_v21 = vld [vmem:[#allocation2 + $0x24] sm:$0x1]  ;;  %v10177_v5 = vld [vmem:[#allocation2 + $0x28] sm:$0xf] }
 0x242   :  { %v5054_v35 = vrot.slane %v5052_v18, 4  ;;  %v5057_v7 = vrot.slane %v5055_v23, 5  ;;  %v3319_v24 = vshrl.u32 %v10148_v17, 16  ;;  %v3322_v56 = vshll.u32 %v10148_v17, 16  ;;  %v10179_v23 = vld [vmem:[#allocation2 + $0x2c] sm:$0x1] }
 0x243   :  { %7061 = vmatpush3.bf16.msra.mxu1 %v7628_v10  ;;  %v4055_v62 = vsel %vm7881_vm2, %v4050_v63, %v4054_v47  ;;  %v5045_v26 = vrot.slane %v5044_v54, 4  ;;  %v5049_v31 = vrot.slane %v5047_v16, 5  ;;  %v3328_v27 = vshll.u32 %v9890_v40, 16  ;;  %v7635_v54 = vld [vmem:[%s10806_s4 + $0x198] sm:$0xff]  }
 0x244   :  { %7062 = vmatprep.subr.bf16.mxu1 %v7632_v20  ;;  %v6473_v10 = vcombine.low %v4041_v41, %v4055_v62  ;;  %v5058_v47 = vor.u32 %v5057_v7, %v5054_v35  ;;  %v3321_v18 = vrot.slane %v3319_v24, 4  ;;  %v3324_v63 = vrot.slane %v3322_v56, 5 }
 0x245   :  { %v5066_v13 = vshrl.u32 %v10162_v2, 16  ;;  %v10864_v20 = vcombine.low %v10028_v19, %v10032_v29  ;;  %v5063_v8 = vrot.slane %v5061_v46, 5  ;;  %v6465_v16 = vcombine.low %v10072_v14, %v10082_v1  ;;  %v7639_v14 = vld [vmem:[%s10806_s4 + $0x1e0] sm:$0xff]  }
 0x246   :  { %4560 = vmatprep.mubr.bf16.mxu0 %v6473_v10  ;;  %v5069_v40 = vshll.u32 %v10162_v2, 16  ;;  %v5075_v41 = vshll.u32 %v10171_v21, 16  ;;  %v5059_v19 = vrot.slane %v5058_v47, 4  ;;  %v3325_v29 = vor.u32 %v3324_v63, %v3321_v18  ;;  %v7640_v47 = vld [vmem:[%s10806_s4 + $0x1a0] sm:$0xff]  }
 0x247   :  { %7287 = vmatmul.mubr.bf16.gmra.mrb[52].mxu1 %v10864_v20  ;;  %v5068_v35 = vrot.slane %v5066_v13, 4  ;;  %v5080_v46 = vshrl.u32 %v10177_v5, 16  ;;  %v5050_v1 = vsel %vm7881_vm2, %v5045_v26, %v5049_v31  ;;  %4561 = vmatmul.mubr.bf16.gmra.mrb[108].mxu0 %v6465_v16  ;;  %v5083_v58 = vshll.u32 %v10177_v5, 16  ;;  %v10209_v31 = vld [vmem:[#allocation2 + $0x18] sm:$0xf]  ;;  %v7643_v20 = vld [vmem:[%s10806_s4 + $0x1e8] sm:$0xff]  }
 0x248   :  { %7290 = vmatprep.mubr.bf16.mxu1 %v6438_v12  ;;  %7063 = vmatpush3.bf16.msra.mxu1 %v7633_v9  ;;  %v5071_v43 = vrot.slane %v5069_v40, 5  ;;  %v5089_v12 = vshll.u32 %v10179_v23, 16  ;;  %v10203_v9 = vld [vmem:[#allocation2 + $0x10] sm:$0xf]  ;;  %v5064_v13 = vsel %vm7881_vm2, %v5059_v19, %v5063_v8  ;;  %v3326_v62 = vrot.slane %v3325_v29, 4 }
 0x249   :  { %7064 = vmatprep.subr.bf16.mxu1 %v7634_v15  ;;  %v3330_v7 = vrot.slane %v3328_v27, 5  ;;  %v5082_v24 = vrot.slane %v5080_v46, 4  ;;  %v6441_v56 = vcombine.low %v10154_v61, %v10159_v50  ;;  %v5077_v10 = vrot.slane %v5075_v41, 5 }
 0x24a   :  { %v5072_v15 = vor.u32 %v5071_v43, %v5068_v35  ;;  %v5085_v26 = vrot.slane %v5083_v58, 5  ;;  %v10214_v18 = vcombine.low %v5050_v1, %v5064_v13  ;;  %v5091_v27 = vrot.slane %v5089_v12, 5  ;;  %v10231_v1 = vld [vmem:[#allocation2 + $0x30] sm:$0xf] }
 0x24b   :  { %v3331_v8 = vsel %vm7881_vm2, %v3326_v62, %v3330_v7  ;;  %v3333_v63 = vshrl.u32 %v10203_v9, 16  ;;  %v10865_v16 = vsel %vm7881_vm2, %v9534_v32, %v9820_v30  ;;  %v3336_v19 = vshll.u32 %v10203_v9, 16  ;;  %v7688_v30 = vld [vmem:[#allocation2] sm:$0xf]  ;;  %v10238_v62 = vld [vmem:[#allocation2 + $0x34] sm:$0x1] }
 0x24c   :  { %7065 = vmatpush3.bf16.msra.mxu1 %v7635_v54  ;;  %v6426_v40 = vcombine.low %v10865_v16, %v3331_v8  ;;  %v5073_v41 = vrot.slane %v5072_v15, 4  ;;  %v5086_v54 = vor.u32 %v5085_v26, %v5082_v24  ;;  %v3342_v35 = vshll.u32 %v9946_v60, 16  ;;  %v10248_v15 = vld [vmem:[#allocation2 + $0x38] sm:$0xf] }
 0x24d   :  { %7066 = vmatprep.subr.bf16.mxu1 %v7639_v14  ;;  %v3335_v29 = vrot.slane %v3333_v63, 4  ;;  %v3347_v46 = vshrl.u32 %v10209_v31, 16  ;;  %v3350_v14 = vshll.u32 %v10209_v31, 16  ;;  %v10866_v43 = vcombine.low %v10088_v44, %v10093_v4  ;;  %v7644_v44 = vld [vmem:[%s10806_s4 + $0x1a8] sm:$0xff]   ;;  %v10258_v63 = vld [vmem:[#allocation2 + $0x3c] sm:$0x1] }
 0x24e   :  { %4842 = vmatprep.mubr.bf16.mxu0 %v6426_v40  ;;  %v5087_v32 = vrot.slane %v5086_v54, 4  ;;  %v6418_v58 = vcombine.low %v7688_v30, %v10148_v17  ;;  %v3338_v12 = vrot.slane %v3336_v19, 5  ;;  %v3356_v13 = vshll.u32 %v9963_v53, 16  ;;  %v7648_v53 = vld [vmem:[%s10806_s4 + $0x1f0] sm:$0xff]   ;;  %v10264_v19 = vld [vmem:[#allocation2 + $0x20] sm:$0xf] }
 0x24f   :  { %7291 = vmatmul.mubr.bf16.gmra.mrb[56].mxu1 %v10866_v43  ;;  %v10867_v60 = vcombine.low %v10097_v52, %v10101_v38  ;;  %v5078_v4 = vsel %vm7881_vm2, %v5073_v41, %v5077_v10  ;;  %v3344_v7 = vrot.slane %v3342_v35, 5  ;;  %v3349_v24 = vrot.slane %v3347_v46, 4 }
 0x250   :  { %7067 = vmatpush3.bf16.msra.mxu1 %v7640_v47  ;;  %v3352_v17 = vrot.slane %v3350_v14, 5  ;;  %v5092_v52 = vsel %vm7881_vm2, %v5087_v32, %v5091_v27  ;;  %4843 = vmatmul.mubr.bf16.vlgmr.msra.gmra.mrb[112].mxu0 %v6418_v58  ;;  %v3339_v38 = vor.u32 %v3338_v12, %v3335_v29  ;;  %v6547_v26 = vcombine.low %v10162_v2, %v10177_v5  ;;  %v7649_v29 = vld [vmem:[%s10806_s4 + $0x1b0] sm:$0xff]   ;;  %v7652_v32 = vld [vmem:[%s10806_s4 + $0x1f8] sm:$0xff]  }
 0x251   :  { %7294 = vmatprep.mubr.bf16.mxu1 %v10867_v60  ;;  %7068 = vmatprep.subr.bf16.mxu1 %v7643_v20  ;;  %v5094_v10 = vshrl.u32 %v10231_v1, 16  ;;  %v3358_v8 = vrot.slane %v3356_v13, 5  ;;  %v5097_v20 = vshll.u32 %v10231_v1, 16  ;;  %v5103_v16 = vshll.u32 %v10238_v62, 16  ;;  %v10279_v60 = vld [vmem:[#allocation2 + $0x28] sm:$0xf] }
 0x252   :  { %v3353_v47 = vor.u32 %v3352_v17, %v3349_v24  ;;  %v3340_v40 = vrot.slane %v3339_v38, 4  ;;  %v5108_v54 = vshrl.u32 %v10248_v15, 16  ;;  %v5111_v27 = vshll.u32 %v10248_v15, 16 }
 0x253   :  { %v5096_v41 = vrot.slane %v5094_v10, 4  ;;  %v10269_v35 = vcombine.low %v5078_v4, %v5092_v52  ;;  %v5099_v14 = vrot.slane %v5097_v20, 5  ;;  %v10271_v43 = vrot.slane %v5103_v16, 5 }
 0x254   :  { %7069 = vmatpush3.bf16.msra.mxu1 %v7644_v44  ;;  %v3354_v46 = vrot.slane %v3353_v47, 4  ;;  %v3345_v30 = vsel %vm7881_vm2, %v3340_v40, %v3344_v7  ;;  %v5110_v58 = vrot.slane %v5108_v54, 4  ;;  %v5113_v12 = vrot.slane %v5111_v27, 5  ;;  %v7653_v7 = vld [vmem:[%s10806_s4 + $0x1b8] sm:$0xff]   ;;  %v10302_v47 = vld [vmem:[#allocation2 + $0x40] sm:$0xf] }
 0x255   :  { %7070 = vmatprep.subr.bf16.mxu1 %v7648_v53  ;;  %v5117_v13 = vshll.u32 %v10258_v63, 16  ;;  %v5100_v4 = vor.u32 %v5099_v14, %v5096_v41  ;;  %v6419_v24 = vcombine.low %v10203_v9, %v10209_v31  ;;  %v3361_v17 = vshrl.u32 %v10264_v19, 16  ;;  %v7658_v53 = vld [vmem:[%s10806_s4 + $0x200] sm:$0xff]  }
 0x256   :  { %v3359_v44 = vsel %vm7881_vm2, %v3354_v46, %v3358_v8  ;;  %v5114_v38 = vor.u32 %v5113_v12, %v5110_v58  ;;  %v3364_v10 = vshll.u32 %v10264_v19, 16  ;;  %v3370_v9 = vshll.u32 %v9965_v42, 16  ;;  %v10305_v42 = vld [vmem:[#allocation2 + $0x44] sm:$0x1]  ;;  %v10321_v12 = vld [vmem:[#allocation2 + $0x4c] sm:$0x1] }
 0x257   :  { %7295 = vmatmul.mubr.bf16.gmra.mrb[60].mxu1 %v6441_v56  ;;  %v6427_v52 = vcombine.low %v3345_v30, %v3359_v44  ;;  %v10298_v31 = vrot.slane %v5100_v4, 4  ;;  %v3363_v61 = vrot.slane %v3361_v17, 4  ;;  %v3375_v50 = vshrl.u32 %v10279_v60, 16 }
 0x258   :  { %7071 = vmatpush3.bf16.msra.mxu1 %v7649_v29  ;;  %5709 = vmatprep.mubr.bf16.mxu1 %v10214_v18  ;;  %v3378_v56 = vshll.u32 %v10279_v60, 16  ;;  %v5115_v8 = vrot.slane %v5114_v38, 4  ;;  %v5119_v20 = vrot.slane %v5117_v13, 5  ;;  %v3366_v16 = vrot.slane %v3364_v10, 5  ;;  %v10311_v29 = vld [vmem:[#allocation2 + $0x48] sm:$0xf] }
 0x259   :  { %7072 = vmatprep.subr.bf16.mxu1 %v7652_v32  ;;  %4850 = vmatprep.mubr.bf16.mxu0 %v6427_v52  ;;  %v3384_v40 = vshll.u32 %v9969_v0, 16  ;;  %v5106_v18 = vsel %vm7881_vm2, %v10298_v31, %v10271_v43  ;;  %v3372_v41 = vrot.slane %v3370_v9, 5  ;;  %v3377_v54 = vrot.slane %v3375_v50, 4  ;;  %v7663_v43 = vld [vmem:[%s10806_s4 + $0x208] sm:$0xff]  }
 0x25a   :  { %4851 = vmatmul.mubr.bf16.gmra.mrb[116].mxu0 %v6419_v24  ;;  %v3380_v27 = vrot.slane %v3378_v56, 5  ;;  %v5120_v46 = vsel %vm7881_vm2, %v5115_v8, %v5119_v20  ;;  %v3367_v14 = vor.u32 %v3366_v16, %v3363_v61  ;;  %v6548_v0 = vcombine.low %v10231_v1, %v10248_v15  ;;  %v10337_v16 = vld [vmem:[#allocation2 + $0x38] sm:$0xf]  ;;  %v7678_v1 = vld [vmem:[%s10806_s4 + $0x230] sm:$0xff]  }
 0x25b   :  { %v5122_v32 = vshrl.u32 %v10302_v47, 16  ;;  %v3386_v58 = vrot.slane %v3384_v40, 5  ;;  %v5125_v13 = vshll.u32 %v10302_v47, 16  ;;  %v5131_v44 = vshll.u32 %v10305_v42, 16 }
 0x25c   :  { %7073 = vmatpush3.bf16.msra.mxu1 %v7653_v7  ;;  %v3381_v30 = vor.u32 %v3380_v27, %v3377_v54  ;;  %v3368_v4 = vrot.slane %v3367_v14, 4  ;;  %v5136_v17 = vshrl.u32 %v10311_v29, 16  ;;  %v5139_v52 = vshll.u32 %v10311_v29, 16  ;;  %v10327_v7 = vld [vmem:[#allocation2 + $0x30] sm:$0xf] }
 0x25d   :  { %7298 = vmatprep.subr.bf16.mxu1 %v7658_v53  ;;  %v5124_v24 = vrot.slane %v5122_v32, 4  ;;  %v5127_v10 = vrot.slane %v5125_v13, 5  ;;  %v5133_v9 = vrot.slane %v5131_v44, 5  ;;  %v5145_v31 = vshll.u32 %v10321_v12, 16 }
 0x25e   :  { %v3382_v38 = vrot.slane %v3381_v30, 4  ;;  %v10868_v61 = vcombine.low %v9955_v45, %v9957_v36  ;;  %v3373_v50 = vsel %vm7881_vm2, %v3368_v4, %v3372_v41  ;;  %v5138_v56 = vrot.slane %v5136_v17, 4  ;;  %v7666_v41 = vld [vmem:[%s10806_s4 + $0x210] sm:$0xff]   ;;  %v10353_v17 = vld [vmem:[#allocation2 + $0x64] sm:$0x1] }
 0x25f   :  { %v5141_v8 = vrot.slane %v5139_v52, 5  ;;  %v6420_v20 = vcombine.low %v10264_v19, %v10279_v60  ;;  %v5128_v54 = vor.u32 %v5127_v10, %v5124_v24  ;;  %v5147_v27 = vrot.slane %v5145_v31, 5  ;;  %v10357_v31 = vld [vmem:[#allocation2 + $0x68] sm:$0xf] }
 0x260   :  { %5710 = vmatmul.mubr.bf16.vlgmr.msra.gmra.mrb[64].mxu1 %v10868_v61  ;;  %v3387_v40 = vsel %vm7881_vm2, %v3382_v38, %v3386_v58  ;;  %v3389_v45 = vshrl.u32 %v10327_v7, 16  ;;  %v3392_v19 = vshll.u32 %v10327_v7, 16  ;;  %v3398_v60 = vshll.u32 %v10001_v51, 16  ;;  %v10350_v58 = vld [vmem:[#allocation2 + $0x60] sm:$0xf] }
 0x261   :  { %5717 = vmatprep.mubr.bf16.mxu1 %v10269_v35  ;;  %7299 = vmatpush3.bf16.msra.mxu1 %v7658_v53  ;;  %v6428_v36 = vcombine.low %v3373_v50, %v3387_v40  ;;  %v5142_v14 = vor.u32 %v5141_v8, %v5138_v56  ;;  %v5129_v35 = vrot.slane %v5128_v54, 4  ;;  %v3403_v32 = vshrl.u32 %v10337_v16, 16  ;;  %v10367_v56 = vld [vmem:[#allocation2 + $0x6c] sm:$0x1] }
 0x262   :  { %7300 = vmatprep.subr.bf16.mxu1 %v7663_v43  ;;  %v3391_v53 = vrot.slane %v3389_v45, 4  ;;  %v3406_v30 = vshll.u32 %v10337_v16, 16  ;;  %v6556_v13 = vcombine.low %v5106_v18, %v5120_v46  ;;  %v3394_v4 = vrot.slane %v3392_v19, 5 }
 0x263   :  { %4858 = vmatprep.mubr.bf16.mxu0 %v6428_v36  ;;  %v5143_v44 = vrot.slane %v5142_v14, 4  ;;  %v3412_v24 = vshll.u32 %v10003_v55, 16  ;;  %v5134_v51 = vsel %vm7881_vm2, %v5129_v35, %v5133_v9  ;;  %v3400_v52 = vrot.slane %v3398_v60, 5  ;;  %v10376_v36 = vld [vmem:[#allocation2 + $0x50] sm:$0xf] }
 0x264   :  { %4859 = vmatmul.mubr.bf16.gmra.mrb[120].mxu0 %v6420_v20  ;;  %v3405_v38 = vrot.slane %v3403_v32, 4  ;;  %v3408_v10 = vrot.slane %v3406_v30, 5  ;;  %v3395_v46 = vor.u32 %v3394_v4, %v3391_v53  ;;  %v6549_v55 = vcombine.low %v10302_v47, %v10311_v29  ;;  %v10381_v32 = vld [vmem:[#allocation2 + $0x58] sm:$0xf]  ;;  %v7672_v30 = vld [vmem:[%s10806_s4 + $0x220] sm:$0xff]  }
 0x265   :  { %7301 = vmatpush3.bf16.msra.mxu1 %v7663_v43  ;;  %v5148_v18 = vsel %vm7881_vm2, %v5143_v44, %v5147_v27  ;;  %v7669_v43 = vld [vmem:[%s10806_s4 + $0x218] sm:$0xff]   ;;  %v5150_v9 = vshrl.u32 %v10350_v58, 16  ;;  %v3414_v50 = vrot.slane %v3412_v24, 5  ;;  %v5153_v8 = vshll.u32 %v10350_v58, 16 }
 0x266   :  { %7302 = vmatprep.subr.bf16.mxu1 %v7666_v41  ;;  %v3409_v61 = vor.u32 %v3408_v10, %v3405_v38  ;;  %v5159_v20 = vshll.u32 %v10353_v17, 16  ;;  %v3396_v40 = vrot.slane %v3395_v46, 4  ;;  %v5164_v27 = vshrl.u32 %v10357_v31, 16  ;;  %v7689_v38 = vld [vmem:[#allocation2 + $0x54] sm:$0x1] }
 0x267   :  { %v5152_v54 = vrot.slane %v5150_v9, 4  ;;  %v5167_v45 = vshll.u32 %v10357_v31, 16  ;;  %v6557_v14 = vcombine.low %v5134_v51, %v5148_v18  ;;  %v5155_v60 = vrot.slane %v5153_v8, 5  ;;  %v7675_v18 = vld [vmem:[%s10806_s4 + $0x228] sm:$0xff]  }
 0x268   :  { %5718 = vmatmul.mubr.bf16.gmra.mrb[68].mxu1 %v6547_v26  ;;  %v3410_v19 = vrot.slane %v3409_v61, 4  ;;  %v5161_v35 = vrot.slane %v5159_v20, 5  ;;  %v3401_v53 = vsel %vm7881_vm2, %v3396_v40, %v3400_v52  ;;  %v5166_v2 = vrot.slane %v5164_v27, 4 }
 0x269   :  { %5725 = vmatprep.mubr.bf16.mxu1 %v6556_v13  ;;  %7303 = vmatpush3.bf16.msra.mxu1 %v7666_v41  ;;  %v5169_v5 = vrot.slane %v5167_v45, 5  ;;  %v5173_v26 = vshll.u32 %v10367_v56, 16  ;;  %v5156_v13 = vor.u32 %v5155_v60, %v5152_v54  ;;  %v6421_v44 = vcombine.low %v10327_v7, %v10337_v16  ;;  %v10397_v7 = vld [vmem:[#allocation2 + $0x70] sm:$0xf]  ;;  %v10400_v54 = vld [vmem:[#allocation2 + $0x74] sm:$0x1] }
 0x26a   :  { %7304 = vmatprep.subr.bf16.mxu1 %v7669_v43  ;;  %v3415_v41 = vsel %vm7881_vm2, %v3410_v19, %v3414_v50  ;;  %v3417_v4 = vshrl.u32 %v10376_v36, 16  ;;  %v3420_v52 = vshll.u32 %v10376_v36, 16  ;;  %v3426_v10 = vshll.u32 %v7689_v38, 16  ;;  %v10404_v60 = vld [vmem:[#allocation2 + $0x78] sm:$0xf] }
 0x26b   :  { %v6429_v24 = vcombine.low %v3401_v53, %v3415_v41  ;;  %v5170_v51 = vor.u32 %v5169_v5, %v5166_v2  ;;  %v5157_v46 = vrot.slane %v5156_v13, 4  ;;  %v3431_v61 = vshrl.u32 %v10381_v32, 16  ;;  %v10414_v41 = vld [vmem:[#allocation2 + $0x7c] sm:$0x1] }
 0x26c   :  { %v3419_v9 = vrot.slane %v3417_v4, 4  ;;  %v3434_v50 = vshll.u32 %v10381_v32, 16  ;;  %v5175_v8 = vrot.slane %v5173_v26, 5  ;;  %v3422_v20 = vrot.slane %v3420_v52, 5 }
 0x26d   :  { %7305 = vmatpush3.bf16.msra.mxu1 %v7669_v43  ;;  %4866 = vmatprep.mubr.bf16.mxu0 %v6429_v24  ;;  %v5171_v16 = vrot.slane %v5170_v51, 4  ;;  %v3440_v40 = vshll.u32 %v10006_v25, 16  ;;  %v5162_v27 = vsel %vm7881_vm2, %v5157_v46, %v5161_v35  ;;  %v3428_v43 = vrot.slane %v3426_v10, 5 }
 0x26e   :  { %7306 = vmatprep.subr.bf16.mxu1 %v7672_v30  ;;  %4867 = vmatmul.mubr.bf16.gmra.mrb[124].mxu0 %v6421_v44  ;;  %v3433_v45 = vrot.slane %v3431_v61, 4  ;;  %v3436_v19 = vrot.slane %v3434_v50, 5  ;;  %v3423_v25 = vor.u32 %v3422_v20, %v3419_v9  ;;  %v6550_v2 = vcombine.low %v10350_v58, %v10357_v31  ;;  %v10428_v50 = vld [vmem:[#allocation2 + $0x68] sm:$0xf] }
 0x26f   :  { %v5176_v53 = vsel %vm7881_vm2, %v5171_v16, %v5175_v8  ;;  %v5178_v5 = vshrl.u32 %v10397_v7, 16  ;;  %v3442_v26 = vrot.slane %v3440_v40, 5  ;;  %v5181_v13 = vshll.u32 %v10397_v7, 16 }
 0x270   :  { %5726 = vmatmul.mubr.bf16.gmra.mrb[72].mxu1 %v6548_v0  ;;  %v3437_v35 = vor.u32 %v3436_v19, %v3433_v45  ;;  %v5187_v44 = vshll.u32 %v10400_v54, 16  ;;  %v3424_v15 = vrot.slane %v3423_v25, 4  ;;  %v5192_v4 = vshrl.u32 %v10404_v60, 16 }
 0x271   :  { %5733 = vmatprep.mubr.bf16.mxu1 %v6557_v14  ;;  %7307 = vmatpush3.bf16.msra.mxu1 %v7672_v30  ;;  %v5180_v0 = vrot.slane %v5178_v5, 4  ;;  %v5195_v24 = vshll.u32 %v10404_v60, 16  ;;  %v10423_v14 = vld [vmem:[#allocation2 + $0x60] sm:$0xf]  ;;  %v6558_v51 = vcombine.low %v5162_v27, %v5176_v53  ;;  %v5183_v38 = vrot.slane %v5181_v13, 5  ;;  %v7681_v53 = vld [vmem:[%s10806_s4 + $0x238] sm:$0xff]  }
 0x272   :  { %7308 = vmatprep.subr.bf16.mxu1 %v7675_v18  ;;  %v3438_v52 = vrot.slane %v3437_v35, 4  ;;  %v5189_v10 = vrot.slane %v5187_v44, 5  ;;  %v3429_v30 = vsel %vm7881_vm2, %v3424_v15, %v3428_v43  ;;  %v5194_v46 = vrot.slane %v5192_v4, 4  ;;  %v10448_v44 = vld [vmem:[#allocation2 + $0x84] sm:$0x1] }
 0x273   :  { %v5197_v9 = vrot.slane %v5195_v24, 5  ;;  %v5201_v61 = vshll.u32 %v10414_v41, 16  ;;  %v5184_v8 = vor.u32 %v5183_v38, %v5180_v0  ;;  %v6422_v20 = vcombine.low %v10376_v36, %v10381_v32  ;;  %v10442_v32 = vld [vmem:[#allocation2 + $0x80] sm:$0xf] }
 0x274   :  { %v3443_v16 = vsel %vm7881_vm2, %v3438_v52, %v3442_v26  ;;  %v3445_v40 = vshrl.u32 %v10423_v14, 16  ;;  %v3448_v43 = vshll.u32 %v10423_v14, 16  ;;  %v3454_v19 = vshll.u32 %v10049_v37, 16  ;;  %v10452_v52 = vld [vmem:[#allocation2 + $0x88] sm:$0xf] }
 0x275   :  { %7309 = vmatpush3.bf16.msra.mxu1 %v7675_v18  ;;  %v6430_v27 = vcombine.low %v3429_v30, %v3443_v16  ;;  %v5198_v45 = vor.u32 %v5197_v9, %v5194_v46  ;;  %v5185_v25 = vrot.slane %v5184_v8, 4  ;;  %v3459_v35 = vshrl.u32 %v10428_v50, 16  ;;  %v10459_v30 = vld [vmem:[#allocation2 + $0x8c] sm:$0x1] }
 0x276   :  { %7310 = vmatprep.subr.bf16.mxu1 %v7678_v1  ;;  %v3447_v5 = vrot.slane %v3445_v40, 4  ;;  %v3462_v36 = vshll.u32 %v10428_v50, 16  ;;  %v5203_v37 = vrot.slane %v5201_v61, 5  ;;  %v3450_v26 = vrot.slane %v3448_v43, 5 }
 0x277   :  { %4874 = vmatprep.mubr.bf16.mxu0 %v6430_v27  ;;  %v5199_v18 = vrot.slane %v5198_v45, 4  ;;  %v3468_v13 = vshll.u32 %v10053_v11, 16  ;;  %v5190_v15 = vsel %vm7881_vm2, %v5185_v25, %v5189_v10  ;;  %v3456_v0 = vrot.slane %v3454_v19, 5 }
 0x278   :  { %5734 = vmatmul.mubr.bf16.gmra.mrb[76].mxu1 %v6549_v55  ;;  %4875 = vmatmul.mubr.bf16.gmra.mrb[128].mxu0 %v6422_v20  ;;  %v3461_v4 = vrot.slane %v3459_v35, 4  ;;  %v3464_v24 = vrot.slane %v3462_v36, 5  ;;  %v3451_v29 = vor.u32 %v3450_v26, %v3447_v5  ;;  %v6551_v55 = vcombine.low %v10397_v7, %v10404_v60  ;;  %v10465_v20 = vld [vmem:[#allocation2 + $0x70] sm:$0xf]  ;;  %v10470_v35 = vld [vmem:[#allocation2 + $0x78] sm:$0xf] }
 0x279   :  { %5741 = vmatprep.mubr.bf16.mxu1 %v6558_v51  ;;  %v5204_v47 = vsel %vm7881_vm2, %v5199_v18, %v5203_v37  ;;  %v5206_v11 = vshrl.u32 %v10442_v32, 16  ;;  %7311 = vmatpush3.bf16.msra.mxu1 %v7678_v1  ;;  %v3470_v38 = vrot.slane %v3468_v13, 5  ;;  %v5209_v10 = vshll.u32 %v10442_v32, 16 }
 0x27a   :  { %v3465_v51 = vor.u32 %v3464_v24, %v3461_v4  ;;  %v5215_v46 = vshll.u32 %v10448_v44, 16  ;;  %7312 = vmatprep.subr.bf16.mxu1 %v7681_v53  ;;  %v3452_v9 = vrot.slane %v3451_v29, 4  ;;  %v5220_v16 = vshrl.u32 %v10452_v52, 16 }
 0x27b   :  { %v5208_v61 = vrot.slane %v5206_v11, 4  ;;  %v5223_v8 = vshll.u32 %v10452_v52, 16  ;;  %v6559_v40 = vcombine.low %v5190_v15, %v5204_v47  ;;  %v5211_v1 = vrot.slane %v5209_v10, 5 }
 0x27c   :  { %v3466_v27 = vrot.slane %v3465_v51, 4  ;;  %v5217_v45 = vrot.slane %v5215_v46, 5  ;;  %v3457_v43 = vsel %vm7881_vm2, %v3452_v9, %v3456_v0  ;;  %v5222_v19 = vrot.slane %v5220_v16, 4  ;;  %v10491_v46 = vld [vmem:[#allocation2 + $0x98] sm:$0xf] }
 0x27d   :  { %v5225_v25 = vrot.slane %v5223_v8, 5  ;;  %v5229_v5 = vshll.u32 %v10459_v30, 16  ;;  %7313 = vmatpush3.bf16.msra.mxu1 %v7681_v53  ;;  %v5212_v18 = vor.u32 %v5211_v1, %v5208_v61  ;;  %v6423_v37 = vcombine.low %v10423_v14, %v10428_v50  ;;  %v10484_v14 = vld [vmem:[#allocation2 + $0x90] sm:$0xf] }
 0x27e   :  { %v3471_v36 = vsel %vm7881_vm2, %v3466_v27, %v3470_v38  ;;  %v3473_v26 = vshrl.u32 %v10465_v20, 16  ;;  %v3476_v0 = vshll.u32 %v10465_v20, 16  ;;  %v3482_v4 = vshll.u32 %v10063_v33, 16  ;;  %v10496_v27 = vld [vmem:[#allocation2 + $0x9c] sm:$0x1] }
 0x27f   :  { %v6431_v13 = vcombine.low %v3457_v43, %v3471_v36  ;;  %v5226_v15 = vor.u32 %v5225_v25, %v5222_v19  ;;  %v5213_v53 = vrot.slane %v5212_v18, 4  ;;  %v3487_v47 = vshrl.u32 %v10470_v35, 16  ;;  %v10502_v36 = vld [vmem:[#allocation2 + $0x80] sm:$0xf] }
 0x280   :  { %5742 = vmatmul.mubr.bf16.gmra.mrb[80].mxu1 %v6550_v2  ;;  %v3475_v24 = vrot.slane %v3473_v26, 4  ;;  %v3490_v29 = vshll.u32 %v10470_v35, 16  ;;  %v5231_v11 = vrot.slane %v5229_v5, 5  ;;  %v3478_v58 = vrot.slane %v3476_v0, 5  ;;  %v10487_v2 = vld [vmem:[#allocation2 + $0x94] sm:$0x1] }
 0x281   :  { %5749 = vmatprep.mubr.bf16.mxu1 %v6559_v40  ;;  %4882 = vmatprep.mubr.bf16.mxu0 %v6431_v13  ;;  %v5227_v50 = vrot.slane %v5226_v15, 4  ;;  %v3496_v31 = vshll.u32 %v10068_v49, 16  ;;  %v5218_v33 = vsel %vm7881_vm2, %v5213_v53, %v5217_v45  ;;  %v3484_v51 = vrot.slane %v3482_v4, 5 }
 0x282   :  { %4883 = vmatmul.mubr.bf16.gmra.mrb[132].mxu0 %v6423_v37  ;;  %v3489_v38 = vrot.slane %v3487_v47, 4  ;;  %v3492_v10 = vrot.slane %v3490_v29, 5  ;;  %v3479_v61 = vor.u32 %v3478_v58, %v3475_v24  ;;  %v5234_v8 = vshrl.u32 %v10484_v14, 16  ;;  %v3287_v24 = vld [vmem:[#allocation2 + $0x88] sm:$0xf] }
 0x283   :  { %v5232_v9 = vsel %vm7881_vm2, %v5227_v50, %v5231_v11  ;;  %v3498_v16 = vrot.slane %v3496_v31, 5  ;;  %v5237_v1 = vshll.u32 %v10484_v14, 16  ;;  %v5243_v45 = vshll.u32 %v10487_v2, 16 }
 0x284   :  { %v6560_v40 = vcombine.low %v5218_v33, %v5232_v9  ;;  %v3493_v49 = vor.u32 %v3492_v10, %v3489_v38  ;;  %v3480_v43 = vrot.slane %v3479_v61, 4  ;;  %v5236_v19 = vrot.slane %v5234_v8, 4 }
 0x285   :  { %v5248_v25 = vshrl.u32 %v10491_v46, 16  ;;  %v5251_v5 = vshll.u32 %v10491_v46, 16  ;;  %v5239_v37 = vrot.slane %v5237_v1, 5  ;;  %v5245_v26 = vrot.slane %v5243_v45, 5  ;;  %v5263_v1 = vld [vmem:[#allocation2 + $0x20] sm:$0xe] }
 0x286   :  { %v3494_v18 = vrot.slane %v3493_v49, 4  ;;  %v5257_v13 = vshll.u32 %v10496_v27, 16  ;;  %v3485_v15 = vsel %vm7881_vm2, %v3480_v43, %v3484_v51  ;;  %v6424_v53 = vcombine.low %v10465_v20, %v10470_v35  ;;  %v5261_v20 = vld [vmem:[#allocation2 + $0x10] sm:$0xe] }
 0x287   :  { %v5250_v0 = vrot.slane %v5248_v25, 4  ;;  %v5253_v4 = vrot.slane %v5251_v5, 5  ;;  %v5240_v29 = vor.u32 %v5239_v37, %v5236_v19  ;;  %v3501_v11 = vshrl.u32 %v10502_v36, 16  ;;  %v5264_v19 = vld [vmem:[#allocation2 + $0x28] sm:$0xe] }
 0x288   :  { %5750 = vmatmul.mubr.bf16.gmra.mrb[84].mxu1 %v6551_v55  ;;  %v3499_v47 = vsel %vm7881_vm2, %v3494_v18, %v3498_v16  ;;  %v5259_v50 = vrot.slane %v5257_v13, 5  ;;  %v3504_v60 = vshll.u32 %v10502_v36, 16  ;;  %v3510_v55 = vshll.u32 %v10104_v34, 16  ;;  %v5262_v16 = vld [vmem:[#allocation2 + $0x18] sm:$0xe] }
 0x289   :  { %5757 = vmatprep.mubr.bf16.mxu1 %v6560_v40  ;;  %v6432_v58 = vcombine.low %v3485_v15, %v3499_v47  ;;  %v5254_v7 = vor.u32 %v5253_v4, %v5250_v0  ;;  %v5241_v31 = vrot.slane %v5240_v29, 4  ;;  %v3503_v33 = vrot.slane %v3501_v11, 4 }
 0x28a   :  { %v3515_v51 = vshrl.u32 %v3287_v24, 16  ;;  %v3518_v38 = vshll.u32 %v3287_v24, 16  ;;  %v5319_v35 = vrot.slane %v10171_v21, 5  ;;  %v5323_v10 = vrot.slane %v10179_v23, 5 }
 0x28b   :  { %4890 = vmatprep.mubr.bf16.mxu0 %v6432_v58  ;;  %v5255_v9 = vrot.slane %v5254_v7, 4  ;;  %v3506_v61 = vrot.slane %v3504_v60, 5  ;;  %v5246_v8 = vsel %vm7881_vm2, %v5241_v31, %v5245_v26  ;;  %v3524_v34 = vshll.u32 %v10111_v22, 16  ;;  %v5265_v7 = vld [vmem:[#allocation2 + $0x30] sm:$0xe] }
 0x28c   :  { %4891 = vmatmul.mubr.bf16.gmra.mrb[136].mxu0 %v6424_v53  ;;  %v3517_v40 = vrot.slane %v3515_v51, 4  ;;  %v3520_v49 = vrot.slane %v3518_v38, 5  ;;  %v6552_v45 = vcombine.low %v10442_v32, %v10452_v52  ;;  %v3512_v43 = vrot.slane %v3510_v55, 5  ;;  %v5266_v60 = vld [vmem:[#allocation2 + $0x38] sm:$0xe] }
 0x28d   :  { %v5260_v21 = vsel %vm7881_vm2, %v5255_v9, %v5259_v50  ;;  %v3507_v23 = vor.u32 %v3506_v61, %v3503_v33  ;;  %v6530_v18 = vrot.slane %v5261_v20, 9  ;;  %v5311_v37 = vrot.slane %v10127_v48, 5  ;;  %v5267_v20 = vld [vmem:[#allocation2 + $0x40] sm:$0xe] }
 0x28e   :  { %v6561_v25 = vcombine.low %v5246_v8, %v5260_v21  ;;  %v3521_v5 = vor.u32 %v3520_v49, %v3517_v40  ;;  %v6531_v13 = vrot.slane %v5262_v16, 9  ;;  %v5315_v22 = vrot.slane %v10144_v28, 5  ;;  %v5272_v21 = vld [vmem:[#allocation2 + $0x78] sm:$0xe] }
 0x28f   :  { %v3508_v26 = vrot.slane %v3507_v23, 4  ;;  %v6532_v15 = vrot.slane %v5263_v1, 9  ;;  %v3526_v32 = vrot.slane %v3524_v34, 5  ;;  %v6533_v52 = vrot.slane %v5264_v19, 9  ;;  %v5273_v23 = vld [vmem:[#allocation2 + $0x80] sm:$0xe] }
 0x290   :  { %5758 = vmatmul.mubr.bf16.gmra.mrb[88].mxu1 %v6552_v45  ;;  %v3522_v0 = vrot.slane %v3521_v5, 4  ;;  %v5312_v28 = vsel %vm8447_vm5, %v6530_v18, %v5311_v37  ;;  %v5316_v50 = vsel %vm8447_vm5, %v6531_v13, %v5315_v22  ;;  %v6425_v58 = vcombine.low %v10502_v36, %v3287_v24  ;;  %v5271_v45 = vld [vmem:[#allocation2 + $0x70] sm:$0xe] }
 0x291   :  { %5765 = vmatprep.mubr.bf16.mxu1 %v6561_v25  ;;  %v3513_v4 = vsel %vm7881_vm2, %v3508_v26, %v3512_v43  ;;  %v5320_v53 = vsel %vm8447_vm5, %v6532_v15, %v5319_v35  ;;  %v5324_v48 = vsel %vm8447_vm5, %v6533_v52, %v5323_v10  ;;  %v6553_v57 = vcombine.low %v10484_v14, %v10491_v46  ;;  %v5268_v35 = vld [vmem:[#allocation2 + $0x48] sm:$0xe]  ;;  %v5269_v10 = vld [vmem:[#allocation2 + $0x60] sm:$0xe]  ;;  %v5276_v52 = vld [vmem:[#allocation2 + $0x98] sm:$0xe] }
 0x292   :  { %v3527_v47 = vsel %vm7881_vm2, %v3522_v0, %v3526_v32  ;;  %v6563_v11 = vcombine.low %v5320_v53, %v5324_v48  ;;  %v6562_v55 = vcombine.low %v5312_v28, %v5316_v50  ;;  %v6534_v31 = vrot.slane %v5265_v7, 9  ;;  %v5270_v14 = vld [vmem:[#allocation2 + $0x68] sm:$0xe]  ;;  %v5275_v32 = vld [vmem:[#allocation2 + $0x90] sm:$0xe] }
 0x293   :  { %v6433_v29 = vcombine.low %v3513_v4, %v3527_v47  ;;  %v5327_v33 = vrot.slane %v10238_v62, 5  ;;  %v6535_v51 = vrot.slane %v5266_v60, 9  ;;  %v5331_v38 = vrot.slane %v10258_v63, 5 }
 0x294   :  { %v6536_v46 = vrot.slane %v5267_v20, 9  ;;  %v5335_v61 = vrot.slane %v10305_v42, 5  ;;  %v6537_v16 = vrot.slane %v5268_v35, 9  ;;  %v5339_v62 = vrot.slane %v10321_v12, 5 }
 0x295   :  { %4898 = vmatprep.mubr.bf16.mxu0 %v6433_v29  ;;  %v5328_v36 = vsel %vm8447_vm5, %v6534_v31, %v5327_v33  ;;  %v5332_v24 = vsel %vm8447_vm5, %v6535_v51, %v5331_v38  ;;  %v6538_v63 = vrot.slane %v5269_v10, 9  ;;  %v5343_v8 = vrot.slane %v10353_v17, 5  ;;  %v5274_v17 = vld [vmem:[#allocation2 + $0x88] sm:$0xe] }
 0x296   :  { %4899 = vmatmul.mubr.bf16.gmra.mrb[140].mxu0 %v6425_v58  ;;  %v6564_v9 = vcombine.low %v5328_v36, %v5332_v24  ;;  %v6539_v40 = vrot.slane %v5270_v14, 9  ;;  %v5347_v49 = vrot.slane %v10367_v56, 5  ;;  %v5336_v34 = vsel %vm8447_vm5, %v6536_v46, %v5335_v61 }
 0x297   :  { %v5340_v1 = vsel %vm8447_vm5, %v6537_v16, %v5339_v62  ;;  %v5344_v42 = vsel %vm8447_vm5, %v6538_v63, %v5343_v8  ;;  %v6540_v19 = vrot.slane %v5271_v45, 9  ;;  %v5351_v25 = vrot.slane %v10400_v54, 5 }
 0x298   :  { %5766 = vmatmul.mubr.bf16.gmra.mrb[92].mxu1 %v6553_v57  ;;  %v5348_v12 = vsel %vm8447_vm5, %v6539_v40, %v5347_v49  ;;  %v6565_v43 = vcombine.low %v5336_v34, %v5340_v1  ;;  %v6541_v5 = vrot.slane %v5272_v21, 9  ;;  %v5355_v18 = vrot.slane %v10414_v41, 5 }
 0x299   :  { %7314 = vmatprep.mubr.bf16.mxu1 %v6562_v55  ;;  %v6566_v56 = vcombine.low %v5344_v42, %v5348_v12  ;;  %v6542_v37 = vrot.slane %v5273_v23, 9  ;;  %v5359_v26 = vrot.slane %v10448_v44, 5  ;;  %v6543_v13 = vrot.slane %v5274_v17, 9 }
 0x29a   :  { %v5363_v22 = vrot.slane %v10459_v30, 5  ;;  %v5352_v15 = vsel %vm8447_vm5, %v6540_v19, %v5351_v25  ;;  %v5356_v0 = vsel %vm8447_vm5, %v6541_v5, %v5355_v18  ;;  %v6544_v44 = vrot.slane %v5275_v32, 9 }
 0x29b   :  { %v5360_v54 = vsel %vm8447_vm5, %v6542_v37, %v5359_v26  ;;  %v6567_v4 = vcombine.low %v5352_v15, %v5356_v0  ;;  %v5367_v30 = vrot.slane %v10487_v2, 5  ;;  %v6545_v47 = vrot.slane %v5276_v52, 9 }
 0x29c   :  { %v5364_v41 = vsel %vm8447_vm5, %v6543_v13, %v5363_v22  ;;  %v5371_v48 = vrot.slane %v10496_v27, 5 }
 0x29d   :  { %v6568_v53 = vcombine.low %v5360_v54, %v5364_v41  ;;  %v5368_v29 = vsel %vm8447_vm5, %v6544_v44, %v5367_v30 }
 0x29e   :  { %v5372_v28 = vsel %vm8447_vm5, %v6545_v47, %v5371_v48 }
 0x29f   :  { %v6569_v50 = vcombine.low %v5368_v29, %v5372_v28 }
 0x2a0   :  { %7315 = vmatmul.mubr.bf16.vlgmr.msra.gmra.mrb[48].mxu1 %v6563_v11 }
 0x2a1   :  { %7318 = vmatprep.mubr.bf16.mxu1 %v6564_v9 }
 0x2a8   :  { %7319 = vmatmul.mubr.bf16.gmra.mrb[52].mxu1 %v6565_v43 }
 0x2a9   :  { %7322 = vmatprep.mubr.bf16.mxu1 %v6566_v56 }
 0x2b0   :  { %7323 = vmatmul.mubr.bf16.gmra.mrb[56].mxu1 %v6567_v4 }
 0x2b1   :  { %7326 = vmatprep.mubr.bf16.mxu1 %v6568_v53 }
 0x2b8   :  { %7327 = vmatmul.mubr.bf16.gmra.mrb[60].mxu1 %v6569_v50 }
 0x2c9   :  { %v6914_v11 = vpop.f32.mrb[80].mxu0 }
 0x2ca   :  { %v6915_v58 = vpop.f32.mrb[81].mxu0 }
 0x2cb   :  { %v6916_v7 = vadd.f32 %v6915_v58, %v6914_v11  ;;  %v6917_v60 = vpop.f32.mrb[82].mxu0 }
 0x2cc   :  { %v6918_v57 = vpop.f32.mrb[83].mxu0 }
 0x2cd   :  { %v6919_v55 = vadd.f32 %v6918_v57, %v6917_v60 }
 0x2d1   :  { %v6920_v2 = vpop.f32.mrb[84].mxu0 }
 0x2d2   :  { %v6921_v31 = vpop.f32.mrb[85].mxu0 }
 0x2d3   :  { %v6922_v33 = vadd.f32 %v6921_v31, %v6920_v2  ;;  %v6923_v27 = vpop.f32.mrb[86].mxu0 }
 0x2d4   :  { %v6924_v51 = vpop.f32.mrb[87].mxu0 }
 0x2d5   :  { %v6925_v38 = vadd.f32 %v6924_v51, %v6923_v27 }
 0x2dd   :  { %v6926_v20 = vpop.f32.mrb[88].mxu0 }
 0x2de   :  { %v6927_v36 = vpop.f32.mrb[89].mxu0 }
 0x2df   :  { %v10579_v24 = vadd.f32 %v6927_v36, %v6926_v20  ;;  %v6929_v3 = vpop.f32.mrb[90].mxu0 }
 0x2e0   :  { %v6930_v35 = vpop.f32.mrb[91].mxu0 }
 0x2e1   :  { %v10581_v10 = vadd.f32 %v6930_v35, %v6929_v3 }
 0x2f3   :  { %v6932_v14 = vpop.f32.mrb[92].mxu0 }
 0x2f4   :  { %v6933_v46 = vpop.f32.mrb[93].mxu0 }
 0x2f5   :  { %v10583_v9 = vadd.f32 %v6933_v46, %v6932_v14  ;;  %v6935_v61 = vpop.f32.mrb[94].mxu0 }
 0x2f6   :  { %v6936_v16 = vpop.f32.mrb[95].mxu0 }
 0x2f7   :  { %v10585_v62 = vadd.f32 %v6936_v16, %v6935_v61 }
 0x2ff   :  { %v6938_v63 = vpop.f32.mrb[96].mxu0 }
 0x300   :  { %v6939_v8 = vpop.f32.mrb[97].mxu0 }
 0x301   :  { %v10587_v40 = vadd.f32 %v6939_v8, %v6938_v63  ;;  %v6941_v49 = vpop.f32.mrb[98].mxu0 }
 0x302   :  { %v6942_v34 = vpop.f32.mrb[99].mxu0 }
 0x303   :  { %v10589_v1 = vadd.f32 %v6942_v34, %v6941_v49 }
 0x309   :  { %v6944_v45 = vpop.f32.mrb[100].mxu0 }
 0x30a   :  { %v6945_v42 = vpop.f32.mrb[101].mxu0 }
 0x30b   :  { %v10591_v12 = vadd.f32 %v6945_v42, %v6944_v45  ;;  %v6947_v21 = vpop.f32.mrb[102].mxu0 }
 0x30c   :  { %v6948_v23 = vpop.f32.mrb[103].mxu0 }
 0x30d   :  { %v10593_v17 = vadd.f32 %v6948_v23, %v6947_v21 }
 0x311   :  { %v6950_v43 = vpop.f32.mrb[104].mxu0 }
 0x312   :  { %v6951_v19 = vpop.f32.mrb[105].mxu0 }
 0x313   :  { %v10595_v56 = vadd.f32 %v6951_v19, %v6950_v43  ;;  %v6953_v25 = vpop.f32.mrb[106].mxu0 }
 0x314   :  { %v6954_v5 = vpop.f32.mrb[107].mxu0 }
 0x315   :  { %v10597_v18 = vadd.f32 %v6954_v5, %v6953_v25 }
 0x31a   :  { %v6956_v37 = vpop.f32.mrb[108].mxu0 }
 0x31b   :  { %v6957_v26 = vpop.f32.mrb[109].mxu0 }
 0x31c   :  { %v10599_v13 = vadd.f32 %v6957_v26, %v6956_v37  ;;  %v6959_v22 = vpop.f32.mrb[110].mxu0 }
 0x31d   :  { %v6960_v15 = vpop.f32.mrb[111].mxu0 }
 0x31e   :  { %v10601_v0 = vadd.f32 %v6960_v15, %v6959_v22 }
 0x323   :  { %v6994_v32 = vpop.f32.mrb[112].mxu0 }
 0x324   :  { %v6995_v54 = vpop.f32.mrb[113].mxu0 }
 0x325   :  { %v6996_v41 = vadd.f32 %v6995_v54, %v6994_v32  ;;  %v6997_v52 = vpop.f32.mrb[114].mxu0 }
 0x326   :  { %v6998_v4 = vpop.f32.mrb[115].mxu0 }
 0x327   :  { %v7397_v44 = vadd.f32 %v6996_v41, %v6916_v7  ;;  %v6999_v53 = vadd.f32 %v6998_v4, %v6997_v52 }
 0x329   :  { %v7403_v30 = vadd.f32 %v6999_v53, %v6919_v55 }
 0x32d   :  { %v7000_v47 = vpop.f32.mrb[116].mxu0 }
 0x32e   :  { %v7001_v48 = vpop.f32.mrb[117].mxu0 }
 0x32f   :  { %v7002_v29 = vadd.f32 %v7001_v48, %v7000_v47  ;;  %v7003_v28 = vpop.f32.mrb[118].mxu0 }
 0x330   :  { %v7004_v50 = vpop.f32.mrb[119].mxu0 }
 0x331   :  { %v7394_v11 = vadd.f32 %v7002_v29, %v6922_v33  ;;  %v7005_v58 = vadd.f32 %v7004_v50, %v7003_v28 }
 0x333   :  { %v7074_v60 = vpop.f32.mrb[64].mxu1  ;;  %v7400_v2 = vadd.f32 %v7005_v58, %v6925_v38 }
 0x334   :  { %v7075_v57 = vpop.f32.mrb[65].mxu1 }
 0x335   :  { %v7076_v31 = vadd.f32 %v7075_v57, %v7074_v60  ;;  %v7077_v27 = vpop.f32.mrb[66].mxu1 }
 0x336   :  { %v7078_v51 = vpop.f32.mrb[67].mxu1 }
 0x337   :  { %v7079_v20 = vadd.f32 %v7078_v51, %v7077_v27  ;;  %v10603_v36 = vadd.f32 %v7397_v44, %v7076_v31  ;;  %v7006_v3 = vpop.f32.mrb[120].mxu0 }
 0x338   :  { %v7007_v7 = vpop.f32.mrb[121].mxu0 }
 0x339   :  { %v10605_v35 = vadd.f32 %v7403_v30, %v7079_v20  ;;  %v7008_v55 = vadd.f32 %v7007_v7, %v7006_v3  ;;  %v7009_v14 = vpop.f32.mrb[122].mxu0 }
 0x33a   :  { %v7010_v61 = vpop.f32.mrb[123].mxu0 }
 0x33b   :  { %v7080_v46 = vpop.f32.mrb[68].mxu1  ;;  %v7409_v33 = vadd.f32 %v7008_v55, %v10579_v24  ;;  %v7011_v63 = vadd.f32 %v7010_v61, %v7009_v14 }
 0x33c   :  { %v7081_v16 = vpop.f32.mrb[69].mxu1 }
 0x33d   :  { %v7082_v8 = vadd.f32 %v7081_v16, %v7080_v46  ;;  %v7083_v38 = vpop.f32.mrb[70].mxu1  ;;  %v7415_v34 = vadd.f32 %v7011_v63, %v10581_v10 }
 0x33e   :  { %v7084_v49 = vpop.f32.mrb[71].mxu1 }
 0x33f   :  { %v7085_v45 = vadd.f32 %v7084_v49, %v7083_v38  ;;  %v10609_v42 = vadd.f32 %v7394_v11, %v7082_v8 }
 0x341   :  { %v10611_v21 = vadd.f32 %v7400_v2, %v7085_v45  ;;  %v7012_v23 = vpop.f32.mrb[124].mxu0 }
 0x342   :  { %v7013_v19 = vpop.f32.mrb[125].mxu0 }
 0x343   :  { %v7086_v43 = vpop.f32.mrb[72].mxu1  ;;  %v7014_v5 = vadd.f32 %v7013_v19, %v7012_v23  ;;  %v7015_v37 = vpop.f32.mrb[126].mxu0 }
 0x344   :  { %v7087_v25 = vpop.f32.mrb[73].mxu1  ;;  %v7016_v24 = vpop.f32.mrb[127].mxu0 }
 0x345   :  { %v7088_v26 = vadd.f32 %v7087_v25, %v7086_v43  ;;  %v7089_v22 = vpop.f32.mrb[74].mxu1  ;;  %v7406_v32 = vadd.f32 %v7014_v5, %v10583_v9  ;;  %v7017_v54 = vadd.f32 %v7016_v24, %v7015_v37 }
 0x346   :  { %v7090_v15 = vpop.f32.mrb[75].mxu1 }
 0x347   :  { %v7091_v41 = vadd.f32 %v7090_v15, %v7089_v22  ;;  %v10614_v10 = vadd.f32 %v7409_v33, %v7088_v26  ;;  %v7412_v52 = vadd.f32 %v7017_v54, %v10585_v62 }
 0x349   :  { %v10617_v4 = vadd.f32 %v7415_v34, %v7091_v41 }
 0x34b   :  { %v7092_v44 = vpop.f32.mrb[76].mxu1  ;;  %v7018_v30 = vpop.f32.mrb[128].mxu0 }
 0x34c   :  { %v7093_v53 = vpop.f32.mrb[77].mxu1  ;;  %v7019_v29 = vpop.f32.mrb[129].mxu0 }
 0x34d   :  { %v7094_v47 = vadd.f32 %v7093_v53, %v7092_v44  ;;  %v7095_v48 = vpop.f32.mrb[78].mxu1  ;;  %v7020_v50 = vadd.f32 %v7019_v29, %v7018_v30  ;;  %v7021_v11 = vpop.f32.mrb[130].mxu0 }
 0x34e   :  { %v7096_v28 = vpop.f32.mrb[79].mxu1  ;;  %v7022_v60 = vpop.f32.mrb[131].mxu0 }
 0x34f   :  { %v7097_v58 = vadd.f32 %v7096_v28, %v7095_v48  ;;  %v10619_v9 = vadd.f32 %v7406_v32, %v7094_v47  ;;  %v7421_v57 = vadd.f32 %v7020_v50, %v10587_v40  ;;  %v7023_v2 = vadd.f32 %v7022_v60, %v7021_v11 }
 0x351   :  { %v10622_v31 = vadd.f32 %v7412_v52, %v7097_v58  ;;  %v7427_v62 = vadd.f32 %v7023_v2, %v10589_v1 }
 0x353   :  { %v7098_v27 = vpop.f32.mrb[80].mxu1 }
 0x354   :  { %v7099_v51 = vpop.f32.mrb[81].mxu1 }
 0x355   :  { %v7100_v20 = vadd.f32 %v7099_v51, %v7098_v27  ;;  %v7101_v3 = vpop.f32.mrb[82].mxu1  ;;  %v7024_v55 = vpop.f32.mrb[132].mxu0 }
 0x356   :  { %v7102_v7 = vpop.f32.mrb[83].mxu1  ;;  %v7025_v46 = vpop.f32.mrb[133].mxu0 }
 0x357   :  { %v7103_v14 = vadd.f32 %v7102_v7, %v7101_v3  ;;  %v10625_v61 = vadd.f32 %v7421_v57, %v7100_v20  ;;  %v7026_v16 = vadd.f32 %v7025_v46, %v7024_v55  ;;  %v7027_v33 = vpop.f32.mrb[134].mxu0 }
 0x358   :  { %v7028_v63 = vpop.f32.mrb[135].mxu0 }
 0x359   :  { %v10627_v8 = vadd.f32 %v7427_v62, %v7103_v14  ;;  %v7418_v40 = vadd.f32 %v7026_v16, %v10591_v12  ;;  %v7029_v38 = vadd.f32 %v7028_v63, %v7027_v33 }
 0x35b   :  { %v7104_v49 = vpop.f32.mrb[84].mxu1  ;;  %v7424_v34 = vadd.f32 %v7029_v38, %v10593_v17 }
 0x35c   :  { %v7105_v1 = vpop.f32.mrb[85].mxu1 }
 0x35d   :  { %v7106_v45 = vadd.f32 %v7105_v1, %v7104_v49  ;;  %v7107_v23 = vpop.f32.mrb[86].mxu1 }
 0x35e   :  { %v7108_v43 = vpop.f32.mrb[87].mxu1 }
 0x35f   :  { %v7109_v19 = vadd.f32 %v7108_v43, %v7107_v23  ;;  %v10631_v25 = vadd.f32 %v7418_v40, %v7106_v45  ;;  %v7030_v5 = vpop.f32.mrb[136].mxu0 }
 0x360   :  { %v7031_v37 = vpop.f32.mrb[137].mxu0 }
 0x361   :  { %v10633_v26 = vadd.f32 %v7424_v34, %v7109_v19  ;;  %v7032_v22 = vadd.f32 %v7031_v37, %v7030_v5  ;;  %v7033_v24 = vpop.f32.mrb[138].mxu0 }
 0x362   :  { %v7034_v32 = vpop.f32.mrb[139].mxu0 }
 0x363   :  { %v7110_v15 = vpop.f32.mrb[88].mxu1  ;;  %v7433_v54 = vadd.f32 %v7032_v22, %v10595_v56  ;;  %v7035_v41 = vadd.f32 %v7034_v32, %v7033_v24 }
 0x364   :  { %v7111_v12 = vpop.f32.mrb[89].mxu1 }
 0x365   :  { %v7112_v52 = vadd.f32 %v7111_v12, %v7110_v15  ;;  %v7113_v17 = vpop.f32.mrb[90].mxu1  ;;  %v7439_v53 = vadd.f32 %v7035_v41, %v10597_v18 }
 0x366   :  { %v7114_v44 = vpop.f32.mrb[91].mxu1 }
 0x367   :  { %v7115_v30 = vadd.f32 %v7114_v44, %v7113_v17  ;;  %v10637_v47 = vadd.f32 %v7433_v54, %v7112_v52 }
 0x369   :  { %v10639_v48 = vadd.f32 %v7439_v53, %v7115_v30  ;;  %v7036_v29 = vpop.f32.mrb[140].mxu0 }
 0x36a   :  { %v7037_v50 = vpop.f32.mrb[141].mxu0 }
 0x36b   :  { %v7116_v28 = vpop.f32.mrb[92].mxu1  ;;  %v7038_v58 = vadd.f32 %v7037_v50, %v7036_v29  ;;  %v7039_v60 = vpop.f32.mrb[142].mxu0 }
 0x36c   :  { %v7117_v11 = vpop.f32.mrb[93].mxu1  ;;  %v7040_v56 = vpop.f32.mrb[143].mxu0 }
 0x36d   :  { %v7118_v57 = vadd.f32 %v7117_v11, %v7116_v28  ;;  %v7119_v2 = vpop.f32.mrb[94].mxu1  ;;  %v7430_v27 = vadd.f32 %v7038_v58, %v10599_v13  ;;  %v7041_v51 = vadd.f32 %v7040_v56, %v7039_v60 }
 0x36e   :  { %v7120_v62 = vpop.f32.mrb[95].mxu1 }
 0x36f   :  { %v7121_v20 = vadd.f32 %v7120_v62, %v7119_v2  ;;  %v7436_v18 = vadd.f32 %v7041_v51, %v10601_v0  ;;  %v7431_v3 = vadd.f32 %v7430_v27, %v7118_v57 }
 0x371   :  { %v10643_v7 = vadd.f32 %v7436_v18, %v7121_v20 }
 0x373   :  { %v7316_v55 = vpop.f32.mrb[48].mxu1 }
 0x374   :  { %v10646_v14 = vadd.f32 %v10609_v42, %v7316_v55  ;;  %v5808_v46 = vpop.f32.mrb[49].mxu1 }
 0x375   :  { %v10649_v16 = vadd.f32 %v10603_v36, %v5808_v46  ;;  %v7317_v33 = vpop.f32.mrb[50].mxu1 }
 0x376   :  { %v10652_v63 = vadd.f32 %v10611_v21, %v7317_v33  ;;  %v5811_v13 = vpop.f32.mrb[51].mxu1  ;;  %v5891_v36 = vmul.f32 %v10646_v14, %v10646_v14 }
 0x377   :  { %v10655_v40 = vadd.f32 %v10605_v35, %v5811_v13  ;;  %v5889_v0 = vmul.f32 %v10649_v16, %v10649_v16 }
 0x378   :  { %v5892_v45 = vmul.f32 %v10652_v63, %v10652_v63 }
 0x379   :  { %v5890_v38 = vmul.f32 %v10655_v40, %v10655_v40  ;;  %v5905_v42 = vadd.f32 %v10655_v40, %v10649_v16 }
 0x37b   :  { %v5906_v49 = vadd.f32 %v10646_v14, %v5905_v42  ;;  %v5926_v21 = vadd.f32 %v5890_v38, %v5889_v0  ;;  %v7320_v1 = vpop.f32.mrb[52].mxu1 }
 0x37c   :  { %v10667_v34 = vadd.f32 %v10619_v9, %v7320_v1  ;;  %v5824_v35 = vpop.f32.mrb[53].mxu1 }
 0x37d   :  { %v5927_v23 = vadd.f32 %v5926_v21, %v5891_v36  ;;  %v10672_v43 = vadd.f32 %v10614_v10, %v5824_v35  ;;  %v5907_v19 = vadd.f32 %v10652_v63, %v5906_v49  ;;  %v7321_v5 = vpop.f32.mrb[54].mxu1 }
 0x37e   :  { %v10676_v37 = vadd.f32 %v10622_v31, %v7321_v5  ;;  %v5827_v22 = vpop.f32.mrb[55].mxu1  ;;  %v5895_v31 = vmul.f32 %v10667_v34, %v10667_v34 }
 0x37f   :  { %v5893_v24 = vmul.f32 %v10672_v43, %v10672_v43  ;;  %v5908_v9 = vadd.f32 %v10672_v43, %v5907_v19  ;;  %v5928_v15 = vadd.f32 %v5927_v23, %v5892_v45  ;;  %v10682_v32 = vadd.f32 %v10617_v4, %v5827_v22 }
 0x380   :  { %v5896_v4 = vmul.f32 %v10676_v37, %v10676_v37 }
 0x381   :  { %v5929_v12 = vadd.f32 %v5928_v15, %v5893_v24  ;;  %v5894_v10 = vmul.f32 %v10682_v32, %v10682_v32  ;;  %v5909_v54 = vadd.f32 %v10682_v32, %v5908_v9 }
 0x383   :  { %v5910_v41 = vadd.f32 %v10667_v34, %v5909_v54  ;;  %v5930_v52 = vadd.f32 %v5929_v12, %v5894_v10  ;;  %v7324_v17 = vpop.f32.mrb[56].mxu1 }
 0x384   :  { %v10691_v44 = vadd.f32 %v10631_v25, %v7324_v17  ;;  %v5840_v53 = vpop.f32.mrb[57].mxu1 }
 0x385   :  { %v5931_v30 = vadd.f32 %v5930_v52, %v5895_v31  ;;  %v10696_v29 = vadd.f32 %v10625_v61, %v5840_v53  ;;  %v5911_v28 = vadd.f32 %v10676_v37, %v5910_v41  ;;  %v7325_v50 = vpop.f32.mrb[58].mxu1 }
 0x386   :  { %v10700_v11 = vadd.f32 %v10633_v26, %v7325_v50  ;;  %v5843_v58 = vpop.f32.mrb[59].mxu1  ;;  %v5899_v26 = vmul.f32 %v10691_v44, %v10691_v44 }
 0x387   :  { %v5897_v60 = vmul.f32 %v10696_v29, %v10696_v29  ;;  %v5912_v25 = vadd.f32 %v10696_v29, %v5911_v28  ;;  %v5932_v57 = vadd.f32 %v5931_v30, %v5896_v4  ;;  %v10706_v2 = vadd.f32 %v10627_v8, %v5843_v58 }
 0x388   :  { %v5900_v8 = vmul.f32 %v10700_v11, %v10700_v11 }
 0x389   :  { %v5933_v56 = vadd.f32 %v5932_v57, %v5897_v60  ;;  %v5898_v61 = vmul.f32 %v10706_v2, %v10706_v2  ;;  %v5913_v62 = vadd.f32 %v10706_v2, %v5912_v25 }
 0x38b   :  { %v5914_v27 = vadd.f32 %v10691_v44, %v5913_v62  ;;  %v5934_v51 = vadd.f32 %v5933_v56, %v5898_v61  ;;  %v7328_v20 = vpop.f32.mrb[60].mxu1 }
 0x38c   :  { %v10714_v18 = vadd.f32 %v7431_v3, %v7328_v20  ;;  %v5856_v55 = vpop.f32.mrb[61].mxu1 }
 0x38d   :  { %v5935_v46 = vadd.f32 %v5934_v51, %v5899_v26  ;;  %v10719_v33 = vadd.f32 %v10637_v47, %v5856_v55  ;;  %v5915_v13 = vadd.f32 %v10700_v11, %v5914_v27  ;;  %v7329_v0 = vpop.f32.mrb[62].mxu1 }
 0x38e   :  { %v10723_v38 = vadd.f32 %v10643_v7, %v7329_v0  ;;  %v5859_v42 = vpop.f32.mrb[63].mxu1  ;;  %v5903_v7 = vmul.f32 %v10714_v18, %v10714_v18 }
 0x38f   :  { %v5901_v36 = vmul.f32 %v10719_v33, %v10719_v33  ;;  %v5916_v3 = vadd.f32 %v10719_v33, %v5915_v13  ;;  %v5936_v49 = vadd.f32 %v5935_v46, %v5900_v8  ;;  %v10729_v21 = vadd.f32 %v10639_v48, %v5859_v42  ;;  %v10870_v8 = vld [vmem:[#allocation4_spill] sm:$0xff]  ;;  %v10871_v46 = vld [vmem:[#allocation5_spill] sm:$0xff]  ;;  %v10872_v13 = vld [vmem:[#allocation6_spill] sm:$0xff] }
 0x390   :  { %v5904_v19 = vmul.f32 %v10723_v38, %v10723_v38  ;;  %v2826_v0 = vunpack.c.l.bf16 %v10872_v13  ;;  %v10873_v42 = vld [vmem:[#allocation7_spill] sm:$0xff] }
 0x391   :  { %v5937_v1 = vadd.f32 %v5936_v49, %v5901_v36  ;;  %v5902_v47 = vmul.f32 %v10729_v21, %v10729_v21  ;;  %v5917_v35 = vadd.f32 %v10729_v21, %v5916_v3  ;;  %v2827_v36 = vunpack.c.l.bf16 %v10873_v42  ;;  %v10874_v3 = vld [vmem:[#allocation8_spill] sm:$0xff]  ;;  %v10875_v49 = vld [vmem:[#allocation9_spill] sm:$0xff] }
 0x393   :  { %v5918_v45 = vadd.f32 %v10714_v18, %v5917_v35  ;;  %v5938_v23 = vadd.f32 %v5937_v1, %v5902_v47  ;;  %v10876_v1 = vld [vmem:[#allocation10_spill] sm:$0xff]  ;;  %v10877_v35 = vld [vmem:[#allocation11_spill] sm:$0xff] }
 0x394   :  { %v2830_v47 = vunpack.c.l.bf16 %v10876_v1 }
 0x395   :  { %v5919_v5 = vadd.f32 %v10723_v38, %v5918_v45  ;;  %v5939_v22 = vadd.f32 %v5938_v23, %v5903_v7  ;;  %v2831_v7 = vunpack.c.l.bf16 %v10877_v35  ;;  %v10878_v45 = vld [vmem:[#allocation12_spill] sm:$0xff] }
 0x396   :  { %v2832_v23 = vunpack.c.l.bf16 %v10878_v45 }
 0x397   :  { %v5920_v48 = vrot.slane %v5919_v5, 4  ;;  %v5940_v24 = vadd.f32 %v5939_v22, %v5904_v19  ;;  %v10879_v19 = vld [vmem:[#allocation13_spill] sm:$0xff]  ;;  %v10880_v22 = vld [vmem:[#allocation14_spill] sm:$0xff] }
 0x399   :  { %v5921_v9 = vadd.f32 %v5920_v48, %v5919_v5  ;;  %v5941_v15 = vrot.slane %v5940_v24, 4  ;;  %v2833_v5 = vunpack.c.l.bf16 %v10879_v19  ;;  %v2834_v48 = vunpack.c.l.bf16 %v10880_v22 }
 0x39b   :  { %v5922_v12 = vrot.slane %v5921_v9, 2  ;;  %v5942_v10 = vadd.f32 %v5941_v15, %v5940_v24  ;;  %v10881_v24 = vsub.s32 0, %v9500_v59  ;;  %v10882_v15 = vld [vmem:[#allocation15_spill] sm:$0xff] }
 0x39d   :  { %v5923_v54 = vadd.f32 %v5922_v12, %v5921_v9  ;;  %v5943_v31 = vrot.slane %v5942_v10, 2  ;;  %v2835_v12 = vunpack.c.l.bf16 %v10882_v15 }
 0x39f   :  { %v5924_v41 = vrot.slane %v5923_v54, 1  ;;  %v5944_v52 = vadd.f32 %v5943_v31, %v5942_v10  ;;  %v10883_v10 = vld [vmem:[#allocation16_spill] sm:$0xff]  ;;  %v2837_v31 = vunpack.c.l.bf16 %v8457_v6 }
 0x3a1   :  { %v5925_v17 = vadd.f32 %v5924_v41, %v5923_v54  ;;  %v5945_v53 = vrot.slane %v5944_v52, 1  ;;  %v2836_v54 = vunpack.c.l.bf16 %v10883_v10  ;;  %v2838_v41 = vunpack.c.l.bf16 %v8469_v39 }
 0x3a3   :  { %v5946_v4 = vadd.f32 %v5945_v53, %v5944_v52  ;;  %v5947_v30 = vmul.f32 0.0078125, %v5925_v17 }
 0x3a5   :  { %v5948_v28 = vmul.f32 0.0078125, %v5946_v4  ;;  %v5949_v50 = vmul.f32 %v5947_v30, %v5947_v30  ;;  %v5955_v58 = vsub.f32 %v10649_v16, %v5947_v30  ;;  %v5956_v60 = vsub.f32 %v10655_v40, %v5947_v30 }
 0x3a6   :  { %v5957_v25 = vsub.f32 %v10646_v14, %v5947_v30  ;;  %v5958_v57 = vsub.f32 %v10652_v63, %v5947_v30  ;;  %v5959_v56 = vsub.f32 %v10672_v43, %v5947_v30  ;;  %v5960_v61 = vsub.f32 %v10682_v32, %v5947_v30 }
 0x3a7   :  { %v5950_v62 = vsub.f32 %v5948_v28, %v5949_v50  ;;  %v5961_v26 = vsub.f32 %v10667_v34, %v5947_v30  ;;  %v5962_v27 = vsub.f32 %v10676_v37, %v5947_v30  ;;  %v5963_v51 = vsub.f32 %v10696_v29, %v5947_v30  ;;  %v5887_v37 = vld [vmem:[%s10809_s5] sm:$0x1] }
 0x3a8   :  { %v5964_v20 = vsub.f32 %v10706_v2, %v5947_v30  ;;  %v5965_v16 = vsub.f32 %v10691_v44, %v5947_v30  ;;  %v5966_v40 = vsub.f32 %v10700_v11, %v5947_v30  ;;  %v5967_v14 = vsub.f32 %v10719_v33, %v5947_v30  ;;  %v10869_v2 = vld [vmem:[#allocation3_spill] sm:$0xff] }
 0x3a9   :  { %v5951_v63 = vmax.f32 %v5950_v62, 0.0  ;;  %v5968_v43 = vsub.f32 %v10729_v21, %v5947_v30  ;;  %v5969_v32 = vsub.f32 %v10714_v18, %v5947_v30  ;;  %v5970_v55 = vsub.f32 %v10723_v38, %v5947_v30  ;;  %v6594_v30 = vld [vmem:[%s10810_s6] ss:$0 sm:$0xff] }
 0x3aa   :  { %v2823_v44 = vunpack.c.l.bf16 %v10869_v2  ;;  %v2824_v11 = vunpack.c.l.bf16 %v10870_v8  ;;  %v2825_v33 = vunpack.c.l.bf16 %v10871_v46  ;;  %v2828_v38 = vunpack.c.l.bf16 %v10874_v3 }
 0x3ab   :  { %v5952_v34 = vadd.f32 1e-05, %v5951_v63  ;;  %v2829_v21 = vunpack.c.l.bf16 %v10875_v49 }
 0x3ad   :  { %7685 = vrsqrt.f32 %v5952_v34 }
 0x3b7   :  { %v7686_v29 = vpop.eup %7685 }
 0x3b8   :  { %v5954_v18 = vmul.f32 %v7686_v29, %v5887_v37 }
 0x3ba   :  { %v5974_v9 = vrot.slane %v5954_v18, %v10881_v24 }
 0x3bc   :  { %v5975_v52 = vmul.f32 %v5974_v9, %v5955_v58  ;;  %v5976_v17 = vmul.f32 %v5974_v9, %v5956_v60  ;;  %v5977_v53 = vmul.f32 %v5974_v9, %v5957_v25  ;;  %v5978_v4 = vmul.f32 %v5974_v9, %v5958_v57 }
 0x3bd   :  { %v5979_v28 = vmul.f32 %v5974_v9, %v5959_v56  ;;  %v5980_v50 = vmul.f32 %v5974_v9, %v5960_v61  ;;  %v5981_v59 = vmul.f32 %v5974_v9, %v5961_v26  ;;  %v5982_v62 = vmul.f32 %v5974_v9, %v5962_v27 }
 0x3be   :  { %v5983_v63 = vmul.f32 %v5974_v9, %v5963_v51  ;;  %v5984_v34 = vmul.f32 %v5974_v9, %v5964_v20  ;;  %v5985_v37 = vmul.f32 %v5974_v9, %v5965_v16  ;;  %v5986_v29 = vmul.f32 %v5974_v9, %v5966_v40 }
 0x3bf   :  { %v5987_v2 = vmul.f32 %v5974_v9, %v5967_v14  ;;  %v5988_v6 = vmul.f32 %v5974_v9, %v5968_v43  ;;  %v5989_v8 = vmul.f32 %v5974_v9, %v5969_v32  ;;  %v5990_v39 = vmul.f32 %v5974_v9, %v5970_v55 }
 0x3c0   :  { %v5997_v58 = vadd.f32 %v6594_v30, %v5975_v52  ;;  %v5998_v60 = vadd.f32 %v6594_v30, %v5976_v17  ;;  %v5999_v25 = vadd.f32 %v6594_v30, %v5977_v53  ;;  %v6000_v57 = vadd.f32 %v6594_v30, %v5978_v4 }
 0x3c1   :  { %v6001_v46 = vadd.f32 %v6594_v30, %v5979_v28  ;;  %v6002_v13 = vadd.f32 %v6594_v30, %v5980_v50  ;;  %v6003_v42 = vadd.f32 %v6594_v30, %v5981_v59  ;;  %v6004_v18 = vadd.f32 %v6594_v30, %v5982_v62 }
 0x3c2   :  { %v6005_v56 = vadd.f32 %v6594_v30, %v5983_v63  ;;  %v6006_v61 = vadd.f32 %v6594_v30, %v5984_v34  ;;  %v6007_v26 = vadd.f32 %v6594_v30, %v5985_v37  ;;  %v6008_v27 = vadd.f32 %v6594_v30, %v5986_v29 }
 0x3c3   :  { %v6009_v51 = vadd.f32 %v6594_v30, %v5987_v2  ;;  %v6010_v20 = vadd.f32 %v6594_v30, %v5988_v6  ;;  %v6011_v16 = vadd.f32 %v6594_v30, %v5989_v8  ;;  %v6012_v40 = vadd.f32 %v6594_v30, %v5990_v39 }
 0x3c4   :  { %v6013_v14 = vadd.f32 %v5997_v58, %v2823_v44  ;;  %v6014_v43 = vadd.f32 %v5998_v60, %v2824_v11  ;;  %v6015_v32 = vadd.f32 %v5999_v25, %v2825_v33  ;;  %v6016_v55 = vadd.f32 %v6000_v57, %v2826_v0 }
 0x3c5   :  { %v6017_v3 = vadd.f32 %v6001_v46, %v2827_v36  ;;  %v6018_v49 = vadd.f32 %v6002_v13, %v2828_v38  ;;  %v6019_v1 = vadd.f32 %v6003_v42, %v2829_v21  ;;  %v6020_v35 = vadd.f32 %v6004_v18, %v2830_v47 }
 0x3c6   :  { %v6021_v45 = vadd.f32 %v6005_v56, %v2831_v7  ;;  %v6022_v19 = vadd.f32 %v6006_v61, %v2832_v23  ;;  %v6023_v22 = vadd.f32 %v6007_v26, %v2833_v5  ;;  %v6024_v24 = vadd.f32 %v6008_v27, %v2834_v48 }
 0x3c7   :  { %v6025_v9 = vadd.f32 %v6009_v51, %v2835_v12  ;;  %v6026_v15 = vadd.f32 %v6010_v20, %v2836_v54  ;;  %v6027_v10 = vadd.f32 %v6011_v16, %v2837_v31  ;;  %v6028_v52 = vadd.f32 %v6012_v40, %v2838_v41 }
 0x3c8   :  { %v6029_v17 = vmul.f32 0.01, %v6013_v14  ;;  %v6030_v53 = vmul.f32 0.01, %v6014_v43  ;;  %v6031_v4 = vmul.f32 0.01, %v6015_v32 }
 0x3c9   :  { %v6032_v30 = vmul.f32 0.01, %v6016_v55  ;;  %v6033_v44 = vmul.f32 0.01, %v6017_v3  ;;  %v6034_v11 = vmul.f32 0.01, %v6018_v49 }
 0x3ca   :  { %v6035_v33 = vmul.f32 0.01, %v6019_v1  ;;  %v6036_v0 = vmul.f32 0.01, %v6020_v35  ;;  %v6037_v36 = vmul.f32 0.01, %v6021_v45  ;;  %v6045_v38 = vmax.f32 %v6013_v14, %v6029_v17 }
 0x3cb   :  { %v6038_v21 = vmul.f32 0.01, %v6022_v19  ;;  %v6039_v47 = vmul.f32 0.01, %v6023_v22  ;;  %v6040_v7 = vmul.f32 0.01, %v6024_v24  ;;  %v6046_v23 = vmax.f32 %v6014_v43, %v6030_v53 }
 0x3cc   :  { %v6041_v5 = vmul.f32 0.01, %v6025_v9  ;;  %v6042_v48 = vmul.f32 0.01, %v6026_v15  ;;  %v6043_v12 = vmul.f32 0.01, %v6027_v10  ;;  %v6047_v54 = vmax.f32 %v6015_v32, %v6031_v4 }
 0x3cd   :  { %v6044_v31 = vmul.f32 0.01, %v6028_v52  ;;  %v6048_v41 = vmax.f32 %v6016_v55, %v6032_v30  ;;  %v6049_v28 = vmax.f32 %v6017_v3, %v6033_v44  ;;  %v6050_v50 = vmax.f32 %v6018_v49, %v6034_v11 }
 0x3ce   :  { %v6051_v59 = vmax.f32 %v6019_v1, %v6035_v33  ;;  %v6052_v62 = vmax.f32 %v6020_v35, %v6036_v0  ;;  %v6053_v63 = vmax.f32 %v6021_v45, %v6037_v36  ;;  %v6054_v34 = vmax.f32 %v6022_v19, %v6038_v21 }
 0x3cf   :  { %v6055_v37 = vmax.f32 %v6023_v22, %v6039_v47  ;;  %v6056_v29 = vmax.f32 %v6024_v24, %v6040_v7  ;;  %v6057_v2 = vmax.f32 %v6025_v9, %v6041_v5  ;;  %v6058_v6 = vmax.f32 %v6026_v15, %v6042_v48 }
 0x3d0   :  { %v6059_v8 = vmax.f32 %v6027_v10, %v6043_v12  ;;  %v6060_v39 = vmax.f32 %v6028_v52, %v6044_v31  ;;  %v6614_v58 = vpack.c.bf16 %v6046_v23, %v6045_v38  ;;  %v6619_v60 = vpack.c.bf16 %v6048_v41, %v6047_v54 }
 0x3d1   :  { %v6624_v25 = vpack.c.bf16 %v6050_v50, %v6049_v28  ;;  %v6629_v57 = vpack.c.bf16 %v6052_v62, %v6051_v59  ;;  %v6634_v46 = vpack.c.bf16 %v6054_v34, %v6053_v63  ;;  %v6639_v13 = vpack.c.bf16 %v6056_v29, %v6055_v37 }
 0x3d2   :  { %6615 = vst [vmem:[%s10811_s7] sm:$0xff] %v6614_v58   ;;  %6651 = vst [vmem:[%s10811_s7 + $0x8] sm:$0xff] %v6619_v60   ;;  %v6644_v42 = vpack.c.bf16 %v6058_v6, %v6057_v2  ;;  %v6649_v18 = vpack.c.bf16 %v6060_v39, %v6059_v8 }
 0x3d3   :  { %6652 = vst [vmem:[%s10811_s7 + $0x10] sm:$0xff] %v6624_v25   ;;  %6653 = vst [vmem:[%s10811_s7 + $0x18] sm:$0xff] %v6629_v57  }
 0x3d4   :  { %6654 = vst [vmem:[%s10811_s7 + $0x20] sm:$0xff] %v6634_v46   ;;  %6655 = vst [vmem:[%s10811_s7 + $0x28] sm:$0xff] %v6639_v13  }
 0x3d5   :  { %6656 = vst [vmem:[%s10811_s7 + $0x30] sm:$0xff] %v6644_v42   ;;  %6657 = vst [vmem:[%s10811_s7 + $0x38] sm:$0xff] %v6649_v18  }

</bundles_post_ra>
